<compile_context>
chip_gen: v5e
topology: v5e:2x2
jax: 0.10.0
libtpu: 0.0.40
codegen_flags: <defaults>
</compile_context>

<pallas_src>
import functools

import jax
import jax.numpy as jnp
from jax.experimental import pallas as pl
from jax.experimental.pallas import tpu as pltpu

EPS = 1e-5  # PyTorch BatchNorm1d default eps


# ---------------------------------------------------------------------------
# The single fused forward kernel
# ---------------------------------------------------------------------------
def _forward_kernel(*refs, dims):
    (NB, Lh, L0, Lv1, L1, P, Cin, C, K0, K1) = dims
    (xp, w0, cb0, w1, cb1, d1, g1, be1,
     a_w0, a_b0, a_g0, a_be0, a_w1, a_b1, a_g1, a_be1,
     b_w0, b_b0, b_g0, b_be0, b_w1, b_b1, b_g1, b_be1,
     l1w, l1b, l2w, l2b,
     out_ref, a0_ref, ap_ref, hp_ref) = refs

    f32 = jnp.float32
    Lp = L1 + 2  # padded length for the kernel-3 / pad-1 block convs

    # ---- training-mode BatchNorm1d over all (batch, position) rows + affine
    #      (+ optional residual) + optional ReLU, fully in registers.
    def bn_relu(hs, g_ref, be_ref, residuals=None, relu=True):
        n = float(sum(h.shape[0] for h in hs))
        tot = hs[0].sum(axis=0, keepdims=True)
        for h in hs[1:]:
            tot = tot + h.sum(axis=0, keepdims=True)
        mean = tot / n
        sq = ((hs[0] - mean) ** 2).sum(axis=0, keepdims=True)
        for h in hs[1:]:
            sq = sq + ((h - mean) ** 2).sum(axis=0, keepdims=True)
        var = sq / n                                   # biased, like PyTorch train()
        scale = g_ref[...] * jax.lax.rsqrt(var + EPS)  # (1, C)
        shift = be_ref[...] - mean * scale             # (1, C)
        outs = []
        for i, h in enumerate(hs):
            y = h * scale + shift
            if residuals is not None:
                y = y + residuals[i]
            if relu:
                y = jnp.maximum(y, 0.0)
            outs.append(y)
        return outs

    # ---- kernel-size-3, stride-1, pad-1 conv on per-batch (L1, C) activations.
    #      Uses a small zero-padded VMEM scratch so tap slices are plain pl.ds reads.
    def conv3x1(hs, w_ref, b_ref):
        outs = []
        for b, h in enumerate(hs):
            base = b * Lp
            ap_ref[pl.ds(base, Lp), :] = jnp.zeros((Lp, C), f32)
            ap_ref[pl.ds(base + 1, L1), :] = h
            acc = jnp.zeros((L1, C), f32)
            for k in range(3):
                acc = acc + jnp.dot(ap_ref[pl.ds(base + k, L1), :],
                                    w_ref[pl.ds(k * C, C), :],
                                    preferred_element_type=f32)
            outs.append(acc + b_ref[...])
        return outs

    # ---- conv0 (K=44, stride=2) + bias + ReLU  -> a0_ref
    # Input was pair-merged in the wrapper: xp[b*Lh + r, j*Cin + c] = x[b, 2r+j, c],
    # so the stride-2 conv becomes a stride-1 conv with K0/2 merged taps.
    for b in range(NB):
        acc = jnp.zeros((L0, C), f32)
        for m in range(K0 // 2):
            acc = acc + jnp.dot(xp[pl.ds(b * Lh + m, L0), :],
                                w0[pl.ds(m * 2 * Cin, 2 * Cin), :],
                                preferred_element_type=f32)
        a0_ref[pl.ds(b * L0, L0), :] = jnp.maximum(acc + cb0[...], 0.0)

    # ---- conv1 (K=20, stride=2) + bias
    # Dense (stride-1) tap accumulation, then stride-2 row selection via a tiny
    # constant matrix matmul (d1), then bias.
    h = []
    for b in range(NB):
        acc = jnp.zeros((Lv1, C), f32)
        for k in range(K1):
            acc = acc + jnp.dot(a0_ref[pl.ds(b * L0 + k, Lv1), :],
                                w1[pl.ds(k * C, C), :],
                                preferred_element_type=f32)
        acc = jnp.dot(d1[...], acc, preferred_element_type=f32)  # (L1, Lv1) @ (Lv1, C)
        h.append(acc + cb1[...])

    # ---- bn1 + ReLU
    h = bn_relu(h, g1, be1)

    # ---- BasicBlock 1
    res = h
    h = bn_relu(conv3x1(h, a_w0, a_b0), a_g0, a_be0)
    h = bn_relu(conv3x1(h, a_w1, a_b1), a_g1, a_be1, residuals=res)

    # ---- BasicBlock 2
    res = h
    h = bn_relu(conv3x1(h, b_w0, b_b0), b_g0, b_be0)
    h = bn_relu(conv3x1(h, b_w1, b_b1), b_g1, b_be1, residuals=res)

    # ---- AvgPool1d(10) + channel-major flatten + Linear(.,200) + ReLU + Linear(200,out)
    # The flatten never materialises: linear1's weight was pre-reordered to
    # position-major, so we accumulate one (1,C)x(C,200) matmul per pooled window.
    for b in range(NB):
        hp_ref[pl.ds(b * L1, L1), :] = h[b]
    for b in range(NB):
        z = l1b[...]
        for p in range(P):
            pooled = jnp.mean(hp_ref[pl.ds(b * L1 + 10 * p, 10), :],
                              axis=0, keepdims=True)                 # (1, C)
            z = z + jnp.dot(pooled, l1w[pl.ds(p * C, C), :],
                            preferred_element_type=f32)
        z = jnp.maximum(z, 0.0)                                      # relu2
        out_ref[pl.ds(b, 1), :] = (jnp.dot(z, l2w[...], preferred_element_type=f32)
                                   + l2b[...])


# ---------------------------------------------------------------------------
# Parameter packing (done ONCE, outside the jitted forward)
# ---------------------------------------------------------------------------
def pack_params(params, win_size, in_channels):
    C = params["conv0_w"].shape[0]          # filter_num
    Cin = in_channels
    K0 = params["conv0_w"].shape[2]
    K1 = params["conv1_w"].shape[2]
    L0 = (win_size - K0) // 2 + 1
    Lv1 = L0 - K1 + 1
    L1 = (L0 - K1) // 2 + 1
    P = L1 // 10
    hidden = params["lin1_w"].shape[0]
    out_fea = params["lin2_w"].shape[0]
    assert K0 % 2 == 0 and L0 >= 1 and L1 >= 1 and P >= 1

    def conv_flat(w):   # (Cout, Cin, K) -> (K*Cin, Cout), tap-major rows
        Co, Ci, K = w.shape
        return jnp.transpose(w, (2, 1, 0)).reshape(K * Ci, Co).astype(jnp.float32)

    def row(v):         # (N,) -> (1, N)
        return v.reshape(1, -1).astype(jnp.float32)

    # stride-2 row-selection matrix for conv1: d1[l, j] = (j == 2*l)
    d1 = (jnp.arange(Lv1)[None, :] == 2 * jnp.arange(L1)[:, None]).astype(jnp.float32)

    # linear1 weight reordered from PyTorch channel-major flatten (c*P + p)
    # to position-major (p*C + c) so the kernel can slice it contiguously.
    l1w_r = jnp.transpose(params["lin1_w"].reshape(hidden, C, P),
                          (2, 1, 0)).reshape(P * C, hidden).astype(jnp.float32)

    b1p, b2p = params["block1"], params["block2"]
    ops = (
        conv_flat(params["conv0_w"]), row(params["conv0_b"]),
        conv_flat(params["conv1_w"]), row(params["conv1_b"]), d1,
        row(params["bn1_g"]), row(params["bn1_b"]),
        conv_flat(b1p["w0"]), row(b1p["b0"]), row(b1p["g0"]), row(b1p["be0"]),
        conv_flat(b1p["w1"]), row(b1p["b1"]), row(b1p["g1"]), row(b1p["be1"]),
        conv_flat(b2p["w0"]), row(b2p["b0"]), row(b2p["g0"]), row(b2p["be0"]),
        conv_flat(b2p["w1"]), row(b2p["b1"]), row(b2p["g1"]), row(b2p["be1"]),
        l1w_r, row(params["lin1_b"]),
        params["lin2_w"].T.astype(jnp.float32), row(params["lin2_b"]),
    )
    dims = dict(win_size=win_size, Cin=Cin, C=C, K0=K0, K1=K1,
                L0=L0, Lv1=Lv1, L1=L1, P=P, hidden=hidden, out_fea=out_fea)
    return ops, dims


# ---------------------------------------------------------------------------
# Forward wrapper: one pallas_call for the whole model
# ---------------------------------------------------------------------------
def make_forward(dims):
    C, Cin = dims["C"], dims["Cin"]
    K0, K1 = dims["K0"], dims["K1"]
    L0, Lv1, L1, P = dims["L0"], dims["Lv1"], dims["L1"], dims["P"]
    out_fea = dims["out_fea"]
    win_size = dims["win_size"]

    def fwd(ops, x):
        # x: (B, win_size, in_channels) — PyTorch's permute(0,2,1) is absorbed
        # by the channel-last layout used throughout.
        NB, L, _ = x.shape
        assert L == win_size
        Lpad = L + (L % 2)
        if Lpad != L:
            x = jnp.pad(x, ((0, 0), (0, Lpad - L), (0, 0)))
        Lh = Lpad // 2
        # pair-merge rows: xp[b*Lh + r, j*Cin + c] = x[b, 2r + j, c]  (free reshape)
        xp = x.astype(jnp.float32).reshape(NB, Lh, 2 * Cin).reshape(NB * Lh, 2 * Cin)

        kdims = (NB, Lh, L0, Lv1, L1, P, Cin, C, K0, K1)
        n_in = 1 + len(ops)
        return pl.pallas_call(
            functools.partial(_forward_kernel, dims=kdims),
            out_shape=jax.ShapeDtypeStruct((NB, out_fea), jnp.float32),
            in_specs=[pl.BlockSpec(memory_space=pltpu.MemorySpace.VMEM)
                      for _ in range(n_in)],
            out_specs=pl.BlockSpec(memory_space=pltpu.MemorySpace.VMEM),
            scratch_shapes=[
                pltpu.VMEM((NB * L0, C), jnp.float32),        # conv0 output
                pltpu.VMEM((NB * (L1 + 2), C), jnp.float32),  # padded block-conv buffer
                pltpu.VMEM((NB * L1, C), jnp.float32),        # block2 output (for pooling)
            ],
        )(xp, *ops)

    return jax.jit(fwd)


# ---------------------------------------------------------------------------
# Deterministic parameter init (shapes from Discriminator_ResNet.__init__)
# ---------------------------------------------------------------------------
def init_params(key, win_size, in_channels, out_fea=1, filter_num=10):
    L0 = (win_size - 44) // 2 + 1
    L1 = (L0 - 20) // 2 + 1
    P = L1 // 10
    flat = filter_num * P                       # linear1 in_features (lazily built in PyTorch)

    keys = iter(jax.random.split(key, 32))

    def normal(shape, std=1.0):
        return std * jax.random.normal(next(keys), shape, dtype=jnp.float32)

    def block_params():
        return dict(
            w0=normal((filter_num, filter_num, 3), 0.1),
            b0=normal((filter_num,), 0.1),
            g0=jnp.ones((filter_num,), jnp.float32),
            be0=jnp.zeros((filter_num,), jnp.float32),
            w1=normal((filter_num, filter_num, 3), 0.1),
            b1=normal((filter_num,), 0.1),
            g1=jnp.ones((filter_num,), jnp.float32),
            be1=jnp.zeros((filter_num,), jnp.float32),
        )

    return dict(
        conv0_w=normal((filter_num, in_channels, 44), 1.0),   # nn.init.normal_(0,1)
        conv0_b=normal((filter_num,), 0.1),
        conv1_w=normal((filter_num, filter_num, 20), 1.0),    # nn.init.normal_(0,1)
        conv1_b=normal((filter_num,), 0.1),
        bn1_g=jnp.ones((filter_num,), jnp.float32),
        bn1_b=jnp.zeros((filter_num,), jnp.float32),
        block1=block_params(),
        block2=block_params(),
        lin1_w=normal((200, flat), 1.0),                      # lazily-built linear1, N(0,1)
        lin1_b=normal((200,), 1.0),
        lin2_w=normal((out_fea, 200), 0.1),
        lin2_b=normal((out_fea,), 1.0),                       # nn.init.normal_(0,1)
    )


# ---------------------------------------------------------------------------
# Pure-JAX reference (mirrors the PyTorch forward) for a correctness check
# ---------------------------------------------------------------------------
def _ref_conv1d(x_blc, w, b, stride=1, padding=0):
    Bn, L, Cin = x_blc.shape
    Cout, _, K = w.shape
    if padding:
        x_blc = jnp.pad(x_blc, ((0, 0), (padding, padding), (0, 0)))
        L = L + 2 * padding
    Lout = (L - K) // stride + 1
    idx = jnp.arange(Lout)[:, None] * stride + jnp.arange(K)[None, :]
    patches = x_blc[:, idx, :]                                     # (B, Lout, K, Cin)
    patches = jnp.transpose(patches, (0, 1, 3, 2)).reshape(Bn, Lout, Cin * K)
    return patches @ w.reshape(Cout, Cin * K).T + b


def _ref_bn(x_blc, g, be):
    mean = jnp.mean(x_blc, axis=(0, 1), keepdims=True)
    var = jnp.mean((x_blc - mean) ** 2, axis=(0, 1), keepdims=True)
    return (x_blc - mean) * jax.lax.rsqrt(var + EPS) * g + be


def reference_forward(params, x):
    h = jax.nn.relu(_ref_conv1d(x, params["conv0_w"], params["conv0_b"], stride=2))
    h = _ref_conv1d(h, params["conv1_w"], params["conv1_b"], stride=2)
    h = jax.nn.relu(_ref_bn(h, params["bn1_g"], params["bn1_b"]))
    for blk in ("block1", "block2"):
        p = params[blk]
        r = h
        o = jax.nn.relu(_ref_bn(_ref_conv1d(h, p["w0"], p["b0"], padding=1),
                                p["g0"], p["be0"]))
        o = _ref_bn(_ref_conv1d(o, p["w1"], p["b1"], padding=1),
                    p["g1"], p["be1"]) + r
        h = jax.nn.relu(o)
    Bn, L1, C = h.shape
    P = L1 // 10
    pooled = jnp.mean(h[:, :P * 10, :].reshape(Bn, P, 10, C), axis=2)   # (B, P, C)
    flat = jnp.transpose(pooled, (0, 2, 1)).reshape(Bn, C * P)          # channel-major
    z = jax.nn.relu(flat @ params["lin1_w"].T + params["lin1_b"])
    return z @ params["lin2_w"].T + params["lin2_b"]


if __name__ == "__main__":
    B, win_size, in_channels, out_fea = 2, 128, 4, 1
    key = jax.random.PRNGKey(0)
    pkey, xkey = jax.random.split(key)
    params = init_params(pkey, win_size, in_channels, out_fea)
    x = jax.random.normal(xkey, (B, win_size, in_channels), dtype=jnp.float32)

    ops, dims = pack_params(params, win_size, in_channels)
    fwd = make_forward(dims)
    out = jax.block_until_ready(fwd(ops, x))

    assert out.shape == (B, out_fea), out.shape
    assert bool(jnp.all(jnp.isfinite(out)))

    ref = jax.block_until_ready(jax.jit(reference_forward)(params, x))
    err = float(jnp.max(jnp.abs(out - ref)))
    scale = float(jnp.max(jnp.abs(ref))) + 1e-6
    assert err <= 2e-2 * scale + 1e-2, (err, scale)

    print("KERNEL_OK")
</pallas_src>

<mosaic_0001>
module attributes {stable_mosaic.version = 11 : i64} {
  func.func @_forward_kernel(%arg0: memref<128x8xf32, #tpu.memory_space<vmem>>, %arg1: memref<176x10xf32, #tpu.memory_space<vmem>>, %arg2: memref<1x10xf32, #tpu.memory_space<vmem>>, %arg3: memref<200x10xf32, #tpu.memory_space<vmem>>, %arg4: memref<1x10xf32, #tpu.memory_space<vmem>>, %arg5: memref<12x24xf32, #tpu.memory_space<vmem>>, %arg6: memref<1x10xf32, #tpu.memory_space<vmem>>, %arg7: memref<1x10xf32, #tpu.memory_space<vmem>>, %arg8: memref<30x10xf32, #tpu.memory_space<vmem>>, %arg9: memref<1x10xf32, #tpu.memory_space<vmem>>, %arg10: memref<1x10xf32, #tpu.memory_space<vmem>>, %arg11: memref<1x10xf32, #tpu.memory_space<vmem>>, %arg12: memref<30x10xf32, #tpu.memory_space<vmem>>, %arg13: memref<1x10xf32, #tpu.memory_space<vmem>>, %arg14: memref<1x10xf32, #tpu.memory_space<vmem>>, %arg15: memref<1x10xf32, #tpu.memory_space<vmem>>, %arg16: memref<30x10xf32, #tpu.memory_space<vmem>>, %arg17: memref<1x10xf32, #tpu.memory_space<vmem>>, %arg18: memref<1x10xf32, #tpu.memory_space<vmem>>, %arg19: memref<1x10xf32, #tpu.memory_space<vmem>>, %arg20: memref<30x10xf32, #tpu.memory_space<vmem>>, %arg21: memref<1x10xf32, #tpu.memory_space<vmem>>, %arg22: memref<1x10xf32, #tpu.memory_space<vmem>>, %arg23: memref<1x10xf32, #tpu.memory_space<vmem>>, %arg24: memref<10x200xf32, #tpu.memory_space<vmem>>, %arg25: memref<1x200xf32, #tpu.memory_space<vmem>>, %arg26: memref<200x1xf32, #tpu.memory_space<vmem>>, %arg27: memref<1x1xf32, #tpu.memory_space<vmem>>, %arg28: memref<2x1xf32, #tpu.memory_space<vmem>>, %arg29: memref<86x10xf32, #tpu.memory_space<vmem>>, %arg30: memref<28x10xf32, #tpu.memory_space<vmem>>, %arg31: memref<24x10xf32, #tpu.memory_space<vmem>>) attributes {dimension_semantics = [], scalar_prefetch = 0 : i64, scratch_operands = 3 : i64, tpu.core_type = #tpu.core_type<tc>} {
    %cst = arith.constant 0.000000e+00 : f32
    %0 = vector.broadcast %cst : f32 to vector<43x10xf32>
    %c0 = arith.constant 0 : index
    %c0_0 = arith.constant 0 : index
    %1 = vector.load %arg0[%c0, %c0_0] : memref<128x8xf32, #tpu.memory_space<vmem>>, vector<43x8xf32>
    %c0_1 = arith.constant 0 : index
    %c0_2 = arith.constant 0 : index
    %2 = vector.load %arg1[%c0_1, %c0_2] : memref<176x10xf32, #tpu.memory_space<vmem>>, vector<8x10xf32>
    %cst_3 = arith.constant dense<0.000000e+00> : vector<43x10xf32>
    %3 = tpu.matmul %1, %2, %cst_3 {dimension_numbers = #tpu.dot_dimension_numbers<[1], [0], [0], [1], [0, 0, 1, 1], [], []>} : vector<43x8xf32>, vector<8x10xf32>, vector<43x10xf32> -> vector<43x10xf32>
    %4 = arith.addf %0, %3 : vector<43x10xf32>
    %c1 = arith.constant 1 : index
    %c0_4 = arith.constant 0 : index
    %5 = vector.load %arg0[%c1, %c0_4] : memref<128x8xf32, #tpu.memory_space<vmem>>, vector<43x8xf32>
    %c8 = arith.constant 8 : index
    %c0_5 = arith.constant 0 : index
    %6 = vector.load %arg1[%c8, %c0_5] : memref<176x10xf32, #tpu.memory_space<vmem>>, vector<8x10xf32>
    %cst_6 = arith.constant dense<0.000000e+00> : vector<43x10xf32>
    %7 = tpu.matmul %5, %6, %cst_6 {dimension_numbers = #tpu.dot_dimension_numbers<[1], [0], [0], [1], [0, 0, 1, 1], [], []>} : vector<43x8xf32>, vector<8x10xf32>, vector<43x10xf32> -> vector<43x10xf32>
    %8 = arith.addf %4, %7 : vector<43x10xf32>
    %c2 = arith.constant 2 : index
    %c0_7 = arith.constant 0 : index
    %9 = vector.load %arg0[%c2, %c0_7] : memref<128x8xf32, #tpu.memory_space<vmem>>, vector<43x8xf32>
    %c16 = arith.constant 16 : index
    %c0_8 = arith.constant 0 : index
    %10 = vector.load %arg1[%c16, %c0_8] : memref<176x10xf32, #tpu.memory_space<vmem>>, vector<8x10xf32>
    %cst_9 = arith.constant dense<0.000000e+00> : vector<43x10xf32>
    %11 = tpu.matmul %9, %10, %cst_9 {dimension_numbers = #tpu.dot_dimension_numbers<[1], [0], [0], [1], [0, 0, 1, 1], [], []>} : vector<43x8xf32>, vector<8x10xf32>, vector<43x10xf32> -> vector<43x10xf32>
    %12 = arith.addf %8, %11 : vector<43x10xf32>
    %c3 = arith.constant 3 : index
    %c0_10 = arith.constant 0 : index
    %13 = vector.load %arg0[%c3, %c0_10] : memref<128x8xf32, #tpu.memory_space<vmem>>, vector<43x8xf32>
    %c24 = arith.constant 24 : index
    %c0_11 = arith.constant 0 : index
    %14 = vector.load %arg1[%c24, %c0_11] : memref<176x10xf32, #tpu.memory_space<vmem>>, vector<8x10xf32>
    %cst_12 = arith.constant dense<0.000000e+00> : vector<43x10xf32>
    %15 = tpu.matmul %13, %14, %cst_12 {dimension_numbers = #tpu.dot_dimension_numbers<[1], [0], [0], [1], [0, 0, 1, 1], [], []>} : vector<43x8xf32>, vector<8x10xf32>, vector<43x10xf32> -> vector<43x10xf32>
    %16 = arith.addf %12, %15 : vector<43x10xf32>
    %c4 = arith.constant 4 : index
    %c0_13 = arith.constant 0 : index
    %17 = vector.load %arg0[%c4, %c0_13] : memref<128x8xf32, #tpu.memory_space<vmem>>, vector<43x8xf32>
    %c32 = arith.constant 32 : index
    %c0_14 = arith.constant 0 : index
    %18 = vector.load %arg1[%c32, %c0_14] : memref<176x10xf32, #tpu.memory_space<vmem>>, vector<8x10xf32>
    %cst_15 = arith.constant dense<0.000000e+00> : vector<43x10xf32>
    %19 = tpu.matmul %17, %18, %cst_15 {dimension_numbers = #tpu.dot_dimension_numbers<[1], [0], [0], [1], [0, 0, 1, 1], [], []>} : vector<43x8xf32>, vector<8x10xf32>, vector<43x10xf32> -> vector<43x10xf32>
    %20 = arith.addf %16, %19 : vector<43x10xf32>
    %c5 = arith.constant 5 : index
    %c0_16 = arith.constant 0 : index
    %21 = vector.load %arg0[%c5, %c0_16] : memref<128x8xf32, #tpu.memory_space<vmem>>, vector<43x8xf32>
    %c40 = arith.constant 40 : index
    %c0_17 = arith.constant 0 : index
    %22 = vector.load %arg1[%c40, %c0_17] : memref<176x10xf32, #tpu.memory_space<vmem>>, vector<8x10xf32>
    %cst_18 = arith.constant dense<0.000000e+00> : vector<43x10xf32>
    %23 = tpu.matmul %21, %22, %cst_18 {dimension_numbers = #tpu.dot_dimension_numbers<[1], [0], [0], [1], [0, 0, 1, 1], [], []>} : vector<43x8xf32>, vector<8x10xf32>, vector<43x10xf32> -> vector<43x10xf32>
    %24 = arith.addf %20, %23 : vector<43x10xf32>
    %c6 = arith.constant 6 : index
    %c0_19 = arith.constant 0 : index
    %25 = vector.load %arg0[%c6, %c0_19] : memref<128x8xf32, #tpu.memory_space<vmem>>, vector<43x8xf32>
    %c48 = arith.constant 48 : index
    %c0_20 = arith.constant 0 : index
    %26 = vector.load %arg1[%c48, %c0_20] : memref<176x10xf32, #tpu.memory_space<vmem>>, vector<8x10xf32>
    %cst_21 = arith.constant dense<0.000000e+00> : vector<43x10xf32>
    %27 = tpu.matmul %25, %26, %cst_21 {dimension_numbers = #tpu.dot_dimension_numbers<[1], [0], [0], [1], [0, 0, 1, 1], [], []>} : vector<43x8xf32>, vector<8x10xf32>, vector<43x10xf32> -> vector<43x10xf32>
    %28 = arith.addf %24, %27 : vector<43x10xf32>
    %c7 = arith.constant 7 : index
    %c0_22 = arith.constant 0 : index
    %29 = vector.load %arg0[%c7, %c0_22] : memref<128x8xf32, #tpu.memory_space<vmem>>, vector<43x8xf32>
    %c56 = arith.constant 56 : index
    %c0_23 = arith.constant 0 : index
    %30 = vector.load %arg1[%c56, %c0_23] : memref<176x10xf32, #tpu.memory_space<vmem>>, vector<8x10xf32>
    %cst_24 = arith.constant dense<0.000000e+00> : vector<43x10xf32>
    %31 = tpu.matmul %29, %30, %cst_24 {dimension_numbers = #tpu.dot_dimension_numbers<[1], [0], [0], [1], [0, 0, 1, 1], [], []>} : vector<43x8xf32>, vector<8x10xf32>, vector<43x10xf32> -> vector<43x10xf32>
    %32 = arith.addf %28, %31 : vector<43x10xf32>
    %c8_25 = arith.constant 8 : index
    %c0_26 = arith.constant 0 : index
    %33 = vector.load %arg0[%c8_25, %c0_26] : memref<128x8xf32, #tpu.memory_space<vmem>>, vector<43x8xf32>
    %c64 = arith.constant 64 : index
    %c0_27 = arith.constant 0 : index
    %34 = vector.load %arg1[%c64, %c0_27] : memref<176x10xf32, #tpu.memory_space<vmem>>, vector<8x10xf32>
    %cst_28 = arith.constant dense<0.000000e+00> : vector<43x10xf32>
    %35 = tpu.matmul %33, %34, %cst_28 {dimension_numbers = #tpu.dot_dimension_numbers<[1], [0], [0], [1], [0, 0, 1, 1], [], []>} : vector<43x8xf32>, vector<8x10xf32>, vector<43x10xf32> -> vector<43x10xf32>
    %36 = arith.addf %32, %35 : vector<43x10xf32>
    %c9 = arith.constant 9 : index
    %c0_29 = arith.constant 0 : index
    %37 = vector.load %arg0[%c9, %c0_29] : memref<128x8xf32, #tpu.memory_space<vmem>>, vector<43x8xf32>
    %c72 = arith.constant 72 : index
    %c0_30 = arith.constant 0 : index
    %38 = vector.load %arg1[%c72, %c0_30] : memref<176x10xf32, #tpu.memory_space<vmem>>, vector<8x10xf32>
    %cst_31 = arith.constant dense<0.000000e+00> : vector<43x10xf32>
    %39 = tpu.matmul %37, %38, %cst_31 {dimension_numbers = #tpu.dot_dimension_numbers<[1], [0], [0], [1], [0, 0, 1, 1], [], []>} : vector<43x8xf32>, vector<8x10xf32>, vector<43x10xf32> -> vector<43x10xf32>
    %40 = arith.addf %36, %39 : vector<43x10xf32>
    %c10 = arith.constant 10 : index
    %c0_32 = arith.constant 0 : index
    %41 = vector.load %arg0[%c10, %c0_32] : memref<128x8xf32, #tpu.memory_space<vmem>>, vector<43x8xf32>
    %c80 = arith.constant 80 : index
    %c0_33 = arith.constant 0 : index
    %42 = vector.load %arg1[%c80, %c0_33] : memref<176x10xf32, #tpu.memory_space<vmem>>, vector<8x10xf32>
    %cst_34 = arith.constant dense<0.000000e+00> : vector<43x10xf32>
    %43 = tpu.matmul %41, %42, %cst_34 {dimension_numbers = #tpu.dot_dimension_numbers<[1], [0], [0], [1], [0, 0, 1, 1], [], []>} : vector<43x8xf32>, vector<8x10xf32>, vector<43x10xf32> -> vector<43x10xf32>
    %44 = arith.addf %40, %43 : vector<43x10xf32>
    %c11 = arith.constant 11 : index
    %c0_35 = arith.constant 0 : index
    %45 = vector.load %arg0[%c11, %c0_35] : memref<128x8xf32, #tpu.memory_space<vmem>>, vector<43x8xf32>
    %c88 = arith.constant 88 : index
    %c0_36 = arith.constant 0 : index
    %46 = vector.load %arg1[%c88, %c0_36] : memref<176x10xf32, #tpu.memory_space<vmem>>, vector<8x10xf32>
    %cst_37 = arith.constant dense<0.000000e+00> : vector<43x10xf32>
    %47 = tpu.matmul %45, %46, %cst_37 {dimension_numbers = #tpu.dot_dimension_numbers<[1], [0], [0], [1], [0, 0, 1, 1], [], []>} : vector<43x8xf32>, vector<8x10xf32>, vector<43x10xf32> -> vector<43x10xf32>
    %48 = arith.addf %44, %47 : vector<43x10xf32>
    %c12 = arith.constant 12 : index
    %c0_38 = arith.constant 0 : index
    %49 = vector.load %arg0[%c12, %c0_38] : memref<128x8xf32, #tpu.memory_space<vmem>>, vector<43x8xf32>
    %c96 = arith.constant 96 : index
    %c0_39 = arith.constant 0 : index
    %50 = vector.load %arg1[%c96, %c0_39] : memref<176x10xf32, #tpu.memory_space<vmem>>, vector<8x10xf32>
    %cst_40 = arith.constant dense<0.000000e+00> : vector<43x10xf32>
    %51 = tpu.matmul %49, %50, %cst_40 {dimension_numbers = #tpu.dot_dimension_numbers<[1], [0], [0], [1], [0, 0, 1, 1], [], []>} : vector<43x8xf32>, vector<8x10xf32>, vector<43x10xf32> -> vector<43x10xf32>
    %52 = arith.addf %48, %51 : vector<43x10xf32>
    %c13 = arith.constant 13 : index
    %c0_41 = arith.constant 0 : index
    %53 = vector.load %arg0[%c13, %c0_41] : memref<128x8xf32, #tpu.memory_space<vmem>>, vector<43x8xf32>
    %c104 = arith.constant 104 : index
    %c0_42 = arith.constant 0 : index
    %54 = vector.load %arg1[%c104, %c0_42] : memref<176x10xf32, #tpu.memory_space<vmem>>, vector<8x10xf32>
    %cst_43 = arith.constant dense<0.000000e+00> : vector<43x10xf32>
    %55 = tpu.matmul %53, %54, %cst_43 {dimension_numbers = #tpu.dot_dimension_numbers<[1], [0], [0], [1], [0, 0, 1, 1], [], []>} : vector<43x8xf32>, vector<8x10xf32>, vector<43x10xf32> -> vector<43x10xf32>
    %56 = arith.addf %52, %55 : vector<43x10xf32>
    %c14 = arith.constant 14 : index
    %c0_44 = arith.constant 0 : index
    %57 = vector.load %arg0[%c14, %c0_44] : memref<128x8xf32, #tpu.memory_space<vmem>>, vector<43x8xf32>
    %c112 = arith.constant 112 : index
    %c0_45 = arith.constant 0 : index
    %58 = vector.load %arg1[%c112, %c0_45] : memref<176x10xf32, #tpu.memory_space<vmem>>, vector<8x10xf32>
    %cst_46 = arith.constant dense<0.000000e+00> : vector<43x10xf32>
    %59 = tpu.matmul %57, %58, %cst_46 {dimension_numbers = #tpu.dot_dimension_numbers<[1], [0], [0], [1], [0, 0, 1, 1], [], []>} : vector<43x8xf32>, vector<8x10xf32>, vector<43x10xf32> -> vector<43x10xf32>
    %60 = arith.addf %56, %59 : vector<43x10xf32>
    %c15 = arith.constant 15 : index
    %c0_47 = arith.constant 0 : index
    %61 = vector.load %arg0[%c15, %c0_47] : memref<128x8xf32, #tpu.memory_space<vmem>>, vector<43x8xf32>
    %c120 = arith.constant 120 : index
    %c0_48 = arith.constant 0 : index
    %62 = vector.load %arg1[%c120, %c0_48] : memref<176x10xf32, #tpu.memory_space<vmem>>, vector<8x10xf32>
    %cst_49 = arith.constant dense<0.000000e+00> : vector<43x10xf32>
    %63 = tpu.matmul %61, %62, %cst_49 {dimension_numbers = #tpu.dot_dimension_numbers<[1], [0], [0], [1], [0, 0, 1, 1], [], []>} : vector<43x8xf32>, vector<8x10xf32>, vector<43x10xf32> -> vector<43x10xf32>
    %64 = arith.addf %60, %63 : vector<43x10xf32>
    %c16_50 = arith.constant 16 : index
    %c0_51 = arith.constant 0 : index
    %65 = vector.load %arg0[%c16_50, %c0_51] : memref<128x8xf32, #tpu.memory_space<vmem>>, vector<43x8xf32>
    %c128 = arith.constant 128 : index
    %c0_52 = arith.constant 0 : index
    %66 = vector.load %arg1[%c128, %c0_52] : memref<176x10xf32, #tpu.memory_space<vmem>>, vector<8x10xf32>
    %cst_53 = arith.constant dense<0.000000e+00> : vector<43x10xf32>
    %67 = tpu.matmul %65, %66, %cst_53 {dimension_numbers = #tpu.dot_dimension_numbers<[1], [0], [0], [1], [0, 0, 1, 1], [], []>} : vector<43x8xf32>, vector<8x10xf32>, vector<43x10xf32> -> vector<43x10xf32>
    %68 = arith.addf %64, %67 : vector<43x10xf32>
    %c17 = arith.constant 17 : index
    %c0_54 = arith.constant 0 : index
    %69 = vector.load %arg0[%c17, %c0_54] : memref<128x8xf32, #tpu.memory_space<vmem>>, vector<43x8xf32>
    %c136 = arith.constant 136 : index
    %c0_55 = arith.constant 0 : index
    %70 = vector.load %arg1[%c136, %c0_55] : memref<176x10xf32, #tpu.memory_space<vmem>>, vector<8x10xf32>
    %cst_56 = arith.constant dense<0.000000e+00> : vector<43x10xf32>
    %71 = tpu.matmul %69, %70, %cst_56 {dimension_numbers = #tpu.dot_dimension_numbers<[1], [0], [0], [1], [0, 0, 1, 1], [], []>} : vector<43x8xf32>, vector<8x10xf32>, vector<43x10xf32> -> vector<43x10xf32>
    %72 = arith.addf %68, %71 : vector<43x10xf32>
    %c18 = arith.constant 18 : index
    %c0_57 = arith.constant 0 : index
    %73 = vector.load %arg0[%c18, %c0_57] : memref<128x8xf32, #tpu.memory_space<vmem>>, vector<43x8xf32>
    %c144 = arith.constant 144 : index
    %c0_58 = arith.constant 0 : index
    %74 = vector.load %arg1[%c144, %c0_58] : memref<176x10xf32, #tpu.memory_space<vmem>>, vector<8x10xf32>
    %cst_59 = arith.constant dense<0.000000e+00> : vector<43x10xf32>
    %75 = tpu.matmul %73, %74, %cst_59 {dimension_numbers = #tpu.dot_dimension_numbers<[1], [0], [0], [1], [0, 0, 1, 1], [], []>} : vector<43x8xf32>, vector<8x10xf32>, vector<43x10xf32> -> vector<43x10xf32>
    %76 = arith.addf %72, %75 : vector<43x10xf32>
    %c19 = arith.constant 19 : index
    %c0_60 = arith.constant 0 : index
    %77 = vector.load %arg0[%c19, %c0_60] : memref<128x8xf32, #tpu.memory_space<vmem>>, vector<43x8xf32>
    %c152 = arith.constant 152 : index
    %c0_61 = arith.constant 0 : index
    %78 = vector.load %arg1[%c152, %c0_61] : memref<176x10xf32, #tpu.memory_space<vmem>>, vector<8x10xf32>
    %cst_62 = arith.constant dense<0.000000e+00> : vector<43x10xf32>
    %79 = tpu.matmul %77, %78, %cst_62 {dimension_numbers = #tpu.dot_dimension_numbers<[1], [0], [0], [1], [0, 0, 1, 1], [], []>} : vector<43x8xf32>, vector<8x10xf32>, vector<43x10xf32> -> vector<43x10xf32>
    %80 = arith.addf %76, %79 : vector<43x10xf32>
    %c20 = arith.constant 20 : index
    %c0_63 = arith.constant 0 : index
    %81 = vector.load %arg0[%c20, %c0_63] : memref<128x8xf32, #tpu.memory_space<vmem>>, vector<43x8xf32>
    %c160 = arith.constant 160 : index
    %c0_64 = arith.constant 0 : index
    %82 = vector.load %arg1[%c160, %c0_64] : memref<176x10xf32, #tpu.memory_space<vmem>>, vector<8x10xf32>
    %cst_65 = arith.constant dense<0.000000e+00> : vector<43x10xf32>
    %83 = tpu.matmul %81, %82, %cst_65 {dimension_numbers = #tpu.dot_dimension_numbers<[1], [0], [0], [1], [0, 0, 1, 1], [], []>} : vector<43x8xf32>, vector<8x10xf32>, vector<43x10xf32> -> vector<43x10xf32>
    %84 = arith.addf %80, %83 : vector<43x10xf32>
    %c21 = arith.constant 21 : index
    %c0_66 = arith.constant 0 : index
    %85 = vector.load %arg0[%c21, %c0_66] : memref<128x8xf32, #tpu.memory_space<vmem>>, vector<43x8xf32>
    %c168 = arith.constant 168 : index
    %c0_67 = arith.constant 0 : index
    %86 = vector.load %arg1[%c168, %c0_67] : memref<176x10xf32, #tpu.memory_space<vmem>>, vector<8x10xf32>
    %cst_68 = arith.constant dense<0.000000e+00> : vector<43x10xf32>
    %87 = tpu.matmul %85, %86, %cst_68 {dimension_numbers = #tpu.dot_dimension_numbers<[1], [0], [0], [1], [0, 0, 1, 1], [], []>} : vector<43x8xf32>, vector<8x10xf32>, vector<43x10xf32> -> vector<43x10xf32>
    %88 = arith.addf %84, %87 : vector<43x10xf32>
    %c0_69 = arith.constant 0 : index
    %c0_70 = arith.constant 0 : index
    %89 = vector.load %arg2[%c0_69, %c0_70] : memref<1x10xf32, #tpu.memory_space<vmem>>, vector<1x10xf32>
    %90 = vector.broadcast %89 : vector<1x10xf32> to vector<43x10xf32>
    %91 = arith.addf %88, %90 : vector<43x10xf32>
    %cst_71 = arith.constant 0.000000e+00 : f32
    %92 = vector.broadcast %cst_71 : f32 to vector<43x10xf32>
    %93 = arith.maximumf %91, %92 : vector<43x10xf32>
    %c0_72 = arith.constant 0 : index
    %c0_73 = arith.constant 0 : index
    %94 = vector.load %arg29[%c0_72, %c0_73] : memref<86x10xf32, #tpu.memory_space<vmem>>, vector<43x10xf32>
    tpu.vector_store %arg29[%c0_72, %c0_73], %93 {strides = array<i32>} : memref<86x10xf32, #tpu.memory_space<vmem>>, vector<43x10xf32>,
    %cst_74 = arith.constant 0.000000e+00 : f32
    %95 = vector.broadcast %cst_74 : f32 to vector<43x10xf32>
    %c64_75 = arith.constant 64 : index
    %c0_76 = arith.constant 0 : index
    %96 = vector.load %arg0[%c64_75, %c0_76] : memref<128x8xf32, #tpu.memory_space<vmem>>, vector<43x8xf32>
    %c0_77 = arith.constant 0 : index
    %c0_78 = arith.constant 0 : index
    %97 = vector.load %arg1[%c0_77, %c0_78] : memref<176x10xf32, #tpu.memory_space<vmem>>, vector<8x10xf32>
    %cst_79 = arith.constant dense<0.000000e+00> : vector<43x10xf32>
    %98 = tpu.matmul %96, %97, %cst_79 {dimension_numbers = #tpu.dot_dimension_numbers<[1], [0], [0], [1], [0, 0, 1, 1], [], []>} : vector<43x8xf32>, vector<8x10xf32>, vector<43x10xf32> -> vector<43x10xf32>
    %99 = arith.addf %95, %98 : vector<43x10xf32>
    %c65 = arith.constant 65 : index
    %c0_80 = arith.constant 0 : index
    %100 = vector.load %arg0[%c65, %c0_80] : memref<128x8xf32, #tpu.memory_space<vmem>>, vector<43x8xf32>
    %c8_81 = arith.constant 8 : index
    %c0_82 = arith.constant 0 : index
    %101 = vector.load %arg1[%c8_81, %c0_82] : memref<176x10xf32, #tpu.memory_space<vmem>>, vector<8x10xf32>
    %cst_83 = arith.constant dense<0.000000e+00> : vector<43x10xf32>
    %102 = tpu.matmul %100, %101, %cst_83 {dimension_numbers = #tpu.dot_dimension_numbers<[1], [0], [0], [1], [0, 0, 1, 1], [], []>} : vector<43x8xf32>, vector<8x10xf32>, vector<43x10xf32> -> vector<43x10xf32>
    %103 = arith.addf %99, %102 : vector<43x10xf32>
    %c66 = arith.constant 66 : index
    %c0_84 = arith.constant 0 : index
    %104 = vector.load %arg0[%c66, %c0_84] : memref<128x8xf32, #tpu.memory_space<vmem>>, vector<43x8xf32>
    %c16_85 = arith.constant 16 : index
    %c0_86 = arith.constant 0 : index
    %105 = vector.load %arg1[%c16_85, %c0_86] : memref<176x10xf32, #tpu.memory_space<vmem>>, vector<8x10xf32>
    %cst_87 = arith.constant dense<0.000000e+00> : vector<43x10xf32>
    %106 = tpu.matmul %104, %105, %cst_87 {dimension_numbers = #tpu.dot_dimension_numbers<[1], [0], [0], [1], [0, 0, 1, 1], [], []>} : vector<43x8xf32>, vector<8x10xf32>, vector<43x10xf32> -> vector<43x10xf32>
    %107 = arith.addf %103, %106 : vector<43x10xf32>
    %c67 = arith.constant 67 : index
    %c0_88 = arith.constant 0 : index
    %108 = vector.load %arg0[%c67, %c0_88] : memref<128x8xf32, #tpu.memory_space<vmem>>, vector<43x8xf32>
    %c24_89 = arith.constant 24 : index
    %c0_90 = arith.constant 0 : index
    %109 = vector.load %arg1[%c24_89, %c0_90] : memref<176x10xf32, #tpu.memory_space<vmem>>, vector<8x10xf32>
    %cst_91 = arith.constant dense<0.000000e+00> : vector<43x10xf32>
    %110 = tpu.matmul %108, %109, %cst_91 {dimension_numbers = #tpu.dot_dimension_numbers<[1], [0], [0], [1], [0, 0, 1, 1], [], []>} : vector<43x8xf32>, vector<8x10xf32>, vector<43x10xf32> -> vector<43x10xf32>
    %111 = arith.addf %107, %110 : vector<43x10xf32>
    %c68 = arith.constant 68 : index
    %c0_92 = arith.constant 0 : index
    %112 = vector.load %arg0[%c68, %c0_92] : memref<128x8xf32, #tpu.memory_space<vmem>>, vector<43x8xf32>
    %c32_93 = arith.constant 32 : index
    %c0_94 = arith.constant 0 : index
    %113 = vector.load %arg1[%c32_93, %c0_94] : memref<176x10xf32, #tpu.memory_space<vmem>>, vector<8x10xf32>
    %cst_95 = arith.constant dense<0.000000e+00> : vector<43x10xf32>
    %114 = tpu.matmul %112, %113, %cst_95 {dimension_numbers = #tpu.dot_dimension_numbers<[1], [0], [0], [1], [0, 0, 1, 1], [], []>} : vector<43x8xf32>, vector<8x10xf32>, vector<43x10xf32> -> vector<43x10xf32>
    %115 = arith.addf %111, %114 : vector<43x10xf32>
    %c69 = arith.constant 69 : index
    %c0_96 = arith.constant 0 : index
    %116 = vector.load %arg0[%c69, %c0_96] : memref<128x8xf32, #tpu.memory_space<vmem>>, vector<43x8xf32>
    %c40_97 = arith.constant 40 : index
    %c0_98 = arith.constant 0 : index
    %117 = vector.load %arg1[%c40_97, %c0_98] : memref<176x10xf32, #tpu.memory_space<vmem>>, vector<8x10xf32>
    %cst_99 = arith.constant dense<0.000000e+00> : vector<43x10xf32>
    %118 = tpu.matmul %116, %117, %cst_99 {dimension_numbers = #tpu.dot_dimension_numbers<[1], [0], [0], [1], [0, 0, 1, 1], [], []>} : vector<43x8xf32>, vector<8x10xf32>, vector<43x10xf32> -> vector<43x10xf32>
    %119 = arith.addf %115, %118 : vector<43x10xf32>
    %c70 = arith.constant 70 : index
    %c0_100 = arith.constant 0 : index
    %120 = vector.load %arg0[%c70, %c0_100] : memref<128x8xf32, #tpu.memory_space<vmem>>, vector<43x8xf32>
    %c48_101 = arith.constant 48 : index
    %c0_102 = arith.constant 0 : index
    %121 = vector.load %arg1[%c48_101, %c0_102] : memref<176x10xf32, #tpu.memory_space<vmem>>, vector<8x10xf32>
    %cst_103 = arith.constant dense<0.000000e+00> : vector<43x10xf32>
    %122 = tpu.matmul %120, %121, %cst_103 {dimension_numbers = #tpu.dot_dimension_numbers<[1], [0], [0], [1], [0, 0, 1, 1], [], []>} : vector<43x8xf32>, vector<8x10xf32>, vector<43x10xf32> -> vector<43x10xf32>
    %123 = arith.addf %119, %122 : vector<43x10xf32>
    %c71 = arith.constant 71 : index
    %c0_104 = arith.constant 0 : index
    %124 = vector.load %arg0[%c71, %c0_104] : memref<128x8xf32, #tpu.memory_space<vmem>>, vector<43x8xf32>
    %c56_105 = arith.constant 56 : index
    %c0_106 = arith.constant 0 : index
    %125 = vector.load %arg1[%c56_105, %c0_106] : memref<176x10xf32, #tpu.memory_space<vmem>>, vector<8x10xf32>
    %cst_107 = arith.constant dense<0.000000e+00> : vector<43x10xf32>
    %126 = tpu.matmul %124, %125, %cst_107 {dimension_numbers = #tpu.dot_dimension_numbers<[1], [0], [0], [1], [0, 0, 1, 1], [], []>} : vector<43x8xf32>, vector<8x10xf32>, vector<43x10xf32> -> vector<43x10xf32>
    %127 = arith.addf %123, %126 : vector<43x10xf32>
    %c72_108 = arith.constant 72 : index
    %c0_109 = arith.constant 0 : index
    %128 = vector.load %arg0[%c72_108, %c0_109] : memref<128x8xf32, #tpu.memory_space<vmem>>, vector<43x8xf32>
    %c64_110 = arith.constant 64 : index
    %c0_111 = arith.constant 0 : index
    %129 = vector.load %arg1[%c64_110, %c0_111] : memref<176x10xf32, #tpu.memory_space<vmem>>, vector<8x10xf32>
    %cst_112 = arith.constant dense<0.000000e+00> : vector<43x10xf32>
    %130 = tpu.matmul %128, %129, %cst_112 {dimension_numbers = #tpu.dot_dimension_numbers<[1], [0], [0], [1], [0, 0, 1, 1], [], []>} : vector<43x8xf32>, vector<8x10xf32>, vector<43x10xf32> -> vector<43x10xf32>
    %131 = arith.addf %127, %130 : vector<43x10xf32>
    %c73 = arith.constant 73 : index
    %c0_113 = arith.constant 0 : index
    %132 = vector.load %arg0[%c73, %c0_113] : memref<128x8xf32, #tpu.memory_space<vmem>>, vector<43x8xf32>
    %c72_114 = arith.constant 72 : index
    %c0_115 = arith.constant 0 : index
    %133 = vector.load %arg1[%c72_114, %c0_115] : memref<176x10xf32, #tpu.memory_space<vmem>>, vector<8x10xf32>
    %cst_116 = arith.constant dense<0.000000e+00> : vector<43x10xf32>
    %134 = tpu.matmul %132, %133, %cst_116 {dimension_numbers = #tpu.dot_dimension_numbers<[1], [0], [0], [1], [0, 0, 1, 1], [], []>} : vector<43x8xf32>, vector<8x10xf32>, vector<43x10xf32> -> vector<43x10xf32>
    %135 = arith.addf %131, %134 : vector<43x10xf32>
    %c74 = arith.constant 74 : index
    %c0_117 = arith.constant 0 : index
    %136 = vector.load %arg0[%c74, %c0_117] : memref<128x8xf32, #tpu.memory_space<vmem>>, vector<43x8xf32>
    %c80_118 = arith.constant 80 : index
    %c0_119 = arith.constant 0 : index
    %137 = vector.load %arg1[%c80_118, %c0_119] : memref<176x10xf32, #tpu.memory_space<vmem>>, vector<8x10xf32>
    %cst_120 = arith.constant dense<0.000000e+00> : vector<43x10xf32>
    %138 = tpu.matmul %136, %137, %cst_120 {dimension_numbers = #tpu.dot_dimension_numbers<[1], [0], [0], [1], [0, 0, 1, 1], [], []>} : vector<43x8xf32>, vector<8x10xf32>, vector<43x10xf32> -> vector<43x10xf32>
    %139 = arith.addf %135, %138 : vector<43x10xf32>
    %c75 = arith.constant 75 : index
    %c0_121 = arith.constant 0 : index
    %140 = vector.load %arg0[%c75, %c0_121] : memref<128x8xf32, #tpu.memory_space<vmem>>, vector<43x8xf32>
    %c88_122 = arith.constant 88 : index
    %c0_123 = arith.constant 0 : index
    %141 = vector.load %arg1[%c88_122, %c0_123] : memref<176x10xf32, #tpu.memory_space<vmem>>, vector<8x10xf32>
    %cst_124 = arith.constant dense<0.000000e+00> : vector<43x10xf32>
    %142 = tpu.matmul %140, %141, %cst_124 {dimension_numbers = #tpu.dot_dimension_numbers<[1], [0], [0], [1], [0, 0, 1, 1], [], []>} : vector<43x8xf32>, vector<8x10xf32>, vector<43x10xf32> -> vector<43x10xf32>
    %143 = arith.addf %139, %142 : vector<43x10xf32>
    %c76 = arith.constant 76 : index
    %c0_125 = arith.constant 0 : index
    %144 = vector.load %arg0[%c76, %c0_125] : memref<128x8xf32, #tpu.memory_space<vmem>>, vector<43x8xf32>
    %c96_126 = arith.constant 96 : index
    %c0_127 = arith.constant 0 : index
    %145 = vector.load %arg1[%c96_126, %c0_127] : memref<176x10xf32, #tpu.memory_space<vmem>>, vector<8x10xf32>
    %cst_128 = arith.constant dense<0.000000e+00> : vector<43x10xf32>
    %146 = tpu.matmul %144, %145, %cst_128 {dimension_numbers = #tpu.dot_dimension_numbers<[1], [0], [0], [1], [0, 0, 1, 1], [], []>} : vector<43x8xf32>, vector<8x10xf32>, vector<43x10xf32> -> vector<43x10xf32>
    %147 = arith.addf %143, %146 : vector<43x10xf32>
    %c77 = arith.constant 77 : index
    %c0_129 = arith.constant 0 : index
    %148 = vector.load %arg0[%c77, %c0_129] : memref<128x8xf32, #tpu.memory_space<vmem>>, vector<43x8xf32>
    %c104_130 = arith.constant 104 : index
    %c0_131 = arith.constant 0 : index
    %149 = vector.load %arg1[%c104_130, %c0_131] : memref<176x10xf32, #tpu.memory_space<vmem>>, vector<8x10xf32>
    %cst_132 = arith.constant dense<0.000000e+00> : vector<43x10xf32>
    %150 = tpu.matmul %148, %149, %cst_132 {dimension_numbers = #tpu.dot_dimension_numbers<[1], [0], [0], [1], [0, 0, 1, 1], [], []>} : vector<43x8xf32>, vector<8x10xf32>, vector<43x10xf32> -> vector<43x10xf32>
    %151 = arith.addf %147, %150 : vector<43x10xf32>
    %c78 = arith.constant 78 : index
    %c0_133 = arith.constant 0 : index
    %152 = vector.load %arg0[%c78, %c0_133] : memref<128x8xf32, #tpu.memory_space<vmem>>, vector<43x8xf32>
    %c112_134 = arith.constant 112 : index
    %c0_135 = arith.constant 0 : index
    %153 = vector.load %arg1[%c112_134, %c0_135] : memref<176x10xf32, #tpu.memory_space<vmem>>, vector<8x10xf32>
    %cst_136 = arith.constant dense<0.000000e+00> : vector<43x10xf32>
    %154 = tpu.matmul %152, %153, %cst_136 {dimension_numbers = #tpu.dot_dimension_numbers<[1], [0], [0], [1], [0, 0, 1, 1], [], []>} : vector<43x8xf32>, vector<8x10xf32>, vector<43x10xf32> -> vector<43x10xf32>
    %155 = arith.addf %151, %154 : vector<43x10xf32>
    %c79 = arith.constant 79 : index
    %c0_137 = arith.constant 0 : index
    %156 = vector.load %arg0[%c79, %c0_137] : memref<128x8xf32, #tpu.memory_space<vmem>>, vector<43x8xf32>
    %c120_138 = arith.constant 120 : index
    %c0_139 = arith.constant 0 : index
    %157 = vector.load %arg1[%c120_138, %c0_139] : memref<176x10xf32, #tpu.memory_space<vmem>>, vector<8x10xf32>
    %cst_140 = arith.constant dense<0.000000e+00> : vector<43x10xf32>
    %158 = tpu.matmul %156, %157, %cst_140 {dimension_numbers = #tpu.dot_dimension_numbers<[1], [0], [0], [1], [0, 0, 1, 1], [], []>} : vector<43x8xf32>, vector<8x10xf32>, vector<43x10xf32> -> vector<43x10xf32>
    %159 = arith.addf %155, %158 : vector<43x10xf32>
    %c80_141 = arith.constant 80 : index
    %c0_142 = arith.constant 0 : index
    %160 = vector.load %arg0[%c80_141, %c0_142] : memref<128x8xf32, #tpu.memory_space<vmem>>, vector<43x8xf32>
    %c128_143 = arith.constant 128 : index
    %c0_144 = arith.constant 0 : index
    %161 = vector.load %arg1[%c128_143, %c0_144] : memref<176x10xf32, #tpu.memory_space<vmem>>, vector<8x10xf32>
    %cst_145 = arith.constant dense<0.000000e+00> : vector<43x10xf32>
    %162 = tpu.matmul %160, %161, %cst_145 {dimension_numbers = #tpu.dot_dimension_numbers<[1], [0], [0], [1], [0, 0, 1, 1], [], []>} : vector<43x8xf32>, vector<8x10xf32>, vector<43x10xf32> -> vector<43x10xf32>
    %163 = arith.addf %159, %162 : vector<43x10xf32>
    %c81 = arith.constant 81 : index
    %c0_146 = arith.constant 0 : index
    %164 = vector.load %arg0[%c81, %c0_146] : memref<128x8xf32, #tpu.memory_space<vmem>>, vector<43x8xf32>
    %c136_147 = arith.constant 136 : index
    %c0_148 = arith.constant 0 : index
    %165 = vector.load %arg1[%c136_147, %c0_148] : memref<176x10xf32, #tpu.memory_space<vmem>>, vector<8x10xf32>
    %cst_149 = arith.constant dense<0.000000e+00> : vector<43x10xf32>
    %166 = tpu.matmul %164, %165, %cst_149 {dimension_numbers = #tpu.dot_dimension_numbers<[1], [0], [0], [1], [0, 0, 1, 1], [], []>} : vector<43x8xf32>, vector<8x10xf32>, vector<43x10xf32> -> vector<43x10xf32>
    %167 = arith.addf %163, %166 : vector<43x10xf32>
    %c82 = arith.constant 82 : index
    %c0_150 = arith.constant 0 : index
    %168 = vector.load %arg0[%c82, %c0_150] : memref<128x8xf32, #tpu.memory_space<vmem>>, vector<43x8xf32>
    %c144_151 = arith.constant 144 : index
    %c0_152 = arith.constant 0 : index
    %169 = vector.load %arg1[%c144_151, %c0_152] : memref<176x10xf32, #tpu.memory_space<vmem>>, vector<8x10xf32>
    %cst_153 = arith.constant dense<0.000000e+00> : vector<43x10xf32>
    %170 = tpu.matmul %168, %169, %cst_153 {dimension_numbers = #tpu.dot_dimension_numbers<[1], [0], [0], [1], [0, 0, 1, 1], [], []>} : vector<43x8xf32>, vector<8x10xf32>, vector<43x10xf32> -> vector<43x10xf32>
    %171 = arith.addf %167, %170 : vector<43x10xf32>
    %c83 = arith.constant 83 : index
    %c0_154 = arith.constant 0 : index
    %172 = vector.load %arg0[%c83, %c0_154] : memref<128x8xf32, #tpu.memory_space<vmem>>, vector<43x8xf32>
    %c152_155 = arith.constant 152 : index
    %c0_156 = arith.constant 0 : index
    %173 = vector.load %arg1[%c152_155, %c0_156] : memref<176x10xf32, #tpu.memory_space<vmem>>, vector<8x10xf32>
    %cst_157 = arith.constant dense<0.000000e+00> : vector<43x10xf32>
    %174 = tpu.matmul %172, %173, %cst_157 {dimension_numbers = #tpu.dot_dimension_numbers<[1], [0], [0], [1], [0, 0, 1, 1], [], []>} : vector<43x8xf32>, vector<8x10xf32>, vector<43x10xf32> -> vector<43x10xf32>
    %175 = arith.addf %171, %174 : vector<43x10xf32>
    %c84 = arith.constant 84 : index
    %c0_158 = arith.constant 0 : index
    %176 = vector.load %arg0[%c84, %c0_158] : memref<128x8xf32, #tpu.memory_space<vmem>>, vector<43x8xf32>
    %c160_159 = arith.constant 160 : index
    %c0_160 = arith.constant 0 : index
    %177 = vector.load %arg1[%c160_159, %c0_160] : memref<176x10xf32, #tpu.memory_space<vmem>>, vector<8x10xf32>
    %cst_161 = arith.constant dense<0.000000e+00> : vector<43x10xf32>
    %178 = tpu.matmul %176, %177, %cst_161 {dimension_numbers = #tpu.dot_dimension_numbers<[1], [0], [0], [1], [0, 0, 1, 1], [], []>} : vector<43x8xf32>, vector<8x10xf32>, vector<43x10xf32> -> vector<43x10xf32>
    %179 = arith.addf %175, %178 : vector<43x10xf32>
    %c85 = arith.constant 85 : index
    %c0_162 = arith.constant 0 : index
    %180 = vector.load %arg0[%c85, %c0_162] : memref<128x8xf32, #tpu.memory_space<vmem>>, vector<43x8xf32>
    %c168_163 = arith.constant 168 : index
    %c0_164 = arith.constant 0 : index
    %181 = vector.load %arg1[%c168_163, %c0_164] : memref<176x10xf32, #tpu.memory_space<vmem>>, vector<8x10xf32>
    %cst_165 = arith.constant dense<0.000000e+00> : vector<43x10xf32>
    %182 = tpu.matmul %180, %181, %cst_165 {dimension_numbers = #tpu.dot_dimension_numbers<[1], [0], [0], [1], [0, 0, 1, 1], [], []>} : vector<43x8xf32>, vector<8x10xf32>, vector<43x10xf32> -> vector<43x10xf32>
    %183 = arith.addf %179, %182 : vector<43x10xf32>
    %c0_166 = arith.constant 0 : index
    %c0_167 = arith.constant 0 : index
    %184 = vector.load %arg2[%c0_166, %c0_167] : memref<1x10xf32, #tpu.memory_space<vmem>>, vector<1x10xf32>
    %185 = vector.broadcast %184 : vector<1x10xf32> to vector<43x10xf32>
    %186 = arith.addf %183, %185 : vector<43x10xf32>
    %cst_168 = arith.constant 0.000000e+00 : f32
    %187 = vector.broadcast %cst_168 : f32 to vector<43x10xf32>
    %188 = arith.maximumf %186, %187 : vector<43x10xf32>
    %c43 = arith.constant 43 : index
    %c0_169 = arith.constant 0 : index
    %189 = vector.load %arg29[%c43, %c0_169] : memref<86x10xf32, #tpu.memory_space<vmem>>, vector<43x10xf32>
    tpu.vector_store %arg29[%c43, %c0_169], %188 {strides = array<i32>} : memref<86x10xf32, #tpu.memory_space<vmem>>, vector<43x10xf32>,
    %cst_170 = arith.constant 0.000000e+00 : f32
    %190 = vector.broadcast %cst_170 : f32 to vector<24x10xf32>
    %c0_171 = arith.constant 0 : index
    %c0_172 = arith.constant 0 : index
    %191 = vector.load %arg29[%c0_171, %c0_172] : memref<86x10xf32, #tpu.memory_space<vmem>>, vector<24x10xf32>
    %c0_173 = arith.constant 0 : index
    %c0_174 = arith.constant 0 : index
    %192 = vector.load %arg3[%c0_173, %c0_174] : memref<200x10xf32, #tpu.memory_space<vmem>>, vector<10x10xf32>
    %cst_175 = arith.constant dense<0.000000e+00> : vector<24x10xf32>
    %193 = tpu.matmul %191, %192, %cst_175 {dimension_numbers = #tpu.dot_dimension_numbers<[1], [0], [0], [1], [0, 0, 1, 1], [], []>} : vector<24x10xf32>, vector<10x10xf32>, vector<24x10xf32> -> vector<24x10xf32>
    %194 = arith.addf %190, %193 : vector<24x10xf32>
    %c1_176 = arith.constant 1 : index
    %c0_177 = arith.constant 0 : index
    %195 = vector.load %arg29[%c1_176, %c0_177] : memref<86x10xf32, #tpu.memory_space<vmem>>, vector<24x10xf32>
    %c10_178 = arith.constant 10 : index
    %c0_179 = arith.constant 0 : index
    %196 = vector.load %arg3[%c10_178, %c0_179] : memref<200x10xf32, #tpu.memory_space<vmem>>, vector<10x10xf32>
    %cst_180 = arith.constant dense<0.000000e+00> : vector<24x10xf32>
    %197 = tpu.matmul %195, %196, %cst_180 {dimension_numbers = #tpu.dot_dimension_numbers<[1], [0], [0], [1], [0, 0, 1, 1], [], []>} : vector<24x10xf32>, vector<10x10xf32>, vector<24x10xf32> -> vector<24x10xf32>
    %198 = arith.addf %194, %197 : vector<24x10xf32>
    %c2_181 = arith.constant 2 : index
    %c0_182 = arith.constant 0 : index
    %199 = vector.load %arg29[%c2_181, %c0_182] : memref<86x10xf32, #tpu.memory_space<vmem>>, vector<24x10xf32>
    %c20_183 = arith.constant 20 : index
    %c0_184 = arith.constant 0 : index
    %200 = vector.load %arg3[%c20_183, %c0_184] : memref<200x10xf32, #tpu.memory_space<vmem>>, vector<10x10xf32>
    %cst_185 = arith.constant dense<0.000000e+00> : vector<24x10xf32>
    %201 = tpu.matmul %199, %200, %cst_185 {dimension_numbers = #tpu.dot_dimension_numbers<[1], [0], [0], [1], [0, 0, 1, 1], [], []>} : vector<24x10xf32>, vector<10x10xf32>, vector<24x10xf32> -> vector<24x10xf32>
    %202 = arith.addf %198, %201 : vector<24x10xf32>
    %c3_186 = arith.constant 3 : index
    %c0_187 = arith.constant 0 : index
    %203 = vector.load %arg29[%c3_186, %c0_187] : memref<86x10xf32, #tpu.memory_space<vmem>>, vector<24x10xf32>
    %c30 = arith.constant 30 : index
    %c0_188 = arith.constant 0 : index
    %204 = vector.load %arg3[%c30, %c0_188] : memref<200x10xf32, #tpu.memory_space<vmem>>, vector<10x10xf32>
    %cst_189 = arith.constant dense<0.000000e+00> : vector<24x10xf32>
    %205 = tpu.matmul %203, %204, %cst_189 {dimension_numbers = #tpu.dot_dimension_numbers<[1], [0], [0], [1], [0, 0, 1, 1], [], []>} : vector<24x10xf32>, vector<10x10xf32>, vector<24x10xf32> -> vector<24x10xf32>
    %206 = arith.addf %202, %205 : vector<24x10xf32>
    %c4_190 = arith.constant 4 : index
    %c0_191 = arith.constant 0 : index
    %207 = vector.load %arg29[%c4_190, %c0_191] : memref<86x10xf32, #tpu.memory_space<vmem>>, vector<24x10xf32>
    %c40_192 = arith.constant 40 : index
    %c0_193 = arith.constant 0 : index
    %208 = vector.load %arg3[%c40_192, %c0_193] : memref<200x10xf32, #tpu.memory_space<vmem>>, vector<10x10xf32>
    %cst_194 = arith.constant dense<0.000000e+00> : vector<24x10xf32>
    %209 = tpu.matmul %207, %208, %cst_194 {dimension_numbers = #tpu.dot_dimension_numbers<[1], [0], [0], [1], [0, 0, 1, 1], [], []>} : vector<24x10xf32>, vector<10x10xf32>, vector<24x10xf32> -> vector<24x10xf32>
    %210 = arith.addf %206, %209 : vector<24x10xf32>
    %c5_195 = arith.constant 5 : index
    %c0_196 = arith.constant 0 : index
    %211 = vector.load %arg29[%c5_195, %c0_196] : memref<86x10xf32, #tpu.memory_space<vmem>>, vector<24x10xf32>
    %c50 = arith.constant 50 : index
    %c0_197 = arith.constant 0 : index
    %212 = vector.load %arg3[%c50, %c0_197] : memref<200x10xf32, #tpu.memory_space<vmem>>, vector<10x10xf32>
    %cst_198 = arith.constant dense<0.000000e+00> : vector<24x10xf32>
    %213 = tpu.matmul %211, %212, %cst_198 {dimension_numbers = #tpu.dot_dimension_numbers<[1], [0], [0], [1], [0, 0, 1, 1], [], []>} : vector<24x10xf32>, vector<10x10xf32>, vector<24x10xf32> -> vector<24x10xf32>
    %214 = arith.addf %210, %213 : vector<24x10xf32>
    %c6_199 = arith.constant 6 : index
    %c0_200 = arith.constant 0 : index
    %215 = vector.load %arg29[%c6_199, %c0_200] : memref<86x10xf32, #tpu.memory_space<vmem>>, vector<24x10xf32>
    %c60 = arith.constant 60 : index
    %c0_201 = arith.constant 0 : index
    %216 = vector.load %arg3[%c60, %c0_201] : memref<200x10xf32, #tpu.memory_space<vmem>>, vector<10x10xf32>
    %cst_202 = arith.constant dense<0.000000e+00> : vector<24x10xf32>
    %217 = tpu.matmul %215, %216, %cst_202 {dimension_numbers = #tpu.dot_dimension_numbers<[1], [0], [0], [1], [0, 0, 1, 1], [], []>} : vector<24x10xf32>, vector<10x10xf32>, vector<24x10xf32> -> vector<24x10xf32>
    %218 = arith.addf %214, %217 : vector<24x10xf32>
    %c7_203 = arith.constant 7 : index
    %c0_204 = arith.constant 0 : index
    %219 = vector.load %arg29[%c7_203, %c0_204] : memref<86x10xf32, #tpu.memory_space<vmem>>, vector<24x10xf32>
    %c70_205 = arith.constant 70 : index
    %c0_206 = arith.constant 0 : index
    %220 = vector.load %arg3[%c70_205, %c0_206] : memref<200x10xf32, #tpu.memory_space<vmem>>, vector<10x10xf32>
    %cst_207 = arith.constant dense<0.000000e+00> : vector<24x10xf32>
    %221 = tpu.matmul %219, %220, %cst_207 {dimension_numbers = #tpu.dot_dimension_numbers<[1], [0], [0], [1], [0, 0, 1, 1], [], []>} : vector<24x10xf32>, vector<10x10xf32>, vector<24x10xf32> -> vector<24x10xf32>
    %222 = arith.addf %218, %221 : vector<24x10xf32>
    %c8_208 = arith.constant 8 : index
    %c0_209 = arith.constant 0 : index
    %223 = vector.load %arg29[%c8_208, %c0_209] : memref<86x10xf32, #tpu.memory_space<vmem>>, vector<24x10xf32>
    %c80_210 = arith.constant 80 : index
    %c0_211 = arith.constant 0 : index
    %224 = vector.load %arg3[%c80_210, %c0_211] : memref<200x10xf32, #tpu.memory_space<vmem>>, vector<10x10xf32>
    %cst_212 = arith.constant dense<0.000000e+00> : vector<24x10xf32>
    %225 = tpu.matmul %223, %224, %cst_212 {dimension_numbers = #tpu.dot_dimension_numbers<[1], [0], [0], [1], [0, 0, 1, 1], [], []>} : vector<24x10xf32>, vector<10x10xf32>, vector<24x10xf32> -> vector<24x10xf32>
    %226 = arith.addf %222, %225 : vector<24x10xf32>
    %c9_213 = arith.constant 9 : index
    %c0_214 = arith.constant 0 : index
    %227 = vector.load %arg29[%c9_213, %c0_214] : memref<86x10xf32, #tpu.memory_space<vmem>>, vector<24x10xf32>
    %c90 = arith.constant 90 : index
    %c0_215 = arith.constant 0 : index
    %228 = vector.load %arg3[%c90, %c0_215] : memref<200x10xf32, #tpu.memory_space<vmem>>, vector<10x10xf32>
    %cst_216 = arith.constant dense<0.000000e+00> : vector<24x10xf32>
    %229 = tpu.matmul %227, %228, %cst_216 {dimension_numbers = #tpu.dot_dimension_numbers<[1], [0], [0], [1], [0, 0, 1, 1], [], []>} : vector<24x10xf32>, vector<10x10xf32>, vector<24x10xf32> -> vector<24x10xf32>
    %230 = arith.addf %226, %229 : vector<24x10xf32>
    %c10_217 = arith.constant 10 : index
    %c0_218 = arith.constant 0 : index
    %231 = vector.load %arg29[%c10_217, %c0_218] : memref<86x10xf32, #tpu.memory_space<vmem>>, vector<24x10xf32>
    %c100 = arith.constant 100 : index
    %c0_219 = arith.constant 0 : index
    %232 = vector.load %arg3[%c100, %c0_219] : memref<200x10xf32, #tpu.memory_space<vmem>>, vector<10x10xf32>
    %cst_220 = arith.constant dense<0.000000e+00> : vector<24x10xf32>
    %233 = tpu.matmul %231, %232, %cst_220 {dimension_numbers = #tpu.dot_dimension_numbers<[1], [0], [0], [1], [0, 0, 1, 1], [], []>} : vector<24x10xf32>, vector<10x10xf32>, vector<24x10xf32> -> vector<24x10xf32>
    %234 = arith.addf %230, %233 : vector<24x10xf32>
    %c11_221 = arith.constant 11 : index
    %c0_222 = arith.constant 0 : index
    %235 = vector.load %arg29[%c11_221, %c0_222] : memref<86x10xf32, #tpu.memory_space<vmem>>, vector<24x10xf32>
    %c110 = arith.constant 110 : index
    %c0_223 = arith.constant 0 : index
    %236 = vector.load %arg3[%c110, %c0_223] : memref<200x10xf32, #tpu.memory_space<vmem>>, vector<10x10xf32>
    %cst_224 = arith.constant dense<0.000000e+00> : vector<24x10xf32>
    %237 = tpu.matmul %235, %236, %cst_224 {dimension_numbers = #tpu.dot_dimension_numbers<[1], [0], [0], [1], [0, 0, 1, 1], [], []>} : vector<24x10xf32>, vector<10x10xf32>, vector<24x10xf32> -> vector<24x10xf32>
    %238 = arith.addf %234, %237 : vector<24x10xf32>
    %c12_225 = arith.constant 12 : index
    %c0_226 = arith.constant 0 : index
    %239 = vector.load %arg29[%c12_225, %c0_226] : memref<86x10xf32, #tpu.memory_space<vmem>>, vector<24x10xf32>
    %c120_227 = arith.constant 120 : index
    %c0_228 = arith.constant 0 : index
    %240 = vector.load %arg3[%c120_227, %c0_228] : memref<200x10xf32, #tpu.memory_space<vmem>>, vector<10x10xf32>
    %cst_229 = arith.constant dense<0.000000e+00> : vector<24x10xf32>
    %241 = tpu.matmul %239, %240, %cst_229 {dimension_numbers = #tpu.dot_dimension_numbers<[1], [0], [0], [1], [0, 0, 1, 1], [], []>} : vector<24x10xf32>, vector<10x10xf32>, vector<24x10xf32> -> vector<24x10xf32>
    %242 = arith.addf %238, %241 : vector<24x10xf32>
    %c13_230 = arith.constant 13 : index
    %c0_231 = arith.constant 0 : index
    %243 = vector.load %arg29[%c13_230, %c0_231] : memref<86x10xf32, #tpu.memory_space<vmem>>, vector<24x10xf32>
    %c130 = arith.constant 130 : index
    %c0_232 = arith.constant 0 : index
    %244 = vector.load %arg3[%c130, %c0_232] : memref<200x10xf32, #tpu.memory_space<vmem>>, vector<10x10xf32>
    %cst_233 = arith.constant dense<0.000000e+00> : vector<24x10xf32>
    %245 = tpu.matmul %243, %244, %cst_233 {dimension_numbers = #tpu.dot_dimension_numbers<[1], [0], [0], [1], [0, 0, 1, 1], [], []>} : vector<24x10xf32>, vector<10x10xf32>, vector<24x10xf32> -> vector<24x10xf32>
    %246 = arith.addf %242, %245 : vector<24x10xf32>
    %c14_234 = arith.constant 14 : index
    %c0_235 = arith.constant 0 : index
    %247 = vector.load %arg29[%c14_234, %c0_235] : memref<86x10xf32, #tpu.memory_space<vmem>>, vector<24x10xf32>
    %c140 = arith.constant 140 : index
    %c0_236 = arith.constant 0 : index
    %248 = vector.load %arg3[%c140, %c0_236] : memref<200x10xf32, #tpu.memory_space<vmem>>, vector<10x10xf32>
    %cst_237 = arith.constant dense<0.000000e+00> : vector<24x10xf32>
    %249 = tpu.matmul %247, %248, %cst_237 {dimension_numbers = #tpu.dot_dimension_numbers<[1], [0], [0], [1], [0, 0, 1, 1], [], []>} : vector<24x10xf32>, vector<10x10xf32>, vector<24x10xf32> -> vector<24x10xf32>
    %250 = arith.addf %246, %249 : vector<24x10xf32>
    %c15_238 = arith.constant 15 : index
    %c0_239 = arith.constant 0 : index
    %251 = vector.load %arg29[%c15_238, %c0_239] : memref<86x10xf32, #tpu.memory_space<vmem>>, vector<24x10xf32>
    %c150 = arith.constant 150 : index
    %c0_240 = arith.constant 0 : index
    %252 = vector.load %arg3[%c150, %c0_240] : memref<200x10xf32, #tpu.memory_space<vmem>>, vector<10x10xf32>
    %cst_241 = arith.constant dense<0.000000e+00> : vector<24x10xf32>
    %253 = tpu.matmul %251, %252, %cst_241 {dimension_numbers = #tpu.dot_dimension_numbers<[1], [0], [0], [1], [0, 0, 1, 1], [], []>} : vector<24x10xf32>, vector<10x10xf32>, vector<24x10xf32> -> vector<24x10xf32>
    %254 = arith.addf %250, %253 : vector<24x10xf32>
    %c16_242 = arith.constant 16 : index
    %c0_243 = arith.constant 0 : index
    %255 = vector.load %arg29[%c16_242, %c0_243] : memref<86x10xf32, #tpu.memory_space<vmem>>, vector<24x10xf32>
    %c160_244 = arith.constant 160 : index
    %c0_245 = arith.constant 0 : index
    %256 = vector.load %arg3[%c160_244, %c0_245] : memref<200x10xf32, #tpu.memory_space<vmem>>, vector<10x10xf32>
    %cst_246 = arith.constant dense<0.000000e+00> : vector<24x10xf32>
    %257 = tpu.matmul %255, %256, %cst_246 {dimension_numbers = #tpu.dot_dimension_numbers<[1], [0], [0], [1], [0, 0, 1, 1], [], []>} : vector<24x10xf32>, vector<10x10xf32>, vector<24x10xf32> -> vector<24x10xf32>
    %258 = arith.addf %254, %257 : vector<24x10xf32>
    %c17_247 = arith.constant 17 : index
    %c0_248 = arith.constant 0 : index
    %259 = vector.load %arg29[%c17_247, %c0_248] : memref<86x10xf32, #tpu.memory_space<vmem>>, vector<24x10xf32>
    %c170 = arith.constant 170 : index
    %c0_249 = arith.constant 0 : index
    %260 = vector.load %arg3[%c170, %c0_249] : memref<200x10xf32, #tpu.memory_space<vmem>>, vector<10x10xf32>
    %cst_250 = arith.constant dense<0.000000e+00> : vector<24x10xf32>
    %261 = tpu.matmul %259, %260, %cst_250 {dimension_numbers = #tpu.dot_dimension_numbers<[1], [0], [0], [1], [0, 0, 1, 1], [], []>} : vector<24x10xf32>, vector<10x10xf32>, vector<24x10xf32> -> vector<24x10xf32>
    %262 = arith.addf %258, %261 : vector<24x10xf32>
    %c18_251 = arith.constant 18 : index
    %c0_252 = arith.constant 0 : index
    %263 = vector.load %arg29[%c18_251, %c0_252] : memref<86x10xf32, #tpu.memory_space<vmem>>, vector<24x10xf32>
    %c180 = arith.constant 180 : index
    %c0_253 = arith.constant 0 : index
    %264 = vector.load %arg3[%c180, %c0_253] : memref<200x10xf32, #tpu.memory_space<vmem>>, vector<10x10xf32>
    %cst_254 = arith.constant dense<0.000000e+00> : vector<24x10xf32>
    %265 = tpu.matmul %263, %264, %cst_254 {dimension_numbers = #tpu.dot_dimension_numbers<[1], [0], [0], [1], [0, 0, 1, 1], [], []>} : vector<24x10xf32>, vector<10x10xf32>, vector<24x10xf32> -> vector<24x10xf32>
    %266 = arith.addf %262, %265 : vector<24x10xf32>
    %c19_255 = arith.constant 19 : index
    %c0_256 = arith.constant 0 : index
    %267 = vector.load %arg29[%c19_255, %c0_256] : memref<86x10xf32, #tpu.memory_space<vmem>>, vector<24x10xf32>
    %c190 = arith.constant 190 : index
    %c0_257 = arith.constant 0 : index
    %268 = vector.load %arg3[%c190, %c0_257] : memref<200x10xf32, #tpu.memory_space<vmem>>, vector<10x10xf32>
    %cst_258 = arith.constant dense<0.000000e+00> : vector<24x10xf32>
    %269 = tpu.matmul %267, %268, %cst_258 {dimension_numbers = #tpu.dot_dimension_numbers<[1], [0], [0], [1], [0, 0, 1, 1], [], []>} : vector<24x10xf32>, vector<10x10xf32>, vector<24x10xf32> -> vector<24x10xf32>
    %270 = arith.addf %266, %269 : vector<24x10xf32>
    %c0_259 = arith.constant 0 : index
    %c0_260 = arith.constant 0 : index
    %271 = vector.load %arg5[%c0_259, %c0_260] : memref<12x24xf32, #tpu.memory_space<vmem>>, vector<12x24xf32>
    %cst_261 = arith.constant dense<0.000000e+00> : vector<12x10xf32>
    %272 = tpu.matmul %271, %270, %cst_261 {dimension_numbers = #tpu.dot_dimension_numbers<[1], [0], [0], [1], [0, 0, 1, 1], [], []>} : vector<12x24xf32>, vector<24x10xf32>, vector<12x10xf32> -> vector<12x10xf32>
    %c0_262 = arith.constant 0 : index
    %c0_263 = arith.constant 0 : index
    %273 = vector.load %arg4[%c0_262, %c0_263] : memref<1x10xf32, #tpu.memory_space<vmem>>, vector<1x10xf32>
    %274 = vector.broadcast %273 : vector<1x10xf32> to vector<12x10xf32>
    %275 = arith.addf %272, %274 : vector<12x10xf32>
    %cst_264 = arith.constant 0.000000e+00 : f32
    %276 = vector.broadcast %cst_264 : f32 to vector<24x10xf32>
    %c43_265 = arith.constant 43 : index
    %c0_266 = arith.constant 0 : index
    %277 = vector.load %arg29[%c43_265, %c0_266] : memref<86x10xf32, #tpu.memory_space<vmem>>, vector<24x10xf32>
    %c0_267 = arith.constant 0 : index
    %c0_268 = arith.constant 0 : index
    %278 = vector.load %arg3[%c0_267, %c0_268] : memref<200x10xf32, #tpu.memory_space<vmem>>, vector<10x10xf32>
    %cst_269 = arith.constant dense<0.000000e+00> : vector<24x10xf32>
    %279 = tpu.matmul %277, %278, %cst_269 {dimension_numbers = #tpu.dot_dimension_numbers<[1], [0], [0], [1], [0, 0, 1, 1], [], []>} : vector<24x10xf32>, vector<10x10xf32>, vector<24x10xf32> -> vector<24x10xf32>
    %280 = arith.addf %276, %279 : vector<24x10xf32>
    %c44 = arith.constant 44 : index
    %c0_270 = arith.constant 0 : index
    %281 = vector.load %arg29[%c44, %c0_270] : memref<86x10xf32, #tpu.memory_space<vmem>>, vector<24x10xf32>
    %c10_271 = arith.constant 10 : index
    %c0_272 = arith.constant 0 : index
    %282 = vector.load %arg3[%c10_271, %c0_272] : memref<200x10xf32, #tpu.memory_space<vmem>>, vector<10x10xf32>
    %cst_273 = arith.constant dense<0.000000e+00> : vector<24x10xf32>
    %283 = tpu.matmul %281, %282, %cst_273 {dimension_numbers = #tpu.dot_dimension_numbers<[1], [0], [0], [1], [0, 0, 1, 1], [], []>} : vector<24x10xf32>, vector<10x10xf32>, vector<24x10xf32> -> vector<24x10xf32>
    %284 = arith.addf %280, %283 : vector<24x10xf32>
    %c45 = arith.constant 45 : index
    %c0_274 = arith.constant 0 : index
    %285 = vector.load %arg29[%c45, %c0_274] : memref<86x10xf32, #tpu.memory_space<vmem>>, vector<24x10xf32>
    %c20_275 = arith.constant 20 : index
    %c0_276 = arith.constant 0 : index
    %286 = vector.load %arg3[%c20_275, %c0_276] : memref<200x10xf32, #tpu.memory_space<vmem>>, vector<10x10xf32>
    %cst_277 = arith.constant dense<0.000000e+00> : vector<24x10xf32>
    %287 = tpu.matmul %285, %286, %cst_277 {dimension_numbers = #tpu.dot_dimension_numbers<[1], [0], [0], [1], [0, 0, 1, 1], [], []>} : vector<24x10xf32>, vector<10x10xf32>, vector<24x10xf32> -> vector<24x10xf32>
    %288 = arith.addf %284, %287 : vector<24x10xf32>
    %c46 = arith.constant 46 : index
    %c0_278 = arith.constant 0 : index
    %289 = vector.load %arg29[%c46, %c0_278] : memref<86x10xf32, #tpu.memory_space<vmem>>, vector<24x10xf32>
    %c30_279 = arith.constant 30 : index
    %c0_280 = arith.constant 0 : index
    %290 = vector.load %arg3[%c30_279, %c0_280] : memref<200x10xf32, #tpu.memory_space<vmem>>, vector<10x10xf32>
    %cst_281 = arith.constant dense<0.000000e+00> : vector<24x10xf32>
    %291 = tpu.matmul %289, %290, %cst_281 {dimension_numbers = #tpu.dot_dimension_numbers<[1], [0], [0], [1], [0, 0, 1, 1], [], []>} : vector<24x10xf32>, vector<10x10xf32>, vector<24x10xf32> -> vector<24x10xf32>
    %292 = arith.addf %288, %291 : vector<24x10xf32>
    %c47 = arith.constant 47 : index
    %c0_282 = arith.constant 0 : index
    %293 = vector.load %arg29[%c47, %c0_282] : memref<86x10xf32, #tpu.memory_space<vmem>>, vector<24x10xf32>
    %c40_283 = arith.constant 40 : index
    %c0_284 = arith.constant 0 : index
    %294 = vector.load %arg3[%c40_283, %c0_284] : memref<200x10xf32, #tpu.memory_space<vmem>>, vector<10x10xf32>
    %cst_285 = arith.constant dense<0.000000e+00> : vector<24x10xf32>
    %295 = tpu.matmul %293, %294, %cst_285 {dimension_numbers = #tpu.dot_dimension_numbers<[1], [0], [0], [1], [0, 0, 1, 1], [], []>} : vector<24x10xf32>, vector<10x10xf32>, vector<24x10xf32> -> vector<24x10xf32>
    %296 = arith.addf %292, %295 : vector<24x10xf32>
    %c48_286 = arith.constant 48 : index
    %c0_287 = arith.constant 0 : index
    %297 = vector.load %arg29[%c48_286, %c0_287] : memref<86x10xf32, #tpu.memory_space<vmem>>, vector<24x10xf32>
    %c50_288 = arith.constant 50 : index
    %c0_289 = arith.constant 0 : index
    %298 = vector.load %arg3[%c50_288, %c0_289] : memref<200x10xf32, #tpu.memory_space<vmem>>, vector<10x10xf32>
    %cst_290 = arith.constant dense<0.000000e+00> : vector<24x10xf32>
    %299 = tpu.matmul %297, %298, %cst_290 {dimension_numbers = #tpu.dot_dimension_numbers<[1], [0], [0], [1], [0, 0, 1, 1], [], []>} : vector<24x10xf32>, vector<10x10xf32>, vector<24x10xf32> -> vector<24x10xf32>
    %300 = arith.addf %296, %299 : vector<24x10xf32>
    %c49 = arith.constant 49 : index
    %c0_291 = arith.constant 0 : index
    %301 = vector.load %arg29[%c49, %c0_291] : memref<86x10xf32, #tpu.memory_space<vmem>>, vector<24x10xf32>
    %c60_292 = arith.constant 60 : index
    %c0_293 = arith.constant 0 : index
    %302 = vector.load %arg3[%c60_292, %c0_293] : memref<200x10xf32, #tpu.memory_space<vmem>>, vector<10x10xf32>
    %cst_294 = arith.constant dense<0.000000e+00> : vector<24x10xf32>
    %303 = tpu.matmul %301, %302, %cst_294 {dimension_numbers = #tpu.dot_dimension_numbers<[1], [0], [0], [1], [0, 0, 1, 1], [], []>} : vector<24x10xf32>, vector<10x10xf32>, vector<24x10xf32> -> vector<24x10xf32>
    %304 = arith.addf %300, %303 : vector<24x10xf32>
    %c50_295 = arith.constant 50 : index
    %c0_296 = arith.constant 0 : index
    %305 = vector.load %arg29[%c50_295, %c0_296] : memref<86x10xf32, #tpu.memory_space<vmem>>, vector<24x10xf32>
    %c70_297 = arith.constant 70 : index
    %c0_298 = arith.constant 0 : index
    %306 = vector.load %arg3[%c70_297, %c0_298] : memref<200x10xf32, #tpu.memory_space<vmem>>, vector<10x10xf32>
    %cst_299 = arith.constant dense<0.000000e+00> : vector<24x10xf32>
    %307 = tpu.matmul %305, %306, %cst_299 {dimension_numbers = #tpu.dot_dimension_numbers<[1], [0], [0], [1], [0, 0, 1, 1], [], []>} : vector<24x10xf32>, vector<10x10xf32>, vector<24x10xf32> -> vector<24x10xf32>
    %308 = arith.addf %304, %307 : vector<24x10xf32>
    %c51 = arith.constant 51 : index
    %c0_300 = arith.constant 0 : index
    %309 = vector.load %arg29[%c51, %c0_300] : memref<86x10xf32, #tpu.memory_space<vmem>>, vector<24x10xf32>
    %c80_301 = arith.constant 80 : index
    %c0_302 = arith.constant 0 : index
    %310 = vector.load %arg3[%c80_301, %c0_302] : memref<200x10xf32, #tpu.memory_space<vmem>>, vector<10x10xf32>
    %cst_303 = arith.constant dense<0.000000e+00> : vector<24x10xf32>
    %311 = tpu.matmul %309, %310, %cst_303 {dimension_numbers = #tpu.dot_dimension_numbers<[1], [0], [0], [1], [0, 0, 1, 1], [], []>} : vector<24x10xf32>, vector<10x10xf32>, vector<24x10xf32> -> vector<24x10xf32>
    %312 = arith.addf %308, %311 : vector<24x10xf32>
    %c52 = arith.constant 52 : index
    %c0_304 = arith.constant 0 : index
    %313 = vector.load %arg29[%c52, %c0_304] : memref<86x10xf32, #tpu.memory_space<vmem>>, vector<24x10xf32>
    %c90_305 = arith.constant 90 : index
    %c0_306 = arith.constant 0 : index
    %314 = vector.load %arg3[%c90_305, %c0_306] : memref<200x10xf32, #tpu.memory_space<vmem>>, vector<10x10xf32>
    %cst_307 = arith.constant dense<0.000000e+00> : vector<24x10xf32>
    %315 = tpu.matmul %313, %314, %cst_307 {dimension_numbers = #tpu.dot_dimension_numbers<[1], [0], [0], [1], [0, 0, 1, 1], [], []>} : vector<24x10xf32>, vector<10x10xf32>, vector<24x10xf32> -> vector<24x10xf32>
    %316 = arith.addf %312, %315 : vector<24x10xf32>
    %c53 = arith.constant 53 : index
    %c0_308 = arith.constant 0 : index
    %317 = vector.load %arg29[%c53, %c0_308] : memref<86x10xf32, #tpu.memory_space<vmem>>, vector<24x10xf32>
    %c100_309 = arith.constant 100 : index
    %c0_310 = arith.constant 0 : index
    %318 = vector.load %arg3[%c100_309, %c0_310] : memref<200x10xf32, #tpu.memory_space<vmem>>, vector<10x10xf32>
    %cst_311 = arith.constant dense<0.000000e+00> : vector<24x10xf32>
    %319 = tpu.matmul %317, %318, %cst_311 {dimension_numbers = #tpu.dot_dimension_numbers<[1], [0], [0], [1], [0, 0, 1, 1], [], []>} : vector<24x10xf32>, vector<10x10xf32>, vector<24x10xf32> -> vector<24x10xf32>
    %320 = arith.addf %316, %319 : vector<24x10xf32>
    %c54 = arith.constant 54 : index
    %c0_312 = arith.constant 0 : index
    %321 = vector.load %arg29[%c54, %c0_312] : memref<86x10xf32, #tpu.memory_space<vmem>>, vector<24x10xf32>
    %c110_313 = arith.constant 110 : index
    %c0_314 = arith.constant 0 : index
    %322 = vector.load %arg3[%c110_313, %c0_314] : memref<200x10xf32, #tpu.memory_space<vmem>>, vector<10x10xf32>
    %cst_315 = arith.constant dense<0.000000e+00> : vector<24x10xf32>
    %323 = tpu.matmul %321, %322, %cst_315 {dimension_numbers = #tpu.dot_dimension_numbers<[1], [0], [0], [1], [0, 0, 1, 1], [], []>} : vector<24x10xf32>, vector<10x10xf32>, vector<24x10xf32> -> vector<24x10xf32>
    %324 = arith.addf %320, %323 : vector<24x10xf32>
    %c55 = arith.constant 55 : index
    %c0_316 = arith.constant 0 : index
    %325 = vector.load %arg29[%c55, %c0_316] : memref<86x10xf32, #tpu.memory_space<vmem>>, vector<24x10xf32>
    %c120_317 = arith.constant 120 : index
    %c0_318 = arith.constant 0 : index
    %326 = vector.load %arg3[%c120_317, %c0_318] : memref<200x10xf32, #tpu.memory_space<vmem>>, vector<10x10xf32>
    %cst_319 = arith.constant dense<0.000000e+00> : vector<24x10xf32>
    %327 = tpu.matmul %325, %326, %cst_319 {dimension_numbers = #tpu.dot_dimension_numbers<[1], [0], [0], [1], [0, 0, 1, 1], [], []>} : vector<24x10xf32>, vector<10x10xf32>, vector<24x10xf32> -> vector<24x10xf32>
    %328 = arith.addf %324, %327 : vector<24x10xf32>
    %c56_320 = arith.constant 56 : index
    %c0_321 = arith.constant 0 : index
    %329 = vector.load %arg29[%c56_320, %c0_321] : memref<86x10xf32, #tpu.memory_space<vmem>>, vector<24x10xf32>
    %c130_322 = arith.constant 130 : index
    %c0_323 = arith.constant 0 : index
    %330 = vector.load %arg3[%c130_322, %c0_323] : memref<200x10xf32, #tpu.memory_space<vmem>>, vector<10x10xf32>
    %cst_324 = arith.constant dense<0.000000e+00> : vector<24x10xf32>
    %331 = tpu.matmul %329, %330, %cst_324 {dimension_numbers = #tpu.dot_dimension_numbers<[1], [0], [0], [1], [0, 0, 1, 1], [], []>} : vector<24x10xf32>, vector<10x10xf32>, vector<24x10xf32> -> vector<24x10xf32>
    %332 = arith.addf %328, %331 : vector<24x10xf32>
    %c57 = arith.constant 57 : index
    %c0_325 = arith.constant 0 : index
    %333 = vector.load %arg29[%c57, %c0_325] : memref<86x10xf32, #tpu.memory_space<vmem>>, vector<24x10xf32>
    %c140_326 = arith.constant 140 : index
    %c0_327 = arith.constant 0 : index
    %334 = vector.load %arg3[%c140_326, %c0_327] : memref<200x10xf32, #tpu.memory_space<vmem>>, vector<10x10xf32>
    %cst_328 = arith.constant dense<0.000000e+00> : vector<24x10xf32>
    %335 = tpu.matmul %333, %334, %cst_328 {dimension_numbers = #tpu.dot_dimension_numbers<[1], [0], [0], [1], [0, 0, 1, 1], [], []>} : vector<24x10xf32>, vector<10x10xf32>, vector<24x10xf32> -> vector<24x10xf32>
    %336 = arith.addf %332, %335 : vector<24x10xf32>
    %c58 = arith.constant 58 : index
    %c0_329 = arith.constant 0 : index
    %337 = vector.load %arg29[%c58, %c0_329] : memref<86x10xf32, #tpu.memory_space<vmem>>, vector<24x10xf32>
    %c150_330 = arith.constant 150 : index
    %c0_331 = arith.constant 0 : index
    %338 = vector.load %arg3[%c150_330, %c0_331] : memref<200x10xf32, #tpu.memory_space<vmem>>, vector<10x10xf32>
    %cst_332 = arith.constant dense<0.000000e+00> : vector<24x10xf32>
    %339 = tpu.matmul %337, %338, %cst_332 {dimension_numbers = #tpu.dot_dimension_numbers<[1], [0], [0], [1], [0, 0, 1, 1], [], []>} : vector<24x10xf32>, vector<10x10xf32>, vector<24x10xf32> -> vector<24x10xf32>
    %340 = arith.addf %336, %339 : vector<24x10xf32>
    %c59 = arith.constant 59 : index
    %c0_333 = arith.constant 0 : index
    %341 = vector.load %arg29[%c59, %c0_333] : memref<86x10xf32, #tpu.memory_space<vmem>>, vector<24x10xf32>
    %c160_334 = arith.constant 160 : index
    %c0_335 = arith.constant 0 : index
    %342 = vector.load %arg3[%c160_334, %c0_335] : memref<200x10xf32, #tpu.memory_space<vmem>>, vector<10x10xf32>
    %cst_336 = arith.constant dense<0.000000e+00> : vector<24x10xf32>
    %343 = tpu.matmul %341, %342, %cst_336 {dimension_numbers = #tpu.dot_dimension_numbers<[1], [0], [0], [1], [0, 0, 1, 1], [], []>} : vector<24x10xf32>, vector<10x10xf32>, vector<24x10xf32> -> vector<24x10xf32>
    %344 = arith.addf %340, %343 : vector<24x10xf32>
    %c60_337 = arith.constant 60 : index
    %c0_338 = arith.constant 0 : index
    %345 = vector.load %arg29[%c60_337, %c0_338] : memref<86x10xf32, #tpu.memory_space<vmem>>, vector<24x10xf32>
    %c170_339 = arith.constant 170 : index
    %c0_340 = arith.constant 0 : index
    %346 = vector.load %arg3[%c170_339, %c0_340] : memref<200x10xf32, #tpu.memory_space<vmem>>, vector<10x10xf32>
    %cst_341 = arith.constant dense<0.000000e+00> : vector<24x10xf32>
    %347 = tpu.matmul %345, %346, %cst_341 {dimension_numbers = #tpu.dot_dimension_numbers<[1], [0], [0], [1], [0, 0, 1, 1], [], []>} : vector<24x10xf32>, vector<10x10xf32>, vector<24x10xf32> -> vector<24x10xf32>
    %348 = arith.addf %344, %347 : vector<24x10xf32>
    %c61 = arith.constant 61 : index
    %c0_342 = arith.constant 0 : index
    %349 = vector.load %arg29[%c61, %c0_342] : memref<86x10xf32, #tpu.memory_space<vmem>>, vector<24x10xf32>
    %c180_343 = arith.constant 180 : index
    %c0_344 = arith.constant 0 : index
    %350 = vector.load %arg3[%c180_343, %c0_344] : memref<200x10xf32, #tpu.memory_space<vmem>>, vector<10x10xf32>
    %cst_345 = arith.constant dense<0.000000e+00> : vector<24x10xf32>
    %351 = tpu.matmul %349, %350, %cst_345 {dimension_numbers = #tpu.dot_dimension_numbers<[1], [0], [0], [1], [0, 0, 1, 1], [], []>} : vector<24x10xf32>, vector<10x10xf32>, vector<24x10xf32> -> vector<24x10xf32>
    %352 = arith.addf %348, %351 : vector<24x10xf32>
    %c62 = arith.constant 62 : index
    %c0_346 = arith.constant 0 : index
    %353 = vector.load %arg29[%c62, %c0_346] : memref<86x10xf32, #tpu.memory_space<vmem>>, vector<24x10xf32>
    %c190_347 = arith.constant 190 : index
    %c0_348 = arith.constant 0 : index
    %354 = vector.load %arg3[%c190_347, %c0_348] : memref<200x10xf32, #tpu.memory_space<vmem>>, vector<10x10xf32>
    %cst_349 = arith.constant dense<0.000000e+00> : vector<24x10xf32>
    %355 = tpu.matmul %353, %354, %cst_349 {dimension_numbers = #tpu.dot_dimension_numbers<[1], [0], [0], [1], [0, 0, 1, 1], [], []>} : vector<24x10xf32>, vector<10x10xf32>, vector<24x10xf32> -> vector<24x10xf32>
    %356 = arith.addf %352, %355 : vector<24x10xf32>
    %c0_350 = arith.constant 0 : index
    %c0_351 = arith.constant 0 : index
    %357 = vector.load %arg5[%c0_350, %c0_351] : memref<12x24xf32, #tpu.memory_space<vmem>>, vector<12x24xf32>
    %cst_352 = arith.constant dense<0.000000e+00> : vector<12x10xf32>
    %358 = tpu.matmul %357, %356, %cst_352 {dimension_numbers = #tpu.dot_dimension_numbers<[1], [0], [0], [1], [0, 0, 1, 1], [], []>} : vector<12x24xf32>, vector<24x10xf32>, vector<12x10xf32> -> vector<12x10xf32>
    %c0_353 = arith.constant 0 : index
    %c0_354 = arith.constant 0 : index
    %359 = vector.load %arg4[%c0_353, %c0_354] : memref<1x10xf32, #tpu.memory_space<vmem>>, vector<1x10xf32>
    %360 = vector.broadcast %359 : vector<1x10xf32> to vector<12x10xf32>
    %361 = arith.addf %358, %360 : vector<12x10xf32>
    %cst_355 = arith.constant dense<0.000000e+00> : vector<10xf32>
    %362 = vector.multi_reduction <add>, %275, %cst_355 [0] : vector<12x10xf32> to vector<10xf32>
    %363 = vector.shape_cast %362 : vector<10xf32> to vector<1x10xf32>
    %cst_356 = arith.constant dense<0.000000e+00> : vector<10xf32>
    %364 = vector.multi_reduction <add>, %361, %cst_356 [0] : vector<12x10xf32> to vector<10xf32>
    %365 = vector.shape_cast %364 : vector<10xf32> to vector<1x10xf32>
    %366 = arith.addf %363, %365 : vector<1x10xf32>
    %cst_357 = arith.constant 2.400000e+01 : f32
    %367 = vector.broadcast %cst_357 : f32 to vector<1x10xf32>
    %368 = arith.divf %366, %367 : vector<1x10xf32>
    %369 = vector.broadcast %368 : vector<1x10xf32> to vector<12x10xf32>
    %370 = arith.subf %275, %369 : vector<12x10xf32>
    %371 = arith.mulf %370, %370 : vector<12x10xf32>
    %cst_358 = arith.constant dense<0.000000e+00> : vector<10xf32>
    %372 = vector.multi_reduction <add>, %371, %cst_358 [0] : vector<12x10xf32> to vector<10xf32>
    %373 = vector.shape_cast %372 : vector<10xf32> to vector<1x10xf32>
    %374 = vector.broadcast %368 : vector<1x10xf32> to vector<12x10xf32>
    %375 = arith.subf %361, %374 : vector<12x10xf32>
    %376 = arith.mulf %375, %375 : vector<12x10xf32>
    %cst_359 = arith.constant dense<0.000000e+00> : vector<10xf32>
    %377 = vector.multi_reduction <add>, %376, %cst_359 [0] : vector<12x10xf32> to vector<10xf32>
    %378 = vector.shape_cast %377 : vector<10xf32> to vector<1x10xf32>
    %379 = arith.addf %373, %378 : vector<1x10xf32>
    %cst_360 = arith.constant 2.400000e+01 : f32
    %380 = vector.broadcast %cst_360 : f32 to vector<1x10xf32>
    %381 = arith.divf %379, %380 : vector<1x10xf32>
    %c0_361 = arith.constant 0 : index
    %c0_362 = arith.constant 0 : index
    %382 = vector.load %arg6[%c0_361, %c0_362] : memref<1x10xf32, #tpu.memory_space<vmem>>, vector<1x10xf32>
    %cst_363 = arith.constant 9.99999974E-6 : f32
    %383 = vector.broadcast %cst_363 : f32 to vector<1x10xf32>
    %384 = arith.addf %381, %383 : vector<1x10xf32>
    %385 = math.rsqrt %384 : vector<1x10xf32>
    %386 = arith.mulf %382, %385 : vector<1x10xf32>
    %c0_364 = arith.constant 0 : index
    %c0_365 = arith.constant 0 : index
    %387 = vector.load %arg7[%c0_364, %c0_365] : memref<1x10xf32, #tpu.memory_space<vmem>>, vector<1x10xf32>
    %388 = arith.mulf %368, %386 : vector<1x10xf32>
    %389 = arith.subf %387, %388 : vector<1x10xf32>
    %390 = vector.broadcast %386 : vector<1x10xf32> to vector<12x10xf32>
    %391 = arith.mulf %275, %390 : vector<12x10xf32>
    %392 = vector.broadcast %389 : vector<1x10xf32> to vector<12x10xf32>
    %393 = arith.addf %391, %392 : vector<12x10xf32>
    %cst_366 = arith.constant 0.000000e+00 : f32
    %394 = vector.broadcast %cst_366 : f32 to vector<12x10xf32>
    %395 = arith.maximumf %393, %394 : vector<12x10xf32>
    %396 = vector.broadcast %386 : vector<1x10xf32> to vector<12x10xf32>
    %397 = arith.mulf %361, %396 : vector<12x10xf32>
    %398 = vector.broadcast %389 : vector<1x10xf32> to vector<12x10xf32>
    %399 = arith.addf %397, %398 : vector<12x10xf32>
    %cst_367 = arith.constant 0.000000e+00 : f32
    %400 = vector.broadcast %cst_367 : f32 to vector<12x10xf32>
    %401 = arith.maximumf %399, %400 : vector<12x10xf32>
    %cst_368 = arith.constant 0.000000e+00 : f32
    %402 = vector.broadcast %cst_368 : f32 to vector<14x10xf32>
    %c0_369 = arith.constant 0 : index
    %c0_370 = arith.constant 0 : index
    %403 = vector.load %arg30[%c0_369, %c0_370] : memref<28x10xf32, #tpu.memory_space<vmem>>, vector<14x10xf32>
    tpu.vector_store %arg30[%c0_369, %c0_370], %402 {strides = array<i32>} : memref<28x10xf32, #tpu.memory_space<vmem>>, vector<14x10xf32>,
    %c1_371 = arith.constant 1 : index
    %c0_372 = arith.constant 0 : index
    %404 = vector.load %arg30[%c1_371, %c0_372] : memref<28x10xf32, #tpu.memory_space<vmem>>, vector<12x10xf32>
    tpu.vector_store %arg30[%c1_371, %c0_372], %395 {strides = array<i32>} : memref<28x10xf32, #tpu.memory_space<vmem>>, vector<12x10xf32>,
    %cst_373 = arith.constant 0.000000e+00 : f32
    %405 = vector.broadcast %cst_373 : f32 to vector<12x10xf32>
    %c0_374 = arith.constant 0 : index
    %c0_375 = arith.constant 0 : index
    %406 = vector.load %arg30[%c0_374, %c0_375] : memref<28x10xf32, #tpu.memory_space<vmem>>, vector<12x10xf32>
    %c0_376 = arith.constant 0 : index
    %c0_377 = arith.constant 0 : index
    %407 = vector.load %arg8[%c0_376, %c0_377] : memref<30x10xf32, #tpu.memory_space<vmem>>, vector<10x10xf32>
    %cst_378 = arith.constant dense<0.000000e+00> : vector<12x10xf32>
    %408 = tpu.matmul %406, %407, %cst_378 {dimension_numbers = #tpu.dot_dimension_numbers<[1], [0], [0], [1], [0, 0, 1, 1], [], []>} : vector<12x10xf32>, vector<10x10xf32>, vector<12x10xf32> -> vector<12x10xf32>
    %409 = arith.addf %405, %408 : vector<12x10xf32>
    %c1_379 = arith.constant 1 : index
    %c0_380 = arith.constant 0 : index
    %410 = vector.load %arg30[%c1_379, %c0_380] : memref<28x10xf32, #tpu.memory_space<vmem>>, vector<12x10xf32>
    %c10_381 = arith.constant 10 : index
    %c0_382 = arith.constant 0 : index
    %411 = vector.load %arg8[%c10_381, %c0_382] : memref<30x10xf32, #tpu.memory_space<vmem>>, vector<10x10xf32>
    %cst_383 = arith.constant dense<0.000000e+00> : vector<12x10xf32>
    %412 = tpu.matmul %410, %411, %cst_383 {dimension_numbers = #tpu.dot_dimension_numbers<[1], [0], [0], [1], [0, 0, 1, 1], [], []>} : vector<12x10xf32>, vector<10x10xf32>, vector<12x10xf32> -> vector<12x10xf32>
    %413 = arith.addf %409, %412 : vector<12x10xf32>
    %c2_384 = arith.constant 2 : index
    %c0_385 = arith.constant 0 : index
    %414 = vector.load %arg30[%c2_384, %c0_385] : memref<28x10xf32, #tpu.memory_space<vmem>>, vector<12x10xf32>
    %c20_386 = arith.constant 20 : index
    %c0_387 = arith.constant 0 : index
    %415 = vector.load %arg8[%c20_386, %c0_387] : memref<30x10xf32, #tpu.memory_space<vmem>>, vector<10x10xf32>
    %cst_388 = arith.constant dense<0.000000e+00> : vector<12x10xf32>
    %416 = tpu.matmul %414, %415, %cst_388 {dimension_numbers = #tpu.dot_dimension_numbers<[1], [0], [0], [1], [0, 0, 1, 1], [], []>} : vector<12x10xf32>, vector<10x10xf32>, vector<12x10xf32> -> vector<12x10xf32>
    %417 = arith.addf %413, %416 : vector<12x10xf32>
    %c0_389 = arith.constant 0 : index
    %c0_390 = arith.constant 0 : index
    %418 = vector.load %arg9[%c0_389, %c0_390] : memref<1x10xf32, #tpu.memory_space<vmem>>, vector<1x10xf32>
    %419 = vector.broadcast %418 : vector<1x10xf32> to vector<12x10xf32>
    %420 = arith.addf %417, %419 : vector<12x10xf32>
    %cst_391 = arith.constant 0.000000e+00 : f32
    %421 = vector.broadcast %cst_391 : f32 to vector<14x10xf32>
    %c14_392 = arith.constant 14 : index
    %c0_393 = arith.constant 0 : index
    %422 = vector.load %arg30[%c14_392, %c0_393] : memref<28x10xf32, #tpu.memory_space<vmem>>, vector<14x10xf32>
    tpu.vector_store %arg30[%c14_392, %c0_393], %421 {strides = array<i32>} : memref<28x10xf32, #tpu.memory_space<vmem>>, vector<14x10xf32>,
    %c15_394 = arith.constant 15 : index
    %c0_395 = arith.constant 0 : index
    %423 = vector.load %arg30[%c15_394, %c0_395] : memref<28x10xf32, #tpu.memory_space<vmem>>, vector<12x10xf32>
    tpu.vector_store %arg30[%c15_394, %c0_395], %401 {strides = array<i32>} : memref<28x10xf32, #tpu.memory_space<vmem>>, vector<12x10xf32>,
    %cst_396 = arith.constant 0.000000e+00 : f32
    %424 = vector.broadcast %cst_396 : f32 to vector<12x10xf32>
    %c14_397 = arith.constant 14 : index
    %c0_398 = arith.constant 0 : index
    %425 = vector.load %arg30[%c14_397, %c0_398] : memref<28x10xf32, #tpu.memory_space<vmem>>, vector<12x10xf32>
    %c0_399 = arith.constant 0 : index
    %c0_400 = arith.constant 0 : index
    %426 = vector.load %arg8[%c0_399, %c0_400] : memref<30x10xf32, #tpu.memory_space<vmem>>, vector<10x10xf32>
    %cst_401 = arith.constant dense<0.000000e+00> : vector<12x10xf32>
    %427 = tpu.matmul %425, %426, %cst_401 {dimension_numbers = #tpu.dot_dimension_numbers<[1], [0], [0], [1], [0, 0, 1, 1], [], []>} : vector<12x10xf32>, vector<10x10xf32>, vector<12x10xf32> -> vector<12x10xf32>
    %428 = arith.addf %424, %427 : vector<12x10xf32>
    %c15_402 = arith.constant 15 : index
    %c0_403 = arith.constant 0 : index
    %429 = vector.load %arg30[%c15_402, %c0_403] : memref<28x10xf32, #tpu.memory_space<vmem>>, vector<12x10xf32>
    %c10_404 = arith.constant 10 : index
    %c0_405 = arith.constant 0 : index
    %430 = vector.load %arg8[%c10_404, %c0_405] : memref<30x10xf32, #tpu.memory_space<vmem>>, vector<10x10xf32>
    %cst_406 = arith.constant dense<0.000000e+00> : vector<12x10xf32>
    %431 = tpu.matmul %429, %430, %cst_406 {dimension_numbers = #tpu.dot_dimension_numbers<[1], [0], [0], [1], [0, 0, 1, 1], [], []>} : vector<12x10xf32>, vector<10x10xf32>, vector<12x10xf32> -> vector<12x10xf32>
    %432 = arith.addf %428, %431 : vector<12x10xf32>
    %c16_407 = arith.constant 16 : index
    %c0_408 = arith.constant 0 : index
    %433 = vector.load %arg30[%c16_407, %c0_408] : memref<28x10xf32, #tpu.memory_space<vmem>>, vector<12x10xf32>
    %c20_409 = arith.constant 20 : index
    %c0_410 = arith.constant 0 : index
    %434 = vector.load %arg8[%c20_409, %c0_410] : memref<30x10xf32, #tpu.memory_space<vmem>>, vector<10x10xf32>
    %cst_411 = arith.constant dense<0.000000e+00> : vector<12x10xf32>
    %435 = tpu.matmul %433, %434, %cst_411 {dimension_numbers = #tpu.dot_dimension_numbers<[1], [0], [0], [1], [0, 0, 1, 1], [], []>} : vector<12x10xf32>, vector<10x10xf32>, vector<12x10xf32> -> vector<12x10xf32>
    %436 = arith.addf %432, %435 : vector<12x10xf32>
    %c0_412 = arith.constant 0 : index
    %c0_413 = arith.constant 0 : index
    %437 = vector.load %arg9[%c0_412, %c0_413] : memref<1x10xf32, #tpu.memory_space<vmem>>, vector<1x10xf32>
    %438 = vector.broadcast %437 : vector<1x10xf32> to vector<12x10xf32>
    %439 = arith.addf %436, %438 : vector<12x10xf32>
    %cst_414 = arith.constant dense<0.000000e+00> : vector<10xf32>
    %440 = vector.multi_reduction <add>, %420, %cst_414 [0] : vector<12x10xf32> to vector<10xf32>
    %441 = vector.shape_cast %440 : vector<10xf32> to vector<1x10xf32>
    %cst_415 = arith.constant dense<0.000000e+00> : vector<10xf32>
    %442 = vector.multi_reduction <add>, %439, %cst_415 [0] : vector<12x10xf32> to vector<10xf32>
    %443 = vector.shape_cast %442 : vector<10xf32> to vector<1x10xf32>
    %444 = arith.addf %441, %443 : vector<1x10xf32>
    %cst_416 = arith.constant 2.400000e+01 : f32
    %445 = vector.broadcast %cst_416 : f32 to vector<1x10xf32>
    %446 = arith.divf %444, %445 : vector<1x10xf32>
    %447 = vector.broadcast %446 : vector<1x10xf32> to vector<12x10xf32>
    %448 = arith.subf %420, %447 : vector<12x10xf32>
    %449 = arith.mulf %448, %448 : vector<12x10xf32>
    %cst_417 = arith.constant dense<0.000000e+00> : vector<10xf32>
    %450 = vector.multi_reduction <add>, %449, %cst_417 [0] : vector<12x10xf32> to vector<10xf32>
    %451 = vector.shape_cast %450 : vector<10xf32> to vector<1x10xf32>
    %452 = vector.broadcast %446 : vector<1x10xf32> to vector<12x10xf32>
    %453 = arith.subf %439, %452 : vector<12x10xf32>
    %454 = arith.mulf %453, %453 : vector<12x10xf32>
    %cst_418 = arith.constant dense<0.000000e+00> : vector<10xf32>
    %455 = vector.multi_reduction <add>, %454, %cst_418 [0] : vector<12x10xf32> to vector<10xf32>
    %456 = vector.shape_cast %455 : vector<10xf32> to vector<1x10xf32>
    %457 = arith.addf %451, %456 : vector<1x10xf32>
    %cst_419 = arith.constant 2.400000e+01 : f32
    %458 = vector.broadcast %cst_419 : f32 to vector<1x10xf32>
    %459 = arith.divf %457, %458 : vector<1x10xf32>
    %c0_420 = arith.constant 0 : index
    %c0_421 = arith.constant 0 : index
    %460 = vector.load %arg10[%c0_420, %c0_421] : memref<1x10xf32, #tpu.memory_space<vmem>>, vector<1x10xf32>
    %cst_422 = arith.constant 9.99999974E-6 : f32
    %461 = vector.broadcast %cst_422 : f32 to vector<1x10xf32>
    %462 = arith.addf %459, %461 : vector<1x10xf32>
    %463 = math.rsqrt %462 : vector<1x10xf32>
    %464 = arith.mulf %460, %463 : vector<1x10xf32>
    %c0_423 = arith.constant 0 : index
    %c0_424 = arith.constant 0 : index
    %465 = vector.load %arg11[%c0_423, %c0_424] : memref<1x10xf32, #tpu.memory_space<vmem>>, vector<1x10xf32>
    %466 = arith.mulf %446, %464 : vector<1x10xf32>
    %467 = arith.subf %465, %466 : vector<1x10xf32>
    %468 = vector.broadcast %464 : vector<1x10xf32> to vector<12x10xf32>
    %469 = arith.mulf %420, %468 : vector<12x10xf32>
    %470 = vector.broadcast %467 : vector<1x10xf32> to vector<12x10xf32>
    %471 = arith.addf %469, %470 : vector<12x10xf32>
    %cst_425 = arith.constant 0.000000e+00 : f32
    %472 = vector.broadcast %cst_425 : f32 to vector<12x10xf32>
    %473 = arith.maximumf %471, %472 : vector<12x10xf32>
    %474 = vector.broadcast %464 : vector<1x10xf32> to vector<12x10xf32>
    %475 = arith.mulf %439, %474 : vector<12x10xf32>
    %476 = vector.broadcast %467 : vector<1x10xf32> to vector<12x10xf32>
    %477 = arith.addf %475, %476 : vector<12x10xf32>
    %cst_426 = arith.constant 0.000000e+00 : f32
    %478 = vector.broadcast %cst_426 : f32 to vector<12x10xf32>
    %479 = arith.maximumf %477, %478 : vector<12x10xf32>
    %cst_427 = arith.constant 0.000000e+00 : f32
    %480 = vector.broadcast %cst_427 : f32 to vector<14x10xf32>
    %c0_428 = arith.constant 0 : index
    %c0_429 = arith.constant 0 : index
    %481 = vector.load %arg30[%c0_428, %c0_429] : memref<28x10xf32, #tpu.memory_space<vmem>>, vector<14x10xf32>
    tpu.vector_store %arg30[%c0_428, %c0_429], %480 {strides = array<i32>} : memref<28x10xf32, #tpu.memory_space<vmem>>, vector<14x10xf32>,
    %c1_430 = arith.constant 1 : index
    %c0_431 = arith.constant 0 : index
    %482 = vector.load %arg30[%c1_430, %c0_431] : memref<28x10xf32, #tpu.memory_space<vmem>>, vector<12x10xf32>
    tpu.vector_store %arg30[%c1_430, %c0_431], %473 {strides = array<i32>} : memref<28x10xf32, #tpu.memory_space<vmem>>, vector<12x10xf32>,
    %cst_432 = arith.constant 0.000000e+00 : f32
    %483 = vector.broadcast %cst_432 : f32 to vector<12x10xf32>
    %c0_433 = arith.constant 0 : index
    %c0_434 = arith.constant 0 : index
    %484 = vector.load %arg30[%c0_433, %c0_434] : memref<28x10xf32, #tpu.memory_space<vmem>>, vector<12x10xf32>
    %c0_435 = arith.constant 0 : index
    %c0_436 = arith.constant 0 : index
    %485 = vector.load %arg12[%c0_435, %c0_436] : memref<30x10xf32, #tpu.memory_space<vmem>>, vector<10x10xf32>
    %cst_437 = arith.constant dense<0.000000e+00> : vector<12x10xf32>
    %486 = tpu.matmul %484, %485, %cst_437 {dimension_numbers = #tpu.dot_dimension_numbers<[1], [0], [0], [1], [0, 0, 1, 1], [], []>} : vector<12x10xf32>, vector<10x10xf32>, vector<12x10xf32> -> vector<12x10xf32>
    %487 = arith.addf %483, %486 : vector<12x10xf32>
    %c1_438 = arith.constant 1 : index
    %c0_439 = arith.constant 0 : index
    %488 = vector.load %arg30[%c1_438, %c0_439] : memref<28x10xf32, #tpu.memory_space<vmem>>, vector<12x10xf32>
    %c10_440 = arith.constant 10 : index
    %c0_441 = arith.constant 0 : index
    %489 = vector.load %arg12[%c10_440, %c0_441] : memref<30x10xf32, #tpu.memory_space<vmem>>, vector<10x10xf32>
    %cst_442 = arith.constant dense<0.000000e+00> : vector<12x10xf32>
    %490 = tpu.matmul %488, %489, %cst_442 {dimension_numbers = #tpu.dot_dimension_numbers<[1], [0], [0], [1], [0, 0, 1, 1], [], []>} : vector<12x10xf32>, vector<10x10xf32>, vector<12x10xf32> -> vector<12x10xf32>
    %491 = arith.addf %487, %490 : vector<12x10xf32>
    %c2_443 = arith.constant 2 : index
    %c0_444 = arith.constant 0 : index
    %492 = vector.load %arg30[%c2_443, %c0_444] : memref<28x10xf32, #tpu.memory_space<vmem>>, vector<12x10xf32>
    %c20_445 = arith.constant 20 : index
    %c0_446 = arith.constant 0 : index
    %493 = vector.load %arg12[%c20_445, %c0_446] : memref<30x10xf32, #tpu.memory_space<vmem>>, vector<10x10xf32>
    %cst_447 = arith.constant dense<0.000000e+00> : vector<12x10xf32>
    %494 = tpu.matmul %492, %493, %cst_447 {dimension_numbers = #tpu.dot_dimension_numbers<[1], [0], [0], [1], [0, 0, 1, 1], [], []>} : vector<12x10xf32>, vector<10x10xf32>, vector<12x10xf32> -> vector<12x10xf32>
    %495 = arith.addf %491, %494 : vector<12x10xf32>
    %c0_448 = arith.constant 0 : index
    %c0_449 = arith.constant 0 : index
    %496 = vector.load %arg13[%c0_448, %c0_449] : memref<1x10xf32, #tpu.memory_space<vmem>>, vector<1x10xf32>
    %497 = vector.broadcast %496 : vector<1x10xf32> to vector<12x10xf32>
    %498 = arith.addf %495, %497 : vector<12x10xf32>
    %cst_450 = arith.constant 0.000000e+00 : f32
    %499 = vector.broadcast %cst_450 : f32 to vector<14x10xf32>
    %c14_451 = arith.constant 14 : index
    %c0_452 = arith.constant 0 : index
    %500 = vector.load %arg30[%c14_451, %c0_452] : memref<28x10xf32, #tpu.memory_space<vmem>>, vector<14x10xf32>
    tpu.vector_store %arg30[%c14_451, %c0_452], %499 {strides = array<i32>} : memref<28x10xf32, #tpu.memory_space<vmem>>, vector<14x10xf32>,
    %c15_453 = arith.constant 15 : index
    %c0_454 = arith.constant 0 : index
    %501 = vector.load %arg30[%c15_453, %c0_454] : memref<28x10xf32, #tpu.memory_space<vmem>>, vector<12x10xf32>
    tpu.vector_store %arg30[%c15_453, %c0_454], %479 {strides = array<i32>} : memref<28x10xf32, #tpu.memory_space<vmem>>, vector<12x10xf32>,
    %cst_455 = arith.constant 0.000000e+00 : f32
    %502 = vector.broadcast %cst_455 : f32 to vector<12x10xf32>
    %c14_456 = arith.constant 14 : index
    %c0_457 = arith.constant 0 : index
    %503 = vector.load %arg30[%c14_456, %c0_457] : memref<28x10xf32, #tpu.memory_space<vmem>>, vector<12x10xf32>
    %c0_458 = arith.constant 0 : index
    %c0_459 = arith.constant 0 : index
    %504 = vector.load %arg12[%c0_458, %c0_459] : memref<30x10xf32, #tpu.memory_space<vmem>>, vector<10x10xf32>
    %cst_460 = arith.constant dense<0.000000e+00> : vector<12x10xf32>
    %505 = tpu.matmul %503, %504, %cst_460 {dimension_numbers = #tpu.dot_dimension_numbers<[1], [0], [0], [1], [0, 0, 1, 1], [], []>} : vector<12x10xf32>, vector<10x10xf32>, vector<12x10xf32> -> vector<12x10xf32>
    %506 = arith.addf %502, %505 : vector<12x10xf32>
    %c15_461 = arith.constant 15 : index
    %c0_462 = arith.constant 0 : index
    %507 = vector.load %arg30[%c15_461, %c0_462] : memref<28x10xf32, #tpu.memory_space<vmem>>, vector<12x10xf32>
    %c10_463 = arith.constant 10 : index
    %c0_464 = arith.constant 0 : index
    %508 = vector.load %arg12[%c10_463, %c0_464] : memref<30x10xf32, #tpu.memory_space<vmem>>, vector<10x10xf32>
    %cst_465 = arith.constant dense<0.000000e+00> : vector<12x10xf32>
    %509 = tpu.matmul %507, %508, %cst_465 {dimension_numbers = #tpu.dot_dimension_numbers<[1], [0], [0], [1], [0, 0, 1, 1], [], []>} : vector<12x10xf32>, vector<10x10xf32>, vector<12x10xf32> -> vector<12x10xf32>
    %510 = arith.addf %506, %509 : vector<12x10xf32>
    %c16_466 = arith.constant 16 : index
    %c0_467 = arith.constant 0 : index
    %511 = vector.load %arg30[%c16_466, %c0_467] : memref<28x10xf32, #tpu.memory_space<vmem>>, vector<12x10xf32>
    %c20_468 = arith.constant 20 : index
    %c0_469 = arith.constant 0 : index
    %512 = vector.load %arg12[%c20_468, %c0_469] : memref<30x10xf32, #tpu.memory_space<vmem>>, vector<10x10xf32>
    %cst_470 = arith.constant dense<0.000000e+00> : vector<12x10xf32>
    %513 = tpu.matmul %511, %512, %cst_470 {dimension_numbers = #tpu.dot_dimension_numbers<[1], [0], [0], [1], [0, 0, 1, 1], [], []>} : vector<12x10xf32>, vector<10x10xf32>, vector<12x10xf32> -> vector<12x10xf32>
    %514 = arith.addf %510, %513 : vector<12x10xf32>
    %c0_471 = arith.constant 0 : index
    %c0_472 = arith.constant 0 : index
    %515 = vector.load %arg13[%c0_471, %c0_472] : memref<1x10xf32, #tpu.memory_space<vmem>>, vector<1x10xf32>
    %516 = vector.broadcast %515 : vector<1x10xf32> to vector<12x10xf32>
    %517 = arith.addf %514, %516 : vector<12x10xf32>
    %cst_473 = arith.constant dense<0.000000e+00> : vector<10xf32>
    %518 = vector.multi_reduction <add>, %498, %cst_473 [0] : vector<12x10xf32> to vector<10xf32>
    %519 = vector.shape_cast %518 : vector<10xf32> to vector<1x10xf32>
    %cst_474 = arith.constant dense<0.000000e+00> : vector<10xf32>
    %520 = vector.multi_reduction <add>, %517, %cst_474 [0] : vector<12x10xf32> to vector<10xf32>
    %521 = vector.shape_cast %520 : vector<10xf32> to vector<1x10xf32>
    %522 = arith.addf %519, %521 : vector<1x10xf32>
    %cst_475 = arith.constant 2.400000e+01 : f32
    %523 = vector.broadcast %cst_475 : f32 to vector<1x10xf32>
    %524 = arith.divf %522, %523 : vector<1x10xf32>
    %525 = vector.broadcast %524 : vector<1x10xf32> to vector<12x10xf32>
    %526 = arith.subf %498, %525 : vector<12x10xf32>
    %527 = arith.mulf %526, %526 : vector<12x10xf32>
    %cst_476 = arith.constant dense<0.000000e+00> : vector<10xf32>
    %528 = vector.multi_reduction <add>, %527, %cst_476 [0] : vector<12x10xf32> to vector<10xf32>
    %529 = vector.shape_cast %528 : vector<10xf32> to vector<1x10xf32>
    %530 = vector.broadcast %524 : vector<1x10xf32> to vector<12x10xf32>
    %531 = arith.subf %517, %530 : vector<12x10xf32>
    %532 = arith.mulf %531, %531 : vector<12x10xf32>
    %cst_477 = arith.constant dense<0.000000e+00> : vector<10xf32>
    %533 = vector.multi_reduction <add>, %532, %cst_477 [0] : vector<12x10xf32> to vector<10xf32>
    %534 = vector.shape_cast %533 : vector<10xf32> to vector<1x10xf32>
    %535 = arith.addf %529, %534 : vector<1x10xf32>
    %cst_478 = arith.constant 2.400000e+01 : f32
    %536 = vector.broadcast %cst_478 : f32 to vector<1x10xf32>
    %537 = arith.divf %535, %536 : vector<1x10xf32>
    %c0_479 = arith.constant 0 : index
    %c0_480 = arith.constant 0 : index
    %538 = vector.load %arg14[%c0_479, %c0_480] : memref<1x10xf32, #tpu.memory_space<vmem>>, vector<1x10xf32>
    %cst_481 = arith.constant 9.99999974E-6 : f32
    %539 = vector.broadcast %cst_481 : f32 to vector<1x10xf32>
    %540 = arith.addf %537, %539 : vector<1x10xf32>
    %541 = math.rsqrt %540 : vector<1x10xf32>
    %542 = arith.mulf %538, %541 : vector<1x10xf32>
    %c0_482 = arith.constant 0 : index
    %c0_483 = arith.constant 0 : index
    %543 = vector.load %arg15[%c0_482, %c0_483] : memref<1x10xf32, #tpu.memory_space<vmem>>, vector<1x10xf32>
    %544 = arith.mulf %524, %542 : vector<1x10xf32>
    %545 = arith.subf %543, %544 : vector<1x10xf32>
    %546 = vector.broadcast %542 : vector<1x10xf32> to vector<12x10xf32>
    %547 = arith.mulf %498, %546 : vector<12x10xf32>
    %548 = vector.broadcast %545 : vector<1x10xf32> to vector<12x10xf32>
    %549 = arith.addf %547, %548 : vector<12x10xf32>
    %550 = arith.addf %549, %395 : vector<12x10xf32>
    %cst_484 = arith.constant 0.000000e+00 : f32
    %551 = vector.broadcast %cst_484 : f32 to vector<12x10xf32>
    %552 = arith.maximumf %550, %551 : vector<12x10xf32>
    %553 = vector.broadcast %542 : vector<1x10xf32> to vector<12x10xf32>
    %554 = arith.mulf %517, %553 : vector<12x10xf32>
    %555 = vector.broadcast %545 : vector<1x10xf32> to vector<12x10xf32>
    %556 = arith.addf %554, %555 : vector<12x10xf32>
    %557 = arith.addf %556, %401 : vector<12x10xf32>
    %cst_485 = arith.constant 0.000000e+00 : f32
    %558 = vector.broadcast %cst_485 : f32 to vector<12x10xf32>
    %559 = arith.maximumf %557, %558 : vector<12x10xf32>
    %cst_486 = arith.constant 0.000000e+00 : f32
    %560 = vector.broadcast %cst_486 : f32 to vector<14x10xf32>
    %c0_487 = arith.constant 0 : index
    %c0_488 = arith.constant 0 : index
    %561 = vector.load %arg30[%c0_487, %c0_488] : memref<28x10xf32, #tpu.memory_space<vmem>>, vector<14x10xf32>
    tpu.vector_store %arg30[%c0_487, %c0_488], %560 {strides = array<i32>} : memref<28x10xf32, #tpu.memory_space<vmem>>, vector<14x10xf32>,
    %c1_489 = arith.constant 1 : index
    %c0_490 = arith.constant 0 : index
    %562 = vector.load %arg30[%c1_489, %c0_490] : memref<28x10xf32, #tpu.memory_space<vmem>>, vector<12x10xf32>
    tpu.vector_store %arg30[%c1_489, %c0_490], %552 {strides = array<i32>} : memref<28x10xf32, #tpu.memory_space<vmem>>, vector<12x10xf32>,
    %cst_491 = arith.constant 0.000000e+00 : f32
    %563 = vector.broadcast %cst_491 : f32 to vector<12x10xf32>
    %c0_492 = arith.constant 0 : index
    %c0_493 = arith.constant 0 : index
    %564 = vector.load %arg30[%c0_492, %c0_493] : memref<28x10xf32, #tpu.memory_space<vmem>>, vector<12x10xf32>
    %c0_494 = arith.constant 0 : index
    %c0_495 = arith.constant 0 : index
    %565 = vector.load %arg16[%c0_494, %c0_495] : memref<30x10xf32, #tpu.memory_space<vmem>>, vector<10x10xf32>
    %cst_496 = arith.constant dense<0.000000e+00> : vector<12x10xf32>
    %566 = tpu.matmul %564, %565, %cst_496 {dimension_numbers = #tpu.dot_dimension_numbers<[1], [0], [0], [1], [0, 0, 1, 1], [], []>} : vector<12x10xf32>, vector<10x10xf32>, vector<12x10xf32> -> vector<12x10xf32>
    %567 = arith.addf %563, %566 : vector<12x10xf32>
    %c1_497 = arith.constant 1 : index
    %c0_498 = arith.constant 0 : index
    %568 = vector.load %arg30[%c1_497, %c0_498] : memref<28x10xf32, #tpu.memory_space<vmem>>, vector<12x10xf32>
    %c10_499 = arith.constant 10 : index
    %c0_500 = arith.constant 0 : index
    %569 = vector.load %arg16[%c10_499, %c0_500] : memref<30x10xf32, #tpu.memory_space<vmem>>, vector<10x10xf32>
    %cst_501 = arith.constant dense<0.000000e+00> : vector<12x10xf32>
    %570 = tpu.matmul %568, %569, %cst_501 {dimension_numbers = #tpu.dot_dimension_numbers<[1], [0], [0], [1], [0, 0, 1, 1], [], []>} : vector<12x10xf32>, vector<10x10xf32>, vector<12x10xf32> -> vector<12x10xf32>
    %571 = arith.addf %567, %570 : vector<12x10xf32>
    %c2_502 = arith.constant 2 : index
    %c0_503 = arith.constant 0 : index
    %572 = vector.load %arg30[%c2_502, %c0_503] : memref<28x10xf32, #tpu.memory_space<vmem>>, vector<12x10xf32>
    %c20_504 = arith.constant 20 : index
    %c0_505 = arith.constant 0 : index
    %573 = vector.load %arg16[%c20_504, %c0_505] : memref<30x10xf32, #tpu.memory_space<vmem>>, vector<10x10xf32>
    %cst_506 = arith.constant dense<0.000000e+00> : vector<12x10xf32>
    %574 = tpu.matmul %572, %573, %cst_506 {dimension_numbers = #tpu.dot_dimension_numbers<[1], [0], [0], [1], [0, 0, 1, 1], [], []>} : vector<12x10xf32>, vector<10x10xf32>, vector<12x10xf32> -> vector<12x10xf32>
    %575 = arith.addf %571, %574 : vector<12x10xf32>
    %c0_507 = arith.constant 0 : index
    %c0_508 = arith.constant 0 : index
    %576 = vector.load %arg17[%c0_507, %c0_508] : memref<1x10xf32, #tpu.memory_space<vmem>>, vector<1x10xf32>
    %577 = vector.broadcast %576 : vector<1x10xf32> to vector<12x10xf32>
    %578 = arith.addf %575, %577 : vector<12x10xf32>
    %cst_509 = arith.constant 0.000000e+00 : f32
    %579 = vector.broadcast %cst_509 : f32 to vector<14x10xf32>
    %c14_510 = arith.constant 14 : index
    %c0_511 = arith.constant 0 : index
    %580 = vector.load %arg30[%c14_510, %c0_511] : memref<28x10xf32, #tpu.memory_space<vmem>>, vector<14x10xf32>
    tpu.vector_store %arg30[%c14_510, %c0_511], %579 {strides = array<i32>} : memref<28x10xf32, #tpu.memory_space<vmem>>, vector<14x10xf32>,
    %c15_512 = arith.constant 15 : index
    %c0_513 = arith.constant 0 : index
    %581 = vector.load %arg30[%c15_512, %c0_513] : memref<28x10xf32, #tpu.memory_space<vmem>>, vector<12x10xf32>
    tpu.vector_store %arg30[%c15_512, %c0_513], %559 {strides = array<i32>} : memref<28x10xf32, #tpu.memory_space<vmem>>, vector<12x10xf32>,
    %cst_514 = arith.constant 0.000000e+00 : f32
    %582 = vector.broadcast %cst_514 : f32 to vector<12x10xf32>
    %c14_515 = arith.constant 14 : index
    %c0_516 = arith.constant 0 : index
    %583 = vector.load %arg30[%c14_515, %c0_516] : memref<28x10xf32, #tpu.memory_space<vmem>>, vector<12x10xf32>
    %c0_517 = arith.constant 0 : index
    %c0_518 = arith.constant 0 : index
    %584 = vector.load %arg16[%c0_517, %c0_518] : memref<30x10xf32, #tpu.memory_space<vmem>>, vector<10x10xf32>
    %cst_519 = arith.constant dense<0.000000e+00> : vector<12x10xf32>
    %585 = tpu.matmul %583, %584, %cst_519 {dimension_numbers = #tpu.dot_dimension_numbers<[1], [0], [0], [1], [0, 0, 1, 1], [], []>} : vector<12x10xf32>, vector<10x10xf32>, vector<12x10xf32> -> vector<12x10xf32>
    %586 = arith.addf %582, %585 : vector<12x10xf32>
    %c15_520 = arith.constant 15 : index
    %c0_521 = arith.constant 0 : index
    %587 = vector.load %arg30[%c15_520, %c0_521] : memref<28x10xf32, #tpu.memory_space<vmem>>, vector<12x10xf32>
    %c10_522 = arith.constant 10 : index
    %c0_523 = arith.constant 0 : index
    %588 = vector.load %arg16[%c10_522, %c0_523] : memref<30x10xf32, #tpu.memory_space<vmem>>, vector<10x10xf32>
    %cst_524 = arith.constant dense<0.000000e+00> : vector<12x10xf32>
    %589 = tpu.matmul %587, %588, %cst_524 {dimension_numbers = #tpu.dot_dimension_numbers<[1], [0], [0], [1], [0, 0, 1, 1], [], []>} : vector<12x10xf32>, vector<10x10xf32>, vector<12x10xf32> -> vector<12x10xf32>
    %590 = arith.addf %586, %589 : vector<12x10xf32>
    %c16_525 = arith.constant 16 : index
    %c0_526 = arith.constant 0 : index
    %591 = vector.load %arg30[%c16_525, %c0_526] : memref<28x10xf32, #tpu.memory_space<vmem>>, vector<12x10xf32>
    %c20_527 = arith.constant 20 : index
    %c0_528 = arith.constant 0 : index
    %592 = vector.load %arg16[%c20_527, %c0_528] : memref<30x10xf32, #tpu.memory_space<vmem>>, vector<10x10xf32>
    %cst_529 = arith.constant dense<0.000000e+00> : vector<12x10xf32>
    %593 = tpu.matmul %591, %592, %cst_529 {dimension_numbers = #tpu.dot_dimension_numbers<[1], [0], [0], [1], [0, 0, 1, 1], [], []>} : vector<12x10xf32>, vector<10x10xf32>, vector<12x10xf32> -> vector<12x10xf32>
    %594 = arith.addf %590, %593 : vector<12x10xf32>
    %c0_530 = arith.constant 0 : index
    %c0_531 = arith.constant 0 : index
    %595 = vector.load %arg17[%c0_530, %c0_531] : memref<1x10xf32, #tpu.memory_space<vmem>>, vector<1x10xf32>
    %596 = vector.broadcast %595 : vector<1x10xf32> to vector<12x10xf32>
    %597 = arith.addf %594, %596 : vector<12x10xf32>
    %cst_532 = arith.constant dense<0.000000e+00> : vector<10xf32>
    %598 = vector.multi_reduction <add>, %578, %cst_532 [0] : vector<12x10xf32> to vector<10xf32>
    %599 = vector.shape_cast %598 : vector<10xf32> to vector<1x10xf32>
    %cst_533 = arith.constant dense<0.000000e+00> : vector<10xf32>
    %600 = vector.multi_reduction <add>, %597, %cst_533 [0] : vector<12x10xf32> to vector<10xf32>
    %601 = vector.shape_cast %600 : vector<10xf32> to vector<1x10xf32>
    %602 = arith.addf %599, %601 : vector<1x10xf32>
    %cst_534 = arith.constant 2.400000e+01 : f32
    %603 = vector.broadcast %cst_534 : f32 to vector<1x10xf32>
    %604 = arith.divf %602, %603 : vector<1x10xf32>
    %605 = vector.broadcast %604 : vector<1x10xf32> to vector<12x10xf32>
    %606 = arith.subf %578, %605 : vector<12x10xf32>
    %607 = arith.mulf %606, %606 : vector<12x10xf32>
    %cst_535 = arith.constant dense<0.000000e+00> : vector<10xf32>
    %608 = vector.multi_reduction <add>, %607, %cst_535 [0] : vector<12x10xf32> to vector<10xf32>
    %609 = vector.shape_cast %608 : vector<10xf32> to vector<1x10xf32>
    %610 = vector.broadcast %604 : vector<1x10xf32> to vector<12x10xf32>
    %611 = arith.subf %597, %610 : vector<12x10xf32>
    %612 = arith.mulf %611, %611 : vector<12x10xf32>
    %cst_536 = arith.constant dense<0.000000e+00> : vector<10xf32>
    %613 = vector.multi_reduction <add>, %612, %cst_536 [0] : vector<12x10xf32> to vector<10xf32>
    %614 = vector.shape_cast %613 : vector<10xf32> to vector<1x10xf32>
    %615 = arith.addf %609, %614 : vector<1x10xf32>
    %cst_537 = arith.constant 2.400000e+01 : f32
    %616 = vector.broadcast %cst_537 : f32 to vector<1x10xf32>
    %617 = arith.divf %615, %616 : vector<1x10xf32>
    %c0_538 = arith.constant 0 : index
    %c0_539 = arith.constant 0 : index
    %618 = vector.load %arg18[%c0_538, %c0_539] : memref<1x10xf32, #tpu.memory_space<vmem>>, vector<1x10xf32>
    %cst_540 = arith.constant 9.99999974E-6 : f32
    %619 = vector.broadcast %cst_540 : f32 to vector<1x10xf32>
    %620 = arith.addf %617, %619 : vector<1x10xf32>
    %621 = math.rsqrt %620 : vector<1x10xf32>
    %622 = arith.mulf %618, %621 : vector<1x10xf32>
    %c0_541 = arith.constant 0 : index
    %c0_542 = arith.constant 0 : index
    %623 = vector.load %arg19[%c0_541, %c0_542] : memref<1x10xf32, #tpu.memory_space<vmem>>, vector<1x10xf32>
    %624 = arith.mulf %604, %622 : vector<1x10xf32>
    %625 = arith.subf %623, %624 : vector<1x10xf32>
    %626 = vector.broadcast %622 : vector<1x10xf32> to vector<12x10xf32>
    %627 = arith.mulf %578, %626 : vector<12x10xf32>
    %628 = vector.broadcast %625 : vector<1x10xf32> to vector<12x10xf32>
    %629 = arith.addf %627, %628 : vector<12x10xf32>
    %cst_543 = arith.constant 0.000000e+00 : f32
    %630 = vector.broadcast %cst_543 : f32 to vector<12x10xf32>
    %631 = arith.maximumf %629, %630 : vector<12x10xf32>
    %632 = vector.broadcast %622 : vector<1x10xf32> to vector<12x10xf32>
    %633 = arith.mulf %597, %632 : vector<12x10xf32>
    %634 = vector.broadcast %625 : vector<1x10xf32> to vector<12x10xf32>
    %635 = arith.addf %633, %634 : vector<12x10xf32>
    %cst_544 = arith.constant 0.000000e+00 : f32
    %636 = vector.broadcast %cst_544 : f32 to vector<12x10xf32>
    %637 = arith.maximumf %635, %636 : vector<12x10xf32>
    %cst_545 = arith.constant 0.000000e+00 : f32
    %638 = vector.broadcast %cst_545 : f32 to vector<14x10xf32>
    %c0_546 = arith.constant 0 : index
    %c0_547 = arith.constant 0 : index
    %639 = vector.load %arg30[%c0_546, %c0_547] : memref<28x10xf32, #tpu.memory_space<vmem>>, vector<14x10xf32>
    tpu.vector_store %arg30[%c0_546, %c0_547], %638 {strides = array<i32>} : memref<28x10xf32, #tpu.memory_space<vmem>>, vector<14x10xf32>,
    %c1_548 = arith.constant 1 : index
    %c0_549 = arith.constant 0 : index
    %640 = vector.load %arg30[%c1_548, %c0_549] : memref<28x10xf32, #tpu.memory_space<vmem>>, vector<12x10xf32>
    tpu.vector_store %arg30[%c1_548, %c0_549], %631 {strides = array<i32>} : memref<28x10xf32, #tpu.memory_space<vmem>>, vector<12x10xf32>,
    %cst_550 = arith.constant 0.000000e+00 : f32
    %641 = vector.broadcast %cst_550 : f32 to vector<12x10xf32>
    %c0_551 = arith.constant 0 : index
    %c0_552 = arith.constant 0 : index
    %642 = vector.load %arg30[%c0_551, %c0_552] : memref<28x10xf32, #tpu.memory_space<vmem>>, vector<12x10xf32>
    %c0_553 = arith.constant 0 : index
    %c0_554 = arith.constant 0 : index
    %643 = vector.load %arg20[%c0_553, %c0_554] : memref<30x10xf32, #tpu.memory_space<vmem>>, vector<10x10xf32>
    %cst_555 = arith.constant dense<0.000000e+00> : vector<12x10xf32>
    %644 = tpu.matmul %642, %643, %cst_555 {dimension_numbers = #tpu.dot_dimension_numbers<[1], [0], [0], [1], [0, 0, 1, 1], [], []>} : vector<12x10xf32>, vector<10x10xf32>, vector<12x10xf32> -> vector<12x10xf32>
    %645 = arith.addf %641, %644 : vector<12x10xf32>
    %c1_556 = arith.constant 1 : index
    %c0_557 = arith.constant 0 : index
    %646 = vector.load %arg30[%c1_556, %c0_557] : memref<28x10xf32, #tpu.memory_space<vmem>>, vector<12x10xf32>
    %c10_558 = arith.constant 10 : index
    %c0_559 = arith.constant 0 : index
    %647 = vector.load %arg20[%c10_558, %c0_559] : memref<30x10xf32, #tpu.memory_space<vmem>>, vector<10x10xf32>
    %cst_560 = arith.constant dense<0.000000e+00> : vector<12x10xf32>
    %648 = tpu.matmul %646, %647, %cst_560 {dimension_numbers = #tpu.dot_dimension_numbers<[1], [0], [0], [1], [0, 0, 1, 1], [], []>} : vector<12x10xf32>, vector<10x10xf32>, vector<12x10xf32> -> vector<12x10xf32>
    %649 = arith.addf %645, %648 : vector<12x10xf32>
    %c2_561 = arith.constant 2 : index
    %c0_562 = arith.constant 0 : index
    %650 = vector.load %arg30[%c2_561, %c0_562] : memref<28x10xf32, #tpu.memory_space<vmem>>, vector<12x10xf32>
    %c20_563 = arith.constant 20 : index
    %c0_564 = arith.constant 0 : index
    %651 = vector.load %arg20[%c20_563, %c0_564] : memref<30x10xf32, #tpu.memory_space<vmem>>, vector<10x10xf32>
    %cst_565 = arith.constant dense<0.000000e+00> : vector<12x10xf32>
    %652 = tpu.matmul %650, %651, %cst_565 {dimension_numbers = #tpu.dot_dimension_numbers<[1], [0], [0], [1], [0, 0, 1, 1], [], []>} : vector<12x10xf32>, vector<10x10xf32>, vector<12x10xf32> -> vector<12x10xf32>
    %653 = arith.addf %649, %652 : vector<12x10xf32>
    %c0_566 = arith.constant 0 : index
    %c0_567 = arith.constant 0 : index
    %654 = vector.load %arg21[%c0_566, %c0_567] : memref<1x10xf32, #tpu.memory_space<vmem>>, vector<1x10xf32>
    %655 = vector.broadcast %654 : vector<1x10xf32> to vector<12x10xf32>
    %656 = arith.addf %653, %655 : vector<12x10xf32>
    %cst_568 = arith.constant 0.000000e+00 : f32
    %657 = vector.broadcast %cst_568 : f32 to vector<14x10xf32>
    %c14_569 = arith.constant 14 : index
    %c0_570 = arith.constant 0 : index
    %658 = vector.load %arg30[%c14_569, %c0_570] : memref<28x10xf32, #tpu.memory_space<vmem>>, vector<14x10xf32>
    tpu.vector_store %arg30[%c14_569, %c0_570], %657 {strides = array<i32>} : memref<28x10xf32, #tpu.memory_space<vmem>>, vector<14x10xf32>,
    %c15_571 = arith.constant 15 : index
    %c0_572 = arith.constant 0 : index
    %659 = vector.load %arg30[%c15_571, %c0_572] : memref<28x10xf32, #tpu.memory_space<vmem>>, vector<12x10xf32>
    tpu.vector_store %arg30[%c15_571, %c0_572], %637 {strides = array<i32>} : memref<28x10xf32, #tpu.memory_space<vmem>>, vector<12x10xf32>,
    %cst_573 = arith.constant 0.000000e+00 : f32
    %660 = vector.broadcast %cst_573 : f32 to vector<12x10xf32>
    %c14_574 = arith.constant 14 : index
    %c0_575 = arith.constant 0 : index
    %661 = vector.load %arg30[%c14_574, %c0_575] : memref<28x10xf32, #tpu.memory_space<vmem>>, vector<12x10xf32>
    %c0_576 = arith.constant 0 : index
    %c0_577 = arith.constant 0 : index
    %662 = vector.load %arg20[%c0_576, %c0_577] : memref<30x10xf32, #tpu.memory_space<vmem>>, vector<10x10xf32>
    %cst_578 = arith.constant dense<0.000000e+00> : vector<12x10xf32>
    %663 = tpu.matmul %661, %662, %cst_578 {dimension_numbers = #tpu.dot_dimension_numbers<[1], [0], [0], [1], [0, 0, 1, 1], [], []>} : vector<12x10xf32>, vector<10x10xf32>, vector<12x10xf32> -> vector<12x10xf32>
    %664 = arith.addf %660, %663 : vector<12x10xf32>
    %c15_579 = arith.constant 15 : index
    %c0_580 = arith.constant 0 : index
    %665 = vector.load %arg30[%c15_579, %c0_580] : memref<28x10xf32, #tpu.memory_space<vmem>>, vector<12x10xf32>
    %c10_581 = arith.constant 10 : index
    %c0_582 = arith.constant 0 : index
    %666 = vector.load %arg20[%c10_581, %c0_582] : memref<30x10xf32, #tpu.memory_space<vmem>>, vector<10x10xf32>
    %cst_583 = arith.constant dense<0.000000e+00> : vector<12x10xf32>
    %667 = tpu.matmul %665, %666, %cst_583 {dimension_numbers = #tpu.dot_dimension_numbers<[1], [0], [0], [1], [0, 0, 1, 1], [], []>} : vector<12x10xf32>, vector<10x10xf32>, vector<12x10xf32> -> vector<12x10xf32>
    %668 = arith.addf %664, %667 : vector<12x10xf32>
    %c16_584 = arith.constant 16 : index
    %c0_585 = arith.constant 0 : index
    %669 = vector.load %arg30[%c16_584, %c0_585] : memref<28x10xf32, #tpu.memory_space<vmem>>, vector<12x10xf32>
    %c20_586 = arith.constant 20 : index
    %c0_587 = arith.constant 0 : index
    %670 = vector.load %arg20[%c20_586, %c0_587] : memref<30x10xf32, #tpu.memory_space<vmem>>, vector<10x10xf32>
    %cst_588 = arith.constant dense<0.000000e+00> : vector<12x10xf32>
    %671 = tpu.matmul %669, %670, %cst_588 {dimension_numbers = #tpu.dot_dimension_numbers<[1], [0], [0], [1], [0, 0, 1, 1], [], []>} : vector<12x10xf32>, vector<10x10xf32>, vector<12x10xf32> -> vector<12x10xf32>
    %672 = arith.addf %668, %671 : vector<12x10xf32>
    %c0_589 = arith.constant 0 : index
    %c0_590 = arith.constant 0 : index
    %673 = vector.load %arg21[%c0_589, %c0_590] : memref<1x10xf32, #tpu.memory_space<vmem>>, vector<1x10xf32>
    %674 = vector.broadcast %673 : vector<1x10xf32> to vector<12x10xf32>
    %675 = arith.addf %672, %674 : vector<12x10xf32>
    %cst_591 = arith.constant dense<0.000000e+00> : vector<10xf32>
    %676 = vector.multi_reduction <add>, %656, %cst_591 [0] : vector<12x10xf32> to vector<10xf32>
    %677 = vector.shape_cast %676 : vector<10xf32> to vector<1x10xf32>
    %cst_592 = arith.constant dense<0.000000e+00> : vector<10xf32>
    %678 = vector.multi_reduction <add>, %675, %cst_592 [0] : vector<12x10xf32> to vector<10xf32>
    %679 = vector.shape_cast %678 : vector<10xf32> to vector<1x10xf32>
    %680 = arith.addf %677, %679 : vector<1x10xf32>
    %cst_593 = arith.constant 2.400000e+01 : f32
    %681 = vector.broadcast %cst_593 : f32 to vector<1x10xf32>
    %682 = arith.divf %680, %681 : vector<1x10xf32>
    %683 = vector.broadcast %682 : vector<1x10xf32> to vector<12x10xf32>
    %684 = arith.subf %656, %683 : vector<12x10xf32>
    %685 = arith.mulf %684, %684 : vector<12x10xf32>
    %cst_594 = arith.constant dense<0.000000e+00> : vector<10xf32>
    %686 = vector.multi_reduction <add>, %685, %cst_594 [0] : vector<12x10xf32> to vector<10xf32>
    %687 = vector.shape_cast %686 : vector<10xf32> to vector<1x10xf32>
    %688 = vector.broadcast %682 : vector<1x10xf32> to vector<12x10xf32>
    %689 = arith.subf %675, %688 : vector<12x10xf32>
    %690 = arith.mulf %689, %689 : vector<12x10xf32>
    %cst_595 = arith.constant dense<0.000000e+00> : vector<10xf32>
    %691 = vector.multi_reduction <add>, %690, %cst_595 [0] : vector<12x10xf32> to vector<10xf32>
    %692 = vector.shape_cast %691 : vector<10xf32> to vector<1x10xf32>
    %693 = arith.addf %687, %692 : vector<1x10xf32>
    %cst_596 = arith.constant 2.400000e+01 : f32
    %694 = vector.broadcast %cst_596 : f32 to vector<1x10xf32>
    %695 = arith.divf %693, %694 : vector<1x10xf32>
    %c0_597 = arith.constant 0 : index
    %c0_598 = arith.constant 0 : index
    %696 = vector.load %arg22[%c0_597, %c0_598] : memref<1x10xf32, #tpu.memory_space<vmem>>, vector<1x10xf32>
    %cst_599 = arith.constant 9.99999974E-6 : f32
    %697 = vector.broadcast %cst_599 : f32 to vector<1x10xf32>
    %698 = arith.addf %695, %697 : vector<1x10xf32>
    %699 = math.rsqrt %698 : vector<1x10xf32>
    %700 = arith.mulf %696, %699 : vector<1x10xf32>
    %c0_600 = arith.constant 0 : index
    %c0_601 = arith.constant 0 : index
    %701 = vector.load %arg23[%c0_600, %c0_601] : memref<1x10xf32, #tpu.memory_space<vmem>>, vector<1x10xf32>
    %702 = arith.mulf %682, %700 : vector<1x10xf32>
    %703 = arith.subf %701, %702 : vector<1x10xf32>
    %704 = vector.broadcast %700 : vector<1x10xf32> to vector<12x10xf32>
    %705 = arith.mulf %656, %704 : vector<12x10xf32>
    %706 = vector.broadcast %703 : vector<1x10xf32> to vector<12x10xf32>
    %707 = arith.addf %705, %706 : vector<12x10xf32>
    %708 = arith.addf %707, %552 : vector<12x10xf32>
    %cst_602 = arith.constant 0.000000e+00 : f32
    %709 = vector.broadcast %cst_602 : f32 to vector<12x10xf32>
    %710 = arith.maximumf %708, %709 : vector<12x10xf32>
    %711 = vector.broadcast %700 : vector<1x10xf32> to vector<12x10xf32>
    %712 = arith.mulf %675, %711 : vector<12x10xf32>
    %713 = vector.broadcast %703 : vector<1x10xf32> to vector<12x10xf32>
    %714 = arith.addf %712, %713 : vector<12x10xf32>
    %715 = arith.addf %714, %559 : vector<12x10xf32>
    %cst_603 = arith.constant 0.000000e+00 : f32
    %716 = vector.broadcast %cst_603 : f32 to vector<12x10xf32>
    %717 = arith.maximumf %715, %716 : vector<12x10xf32>
    %c0_604 = arith.constant 0 : index
    %c0_605 = arith.constant 0 : index
    %718 = vector.load %arg31[%c0_604, %c0_605] : memref<24x10xf32, #tpu.memory_space<vmem>>, vector<12x10xf32>
    tpu.vector_store %arg31[%c0_604, %c0_605], %710 {strides = array<i32>} : memref<24x10xf32, #tpu.memory_space<vmem>>, vector<12x10xf32>,
    %c12_606 = arith.constant 12 : index
    %c0_607 = arith.constant 0 : index
    %719 = vector.load %arg31[%c12_606, %c0_607] : memref<24x10xf32, #tpu.memory_space<vmem>>, vector<12x10xf32>
    tpu.vector_store %arg31[%c12_606, %c0_607], %717 {strides = array<i32>} : memref<24x10xf32, #tpu.memory_space<vmem>>, vector<12x10xf32>,
    %c0_608 = arith.constant 0 : index
    %c0_609 = arith.constant 0 : index
    %720 = vector.load %arg25[%c0_608, %c0_609] : memref<1x200xf32, #tpu.memory_space<vmem>>, vector<1x200xf32>
    %c0_610 = arith.constant 0 : index
    %c0_611 = arith.constant 0 : index
    %721 = vector.load %arg31[%c0_610, %c0_611] : memref<24x10xf32, #tpu.memory_space<vmem>>, vector<10x10xf32>
    %cst_612 = arith.constant dense<0.000000e+00> : vector<10xf32>
    %722 = vector.multi_reduction <add>, %721, %cst_612 [0] : vector<10x10xf32> to vector<10xf32>
    %723 = vector.shape_cast %722 : vector<10xf32> to vector<1x10xf32>
    %cst_613 = arith.constant 1.000000e+01 : f32
    %724 = vector.broadcast %cst_613 : f32 to vector<1x10xf32>
    %725 = arith.divf %723, %724 : vector<1x10xf32>
    %c0_614 = arith.constant 0 : index
    %c0_615 = arith.constant 0 : index
    %726 = vector.load %arg24[%c0_614, %c0_615] : memref<10x200xf32, #tpu.memory_space<vmem>>, vector<10x200xf32>
    %cst_616 = arith.constant dense<0.000000e+00> : vector<1x200xf32>
    %727 = tpu.matmul %725, %726, %cst_616 {dimension_numbers = #tpu.dot_dimension_numbers<[1], [0], [0], [1], [0, 0, 1, 1], [], []>} : vector<1x10xf32>, vector<10x200xf32>, vector<1x200xf32> -> vector<1x200xf32>
    %728 = arith.addf %720, %727 : vector<1x200xf32>
    %cst_617 = arith.constant 0.000000e+00 : f32
    %729 = vector.broadcast %cst_617 : f32 to vector<1x200xf32>
    %730 = arith.maximumf %728, %729 : vector<1x200xf32>
    %c0_618 = arith.constant 0 : index
    %c0_619 = arith.constant 0 : index
    %731 = vector.load %arg26[%c0_618, %c0_619] : memref<200x1xf32, #tpu.memory_space<vmem>>, vector<200x1xf32>
    %cst_620 = arith.constant dense<0.000000e+00> : vector<1x1xf32>
    %732 = tpu.matmul %730, %731, %cst_620 {dimension_numbers = #tpu.dot_dimension_numbers<[1], [0], [0], [1], [0, 0, 1, 1], [], []>} : vector<1x200xf32>, vector<200x1xf32>, vector<1x1xf32> -> vector<1x1xf32>
    %c0_621 = arith.constant 0 : index
    %c0_622 = arith.constant 0 : index
    %733 = vector.load %arg27[%c0_621, %c0_622] : memref<1x1xf32, #tpu.memory_space<vmem>>, vector<1x1xf32>
    %734 = arith.addf %732, %733 : vector<1x1xf32>
    %c0_623 = arith.constant 0 : index
    %c0_624 = arith.constant 0 : index
    %735 = vector.load %arg28[%c0_623, %c0_624] : memref<2x1xf32, #tpu.memory_space<vmem>>, vector<1x1xf32>
    tpu.vector_store %arg28[%c0_623, %c0_624], %734 {strides = array<i32>} : memref<2x1xf32, #tpu.memory_space<vmem>>, vector<1x1xf32>,
    %c0_625 = arith.constant 0 : index
    %c0_626 = arith.constant 0 : index
    %736 = vector.load %arg25[%c0_625, %c0_626] : memref<1x200xf32, #tpu.memory_space<vmem>>, vector<1x200xf32>
    %c12_627 = arith.constant 12 : index
    %c0_628 = arith.constant 0 : index
    %737 = vector.load %arg31[%c12_627, %c0_628] : memref<24x10xf32, #tpu.memory_space<vmem>>, vector<10x10xf32>
    %cst_629 = arith.constant dense<0.000000e+00> : vector<10xf32>
    %738 = vector.multi_reduction <add>, %737, %cst_629 [0] : vector<10x10xf32> to vector<10xf32>
    %739 = vector.shape_cast %738 : vector<10xf32> to vector<1x10xf32>
    %cst_630 = arith.constant 1.000000e+01 : f32
    %740 = vector.broadcast %cst_630 : f32 to vector<1x10xf32>
    %741 = arith.divf %739, %740 : vector<1x10xf32>
    %c0_631 = arith.constant 0 : index
    %c0_632 = arith.constant 0 : index
    %742 = vector.load %arg24[%c0_631, %c0_632] : memref<10x200xf32, #tpu.memory_space<vmem>>, vector<10x200xf32>
    %cst_633 = arith.constant dense<0.000000e+00> : vector<1x200xf32>
    %743 = tpu.matmul %741, %742, %cst_633 {dimension_numbers = #tpu.dot_dimension_numbers<[1], [0], [0], [1], [0, 0, 1, 1], [], []>} : vector<1x10xf32>, vector<10x200xf32>, vector<1x200xf32> -> vector<1x200xf32>
    %744 = arith.addf %736, %743 : vector<1x200xf32>
    %cst_634 = arith.constant 0.000000e+00 : f32
    %745 = vector.broadcast %cst_634 : f32 to vector<1x200xf32>
    %746 = arith.maximumf %744, %745 : vector<1x200xf32>
    %c0_635 = arith.constant 0 : index
    %c0_636 = arith.constant 0 : index
    %747 = vector.load %arg26[%c0_635, %c0_636] : memref<200x1xf32, #tpu.memory_space<vmem>>, vector<200x1xf32>
    %cst_637 = arith.constant dense<0.000000e+00> : vector<1x1xf32>
    %748 = tpu.matmul %746, %747, %cst_637 {dimension_numbers = #tpu.dot_dimension_numbers<[1], [0], [0], [1], [0, 0, 1, 1], [], []>} : vector<1x200xf32>, vector<200x1xf32>, vector<1x1xf32> -> vector<1x1xf32>
    %c0_638 = arith.constant 0 : index
    %c0_639 = arith.constant 0 : index
    %749 = vector.load %arg27[%c0_638, %c0_639] : memref<1x1xf32, #tpu.memory_space<vmem>>, vector<1x1xf32>
    %750 = arith.addf %748, %749 : vector<1x1xf32>
    %c1_640 = arith.constant 1 : index
    %c0_641 = arith.constant 0 : index
    %751 = vector.load %arg28[%c1_640, %c0_641] : memref<2x1xf32, #tpu.memory_space<vmem>>, vector<1x1xf32>
    tpu.vector_store %arg28[%c1_640, %c0_641], %750 {strides = array<i32>} : memref<2x1xf32, #tpu.memory_space<vmem>>, vector<1x1xf32>,
    return
  }
}

</mosaic_0001>

<bundles_post_ra>
// kernel: fwd.1
= control target key start
LH: loop header
LB: loop body
LE: loop exit
PB: predicated region body
PF: predicated region fallthrough
CT: control target
= control target key end

     0   :  { %vm105_vm0 = vcmask 64512   ;;  %vm1548_vm1 = vcmask 80896   ;;  %vm1554_vm2 = vcmask 75776   ;;  %vm3037_vm3 = vcmask 1041408   ;;  %s9969_s1 = inlined_call_operand.vmem [shape: f32[176,10], index: 1, kind: input, shape index: {}]   ;;  %s9970_s0 = inlined_call_operand.vmem [shape: f32[128,8], index: 0, kind: input, shape index: {}]   ;;  %s9971_s2 = inlined_call_operand.vmem [shape: f32[1,10], index: 2, kind: input, shape index: {}]   ;;  %s9972_s3 = inlined_call_operand.vmem [shape: f32[200,10], index: 3, kind: input, shape index: {}]   ;;  %s9973_s4 = inlined_call_operand.vmem [shape: f32[1,10], index: 4, kind: input, shape index: {}]   ;;  %s9974_s5 = inlined_call_operand.vmem [shape: f32[12,24], index: 5, kind: input, shape index: {}]   ;;  %s9975_s8 = inlined_call_operand.vmem [shape: f32[30,10], index: 8, kind: input, shape index: {}]   ;;  %s9976_s6 = inlined_call_operand.vmem [shape: f32[1,10], index: 6, kind: input, shape index: {}]   ;;  %s9977_s7 = inlined_call_operand.vmem [shape: f32[1,10], index: 7, kind: input, shape index: {}]   ;;  %s9978_s9 = inlined_call_operand.vmem [shape: f32[1,10], index: 9, kind: input, shape index: {}]   ;;  %s9979_s12 = inlined_call_operand.vmem [shape: f32[30,10], index: 12, kind: input, shape index: {}]   ;;  %s9980_s10 = inlined_call_operand.vmem [shape: f32[1,10], index: 10, kind: input, shape index: {}]   ;;  %s9981_s11 = inlined_call_operand.vmem [shape: f32[1,10], index: 11, kind: input, shape index: {}]   ;;  %s9982_s13 = inlined_call_operand.vmem [shape: f32[1,10], index: 13, kind: input, shape index: {}]   ;;  %s9983_s16 = inlined_call_operand.vmem [shape: f32[30,10], index: 16, kind: input, shape index: {}]   ;;  %s9984_s14 = inlined_call_operand.vmem [shape: f32[1,10], index: 14, kind: input, shape index: {}]   ;;  %s9985_s15 = inlined_call_operand.vmem [shape: f32[1,10], index: 15, kind: input, shape index: {}]   ;;  %s9986_s17 = inlined_call_operand.vmem [shape: f32[1,10], index: 17, kind: input, shape index: {}]   ;;  %s9987_s20 = inlined_call_operand.vmem [shape: f32[30,10], index: 20, kind: input, shape index: {}]   ;;  %s9988_s18 = inlined_call_operand.vmem [shape: f32[1,10], index: 18, kind: input, shape index: {}]   ;;  %s9989_s19 = inlined_call_operand.vmem [shape: f32[1,10], index: 19, kind: input, shape index: {}]   ;;  %s9990_s21 = inlined_call_operand.vmem [shape: f32[1,10], index: 21, kind: input, shape index: {}]   ;;  %s9991_s24 = inlined_call_operand.vmem [shape: f32[10,200], index: 24, kind: input, shape index: {}]   ;;  %s9992_s22 = inlined_call_operand.vmem [shape: f32[1,10], index: 22, kind: input, shape index: {}]   ;;  %s9993_s23 = inlined_call_operand.vmem [shape: f32[1,10], index: 23, kind: input, shape index: {}]   ;;  %s9994_s26 = inlined_call_operand.vmem [shape: f32[200,1], index: 26, kind: input, shape index: {}]   ;;  %s9995_s27 = inlined_call_operand.<no memory space> [shape: f32[1,1], index: 27, kind: input, shape index: {}]   ;;  %s9996_s25 = inlined_call_operand.vmem [shape: f32[1,200], index: 25, kind: input, shape index: {}]   ;;  %s9997_s28 = inlined_call_operand.vmem [shape: f32[2,1], index: 28, kind: output, shape index: {}]  }
   0x1   :  { %10027 = sst [smem:[#allocation22_spill]] %s9969_s1  ;;  %vm3939_vm4 = vcmask 195584   ;;  %vm4807_vm5 = vcmask 76800   ;;  %vm4897_vm7 = vcmask 78848  }
   0x2   :  { %10028 = sst [smem:[#allocation23_spill]] %s9970_s0 }
   0x3   :  { %10029 = sst [smem:[#allocation24_spill]] %s9971_s2 }
   0x4   :  { %10030 = sst [smem:[#allocation25_spill]] %s9972_s3 }
   0x5   :  { %10031 = sst [smem:[#allocation26_spill]] %s9973_s4 }
   0x6   :  { %10032 = sst [smem:[#allocation27_spill]] %s9974_s5 }
   0x7   :  { %10033 = sst [smem:[#allocation28_spill]] %s9975_s8 }
   0x8   :  { %10034 = sst [smem:[#allocation29_spill]] %s9976_s6 }
   0x9   :  { %10035 = sst [smem:[#allocation30_spill]] %s9977_s7 }
   0xa   :  { %10036 = sst [smem:[#allocation31_spill]] %s9978_s9 }
   0xb   :  { %10037 = sst [smem:[#allocation32_spill]] %s9979_s12 }
   0xc   :  { %10038 = sst [smem:[#allocation33_spill]] %s9980_s10 }
   0xd   :  { %10039 = sst [smem:[#allocation34_spill]] %s9981_s11 }
   0xe   :  { %s10040_s9 = sld [smem:[#allocation22_spill]] }
   0xf   :  { %s10041_s6 = sld [smem:[#allocation23_spill]] }
  0x10   :  { %s10047_s5 = sld [smem:[#allocation24_spill]] }
  0x11   :  { %s10053_s29 = sld [smem:[#allocation25_spill]] }
  0x12   :  { %s10080_s10 = sld [smem:[#allocation27_spill]] }
  0x13   :  { %s10089_s2 = sld [smem:[#allocation29_spill]] }
  0x14   :  { %v7198_v0 = vld [vmem:[%s10040_s9 + $0x8] sm:$0xff]  ;;  %v7203_v1 = vld [vmem:[%s10040_s9] sm:$0xff]  ;;  %v7208_v2 = vld [vmem:[%s10040_s9 + $0x10] sm:$0xff]  ;;  %s10090_s8 = sld [smem:[#allocation30_spill]] }
  0x15   :  { %139 = vmatpush.msra.mxu0 %v7198_v0  ;;  %192 = vmatpush.msra.mxu1 %v7203_v1  ;;  %v7215_v3 = vld [vmem:[%s10040_s9 + $0x18] sm:$0xff]  ;;  %v98_v4 = vld [vmem:[%s10041_s6 + $0x1] sm:$0xff]  ;;  %v7228_v6 = vld [vmem:[%s10041_s6 + $0xa] sm:$0xff]  ;;  %s10093_s11 = sld [smem:[#allocation33_spill]] }
  0x16   :  { %v91_v5 = vld [vmem:[%s10041_s6] sm:$0xff]  ;;  %7014 = vmatpush.msra.mxu2 %v7208_v2  ;;  %318 = vmatpush.msra.mxu3 %v7215_v3  ;;  %v548_v9 = vld [vmem:[%s10040_s9 + $0x38] sm:$0xff]  ;;  %v7251_v10 = vld [vmem:[%s10040_s9 + $0x30] sm:$0xff] }
  0x17   :  { %v278_v7 = vld [vmem:[%s10041_s6 + $0x3] sm:$0xff]  ;;  %6504 = vmatmul.msk.f32.vlgmr.msra.gmra.mxu0 %vm105_vm0, %v98_v4  ;;  %6510 = vmatmul.msk.f32.vlgmr.msra.gmra.mxu1 %vm105_vm0, %v91_v5  ;;  %v7267_v13 = vld [vmem:[%s10041_s6 + $0x12] sm:$0xff]  ;;  %v7295_v17 = vld [vmem:[%s10041_s6 + $0x1a] sm:$0xff] }
  0x18   :  { %6517 = vmatmul.msk.f32.vlgmr.msra.gmra.mxu2 %vm105_vm0, %v7228_v6  ;;  %6522 = vmatmul.msk.f32.vlgmr.msra.gmra.mxu3 %vm105_vm0, %v278_v7  ;;  %v7242_v8 = vld [vmem:[%s10040_s9 + $0x20] sm:$0xff]  ;;  %v7256_v11 = vld [vmem:[%s10041_s6 + $0x9] sm:$0xff]  ;;  %v7285_v15 = vld [vmem:[%s10041_s6 + $0x11] sm:$0xff] }
  0x19   :  { %252 = vmatpush.msrb.mxu1 %v7208_v2  ;;  %384 = vmatpush.msrb.mxu0 %v7242_v8  ;;  %v7261_v12 = vld [vmem:[%s10041_s6 + $0x8] sm:$0xff]  ;;  %v7290_v16 = vld [vmem:[%s10041_s6 + $0x10] sm:$0xff]  ;;  %v7319_v20 = vld [vmem:[%s10041_s6 + $0x19] sm:$0xff] }
  0x1a   :  { %582 = vmatpush.msrb.mxu3 %v548_v9  ;;  %516 = vmatpush.msrb.mxu2 %v7251_v10  ;;  %v7272_v14 = vld [vmem:[%s10041_s6 + $0xb] sm:$0xff]  ;;  %v7300_v18 = vld [vmem:[%s10041_s6 + $0x13] sm:$0xff]  ;;  %v7329_v22 = vld [vmem:[%s10041_s6 + $0x22] sm:$0xff] }
  0x1b   :  { %v7313_v19 = vld [vmem:[%s10040_s9 + $0x28] sm:$0xff]  ;;  %v7324_v21 = vld [vmem:[%s10041_s6 + $0x18] sm:$0xff]  ;;  %v7352_v25 = vld [vmem:[%s10041_s6 + $0x20] sm:$0xff] }
  0x1c   :  { %450 = vmatpush.msra.mxu1 %v7313_v19  ;;  %v7334_v23 = vld [vmem:[%s10041_s6 + $0x1b] sm:$0xff]  ;;  %v217_v26 = vld [vmem:[%s10041_s6 + $0x2a] sm:$0x7]  ;;  %v746_v28 = vld [vmem:[%s10040_s9 + $0x50] sm:$0xff] }
  0x1d   :  { %v7347_v24 = vld [vmem:[%s10041_s6 + $0x21] sm:$0xff]  ;;  %780 = vmatpush.msra.mxu2 %v746_v28  ;;  %v103_v29 = vld [vmem:[%s10041_s6 + $0x29] sm:$0x7]  ;;  %v812_v34 = vld [vmem:[%s10040_s9 + $0x58] sm:$0xff] }
  0x1e   :  { %v7360_v27 = vld [vmem:[%s10041_s6 + $0x23] sm:$0xff]  ;;  %v283_v31 = vld [vmem:[%s10041_s6 + $0x2b] sm:$0x7]  ;;  %846 = vmatpush.msra.mxu3 %v812_v34  ;;  %v7406_v37 = vld [vmem:[%s10041_s6 + $0xe] sm:$0xff] }
  0x1f   :  { %6505 = vmatmul.msk.f32.gmra.mxu0 %vm105_vm0, %v7256_v11  ;;  %6511 = vmatmul.msk.f32.gmra.mxu1 %vm105_vm0, %v7261_v12  ;;  %v96_v30 = vld [vmem:[%s10041_s6 + $0x28] sm:$0x7]  ;;  %v7391_v33 = vld [vmem:[%s10040_s9 + $0x40] sm:$0xff]  ;;  %v7425_v40 = vld [vmem:[%s10041_s6 + $0xc] sm:$0xff] }
  0x20   :  { %6518 = vmatmul.msk.f32.gmra.mxu2 %vm105_vm0, %v7267_v13  ;;  %6523 = vmatmul.msk.f32.gmra.mxu3 %vm105_vm0, %v7272_v14  ;;  %v476_v32 = vld [vmem:[%s10041_s6 + $0x6] sm:$0xff]  ;;  %v7433_v42 = vld [vmem:[%s10041_s6 + $0x16] sm:$0xff]  ;;  %v7460_v46 = vld [vmem:[%s10041_s6 + $0x1e] sm:$0xff] }
  0x21   :  { %648 = vmatpush.msra.mxu0 %v7391_v33  ;;  %v212_v35 = vld [vmem:[%s10041_s6 + $0x2] sm:$0xff]  ;;  %v7438_v43 = vld [vmem:[%s10041_s6 + $0xf] sm:$0xff]  ;;  %v7465_v47 = vld [vmem:[%s10041_s6 + $0x17] sm:$0xff] }
  0x22   :  { %v344_v36 = vld [vmem:[%s10041_s6 + $0x4] sm:$0xff]  ;;  %v7450_v44 = vld [vmem:[%s10041_s6 + $0x14] sm:$0xff]  ;;  %v7478_v48 = vld [vmem:[%s10041_s6 + $0x1c] sm:$0xff] }
  0x23   :  { %v542_v38 = vld [vmem:[%s10041_s6 + $0x7] sm:$0xff]  ;;  %v7483_v49 = vld [vmem:[%s10041_s6 + $0x15] sm:$0xff]  ;;  %v7493_v51 = vld [vmem:[%s10041_s6 + $0x1f] sm:$0xff] }
  0x24   :  { %v7414_v39 = vld [vmem:[%s10040_s9 + $0x48] sm:$0xff]  ;;  %v7511_v53 = vld [vmem:[%s10041_s6 + $0x1d] sm:$0xff]  ;;  %v1010_v56 = vld [vmem:[%s10040_s9 + $0x70] sm:$0xff] }
  0x25   :  { %v410_v41 = vld [vmem:[%s10041_s6 + $0x5] sm:$0xff]  ;;  %v7455_v45 = vld [vmem:[%s10041_s6 + $0xd] sm:$0xff]  ;;  %v1076_v61 = vld [vmem:[%s10040_s9 + $0x78] sm:$0xff] }
  0x26   :  { %v7488_v50 = vld [vmem:[%s10041_s6 + $0x26] sm:$0xff]  ;;  %v481_v54 = vld [vmem:[%s10041_s6 + $0x2e] sm:$0x7]  ;;  %v745_v9 = vld [vmem:[%s10041_s6 + $0x32] sm:$0x7] }
  0x27   :  { %6506 = vmatmul.msk.f32.gmra.mxu0 %vm105_vm0, %v7285_v15  ;;  %6512 = vmatmul.msk.f32.gmra.mxu1 %vm105_vm0, %v7290_v16  ;;  %v7506_v52 = vld [vmem:[%s10041_s6 + $0x24] sm:$0xff]  ;;  %v349_v57 = vld [vmem:[%s10041_s6 + $0x2c] sm:$0x7]  ;;  %v547_v59 = vld [vmem:[%s10041_s6 + $0x2f] sm:$0x7] }
  0x28   :  { %6519 = vmatmul.msk.f32.gmra.mxu2 %vm105_vm0, %v7295_v17  ;;  %6524 = vmatmul.msk.f32.gmra.mxu3 %vm105_vm0, %v7300_v18  ;;  %v7519_v55 = vld [vmem:[%s10041_s6 + $0x27] sm:$0xff] }
  0x29   :  { %v7537_v58 = vld [vmem:[%s10041_s6 + $0x25] sm:$0xff]  ;;  %v415_v63 = vld [vmem:[%s10041_s6 + $0x2d] sm:$0x7] }
  0x2a   :  { %v7551_v60 = vld [vmem:[%s10040_s9 + $0x60] sm:$0xff]  ;;  %v7559_v62 = vld [vmem:[%s10040_s9 + $0x68] sm:$0xff] }
  0x2b   :  { %v7592_v4 = vld [vmem:[%s10041_s6 + $0x2a] sm:$0xff] }
  0x2c   :  { %v7609_v7 = vld [vmem:[%s10041_s6 + $0x28] sm:$0xff] }
  0x2f   :  { %6507 = vmatmul.msk.f32.gmra.mxu0 %vm105_vm0, %v7319_v20  ;;  %6513 = vmatmul.msk.f32.gmra.mxu1 %vm105_vm0, %v7324_v21 }
  0x30   :  { %6520 = vmatmul.msk.f32.gmra.mxu2 %vm105_vm0, %v7329_v22  ;;  %6525 = vmatmul.msk.f32.gmra.mxu3 %vm105_vm0, %v7334_v23 }
  0x37   :  { %6508 = vmatmul.msk.f32.gmra.mxu0 %vm105_vm0, %v7347_v24  ;;  %6514 = vmatmul.msk.f32.gmra.mxu1 %vm105_vm0, %v7352_v25 }
  0x38   :  { %6521 = vmatmul.msk.f32.gmra.mxu2 %vm105_vm0, %v217_v26  ;;  %6526 = vmatmul.msk.f32.gmra.mxu3 %vm105_vm0, %v7360_v27 }
  0x3f   :  { %6509 = vmatmul.msk.f32.gmra.mxu0 %vm105_vm0, %v103_v29  ;;  %6515 = vmatmul.msk.f32.gmra.mxu1 %vm105_vm0, %v96_v30  ;;  %v613_v29 = vld [vmem:[%s10041_s6 + $0x30] sm:$0x7] }
  0x40   :  { %6527 = vmatmul.msk.f32.gmra.mxu3 %vm105_vm0, %v283_v31  ;;  %6540 = vmatmul.msk.f32.vlgmr.msrb.gmra.mxu2 %vm105_vm0, %v476_v32  ;;  %v7634_v30 = vld [vmem:[%s10041_s6 + $0x29] sm:$0xff]  ;;  %v811_v31 = vld [vmem:[%s10041_s6 + $0x33] sm:$0x7] }
  0x41   :  { %1044 = vmatpush.msrb.mxu2 %v1010_v56  ;;  %v1274_v32 = vld [vmem:[%s10040_s9 + $0x90] sm:$0xff] }
  0x47   :  { %6516 = vmatmul.msk.f32.vlgmr.msrb.gmra.mxu1 %vm105_vm0, %v212_v35  ;;  %6528 = vmatmul.msk.f32.vlgmr.msrb.gmra.mxu0 %vm105_vm0, %v344_v36  ;;  %v1142_v35 = vld [vmem:[%s10040_s9 + $0x80] sm:$0xff]  ;;  %v1340_v36 = vld [vmem:[%s10040_s9 + $0x98] sm:$0xff] }
  0x48   :  { %6541 = vmatmul.msk.f32.gmra.mxu2 %vm105_vm0, %v7406_v37  ;;  %6546 = vmatmul.msk.f32.vlgmr.msrb.gmra.mxu3 %vm105_vm0, %v542_v38 }
  0x49   :  { %714 = vmatpush.msrb.mxu1 %v7414_v39  ;;  %912 = vmatpush.msrb.mxu0 %v7551_v60 }
  0x4a   :  { %1110 = vmatpush.msrb.mxu3 %v1076_v61  ;;  %v1208_v61 = vld [vmem:[%s10040_s9 + $0x88] sm:$0xff] }
  0x4f   :  { %6529 = vmatmul.msk.f32.gmra.mxu0 %vm105_vm0, %v7425_v40  ;;  %6534 = vmatmul.msk.f32.vlgmr.msra.gmra.mxu1 %vm105_vm0, %v410_v41 }
  0x50   :  { %6542 = vmatmul.msk.f32.gmra.mxu2 %vm105_vm0, %v7433_v42  ;;  %6547 = vmatmul.msk.f32.gmra.mxu3 %vm105_vm0, %v7438_v43 }
  0x51   :  { %978 = vmatpush.msra.mxu1 %v7559_v62 }
  0x57   :  { %6530 = vmatmul.msk.f32.gmra.mxu0 %vm105_vm0, %v7450_v44  ;;  %6535 = vmatmul.msk.f32.gmra.mxu1 %vm105_vm0, %v7455_v45 }
  0x58   :  { %6543 = vmatmul.msk.f32.gmra.mxu2 %vm105_vm0, %v7460_v46  ;;  %6548 = vmatmul.msk.f32.gmra.mxu3 %vm105_vm0, %v7465_v47 }
  0x5f   :  { %6531 = vmatmul.msk.f32.gmra.mxu0 %vm105_vm0, %v7478_v48  ;;  %6536 = vmatmul.msk.f32.gmra.mxu1 %vm105_vm0, %v7483_v49 }
  0x60   :  { %6544 = vmatmul.msk.f32.gmra.mxu2 %vm105_vm0, %v7488_v50  ;;  %6549 = vmatmul.msk.f32.gmra.mxu3 %vm105_vm0, %v7493_v51 }
  0x67   :  { %6532 = vmatmul.msk.f32.gmra.mxu0 %vm105_vm0, %v7506_v52  ;;  %6537 = vmatmul.msk.f32.gmra.mxu1 %vm105_vm0, %v7511_v53 }
  0x68   :  { %6545 = vmatmul.msk.f32.gmra.mxu2 %vm105_vm0, %v481_v54  ;;  %6550 = vmatmul.msk.f32.gmra.mxu3 %vm105_vm0, %v7519_v55 }
  0x6f   :  { %6533 = vmatmul.msk.f32.gmra.mxu0 %vm105_vm0, %v349_v57  ;;  %6538 = vmatmul.msk.f32.gmra.mxu1 %vm105_vm0, %v7537_v58 }
  0x70   :  { %6551 = vmatmul.msk.f32.gmra.mxu3 %vm105_vm0, %v547_v59  ;;  %6564 = vmatmul.msk.f32.vlgmr.msra.gmra.mxu2 %vm105_vm0, %v7228_v6 }
  0x71   :  { %1308 = vmatpush.msra.mxu2 %v1274_v32 }
  0x77   :  { %6539 = vmatmul.msk.f32.gmra.mxu1 %vm105_vm0, %v415_v63  ;;  %6552 = vmatmul.msk.f32.vlgmr.msra.gmra.mxu0 %vm105_vm0, %v7261_v12 }
  0x78   :  { %6565 = vmatmul.msk.f32.gmra.mxu2 %vm105_vm0, %v7267_v13  ;;  %6570 = vmatmul.msk.f32.vlgmr.msra.gmra.mxu3 %vm105_vm0, %v7272_v14 }
  0x79   :  { %1176 = vmatpush.msra.mxu0 %v1142_v35  ;;  %1374 = vmatpush.msra.mxu3 %v1340_v36 }
  0x7f   :  { %6553 = vmatmul.msk.f32.gmra.mxu0 %vm105_vm0, %v7290_v16  ;;  %6558 = vmatmul.msk.f32.vlgmr.msrb.gmra.mxu1 %vm105_vm0, %v7256_v11  ;;  %v7617_v11 = vld [vmem:[%s10041_s6 + $0x2b] sm:$0xff] }
  0x80   :  { %6566 = vmatmul.msk.f32.gmra.mxu2 %vm105_vm0, %v7295_v17  ;;  %6571 = vmatmul.msk.f32.gmra.mxu3 %vm105_vm0, %v7300_v18 }
  0x81   :  { %1242 = vmatpush.msrb.mxu1 %v1208_v61 }
  0x87   :  { %6554 = vmatmul.msk.f32.gmra.mxu0 %vm105_vm0, %v7324_v21  ;;  %6559 = vmatmul.msk.f32.gmra.mxu1 %vm105_vm0, %v7285_v15 }
  0x88   :  { %6567 = vmatmul.msk.f32.gmra.mxu2 %vm105_vm0, %v7329_v22  ;;  %6572 = vmatmul.msk.f32.gmra.mxu3 %vm105_vm0, %v7334_v23 }
  0x8f   :  { %6555 = vmatmul.msk.f32.gmra.mxu0 %vm105_vm0, %v7352_v25  ;;  %6560 = vmatmul.msk.f32.gmra.mxu1 %vm105_vm0, %v7319_v20 }
  0x90   :  { %6568 = vmatmul.msk.f32.gmra.mxu2 %vm105_vm0, %v7592_v4  ;;  %6573 = vmatmul.msk.f32.gmra.mxu3 %vm105_vm0, %v7360_v27 }
  0x94   :  { %v7602_v5 = vpop.f32.mrf.mxu0  ;;  %v7604_v6 = vpop.f32.mrf.mxu1 }
  0x97   :  { %6556 = vmatmul.msk.f32.gmra.mxu0 %vm105_vm0, %v7609_v7  ;;  %6561 = vmatmul.msk.f32.gmra.mxu1 %vm105_vm0, %v7347_v24 }
  0x98   :  { %6569 = vmatmul.msk.f32.gmra.mxu2 %vm105_vm0, %v745_v9  ;;  %6574 = vmatmul.msk.f32.gmra.mxu3 %vm105_vm0, %v7617_v11 }
  0x9b   :  { %v257_v12 = vpop.f32.mrf.mxu2  ;;  %v7626_v14 = vpop.f32.mrf.mxu3 }
  0x9c   :  { %v144_v26 = vpop.f32.mrf.mxu0  ;;  %v197_v28 = vpop.f32.mrf.mxu1 }
  0x9d   :  { %v198_v34 = vadd.f32 %v197_v28, %v144_v26 }
  0x9f   :  { %6557 = vmatmul.msk.f32.gmra.mxu0 %vm105_vm0, %v613_v29  ;;  %6562 = vmatmul.msk.f32.gmra.mxu1 %vm105_vm0, %v7634_v30  ;;  %v273_v38 = vadd.f32 %v257_v12, %v198_v34 }
  0xa0   :  { %6575 = vmatmul.msk.f32.gmra.mxu3 %vm105_vm0, %v811_v31  ;;  %6588 = vmatmul.msk.f32.vlgmr.msrb.gmra.mxu2 %vm105_vm0, %v7406_v37  ;;  %v679_v37 = vld [vmem:[%s10041_s6 + $0x31] sm:$0x7] }
  0xa1   :  { %1603 = vmatpush.msrb.mxu2 %v7198_v0 }
  0xa3   :  { %v260_v41 = vpop.f32.mrf.mxu2  ;;  %v323_v54 = vpop.f32.mrf.mxu3 }
  0xa4   :  { %v7655_v56 = vadd.f32 %v323_v54, %v273_v38  ;;  %v147_v57 = vpop.f32.mrf.mxu0  ;;  %v200_v59 = vpop.f32.mrf.mxu1  ;;  %v1008_v54 = vld [vmem:[%s10041_s6 + $0x2e] sm:$0xff] }
  0xa5   :  { %v201_v63 = vadd.f32 %v200_v59, %v147_v57 }
  0xa7   :  { %6563 = vmatmul.msk.f32.gmra.mxu1 %vm105_vm0, %v679_v37  ;;  %6576 = vmatmul.msk.f32.vlgmr.msrb.gmra.mxu0 %vm105_vm0, %v7425_v40  ;;  %v274_v0 = vadd.f32 %v260_v41, %v201_v63 }
  0xa8   :  { %6589 = vmatmul.msk.f32.gmra.mxu2 %vm105_vm0, %v7433_v42  ;;  %6594 = vmatmul.msk.f32.vlgmr.msrb.gmra.mxu3 %vm105_vm0, %v7438_v43 }
  0xa9   :  { %1656 = vmatpush.msrb.mxu3 %v7203_v1 }
  0xab   :  { %v263_v9 = vpop.f32.mrf.mxu2  ;;  %v326_v12 = vpop.f32.mrf.mxu3 }
  0xac   :  { %v7671_v26 = vadd.f32 %v326_v12, %v274_v0  ;;  %v150_v28 = vpop.f32.mrf.mxu0  ;;  %v203_v29 = vpop.f32.mrf.mxu1 }
  0xad   :  { %v204_v31 = vadd.f32 %v203_v29, %v150_v28 }
  0xaf   :  { %6577 = vmatmul.msk.f32.gmra.mxu0 %vm105_vm0, %v7450_v44  ;;  %6582 = vmatmul.msk.f32.vlgmr.msra.gmra.mxu1 %vm105_vm0, %v7455_v45  ;;  %v275_v1 = vadd.f32 %v263_v9, %v204_v31  ;;  %v7710_v9 = vld [vmem:[%s10041_s6 + $0x2c] sm:$0xff] }
  0xb0   :  { %6590 = vmatmul.msk.f32.gmra.mxu2 %vm105_vm0, %v7460_v46  ;;  %6595 = vmatmul.msk.f32.gmra.mxu3 %vm105_vm0, %v7465_v47 }
  0xb3   :  { %v266_v40 = vpop.f32.mrf.mxu2  ;;  %v329_v42 = vpop.f32.mrf.mxu3 }
  0xb4   :  { %v7681_v43 = vadd.f32 %v329_v42, %v275_v1  ;;  %v153_v32 = vpop.f32.mrf.mxu0  ;;  %v206_v34 = vpop.f32.mrf.mxu1  ;;  %v877_v42 = vld [vmem:[%s10041_s6 + $0x34] sm:$0x7] }
  0xb5   :  { %v207_v35 = vadd.f32 %v206_v34, %v153_v32  ;;  %v1075_v34 = vld [vmem:[%s10041_s6 + $0x37] sm:$0x7] }
  0xb7   :  { %6578 = vmatmul.msk.f32.gmra.mxu0 %vm105_vm0, %v7478_v48  ;;  %6583 = vmatmul.msk.f32.gmra.mxu1 %vm105_vm0, %v7483_v49  ;;  %v276_v45 = vadd.f32 %v266_v40, %v207_v35 }
  0xb8   :  { %6591 = vmatmul.msk.f32.gmra.mxu2 %vm105_vm0, %v7488_v50  ;;  %6596 = vmatmul.msk.f32.gmra.mxu3 %vm105_vm0, %v7493_v51  ;;  %v195_v51 = vadd.f32 %v7604_v6, %v7602_v5  ;;  %v1074_v5 = vld [vmem:[%s10041_s6 + $0x2f] sm:$0xff] }
  0xbb   :  { %v269_v46 = vpop.f32.mrf.mxu2  ;;  %v332_v47 = vpop.f32.mrf.mxu3 }
  0xbc   :  { %v7691_v36 = vadd.f32 %v332_v47, %v276_v45  ;;  %v156_v38 = vpop.f32.mrf.mxu0  ;;  %v209_v41 = vpop.f32.mrf.mxu1  ;;  %v1406_v45 = vld [vmem:[%s10040_s9 + $0xa0] sm:$0xff] }
  0xbd   :  { %v210_v57 = vadd.f32 %v209_v41, %v156_v38  ;;  %1440 = vmatpush.msrb.mxu0 %v1406_v45 }
  0xbf   :  { %6579 = vmatmul.msk.f32.gmra.mxu0 %vm105_vm0, %v7506_v52  ;;  %6584 = vmatmul.msk.f32.gmra.mxu1 %vm105_vm0, %v7511_v53  ;;  %v277_v50 = vadd.f32 %v269_v46, %v210_v57 }
  0xc0   :  { %6592 = vmatmul.msk.f32.gmra.mxu2 %vm105_vm0, %v1008_v54  ;;  %6597 = vmatmul.msk.f32.gmra.mxu3 %vm105_vm0, %v7519_v55  ;;  %v1009_v55 = vld [vmem:[%s10041_s6 + $0x36] sm:$0x7]  ;;  %v1472_v54 = vld [vmem:[%s10040_s9 + $0xa8] sm:$0xff] }
  0xc1   :  { %1506 = vmatpush.msra.mxu1 %v1472_v54 }
  0xc3   :  { %v335_v59 = vpop.f32.mrf.mxu3  ;;  %v518_v37 = vpop.f32.mrf.mxu2 }
  0xc4   :  { %v7705_v61 = vadd.f32 %v335_v59, %v277_v50  ;;  %v254_v63 = vpop.f32.mrf.mxu1  ;;  %v386_v0 = vpop.f32.mrf.mxu0 }
  0xc5   :  { %v272_v12 = vadd.f32 %v254_v63, %v195_v51 }
  0xc7   :  { %v338_v6 = vadd.f32 %v7626_v14, %v272_v12  ;;  %6580 = vmatmul.msk.f32.gmra.mxu0 %vm105_vm0, %v7710_v9  ;;  %6585 = vmatmul.msk.f32.gmra.mxu1 %vm105_vm0, %v7537_v58  ;;  %v7731_v14 = vld [vmem:[%s10041_s6 + $0x2d] sm:$0xff] }
  0xc8   :  { %6593 = vmatmul.msk.f32.gmra.mxu2 %vm105_vm0, %v1009_v55  ;;  %6598 = vmatmul.msk.f32.gmra.mxu3 %vm105_vm0, %v1074_v5 }
  0xc9   :  { %v404_v28 = vadd.f32 %v386_v0, %v338_v6 }
  0xcb   :  { %v521_v29 = vpop.f32.mrf.mxu2  ;;  %v584_v31 = vpop.f32.mrf.mxu3 }
  0xcc   :  { %v389_v1 = vpop.f32.mrf.mxu0  ;;  %v452_v40 = vpop.f32.mrf.mxu1 }
  0xcd   :  { %v470_v32 = vadd.f32 %v452_v40, %v404_v28  ;;  %v405_v47 = vadd.f32 %v389_v1, %v7655_v56 }
  0xcf   :  { %v536_v35 = vadd.f32 %v518_v37, %v470_v32  ;;  %6581 = vmatmul.msk.f32.gmra.mxu0 %vm105_vm0, %v877_v42  ;;  %6586 = vmatmul.msk.f32.gmra.mxu1 %vm105_vm0, %v7731_v14 }
  0xd0   :  { %6599 = vmatmul.msk.f32.gmra.mxu3 %vm105_vm0, %v1075_v34  ;;  %6612 = vmatmul.msk.f32.vlgmr.msra.gmra.mxu2 %vm105_vm0, %v7267_v13  ;;  %v943_v13 = vld [vmem:[%s10041_s6 + $0x35] sm:$0x7] }
  0xd1   :  { %v7745_v46 = vadd.f32 %v584_v31, %v536_v35  ;;  %1848 = vmatpush.msra.mxu2 %v7242_v8 }
  0xd3   :  { %v524_v38 = vpop.f32.mrf.mxu2  ;;  %v587_v41 = vpop.f32.mrf.mxu3 }
  0xd4   :  { %v392_v57 = vpop.f32.mrf.mxu0  ;;  %v455_v50 = vpop.f32.mrf.mxu1 }
  0xd5   :  { %v471_v51 = vadd.f32 %v455_v50, %v405_v47  ;;  %v406_v56 = vadd.f32 %v392_v57, %v7671_v26  ;;  %v1339_v57 = vld [vmem:[%s10041_s6 + $0x3b] sm:$0x7] }
  0xd7   :  { %v537_v59 = vadd.f32 %v521_v29, %v471_v51  ;;  %6587 = vmatmul.msk.f32.gmra.mxu1 %vm105_vm0, %v943_v13  ;;  %6600 = vmatmul.msk.f32.vlgmr.msra.gmra.mxu0 %vm105_vm0, %v7290_v16 }
  0xd8   :  { %6613 = vmatmul.msk.f32.gmra.mxu2 %vm105_vm0, %v7295_v17  ;;  %6618 = vmatmul.msk.f32.vlgmr.msra.gmra.mxu3 %vm105_vm0, %v7300_v18 }
  0xd9   :  { %v7762_v8 = vadd.f32 %v587_v41, %v537_v59  ;;  %1716 = vmatpush.msra.mxu0 %v7208_v2  ;;  %1914 = vmatpush.msra.mxu3 %v7313_v19  ;;  %v1141_v41 = vld [vmem:[%s10041_s6 + $0x38] sm:$0x7] }
  0xdb   :  { %v527_v37 = vpop.f32.mrf.mxu2  ;;  %v590_v63 = vpop.f32.mrf.mxu3 }
  0xdc   :  { %v395_v0 = vpop.f32.mrf.mxu0  ;;  %v458_v12 = vpop.f32.mrf.mxu1 }
  0xdd   :  { %v472_v55 = vadd.f32 %v458_v12, %v406_v56  ;;  %v407_v17 = vadd.f32 %v395_v0, %v7681_v43  ;;  %v1207_v0 = vld [vmem:[%s10041_s6 + $0x39] sm:$0x7] }
  0xdf   :  { %v538_v16 = vadd.f32 %v524_v38, %v472_v55  ;;  %6601 = vmatmul.msk.f32.gmra.mxu0 %vm105_vm0, %v7324_v21  ;;  %6606 = vmatmul.msk.f32.vlgmr.msrb.gmra.mxu1 %vm105_vm0, %v7285_v15  ;;  %v7846_v55 = vld [vmem:[%s10041_s6 + $0x49] sm:$0xff] }
  0xe0   :  { %6614 = vmatmul.msk.f32.gmra.mxu2 %vm105_vm0, %v7329_v22  ;;  %6619 = vmatmul.msk.f32.gmra.mxu3 %vm105_vm0, %v7334_v23 }
  0xe1   :  { %v7775_v2 = vadd.f32 %v590_v63, %v538_v16  ;;  %1782 = vmatpush.msrb.mxu1 %v7215_v3 }
  0xe3   :  { %v530_v18 = vpop.f32.mrf.mxu2  ;;  %v593_v19 = vpop.f32.mrf.mxu3 }
  0xe4   :  { %v398_v26 = vpop.f32.mrf.mxu0  ;;  %v461_v5 = vpop.f32.mrf.mxu1 }
  0xe5   :  { %v473_v21 = vadd.f32 %v461_v5, %v407_v17  ;;  %v408_v15 = vadd.f32 %v398_v26, %v7691_v36 }
  0xe7   :  { %v539_v6 = vadd.f32 %v527_v37, %v473_v21  ;;  %6602 = vmatmul.msk.f32.gmra.mxu0 %vm105_vm0, %v7352_v25  ;;  %6607 = vmatmul.msk.f32.gmra.mxu1 %vm105_vm0, %v7319_v20  ;;  %v1272_v25 = vld [vmem:[%s10041_s6 + $0x32] sm:$0xff] }
  0xe8   :  { %6615 = vmatmul.msk.f32.gmra.mxu2 %vm105_vm0, %v7592_v4  ;;  %6620 = vmatmul.msk.f32.gmra.mxu3 %vm105_vm0, %v7360_v27 }
  0xe9   :  { %v7787_v3 = vadd.f32 %v593_v19, %v539_v6  ;;  %v7870_v6 = vld [vmem:[%s10041_s6 + $0x48] sm:$0xff] }
  0xeb   :  { %v533_v22 = vpop.f32.mrf.mxu2  ;;  %v596_v23 = vpop.f32.mrf.mxu3 }
  0xec   :  { %v401_v43 = vpop.f32.mrf.mxu0  ;;  %v464_v28 = vpop.f32.mrf.mxu1 }
  0xed   :  { %v474_v29 = vadd.f32 %v464_v28, %v408_v15  ;;  %v409_v4 = vadd.f32 %v401_v43, %v7705_v61 }
  0xef   :  { %v540_v20 = vadd.f32 %v530_v18, %v474_v29  ;;  %6603 = vmatmul.msk.f32.gmra.mxu0 %vm105_vm0, %v7609_v7  ;;  %6608 = vmatmul.msk.f32.gmra.mxu1 %vm105_vm0, %v7347_v24  ;;  %v1140_v7 = vld [vmem:[%s10041_s6 + $0x30] sm:$0xff]  ;;  %v1273_v24 = vld [vmem:[%s10041_s6 + $0x3a] sm:$0x7] }
  0xf0   :  { %6616 = vmatmul.msk.f32.gmra.mxu2 %vm105_vm0, %v1272_v25  ;;  %6621 = vmatmul.msk.f32.gmra.mxu3 %vm105_vm0, %v7617_v11  ;;  %v1338_v11 = vld [vmem:[%s10041_s6 + $0x33] sm:$0xff] }
  0xf1   :  { %v7800_v27 = vadd.f32 %v596_v23, %v540_v20 }
  0xf3   :  { %v599_v36 = vpop.f32.mrf.mxu3  ;;  %v782_v31 = vpop.f32.mrf.mxu2 }
  0xf4   :  { %v467_v1 = vpop.f32.mrf.mxu1  ;;  %v650_v40 = vpop.f32.mrf.mxu0 }
  0xf5   :  { %v475_v42 = vadd.f32 %v467_v1, %v409_v4  ;;  %v668_v34 = vadd.f32 %v650_v40, %v7745_v46  ;;  %v1563_v46 = vld [vmem:[%s10041_s6 + $0x41] sm:$0xff] }
  0xf7   :  { %v541_v32 = vadd.f32 %v533_v22, %v475_v42  ;;  %6604 = vmatmul.msk.f32.gmra.mxu0 %vm105_vm0, %v1140_v7  ;;  %6609 = vmatmul.msk.f32.gmra.mxu1 %vm105_vm0, %v7634_v30  ;;  %v1206_v30 = vld [vmem:[%s10041_s6 + $0x31] sm:$0xff] }
  0xf8   :  { %6617 = vmatmul.msk.f32.gmra.mxu2 %vm105_vm0, %v1273_v24  ;;  %6622 = vmatmul.msk.f32.gmra.mxu3 %vm105_vm0, %v1338_v11 }
  0xf9   :  { %v7817_v61 = vadd.f32 %v599_v36, %v541_v32 }
  0xfb   :  { %v785_v35 = vpop.f32.mrf.mxu2  ;;  %v848_v45 = vpop.f32.mrf.mxu3 }
  0xfc   :  { %v653_v47 = vpop.f32.mrf.mxu0  ;;  %v716_v38 = vpop.f32.mrf.mxu1 }
  0xfd   :  { %v734_v54 = vadd.f32 %v716_v38, %v668_v34  ;;  %v669_v51 = vadd.f32 %v653_v47, %v7762_v8 }
  0xff   :  { %v800_v50 = vadd.f32 %v782_v31, %v734_v54  ;;  %6605 = vmatmul.msk.f32.gmra.mxu0 %vm105_vm0, %v1141_v41  ;;  %6610 = vmatmul.msk.f32.gmra.mxu1 %vm105_vm0, %v1206_v30 }
 0x100   :  { %6623 = vmatmul.msk.f32.gmra.mxu3 %vm105_vm0, %v1339_v57  ;;  %6636 = vmatmul.msk.f32.vlgmr.msrb.gmra.mxu2 %vm105_vm0, %v1563_v46  ;;  %v1405_v57 = vld [vmem:[%s10041_s6 + $0x3c] sm:$0x7] }
 0x101   :  { %v7836_v13 = vadd.f32 %v848_v45, %v800_v50  ;;  %2112 = vmatpush.msrb.mxu2 %v7391_v33  ;;  %v1556_v33 = vld [vmem:[%s10041_s6 + $0x40] sm:$0xff]  ;;  %v1561_v50 = vld [vmem:[%s10041_s6 + $0x68] sm:$0x7] }
 0x103   :  { %v788_v59 = vpop.f32.mrf.mxu2  ;;  %v851_v56 = vpop.f32.mrf.mxu3 }
 0x104   :  { %v656_v37 = vpop.f32.mrf.mxu0  ;;  %v719_v63 = vpop.f32.mrf.mxu1 }
 0x105   :  { %v735_v12 = vadd.f32 %v719_v63, %v669_v51  ;;  %v670_v17 = vadd.f32 %v656_v37, %v7775_v2 }
 0x107   :  { %v801_v16 = vadd.f32 %v785_v35, %v735_v12  ;;  %6611 = vmatmul.msk.f32.gmra.mxu1 %vm105_vm0, %v1207_v0  ;;  %6624 = vmatmul.msk.f32.vlgmr.msrb.gmra.mxu0 %vm105_vm0, %v7450_v44  ;;  %v7865_v44 = vld [vmem:[%s10041_s6 + $0x51] sm:$0xff]  ;;  %v7934_v35 = vld [vmem:[%s10041_s6 + $0x60] sm:$0xff] }
 0x108   :  { %6637 = vmatmul.msk.f32.gmra.mxu2 %vm105_vm0, %v7846_v55  ;;  %6642 = vmatmul.msk.f32.vlgmr.msrb.gmra.mxu3 %vm105_vm0, %v1556_v33  ;;  %v2012_v0 = vld [vmem:[%s10040_s9 + $0x38] sm:$0xff] }
 0x109   :  { %v7857_v8 = vadd.f32 %v851_v56, %v801_v16  ;;  %1980 = vmatpush.msrb.mxu0 %v7251_v10  ;;  %2178 = vmatpush.msrb.mxu3 %v7414_v39  ;;  %v1471_v16 = vld [vmem:[%s10041_s6 + $0x3d] sm:$0x7] }
 0x10b   :  { %v791_v18 = vpop.f32.mrf.mxu2  ;;  %v854_v19 = vpop.f32.mrf.mxu3 }
 0x10c   :  { %v659_v26 = vpop.f32.mrf.mxu0  ;;  %v722_v5 = vpop.f32.mrf.mxu1 }
 0x10d   :  { %v736_v21 = vadd.f32 %v722_v5, %v670_v17  ;;  %v671_v2 = vadd.f32 %v659_v26, %v7787_v3  ;;  %v1676_v17 = vld [vmem:[%s10041_s6 + $0x42] sm:$0xff] }
 0x10f   :  { %v802_v10 = vadd.f32 %v788_v59, %v736_v21  ;;  %6625 = vmatmul.msk.f32.gmra.mxu0 %vm105_vm0, %v7478_v48  ;;  %6630 = vmatmul.msk.f32.vlgmr.msra.gmra.mxu1 %vm105_vm0, %v7483_v49  ;;  %v7886_v48 = vld [vmem:[%s10041_s6 + $0x59] sm:$0xff]  ;;  %v7891_v49 = vld [vmem:[%s10041_s6 + $0x50] sm:$0xff] }
 0x110   :  { %6638 = vmatmul.msk.f32.gmra.mxu2 %vm105_vm0, %v7865_v44  ;;  %6643 = vmatmul.msk.f32.gmra.mxu3 %vm105_vm0, %v7870_v6 }
 0x111   :  { %v7880_v39 = vadd.f32 %v854_v19, %v802_v10  ;;  %2046 = vmatpush.msra.mxu1 %v2012_v0  ;;  %v8101_v0 = vld [vmem:[%s10041_s6 + $0x65] sm:$0xff] }
 0x113   :  { %v794_v15 = vpop.f32.mrf.mxu2  ;;  %v857_v22 = vpop.f32.mrf.mxu3 }
 0x114   :  { %v662_v23 = vpop.f32.mrf.mxu0  ;;  %v725_v43 = vpop.f32.mrf.mxu1 }
 0x115   :  { %v737_v28 = vadd.f32 %v725_v43, %v671_v2  ;;  %v672_v25 = vadd.f32 %v662_v23, %v7800_v27  ;;  %v1742_v23 = vld [vmem:[%s10041_s6 + $0x43] sm:$0xff] }
 0x117   :  { %v803_v29 = vadd.f32 %v791_v18, %v737_v28  ;;  %6626 = vmatmul.msk.f32.gmra.mxu0 %vm105_vm0, %v7506_v52  ;;  %6631 = vmatmul.msk.f32.gmra.mxu1 %vm105_vm0, %v7511_v53  ;;  %v7907_v52 = vld [vmem:[%s10041_s6 + $0x61] sm:$0xff]  ;;  %v7912_v53 = vld [vmem:[%s10041_s6 + $0x58] sm:$0xff] }
 0x118   :  { %6639 = vmatmul.msk.f32.gmra.mxu2 %vm105_vm0, %v7886_v48  ;;  %6644 = vmatmul.msk.f32.gmra.mxu3 %vm105_vm0, %v7891_v49  ;;  %10042 = vst [vmem:[#allocation6_spill] sm:$0xff] %v7907_v52  ;;  %v1874_v18 = vld [vmem:[%s10041_s6 + $0x45] sm:$0xff] }
 0x119   :  { %v7901_v3 = vadd.f32 %v857_v22, %v803_v29  ;;  %v7994_v22 = vld [vmem:[%s10041_s6 + $0x4a] sm:$0xff] }
 0x11b   :  { %v797_v20 = vpop.f32.mrf.mxu2  ;;  %v860_v4 = vpop.f32.mrf.mxu3 }
 0x11c   :  { %v665_v36 = vpop.f32.mrf.mxu0  ;;  %v728_v31 = vpop.f32.mrf.mxu1 }
 0x11d   :  { %v738_v1 = vadd.f32 %v728_v31, %v672_v25  ;;  %v673_v7 = vadd.f32 %v665_v36, %v7817_v61 }
 0x11f   :  { %v804_v40 = vadd.f32 %v794_v15, %v738_v1  ;;  %6627 = vmatmul.msk.f32.gmra.mxu0 %vm105_vm0, %v7710_v9  ;;  %6632 = vmatmul.msk.f32.gmra.mxu1 %vm105_vm0, %v7537_v58  ;;  %v1404_v9 = vld [vmem:[%s10041_s6 + $0x34] sm:$0xff]  ;;  %v1568_v58 = vld [vmem:[%s10041_s6 + $0x69] sm:$0x7] }
 0x120   :  { %6640 = vmatmul.msk.f32.gmra.mxu2 %vm105_vm0, %v7907_v52  ;;  %6645 = vmatmul.msk.f32.gmra.mxu3 %vm105_vm0, %v7912_v53  ;;  %v8022_v1 = vld [vmem:[%s10041_s6 + $0x52] sm:$0xff] }
 0x121   :  { %v7922_v27 = vadd.f32 %v860_v4, %v804_v40  ;;  %v8027_v40 = vld [vmem:[%s10041_s6 + $0x4b] sm:$0xff] }
 0x123   :  { %v863_v42 = vpop.f32.mrf.mxu3  ;;  %v1046_v24 = vpop.f32.mrf.mxu2 }
 0x124   :  { %v731_v11 = vpop.f32.mrf.mxu1  ;;  %v914_v32 = vpop.f32.mrf.mxu0 }
 0x125   :  { %v739_v34 = vadd.f32 %v731_v11, %v673_v7  ;;  %v932_v47 = vadd.f32 %v914_v32, %v7836_v13  ;;  %v1808_v13 = vld [vmem:[%s10041_s6 + $0x44] sm:$0xff] }
 0x127   :  { %v805_v45 = vadd.f32 %v797_v20, %v739_v34  ;;  %6628 = vmatmul.msk.f32.gmra.mxu0 %vm105_vm0, %v1404_v9  ;;  %6633 = vmatmul.msk.f32.gmra.mxu1 %vm105_vm0, %v7731_v14  ;;  %v1470_v14 = vld [vmem:[%s10041_s6 + $0x35] sm:$0xff] }
 0x128   :  { %6641 = vmatmul.msk.f32.gmra.mxu2 %vm105_vm0, %v1568_v58  ;;  %6646 = vmatmul.msk.f32.gmra.mxu3 %vm105_vm0, %v7934_v35 }
 0x129   :  { %v7942_v61 = vadd.f32 %v863_v42, %v805_v45  ;;  %v8032_v42 = vld [vmem:[%s10041_s6 + $0x5c] sm:$0xff] }
 0x12b   :  { %v1049_v38 = vpop.f32.mrf.mxu2  ;;  %v1112_v41 = vpop.f32.mrf.mxu3 }
 0x12c   :  { %v917_v30 = vpop.f32.mrf.mxu0  ;;  %v980_v54 = vpop.f32.mrf.mxu1 }
 0x12d   :  { %v998_v46 = vadd.f32 %v980_v54, %v932_v47  ;;  %v933_v56 = vadd.f32 %v917_v30, %v7857_v8  ;;  %v7977_v8 = vld [vmem:[%s10041_s6 + $0x4c] sm:$0xff]  ;;  %v8053_v47 = vld [vmem:[%s10041_s6 + $0x5a] sm:$0xff]  ;;  %v8063_v30 = vld [vmem:[%s10041_s6 + $0x64] sm:$0xff] }
 0x12f   :  { %v1064_v51 = vadd.f32 %v1046_v24, %v998_v46  ;;  %6629 = vmatmul.msk.f32.gmra.mxu0 %vm105_vm0, %v1405_v57  ;;  %6634 = vmatmul.msk.f32.gmra.mxu1 %vm105_vm0, %v1470_v14 }
 0x130   :  { %6647 = vmatmul.msk.f32.gmra.mxu3 %vm105_vm0, %v1561_v50  ;;  %6660 = vmatmul.msk.f32.vlgmr.msra.gmra.mxu2 %vm105_vm0, %v1808_v13 }
 0x131   :  { %v7961_v59 = vadd.f32 %v1112_v41, %v1064_v51  ;;  %2376 = vmatpush.msra.mxu2 %v7551_v60 }
 0x133   :  { %v1052_v37 = vpop.f32.mrf.mxu2  ;;  %v1115_v63 = vpop.f32.mrf.mxu3 }
 0x134   :  { %v920_v12 = vpop.f32.mrf.mxu0  ;;  %v983_v33 = vpop.f32.mrf.mxu1 }
 0x135   :  { %v999_v60 = vadd.f32 %v983_v33, %v933_v56  ;;  %v934_v5 = vadd.f32 %v920_v12, %v7880_v39  ;;  %v8007_v39 = vld [vmem:[%s10041_s6 + $0x4d] sm:$0xff]  ;;  %v8088_v56 = vld [vmem:[%s10041_s6 + $0x62] sm:$0xff] }
 0x137   :  { %v1065_v19 = vadd.f32 %v1049_v38, %v999_v60  ;;  %6635 = vmatmul.msk.f32.gmra.mxu1 %vm105_vm0, %v1471_v16  ;;  %6648 = vmatmul.msk.f32.vlgmr.msra.gmra.mxu0 %vm105_vm0, %v1676_v17  ;;  %v8058_v38 = vld [vmem:[%s10041_s6 + $0x53] sm:$0xff] }
 0x138   :  { %6661 = vmatmul.msk.f32.gmra.mxu2 %vm105_vm0, %v7977_v8  ;;  %6666 = vmatmul.msk.f32.vlgmr.msra.gmra.mxu3 %vm105_vm0, %v1874_v18 }
 0x139   :  { %v7987_v26 = vadd.f32 %v1115_v63, %v1065_v19  ;;  %2442 = vmatpush.msra.mxu3 %v7559_v62  ;;  %v8002_v62 = vld [vmem:[%s10041_s6 + $0x54] sm:$0xff]  ;;  %v1681_v19 = vld [vmem:[%s10041_s6 + $0x6a] sm:$0x7] }
 0x13b   :  { %v1055_v21 = vpop.f32.mrf.mxu2  ;;  %v1118_v10 = vpop.f32.mrf.mxu3 }
 0x13c   :  { %v923_v2 = vpop.f32.mrf.mxu0  ;;  %v986_v15 = vpop.f32.mrf.mxu1 }
 0x13d   :  { %v1000_v43 = vadd.f32 %v986_v15, %v934_v5  ;;  %v935_v25 = vadd.f32 %v923_v2, %v7901_v3  ;;  %v8037_v3 = vld [vmem:[%s10041_s6 + $0x55] sm:$0xff]  ;;  %v8124_v5 = vld [vmem:[%s10041_s6 + $0x63] sm:$0xff] }
 0x13f   :  { %v1066_v28 = vadd.f32 %v1052_v37, %v1000_v43  ;;  %6649 = vmatmul.msk.f32.gmra.mxu0 %vm105_vm0, %v7994_v22  ;;  %6654 = vmatmul.msk.f32.vlgmr.msrb.gmra.mxu1 %vm105_vm0, %v1742_v23  ;;  %v8093_v37 = vld [vmem:[%s10041_s6 + $0x5b] sm:$0xff] }
 0x140   :  { %6662 = vmatmul.msk.f32.gmra.mxu2 %vm105_vm0, %v8002_v62  ;;  %6667 = vmatmul.msk.f32.gmra.mxu3 %vm105_vm0, %v8007_v39  ;;  %v2276_v23 = vld [vmem:[%s10040_s9 + $0x58] sm:$0xff] }
 0x141   :  { %v8016_v29 = vadd.f32 %v1118_v10, %v1066_v28  ;;  %v2210_v10 = vld [vmem:[%s10040_s9 + $0x50] sm:$0xff]  ;;  %2310 = vmatpush.msrb.mxu1 %v2276_v23 }
 0x142   :  { %2244 = vmatpush.msra.mxu0 %v2210_v10 }
 0x143   :  { %v1058_v20 = vpop.f32.mrf.mxu2  ;;  %v1121_v4 = vpop.f32.mrf.mxu3 }
 0x144   :  { %v926_v36 = vpop.f32.mrf.mxu0  ;;  %v989_v31 = vpop.f32.mrf.mxu1 }
 0x145   :  { %v1001_v7 = vadd.f32 %v989_v31, %v935_v25  ;;  %v936_v32 = vadd.f32 %v926_v36, %v7922_v27  ;;  %v8068_v27 = vld [vmem:[%s10041_s6 + $0x5d] sm:$0xff]  ;;  %v1940_v25 = vld [vmem:[%s10041_s6 + $0x46] sm:$0xff] }
 0x147   :  { %v1067_v24 = vadd.f32 %v1055_v21, %v1001_v7  ;;  %6650 = vmatmul.msk.f32.gmra.mxu0 %vm105_vm0, %v8022_v1  ;;  %6655 = vmatmul.msk.f32.gmra.mxu1 %vm105_vm0, %v8027_v40  ;;  %v1879_v21 = vld [vmem:[%s10041_s6 + $0x6d] sm:$0x7] }
 0x148   :  { %6663 = vmatmul.msk.f32.gmra.mxu2 %vm105_vm0, %v8032_v42  ;;  %6668 = vmatmul.msk.f32.gmra.mxu3 %vm105_vm0, %v8037_v3  ;;  %v8170_v7 = vld [vmem:[%s10041_s6 + $0x4e] sm:$0xff] }
 0x149   :  { %v8047_v11 = vadd.f32 %v1121_v4, %v1067_v24  ;;  %v2006_v24 = vld [vmem:[%s10041_s6 + $0x47] sm:$0xff] }
 0x14b   :  { %v1061_v9 = vpop.f32.mrf.mxu2  ;;  %v1124_v34 = vpop.f32.mrf.mxu3 }
 0x14c   :  { %v929_v58 = vpop.f32.mrf.mxu0  ;;  %v992_v45 = vpop.f32.mrf.mxu1 }
 0x14d   :  { %v1002_v41 = vadd.f32 %v992_v45, %v936_v32  ;;  %v937_v14 = vadd.f32 %v929_v58, %v7942_v61  ;;  %v1813_v61 = vld [vmem:[%s10041_s6 + $0x6c] sm:$0x7]  ;;  %v8193_v58 = vld [vmem:[%s10041_s6 + $0x56] sm:$0xff] }
 0x14e   :  { %v8198_v45 = vld [vmem:[%s10041_s6 + $0x4f] sm:$0xff] }
 0x14f   :  { %v1068_v54 = vadd.f32 %v1058_v20, %v1002_v41  ;;  %6651 = vmatmul.msk.f32.gmra.mxu0 %vm105_vm0, %v8053_v47  ;;  %6656 = vmatmul.msk.f32.gmra.mxu1 %vm105_vm0, %v8058_v38 }
 0x150   :  { %6664 = vmatmul.msk.f32.gmra.mxu2 %vm105_vm0, %v8063_v30  ;;  %6669 = vmatmul.msk.f32.gmra.mxu3 %vm105_vm0, %v8068_v27 }
 0x151   :  { %v8078_v57 = vadd.f32 %v1124_v34, %v1068_v54 }
 0x153   :  { %v1127_v46 = vpop.f32.mrf.mxu3  ;;  %v8081_v50 = vpop.f32.mrf.mxu2 }
 0x154   :  { %v995_v13 = vpop.f32.mrf.mxu1  ;;  %v8083_v51 = vpop.f32.mrf.mxu0 }
 0x155   :  { %v1003_v63 = vadd.f32 %v995_v13, %v937_v14  ;;  %v8219_v13 = vld [vmem:[%s10041_s6 + $0x5e] sm:$0xff] }
 0x157   :  { %v1069_v12 = vadd.f32 %v1061_v9, %v1003_v63  ;;  %6652 = vmatmul.msk.f32.gmra.mxu0 %vm105_vm0, %v8088_v56  ;;  %6657 = vmatmul.msk.f32.gmra.mxu1 %vm105_vm0, %v8093_v37  ;;  %v8224_v63 = vld [vmem:[%s10041_s6 + $0x57] sm:$0xff] }
 0x158   :  { %6665 = vmatmul.msk.f32.gmra.mxu2 %vm105_vm0, %v1813_v61  ;;  %6670 = vmatmul.msk.f32.gmra.mxu3 %vm105_vm0, %v8101_v0  ;;  %10043 = vst [vmem:[#allocation7_spill] sm:$0xff] %v8224_v63  ;;  %v8229_v61 = vld [vmem:[%s10041_s6 + $0x68] sm:$0xff] }
 0x159   :  { %v8110_v33 = vadd.f32 %v1127_v46, %v1069_v12  ;;  %10044 = vst [vmem:[#allocation8_spill] sm:$0xff] %v8229_v61  ;;  %v1196_v12 = vadd.f32 %v8083_v51, %v7961_v59  ;;  %v8248_v59 = vld [vmem:[%s10041_s6 + $0x66] sm:$0xff] }
 0x15a   :  { %10045 = vst [vmem:[#allocation9_spill] sm:$0xff] %v8248_v59  ;;  %v8253_v51 = vld [vmem:[%s10041_s6 + $0x5f] sm:$0xff] }
 0x15b   :  { %v8112_v16 = vpop.f32.mrf.mxu2  ;;  %v8114_v17 = vpop.f32.mrf.mxu3  ;;  %10046 = vst [vmem:[#allocation10_spill] sm:$0xff] %v8253_v51 }
 0x15c   :  { %v8116_v60 = vpop.f32.mrf.mxu0  ;;  %v1244_v18 = vpop.f32.mrf.mxu1 }
 0x15f   :  { %6653 = vmatmul.msk.f32.gmra.mxu0 %vm105_vm0, %v1681_v19  ;;  %6658 = vmatmul.msk.f32.gmra.mxu1 %vm105_vm0, %v8124_v5  ;;  %v1262_v19 = vadd.f32 %v1244_v18, %v1196_v12  ;;  %v2077_v18 = vld [vmem:[%s10041_s6 + $0x70] sm:$0x7]  ;;  %v1197_v12 = vadd.f32 %v8116_v60, %v7987_v26  ;;  %v8277_v26 = vld [vmem:[%s10047_s5] ss:$0 sm:$0xff] }
 0x160   :  { %6671 = vmatmul.msk.f32.gmra.mxu3 %vm105_vm0, %v1879_v21  ;;  %6684 = vmatmul.msk.f32.vlgmr.msrb.gmra.mxu2 %vm105_vm0, %v7870_v6  ;;  %v1747_v6 = vld [vmem:[%s10041_s6 + $0x6b] sm:$0x7] }
 0x163   :  { %v8138_v2 = vpop.f32.mrf.mxu2  ;;  %v8140_v15 = vpop.f32.mrf.mxu3 }
 0x164   :  { %v8145_v43 = vpop.f32.mrf.mxu0  ;;  %v1247_v28 = vpop.f32.mrf.mxu1 }
 0x167   :  { %6659 = vmatmul.msk.f32.gmra.mxu1 %vm105_vm0, %v1747_v6  ;;  %6672 = vmatmul.msk.f32.vlgmr.msrb.gmra.mxu0 %vm105_vm0, %v1940_v25  ;;  %v1328_v25 = vadd.f32 %v8081_v50, %v1262_v19  ;;  %v1263_v50 = vadd.f32 %v1247_v28, %v1197_v12 }
 0x168   :  { %6685 = vmatmul.msk.f32.gmra.mxu2 %vm105_vm0, %v7891_v49  ;;  %6690 = vmatmul.msk.f32.vlgmr.msrb.gmra.mxu3 %vm105_vm0, %v7846_v55 }
 0x169   :  { %v1394_v19 = vadd.f32 %v8114_v17, %v1328_v25  ;;  %v8287_v17 = vld [vmem:[%s10041_s6 + $0x67] sm:$0xff]  ;;  %v1329_v28 = vadd.f32 %v8112_v16, %v1263_v50  ;;  %v2143_v25 = vld [vmem:[%s10041_s6 + $0x71] sm:$0x7] }
 0x16a   :  { %v2606_v50 = vld [vmem:[%s10040_s9 + $0x80] sm:$0xff] }
 0x16b   :  { %v8159_v20 = vpop.f32.mrf.mxu2  ;;  %v8161_v4 = vpop.f32.mrf.mxu3  ;;  %v1395_v16 = vadd.f32 %v8140_v15, %v1329_v28  ;;  %2640 = vmatpush.msrb.mxu2 %v2606_v50  ;;  %v2540_v28 = vld [vmem:[%s10040_s9 + $0x78] sm:$0xff] }
 0x16c   :  { %v8163_v36 = vpop.f32.mrf.mxu0  ;;  %v8165_v31 = vpop.f32.mrf.mxu1 }
 0x16f   :  { %6673 = vmatmul.msk.f32.gmra.mxu0 %vm105_vm0, %v8170_v7  ;;  %6678 = vmatmul.msk.f32.vlgmr.msra.gmra.mxu1 %vm105_vm0, %v2006_v24  ;;  %v8262_v24 = vld [vmem:[%s10041_s6 + $0x69] sm:$0xff] }
 0x170   :  { %6686 = vmatmul.msk.f32.gmra.mxu2 %vm105_vm0, %v7912_v53  ;;  %6691 = vmatmul.msk.f32.gmra.mxu3 %vm105_vm0, %v7865_v44 }
 0x171   :  { %2574 = vmatpush.msra.mxu1 %v2540_v28 }
 0x173   :  { %v8182_v55 = vpop.f32.mrf.mxu2  ;;  %v8184_v32 = vpop.f32.mrf.mxu3 }
 0x174   :  { %v8186_v9 = vpop.f32.mrf.mxu0  ;;  %v8188_v34 = vpop.f32.mrf.mxu1 }
 0x177   :  { %6674 = vmatmul.msk.f32.gmra.mxu0 %vm105_vm0, %v8193_v58  ;;  %6679 = vmatmul.msk.f32.gmra.mxu1 %vm105_vm0, %v8198_v45 }
 0x178   :  { %6687 = vmatmul.msk.f32.gmra.mxu2 %vm105_vm0, %v7934_v35  ;;  %6692 = vmatmul.msk.f32.gmra.mxu3 %vm105_vm0, %v7886_v48 }
 0x17b   :  { %v8208_v41 = vpop.f32.mrf.mxu2  ;;  %v8210_v54 = vpop.f32.mrf.mxu3 }
 0x17c   :  { %v8212_v14 = vpop.f32.mrf.mxu0  ;;  %v8214_v46 = vpop.f32.mrf.mxu1 }
 0x17d   :  { %v1201_v28 = vadd.f32 %v8212_v14, %v8110_v33 }
 0x17f   :  { %6675 = vmatmul.msk.f32.gmra.mxu0 %vm105_vm0, %v8219_v13  ;;  %6680 = vmatmul.msk.f32.gmra.mxu1 %vm105_vm0, %v8224_v63 }
 0x180   :  { %6688 = vmatmul.msk.f32.gmra.mxu2 %vm105_vm0, %v8229_v61  ;;  %6693 = vmatmul.msk.f32.gmra.mxu3 %vm105_vm0, %v7907_v52 }
 0x183   :  { %v8241_v21 = vpop.f32.mrf.mxu3  ;;  %v1605_v10 = vpop.f32.mrf.mxu2 }
 0x184   :  { %v8243_v23 = vpop.f32.mrf.mxu1  ;;  %v1442_v6 = vpop.f32.mrf.mxu0 }
 0x185   :  { %v1460_v52 = vadd.f32 %v1442_v6, %v1394_v19  ;;  %v2474_v19 = vld [vmem:[%s10040_s9 + $0x70] sm:$0xff] }
 0x186   :  { %2508 = vmatpush.msrb.mxu0 %v2474_v19 }
 0x187   :  { %6676 = vmatmul.msk.f32.gmra.mxu0 %vm105_vm0, %v8248_v59  ;;  %6681 = vmatmul.msk.f32.gmra.mxu1 %vm105_vm0, %v8253_v51 }
 0x188   :  { %6689 = vmatmul.msk.f32.gmra.mxu2 %vm105_vm0, %v2077_v18  ;;  %6694 = vmatmul.msk.f32.gmra.mxu3 %vm105_vm0, %v8262_v24  ;;  %v1945_v18 = vld [vmem:[%s10041_s6 + $0x6e] sm:$0x7] }
 0x18b   :  { %v1608_v61 = vpop.f32.mrf.mxu2  ;;  %v1658_v63 = vpop.f32.mrf.mxu3 }
 0x18c   :  { %v8279_v60 = vadd.f32 %v1658_v63, %v1605_v10  ;;  %v1445_v59 = vpop.f32.mrf.mxu0  ;;  %v1508_v51 = vpop.f32.mrf.mxu1  ;;  %v1198_v63 = vadd.f32 %v8145_v43, %v8016_v29 }
 0x18d   :  { %v1526_v6 = vadd.f32 %v1508_v51, %v1460_v52  ;;  %v1461_v12 = vadd.f32 %v1445_v59, %v1395_v16 }
 0x18e   :  { %v1264_v52 = vadd.f32 %v8165_v31, %v1198_v63 }
 0x18f   :  { %v1536_v10 = vadd.f32 %v8277_v26, %v1526_v6  ;;  %6677 = vmatmul.msk.f32.gmra.mxu0 %vm105_vm0, %v1945_v18  ;;  %6682 = vmatmul.msk.f32.gmra.mxu1 %vm105_vm0, %v8287_v17  ;;  %v2011_v18 = vld [vmem:[%s10041_s6 + $0x6f] sm:$0x7] }
 0x190   :  { %6695 = vmatmul.msk.f32.gmra.mxu3 %vm105_vm0, %v2143_v25  ;;  %6708 = vmatmul.msk.f32.vlgmr.msra.gmra.mxu2 %vm105_vm0, %v7977_v8  ;;  %v2672_v8 = vld [vmem:[%s10040_s9 + $0x88] sm:$0xff]  ;;  %v1330_v6 = vadd.f32 %v8138_v2, %v1264_v52 }
 0x191   :  { %v1542_v51 = vmax.f32 %v1536_v10, 0.0  ;;  %2706 = vmatpush.msrb.mxu3 %v2672_v8 }
 0x192   :  { %v1396_v10 = vadd.f32 %v8161_v4, %v1330_v6 }
 0x193   :  { %1549 = vst.msk [vmem:[#allocation2] sm:$0xff] %vm1548_vm1, %v1542_v51  ;;  %v1611_v29 = vpop.f32.mrf.mxu2  ;;  %v1661_v43 = vpop.f32.mrf.mxu3 }
 0x194   :  { %v8314_v31 = vadd.f32 %v1661_v43, %v1608_v61  ;;  %v1448_v15 = vpop.f32.mrf.mxu0  ;;  %v1511_v59 = vpop.f32.mrf.mxu1  ;;  %v1199_v61 = vadd.f32 %v8163_v36, %v8047_v11 }
 0x195   :  { %v1527_v25 = vadd.f32 %v1511_v59, %v1461_v12  ;;  %v1462_v16 = vadd.f32 %v1448_v15, %v1396_v10 }
 0x196   :  { %v1265_v2 = vadd.f32 %v8188_v34, %v1199_v61 }
 0x197   :  { %v1537_v63 = vadd.f32 %v8277_v26, %v1527_v25  ;;  %6683 = vmatmul.msk.f32.gmra.mxu1 %vm105_vm0, %v2011_v18  ;;  %6696 = vmatmul.msk.f32.vlgmr.msra.gmra.mxu0 %vm105_vm0, %v7994_v22 }
 0x198   :  { %6709 = vmatmul.msk.f32.gmra.mxu2 %vm105_vm0, %v8002_v62  ;;  %6714 = vmatmul.msk.f32.vlgmr.msra.gmra.mxu3 %vm105_vm0, %v8007_v39  ;;  %v1331_v43 = vadd.f32 %v8159_v20, %v1265_v2  ;;  %v1200_v39 = vadd.f32 %v8186_v9, %v8078_v57 }
 0x199   :  { %v1543_v52 = vmax.f32 %v1537_v63, 0.0 }
 0x19a   :  { %v1266_v20 = vadd.f32 %v8214_v46, %v1200_v39  ;;  %v1397_v4 = vadd.f32 %v8184_v32, %v1331_v43  ;;  %v8394_v39 = vld [vmem:[%s10041_s6 + $0x6a] sm:$0xff] }
 0x19b   :  { %1550 = vst.msk [vmem:[#allocation2 + $0x8] sm:$0xff] %vm1548_vm1, %v1543_v52  ;;  %v1614_v11 = vpop.f32.mrf.mxu2  ;;  %v1664_v36 = vpop.f32.mrf.mxu3 }
 0x19c   :  { %v8336_v51 = vadd.f32 %v1664_v36, %v1611_v29  ;;  %v1451_v12 = vpop.f32.mrf.mxu0  ;;  %v1514_v22 = vpop.f32.mrf.mxu1  ;;  %v1332_v59 = vadd.f32 %v8182_v55, %v1266_v20  ;;  %v1267_v55 = vadd.f32 %v8243_v23, %v1201_v28  ;;  %v8402_v20 = vld [vmem:[%s10041_s6 + $0x6d] sm:$0xff]  ;;  %v2407_v28 = vld [vmem:[%s10041_s6 + $0x75] sm:$0x7] }
 0x19d   :  { %v1528_v50 = vadd.f32 %v1514_v22, %v1462_v16  ;;  %v1463_v57 = vadd.f32 %v1451_v12, %v1397_v4  ;;  %v8376_v16 = vld [vmem:[%s10041_s6 + $0x6c] sm:$0xff] }
 0x19e   :  { %v1398_v32 = vadd.f32 %v8210_v54, %v1332_v59  ;;  %v1333_v10 = vadd.f32 %v8208_v41, %v1267_v55  ;;  %v8420_v59 = vld [vmem:[%s10041_s6 + $0x6b] sm:$0xff] }
 0x19f   :  { %v1538_v34 = vadd.f32 %v8277_v26, %v1528_v50  ;;  %6697 = vmatmul.msk.f32.gmra.mxu0 %vm105_vm0, %v8022_v1  ;;  %6702 = vmatmul.msk.f32.vlgmr.msrb.gmra.mxu1 %vm105_vm0, %v8027_v40  ;;  %v2738_v55 = vld [vmem:[%s10040_s9 + $0x90] sm:$0xff] }
 0x1a0   :  { %6710 = vmatmul.msk.f32.gmra.mxu2 %vm105_vm0, %v8032_v42  ;;  %6715 = vmatmul.msk.f32.gmra.mxu3 %vm105_vm0, %v8037_v3  ;;  %v1399_v41 = vadd.f32 %v8241_v21, %v1333_v10  ;;  %v2341_v21 = vld [vmem:[%s10041_s6 + $0x74] sm:$0x7] }
 0x1a1   :  { %v1544_v29 = vmax.f32 %v1538_v34, 0.0  ;;  %2772 = vmatpush.msra.mxu0 %v2738_v55  ;;  %v2275_v10 = vld [vmem:[%s10041_s6 + $0x73] sm:$0x7] }
 0x1a3   :  { %1551 = vst.msk [vmem:[#allocation2 + $0x10] sm:$0xff] %vm1548_vm1, %v1544_v29  ;;  %v1617_v9 = vpop.f32.mrf.mxu2  ;;  %v1667_v19 = vpop.f32.mrf.mxu3 }
 0x1a4   :  { %v8353_v8 = vadd.f32 %v1667_v19, %v1614_v11  ;;  %v1454_v15 = vpop.f32.mrf.mxu0  ;;  %v1517_v40 = vpop.f32.mrf.mxu1 }
 0x1a5   :  { %v1529_v18 = vadd.f32 %v1517_v40, %v1463_v57  ;;  %v1464_v33 = vadd.f32 %v1454_v15, %v1398_v32  ;;  %v2209_v40 = vld [vmem:[%s10041_s6 + $0x72] sm:$0x7]  ;;  %v2936_v32 = vld [vmem:[%s10040_s9 + $0xa8] sm:$0xff] }
 0x1a6   :  { %2970 = vmatpush.msra.mxu3 %v2936_v32 }
 0x1a7   :  { %v1539_v46 = vadd.f32 %v8277_v26, %v1529_v18  ;;  %6698 = vmatmul.msk.f32.gmra.mxu0 %vm105_vm0, %v8053_v47  ;;  %6703 = vmatmul.msk.f32.gmra.mxu1 %vm105_vm0, %v8058_v38 }
 0x1a8   :  { %6711 = vmatmul.msk.f32.gmra.mxu2 %vm105_vm0, %v8063_v30  ;;  %6716 = vmatmul.msk.f32.gmra.mxu3 %vm105_vm0, %v8068_v27 }
 0x1a9   :  { %v1545_v6 = vmax.f32 %v1539_v46, 0.0 }
 0x1ab   :  { %1552 = vst.msk [vmem:[#allocation2 + $0x18] sm:$0xff] %vm1548_vm1, %v1545_v6  ;;  %v1620_v14 = vpop.f32.mrf.mxu2  ;;  %v1670_v25 = vpop.f32.mrf.mxu3 }
 0x1ac   :  { %v8370_v61 = vadd.f32 %v1670_v25, %v1617_v9  ;;  %v1457_v63 = vpop.f32.mrf.mxu0  ;;  %v1520_v2 = vpop.f32.mrf.mxu1 }
 0x1ad   :  { %v1530_v52 = vadd.f32 %v1520_v2, %v1464_v33  ;;  %v1465_v11 = vadd.f32 %v1457_v63, %v1399_v41 }
 0x1af   :  { %v1540_v54 = vadd.f32 %v8277_v26, %v1530_v52  ;;  %6699 = vmatmul.msk.f32.gmra.mxu0 %vm105_vm0, %v8088_v56  ;;  %6704 = vmatmul.msk.f32.gmra.mxu1 %vm105_vm0, %v8093_v37 }
 0x1b0   :  { %6712 = vmatmul.msk.f32.gmra.mxu2 %vm105_vm0, %v8376_v16  ;;  %6717 = vmatmul.msk.f32.gmra.mxu3 %vm105_vm0, %v8101_v0 }
 0x1b1   :  { %v1546_v23 = vmax.f32 %v1540_v54, 0.0 }
 0x1b3   :  { %1553 = vst.msk [vmem:[#allocation2 + $0x20] sm:$0xff] %vm1548_vm1, %v1546_v23  ;;  %v1673_v36 = vpop.f32.mrf.mxu3  ;;  %v1850_v12 = vpop.f32.mrf.mxu2 }
 0x1b4   :  { %v8389_v22 = vadd.f32 %v1673_v36, %v1620_v14  ;;  %v1523_v43 = vpop.f32.mrf.mxu1  ;;  %v1718_v50 = vpop.f32.mrf.mxu0 }
 0x1b5   :  { %v1531_v34 = vadd.f32 %v1523_v43, %v1465_v11  ;;  %v1736_v57 = vadd.f32 %v1718_v50, %v8279_v60  ;;  %v2870_v60 = vld [vmem:[%s10040_s9 + $0xa0] sm:$0xff] }
 0x1b6   :  { %2904 = vmatpush.msra.mxu2 %v2870_v60 }
 0x1b7   :  { %v1541_v4 = vadd.f32 %v8277_v26, %v1531_v34  ;;  %6700 = vmatmul.msk.f32.gmra.mxu0 %vm105_vm0, %v8394_v39  ;;  %6705 = vmatmul.msk.f32.gmra.mxu1 %vm105_vm0, %v8124_v5 }
 0x1b8   :  { %6713 = vmatmul.msk.f32.gmra.mxu2 %vm105_vm0, %v2341_v21  ;;  %6718 = vmatmul.msk.f32.gmra.mxu3 %vm105_vm0, %v8402_v20 }
 0x1b9   :  { %v1547_v29 = vmax.f32 %v1541_v4, 0.0 }
 0x1bb   :  { %1555 = vst.msk [vmem:[#allocation2 + $0x28] sm:$0x7] %vm1554_vm2, %v1547_v29  ;;  %v1853_v9 = vpop.f32.mrf.mxu2  ;;  %v1916_v19 = vpop.f32.mrf.mxu3 }
 0x1bc   :  { %v1721_v26 = vpop.f32.mrf.mxu0  ;;  %v1784_v15 = vpop.f32.mrf.mxu1 }
 0x1bd   :  { %v1802_v18 = vadd.f32 %v1784_v15, %v1736_v57  ;;  %v1737_v33 = vadd.f32 %v1721_v26, %v8314_v31 }
 0x1bf   :  { %v1868_v46 = vadd.f32 %v1850_v12, %v1802_v18  ;;  %6701 = vmatmul.msk.f32.gmra.mxu0 %vm105_vm0, %v2209_v40  ;;  %6706 = vmatmul.msk.f32.gmra.mxu1 %vm105_vm0, %v8420_v59  ;;  %v10051_v18 = vld [vmem:[#allocation9_spill] sm:$0xff] }
 0x1c0   :  { %6719 = vmatmul.msk.f32.gmra.mxu3 %vm105_vm0, %v2407_v28  ;;  %6732 = vmatmul.msk.f32.vlgmr.msrb.gmra.mxu2 %vm105_vm0, %v7891_v49  ;;  %v2804_v49 = vld [vmem:[%s10040_s9 + $0x98] sm:$0xff] }
 0x1c1   :  { %v8440_v6 = vadd.f32 %v1916_v19, %v1868_v46  ;;  %2838 = vmatpush.msrb.mxu1 %v2804_v49  ;;  %v10052_v28 = vld [vmem:[#allocation10_spill] sm:$0xff] }
 0x1c2   :  { %v2605_v49 = vld [vmem:[%s10041_s6 + $0x78] sm:$0x7] }
 0x1c3   :  { %v1856_v14 = vpop.f32.mrf.mxu2  ;;  %v1919_v25 = vpop.f32.mrf.mxu3 }
 0x1c4   :  { %v1724_v63 = vpop.f32.mrf.mxu0  ;;  %v1787_v2 = vpop.f32.mrf.mxu1 }
 0x1c5   :  { %v1803_v52 = vadd.f32 %v1787_v2, %v1737_v33  ;;  %v1738_v41 = vadd.f32 %v1724_v63, %v8336_v51 }
 0x1c7   :  { %v1869_v54 = vadd.f32 %v1853_v9, %v1803_v52  ;;  %6707 = vmatmul.msk.f32.gmra.mxu1 %vm105_vm0, %v2275_v10  ;;  %6720 = vmatmul.msk.f32.vlgmr.msrb.gmra.mxu0 %vm105_vm0, %v8170_v7 }
 0x1c8   :  { %6733 = vmatmul.msk.f32.gmra.mxu2 %vm105_vm0, %v7912_v53  ;;  %6738 = vmatmul.msk.f32.vlgmr.msrb.gmra.mxu3 %vm105_vm0, %v7865_v44 }
 0x1c9   :  { %v8456_v31 = vadd.f32 %v1919_v25, %v1869_v54 }
 0x1cb   :  { %v1859_v23 = vpop.f32.mrf.mxu2  ;;  %v1922_v11 = vpop.f32.mrf.mxu3 }
 0x1cc   :  { %v1727_v36 = vpop.f32.mrf.mxu0  ;;  %v1790_v12 = vpop.f32.mrf.mxu1 }
 0x1cd   :  { %v1804_v43 = vadd.f32 %v1790_v12, %v1738_v41  ;;  %v1739_v53 = vadd.f32 %v1727_v36, %v8353_v8  ;;  %v2671_v36 = vld [vmem:[%s10041_s6 + $0x79] sm:$0x7] }
 0x1cf   :  { %v1870_v50 = vadd.f32 %v1856_v14, %v1804_v43  ;;  %6721 = vmatmul.msk.f32.gmra.mxu0 %vm105_vm0, %v8193_v58  ;;  %6726 = vmatmul.msk.f32.vlgmr.msra.gmra.mxu1 %vm105_vm0, %v8198_v45  ;;  %v10048_v58 = vld [vmem:[#allocation7_spill] sm:$0xff]  ;;  %v2472_v14 = vld [vmem:[%s10041_s6 + $0x6e] sm:$0xff] }
 0x1d0   :  { %6734 = vmatmul.msk.f32.gmra.mxu2 %vm105_vm0, %v7934_v35  ;;  %6739 = vmatmul.msk.f32.gmra.mxu3 %vm105_vm0, %v7886_v48  ;;  %v10049_v35 = vld [vmem:[#allocation8_spill] sm:$0xff]  ;;  %v10050_v48 = vld [vmem:[#allocation6_spill] sm:$0xff] }
 0x1d1   :  { %v8467_v44 = vadd.f32 %v1922_v11, %v1870_v50  ;;  %v8533_v43 = vld [vmem:[%s10053_s29 + $0x12] sm:$0x3]  ;;  %v3155_v50 = vld [vmem:[%s10053_s29 + $0x26] sm:$0x3] }
 0x1d2   :  { %6768 = vmatpush.msk.msrb.mxu0 %vm3037_vm3, %v8533_v43  ;;  %6780 = vmatpush.msk.msrb.mxu3 %vm3037_vm3, %v3155_v50  ;;  %v3339_v50 = vld [vmem:[%s10053_s29 + $0x4e] sm:$0x3] }
 0x1d3   :  { %v1862_v7 = vpop.f32.mrf.mxu2  ;;  %v1925_v51 = vpop.f32.mrf.mxu3 }
 0x1d4   :  { %v1730_v34 = vpop.f32.mrf.mxu0  ;;  %v1793_v21 = vpop.f32.mrf.mxu1 }
 0x1d5   :  { %v1805_v4 = vadd.f32 %v1793_v21, %v1739_v53  ;;  %v1740_v8 = vadd.f32 %v1730_v34, %v8370_v61  ;;  %v8549_v34 = vld [vmem:[%s10053_s29 + $0x8] sm:$0x3] }
 0x1d6   :  { %6772 = vmatpush.msk.msra.mxu1 %vm3037_vm3, %v8549_v34 }
 0x1d7   :  { %v1871_v29 = vadd.f32 %v1859_v23, %v1805_v4  ;;  %6722 = vmatmul.msk.f32.gmra.mxu0 %vm105_vm0, %v8219_v13  ;;  %6727 = vmatmul.msk.f32.gmra.mxu1 %vm105_vm0, %v10048_v58  ;;  %v2604_v13 = vld [vmem:[%s10041_s6 + $0x70] sm:$0xff] }
 0x1d8   :  { %6735 = vmatmul.msk.f32.gmra.mxu2 %vm105_vm0, %v10049_v35  ;;  %6740 = vmatmul.msk.f32.gmra.mxu3 %vm105_vm0, %v10050_v48  ;;  %v2473_v23 = vld [vmem:[%s10041_s6 + $0x76] sm:$0x7] }
 0x1d9   :  { %v8478_v45 = vadd.f32 %v1925_v51, %v1871_v29  ;;  %v2539_v29 = vld [vmem:[%s10041_s6 + $0x77] sm:$0x7] }
 0x1db   :  { %v1865_v57 = vpop.f32.mrf.mxu2  ;;  %v1928_v9 = vpop.f32.mrf.mxu3 }
 0x1dc   :  { %v1733_v19 = vpop.f32.mrf.mxu0  ;;  %v1796_v26 = vpop.f32.mrf.mxu1 }
 0x1dd   :  { %v1806_v15 = vadd.f32 %v1796_v26, %v1740_v8  ;;  %v1741_v46 = vadd.f32 %v1733_v19, %v8389_v22 }
 0x1df   :  { %v1872_v40 = vadd.f32 %v1862_v7, %v1806_v15  ;;  %6723 = vmatmul.msk.f32.gmra.mxu0 %vm105_vm0, %v10051_v18  ;;  %6728 = vmatmul.msk.f32.gmra.mxu1 %vm105_vm0, %v10052_v28  ;;  %v8569_v15 = vld [vmem:[%s10053_s29 + $0x14] sm:$0xff] }
 0x1e0   :  { %6736 = vmatmul.msk.f32.gmra.mxu2 %vm105_vm0, %v2604_v13  ;;  %6741 = vmatmul.msk.f32.gmra.mxu3 %vm105_vm0, %v8262_v24  ;;  %v2670_v24 = vld [vmem:[%s10041_s6 + $0x71] sm:$0xff] }
 0x1e1   :  { %v8491_v61 = vadd.f32 %v1928_v9, %v1872_v40 }
 0x1e3   :  { %v1931_v60 = vpop.f32.mrf.mxu3  ;;  %v2114_v55 = vpop.f32.mrf.mxu2 }
 0x1e4   :  { %v1799_v32 = vpop.f32.mrf.mxu1  ;;  %v1982_v33 = vpop.f32.mrf.mxu0 }
 0x1e5   :  { %v1807_v25 = vadd.f32 %v1799_v32, %v1741_v46  ;;  %v2000_v2 = vadd.f32 %v1982_v33, %v8440_v6  ;;  %v8525_v6 = vld [vmem:[%s10053_s29 + $0x1c] sm:$0x3] }
 0x1e6   :  { %6776 = vmatpush.msk.msrb.mxu2 %vm3037_vm3, %v8525_v6 }
 0x1e7   :  { %v1873_v63 = vadd.f32 %v1865_v57, %v1807_v25  ;;  %6724 = vmatmul.msk.f32.gmra.mxu0 %vm105_vm0, %v2472_v14  ;;  %6729 = vmatmul.msk.f32.gmra.mxu1 %vm105_vm0, %v8287_v17  ;;  %v2538_v17 = vld [vmem:[%s10041_s6 + $0x6f] sm:$0xff] }
 0x1e8   :  { %6737 = vmatmul.msk.f32.gmra.mxu2 %vm105_vm0, %v2605_v49  ;;  %6742 = vmatmul.msk.f32.gmra.mxu3 %vm105_vm0, %v2670_v24 }
 0x1e9   :  { %v8508_v22 = vadd.f32 %v1931_v60, %v1873_v63  ;;  %3137 = vmatpush.msrb.mxu2 %v8569_v15 }
 0x1eb   :  { %v2117_v10 = vpop.f32.mrf.mxu2  ;;  %v2180_v52 = vpop.f32.mrf.mxu3 }
 0x1ec   :  { %v1985_v54 = vpop.f32.mrf.mxu0  ;;  %v2048_v41 = vpop.f32.mrf.mxu1 }
 0x1ed   :  { %v2066_v11 = vadd.f32 %v2048_v41, %v2000_v2  ;;  %v8641_v2 = vld [vmem:[%s10053_s29 + $0x3c] sm:$0xff] }
 0x1ef   :  { %v2132_v12 = vadd.f32 %v2114_v55, %v2066_v11  ;;  %6725 = vmatmul.msk.f32.gmra.mxu0 %vm105_vm0, %v2473_v23  ;;  %6730 = vmatmul.msk.f32.gmra.mxu1 %vm105_vm0, %v2538_v17  ;;  %v2737_v17 = vld [vmem:[%s10041_s6 + $0x7a] sm:$0x7] }
 0x1f0   :  { %6743 = vmatmul.msk.f32.gmra.mxu3 %vm105_vm0, %v2671_v36  ;;  %6756 = vmatmul.msk.f32.vlgmr.msra.gmra.mxu2 %vm105_vm0, %v8002_v62  ;;  %v2001_v62 = vadd.f32 %v1985_v54, %v8456_v31 }
 0x1f1   :  { %v8542_v53 = vadd.f32 %v2180_v52, %v2132_v12  ;;  %v8661_v12 = vld [vmem:[%s10053_s29 + $0x30] sm:$0x3] }
 0x1f3   :  { %v2120_v7 = vpop.f32.mrf.mxu2  ;;  %v2183_v51 = vpop.f32.mrf.mxu3 }
 0x1f4   :  { %v1988_v21 = vpop.f32.mrf.mxu0  ;;  %v2051_v4 = vpop.f32.mrf.mxu1 }
 0x1f5   :  { %v2067_v58 = vadd.f32 %v2051_v4, %v2001_v62  ;;  %v2002_v48 = vadd.f32 %v1988_v21, %v8467_v44  ;;  %v2935_v62 = vld [vmem:[%s10041_s6 + $0x7d] sm:$0x7]  ;;  %v3105_v4 = vld [vmem:[#allocation2 + $0x2] sm:$0xff] }
 0x1f7   :  { %v2133_v35 = vadd.f32 %v2117_v10, %v2067_v58  ;;  %6731 = vmatmul.msk.f32.gmra.mxu1 %vm105_vm0, %v2539_v29  ;;  %6744 = vmatmul.msk.f32.vlgmr.msra.gmra.mxu0 %vm105_vm0, %v8022_v1 }
 0x1f8   :  { %6757 = vmatmul.msk.f32.gmra.mxu2 %vm105_vm0, %v8032_v42  ;;  %6762 = vmatmul.msk.f32.vlgmr.msra.gmra.mxu3 %vm105_vm0, %v8037_v3 }
 0x1f9   :  { %v8563_v31 = vadd.f32 %v2183_v51, %v2133_v35  ;;  %v3338_v51 = vld [vmem:[%s10053_s29 + $0x46] sm:$0xff] }
 0x1fb   :  { %v2123_v8 = vpop.f32.mrf.mxu2  ;;  %v2186_v57 = vpop.f32.mrf.mxu3 }
 0x1fc   :  { %v1991_v9 = vpop.f32.mrf.mxu0  ;;  %v2054_v19 = vpop.f32.mrf.mxu1 }
 0x1fd   :  { %v2068_v26 = vadd.f32 %v2054_v19, %v2002_v48  ;;  %v2003_v3 = vadd.f32 %v1991_v9, %v8478_v45  ;;  %v2803_v19 = vld [vmem:[%s10041_s6 + $0x7b] sm:$0x7] }
 0x1ff   :  { %v2134_v1 = vadd.f32 %v2120_v7, %v2068_v26  ;;  %6745 = vmatmul.msk.f32.gmra.mxu0 %vm105_vm0, %v8053_v47  ;;  %6750 = vmatmul.msk.f32.vlgmr.msrb.gmra.mxu1 %vm105_vm0, %v8058_v38  ;;  %v8586_v38 = vld [vmem:[%s10053_s29 + $0xa] sm:$0xff] }
 0x200   :  { %6758 = vmatmul.msk.f32.gmra.mxu2 %vm105_vm0, %v8063_v30  ;;  %6763 = vmatmul.msk.f32.gmra.mxu3 %vm105_vm0, %v8068_v27  ;;  %v3154_v30 = vld [vmem:[%s10053_s29 + $0x1e] sm:$0xff]  ;;  %v8675_v7 = vld [vmem:[%s10053_s29 + $0x28] sm:$0xff] }
 0x201   :  { %v8580_v42 = vadd.f32 %v2186_v57, %v2134_v1  ;;  %3056 = vmatpush.msrb.mxu0 %v8586_v38  ;;  %3183 = vmatpush.msrb.mxu3 %v3154_v30  ;;  %v3023_v1 = vld [vmem:[#allocation2 + $0x1] sm:$0xff] }
 0x203   :  { %v2126_v44 = vpop.f32.mrf.mxu2  ;;  %v2189_v13 = vpop.f32.mrf.mxu3  ;;  %6784 = vmatpush.msk.msra.mxu0 %vm3037_vm3, %v8661_v12  ;;  %6796 = vmatpush.msk.msra.mxu3 %vm3037_vm3, %v3339_v50 }
 0x204   :  { %v1994_v40 = vpop.f32.mrf.mxu0  ;;  %v2057_v18 = vpop.f32.mrf.mxu1 }
 0x205   :  { %v2069_v47 = vadd.f32 %v2057_v18, %v2003_v3  ;;  %v2004_v28 = vadd.f32 %v1994_v40, %v8491_v61  ;;  %3229 = vmatpush.msra.mxu0 %v8675_v7  ;;  %3367 = vmatpush.msra.mxu3 %v3338_v51 }
 0x207   :  { %v2135_v27 = vadd.f32 %v2123_v8, %v2069_v47  ;;  %6746 = vmatmul.msk.f32.gmra.mxu0 %vm105_vm0, %v8088_v56  ;;  %6751 = vmatmul.msk.f32.gmra.mxu1 %vm105_vm0, %v8093_v37  ;;  %v8606_v56 = vld [vmem:[%s10053_s29] sm:$0xff]  ;;  %v8691_v8 = vld [vmem:[%s10053_s29 + $0x3a] sm:$0x3] }
 0x208   :  { %6759 = vmatmul.msk.f32.gmra.mxu2 %vm105_vm0, %v8376_v16  ;;  %6764 = vmatmul.msk.f32.gmra.mxu3 %vm105_vm0, %v8101_v0  ;;  %v2868_v0 = vld [vmem:[%s10041_s6 + $0x74] sm:$0xff] }
 0x209   :  { %v8600_v45 = vadd.f32 %v2189_v13, %v2135_v27  ;;  %3094 = vmatpush.msra.mxu1 %v8606_v56  ;;  %v8705_v13 = vld [vmem:[%s10053_s29 + $0x32] sm:$0xff] }
 0x20b   :  { %v2129_v46 = vpop.f32.mrf.mxu2  ;;  %v2192_v60 = vpop.f32.mrf.mxu3  ;;  %6788 = vmatpush.msk.msrb.mxu1 %vm3037_vm3, %v8691_v8 }
 0x20c   :  { %v1997_v37 = vpop.f32.mrf.mxu0  ;;  %v2060_v55 = vpop.f32.mrf.mxu1 }
 0x20d   :  { %v2070_v16 = vadd.f32 %v2060_v55, %v2004_v28  ;;  %v2005_v33 = vadd.f32 %v1997_v37, %v8508_v22  ;;  %v2934_v22 = vld [vmem:[%s10041_s6 + $0x75] sm:$0xff]  ;;  %3275 = vmatpush.msrb.mxu1 %v8705_v13  ;;  %v8719_v37 = vld [vmem:[#allocation2 + $0x9] sm:$0xff]  ;;  %v3018_v55 = vld [vmem:[#allocation2] sm:$0xff] }
 0x20f   :  { %v2136_v32 = vadd.f32 %v2126_v44, %v2070_v16  ;;  %6747 = vmatmul.msk.f32.gmra.mxu0 %vm105_vm0, %v8394_v39  ;;  %6752 = vmatmul.msk.f32.gmra.mxu1 %vm105_vm0, %v8124_v5  ;;  %v2736_v39 = vld [vmem:[%s10041_s6 + $0x72] sm:$0xff]  ;;  %v8628_v5 = vld [vmem:[%s10053_s29 + $0x44] sm:$0x3] }
 0x210   :  { %6760 = vmatmul.msk.f32.gmra.mxu2 %vm105_vm0, %v2868_v0  ;;  %6765 = vmatmul.msk.f32.gmra.mxu3 %vm105_vm0, %v8402_v20  ;;  %v2869_v20 = vld [vmem:[%s10041_s6 + $0x7c] sm:$0x7]  ;;  %v3151_v44 = vld [vmem:[#allocation2 + $0x3] sm:$0xff]  ;;  %v8728_v0 = vld [vmem:[#allocation2 + $0xb] sm:$0xff] }
 0x211   :  { %v8619_v61 = vadd.f32 %v2192_v60, %v2136_v32  ;;  %6792 = vmatpush.msk.msra.mxu2 %vm3037_vm3, %v8628_v5  ;;  %v8717_v60 = vld [vmem:[%s10053_s29 + $0x6c] sm:$0x3]  ;;  %v8733_v32 = vld [vmem:[%s10053_s29 + $0x64] sm:$0xff] }
 0x213   :  { %v2195_v14 = vpop.f32.mrf.mxu3  ;;  %v2378_v25 = vpop.f32.mrf.mxu2  ;;  %3321 = vmatpush.msra.mxu2 %v8641_v2 }
 0x214   :  { %v2063_v49 = vpop.f32.mrf.mxu1  ;;  %v2246_v24 = vpop.f32.mrf.mxu0 }
 0x215   :  { %v2071_v63 = vadd.f32 %v2063_v49, %v2005_v33  ;;  %v2264_v54 = vadd.f32 %v2246_v24, %v8542_v53 }
 0x217   :  { %v2137_v10 = vadd.f32 %v2129_v46, %v2071_v63  ;;  %6748 = vmatmul.msk.f32.gmra.mxu0 %vm105_vm0, %v2736_v39  ;;  %6753 = vmatmul.msk.f32.gmra.mxu1 %vm105_vm0, %v8420_v59  ;;  %v2802_v59 = vld [vmem:[%s10041_s6 + $0x73] sm:$0xff]  ;;  %s10088_s6 = sld [smem:[#allocation28_spill]] }
 0x218   :  { %6761 = vmatmul.msk.f32.gmra.mxu2 %vm105_vm0, %v2869_v20  ;;  %6766 = vmatmul.msk.f32.gmra.mxu3 %vm105_vm0, %v2934_v22  ;;  %v8746_v20 = vld [vmem:[%s10053_s29 + $0x58] sm:$0x3]  ;;  %v8751_v22 = vld [vmem:[%s10053_s29 + $0x76] sm:$0x3] }
 0x219   :  { %v8649_v52 = vadd.f32 %v2195_v14, %v2137_v10  ;;  %10054 = vst [vmem:[#allocation7_spill] sm:$0xff] %v8751_v22  ;;  %v8753_v10 = vld [vmem:[#allocation2 + $0x11] sm:$0xff] }
 0x21b   :  { %v2381_v41 = vpop.f32.mrf.mxu2  ;;  %v2444_v23 = vpop.f32.mrf.mxu3 }
 0x21c   :  { %v2249_v11 = vpop.f32.mrf.mxu0  ;;  %v2312_v36 = vpop.f32.mrf.mxu1 }
 0x21d   :  { %v2330_v53 = vadd.f32 %v2312_v36, %v2264_v54  ;;  %v2265_v58 = vadd.f32 %v2249_v11, %v8563_v31  ;;  %v8700_v31 = vld [vmem:[#allocation2 + $0xa] sm:$0xff] }
 0x21e   :  { %v8755_v54 = vld [vmem:[#allocation2 + $0x8] sm:$0xff] }
 0x21f   :  { %v2396_v21 = vadd.f32 %v2378_v25, %v2330_v53  ;;  %6749 = vmatmul.msk.f32.gmra.mxu0 %vm105_vm0, %v2737_v17  ;;  %6754 = vmatmul.msk.f32.gmra.mxu1 %vm105_vm0, %v2802_v59  ;;  %v8770_v17 = vld [vmem:[%s10053_s29 + $0x50] sm:$0xff] }
 0x220   :  { %6767 = vmatmul.msk.f32.gmra.mxu3 %vm105_vm0, %v2935_v62  ;;  %6777 = vmatmul.msk.f32.vlgmr.msrb.gmra.mxu2 %vm1548_vm1, %v3105_v4  ;;  %v8775_v11 = vld [vmem:[%s10053_s29 + $0x6e] sm:$0xff]  ;;  %v8788_v62 = vld [vmem:[%s10053_s29 + $0x62] sm:$0x3] }
 0x221   :  { %v8685_v29 = vadd.f32 %v2444_v23, %v2396_v21  ;;  %6808 = vmatpush.msk.msrb.mxu2 %vm3037_vm3, %v8717_v60  ;;  %v8765_v23 = vld [vmem:[#allocation2 + $0x13] sm:$0xff]  ;;  %10055 = vst [vmem:[#allocation8_spill] sm:$0xff] %v8775_v11 }
 0x223   :  { %v2384_v35 = vpop.f32.mrf.mxu2  ;;  %v2447_v48 = vpop.f32.mrf.mxu3  ;;  %3505 = vmatpush.msrb.mxu2 %v8733_v32 }
 0x224   :  { %v2252_v57 = vpop.f32.mrf.mxu0  ;;  %v2315_v9 = vpop.f32.mrf.mxu1 }
 0x225   :  { %v2331_v26 = vadd.f32 %v2315_v9, %v2265_v58  ;;  %v2266_v18 = vadd.f32 %v2252_v57, %v8580_v42  ;;  %v8726_v42 = vld [vmem:[#allocation2 + $0x12] sm:$0xff]  ;;  %v3335_v57 = vld [vmem:[#allocation2 + $0x7] sm:$0xff]  ;;  %v8802_v9 = vld [vmem:[%s10053_s29 + $0x5a] sm:$0xff] }
 0x226   :  { %v8792_v58 = vld [vmem:[#allocation2 + $0x10] sm:$0xff] }
 0x227   :  { %v2397_v3 = vadd.f32 %v2381_v41, %v2331_v26  ;;  %6755 = vmatmul.msk.f32.gmra.mxu1 %vm105_vm0, %v2803_v19  ;;  %6769 = vmatmul.msk.f32.vlgmr.msrb.gmra.mxu0 %vm1548_vm1, %v3023_v1 }
 0x228   :  { %6778 = vmatmul.msk.f32.gmra.mxu2 %vm1548_vm1, %v8700_v31  ;;  %6781 = vmatmul.msk.f32.vlgmr.msrb.gmra.mxu3 %vm1548_vm1, %v3151_v44 }
 0x229   :  { %v8711_v40 = vadd.f32 %v2447_v48, %v2397_v3  ;;  %6800 = vmatpush.msk.msrb.mxu0 %vm3037_vm3, %v8746_v20  ;;  %6812 = vmatpush.msk.msrb.mxu3 %vm3037_vm3, %v8751_v22  ;;  %v8964_v22 = vld [vmem:[%s10053_s29 + $0xa8] sm:$0x3] }
 0x22a   :  { %10065 = vst [vmem:[#allocation17_spill] sm:$0xff] %v8964_v22 }
 0x22b   :  { %v2387_v47 = vpop.f32.mrf.mxu2  ;;  %v2450_v30 = vpop.f32.mrf.mxu3  ;;  %3413 = vmatpush.msrb.mxu0 %v8770_v17  ;;  %3551 = vmatpush.msrb.mxu3 %v8775_v11 }
 0x22c   :  { %v2255_v27 = vpop.f32.mrf.mxu0  ;;  %v2318_v28 = vpop.f32.mrf.mxu1 }
 0x22d   :  { %v2332_v46 = vadd.f32 %v2318_v28, %v2266_v18  ;;  %v2267_v14 = vadd.f32 %v2255_v27, %v8600_v45  ;;  %v3289_v45 = vld [vmem:[#allocation2 + $0x6] sm:$0xff] }
 0x22e   :  { %v8820_v27 = vld [vmem:[#allocation2 + $0xc] sm:$0xff] }
 0x22f   :  { %v2398_v16 = vadd.f32 %v2384_v35, %v2332_v46  ;;  %6770 = vmatmul.msk.f32.gmra.mxu0 %vm1548_vm1, %v8719_v37  ;;  %6773 = vmatmul.msk.f32.vlgmr.msra.gmra.mxu1 %vm1548_vm1, %v3018_v55  ;;  %v3197_v35 = vld [vmem:[#allocation2 + $0x4] sm:$0xff]  ;;  %v8829_v55 = vld [vmem:[#allocation2 + $0xf] sm:$0xff] }
 0x230   :  { %6779 = vmatmul.msk.f32.gmra.mxu2 %vm1548_vm1, %v8726_v42  ;;  %6782 = vmatmul.msk.f32.gmra.mxu3 %vm1548_vm1, %v8728_v0  ;;  %v3243_v28 = vld [vmem:[#allocation2 + $0x5] sm:$0xff] }
 0x231   :  { %v8740_v33 = vadd.f32 %v2450_v30, %v2398_v16  ;;  %6804 = vmatpush.msk.msra.mxu1 %vm3037_vm3, %v8788_v62  ;;  %v8818_v30 = vld [vmem:[%s10053_s29 + $0x94] sm:$0x3]  ;;  %v8834_v16 = vld [vmem:[%s10053_s29 + $0x8c] sm:$0xff] }
 0x232   :  { %10056 = vst [vmem:[#allocation6_spill] sm:$0xff] %v8818_v30 }
 0x233   :  { %v2390_v25 = vpop.f32.mrf.mxu2  ;;  %v2453_v49 = vpop.f32.mrf.mxu3  ;;  %3459 = vmatpush.msra.mxu1 %v8802_v9  ;;  %10057 = vst [vmem:[#allocation9_spill] sm:$0xff] %v8834_v16 }
 0x234   :  { %v2258_v24 = vpop.f32.mrf.mxu0  ;;  %v2321_v39 = vpop.f32.mrf.mxu1 }
 0x235   :  { %v2333_v63 = vadd.f32 %v2321_v39, %v2267_v14  ;;  %v2268_v59 = vadd.f32 %v2258_v24, %v8619_v61  ;;  %v8797_v61 = vld [vmem:[#allocation2 + $0xe] sm:$0xff] }
 0x237   :  { %v2399_v41 = vadd.f32 %v2387_v47, %v2333_v63  ;;  %6771 = vmatmul.msk.f32.gmra.mxu0 %vm1548_vm1, %v8753_v10  ;;  %6774 = vmatmul.msk.f32.gmra.mxu1 %vm1548_vm1, %v8755_v54  ;;  %v8854_v63 = vld [vmem:[%s10053_s29 + $0x80] sm:$0x3] }
 0x238   :  { %6783 = vmatmul.msk.f32.gmra.mxu3 %vm1548_vm1, %v8765_v23  ;;  %6793 = vmatmul.msk.f32.vlgmr.msra.gmra.mxu2 %vm1548_vm1, %v3289_v45  ;;  %10058 = vst [vmem:[#allocation10_spill] sm:$0xff] %v8854_v63  ;;  %v8859_v45 = vld [vmem:[%s10053_s29 + $0x9e] sm:$0x3] }
 0x239   :  { %v8782_v36 = vadd.f32 %v2453_v49, %v2399_v41  ;;  %6824 = vmatpush.msk.msra.mxu2 %vm3037_vm3, %v8818_v30  ;;  %10059 = vst [vmem:[#allocation11_spill] sm:$0xff] %v8859_v45  ;;  %v8861_v41 = vld [vmem:[#allocation2 + $0x14] sm:$0xff] }
 0x23b   :  { %v2393_v50 = vpop.f32.mrf.mxu2  ;;  %v2456_v53 = vpop.f32.mrf.mxu3  ;;  %3689 = vmatpush.msra.mxu2 %v8834_v16 }
 0x23c   :  { %v2261_v51 = vpop.f32.mrf.mxu0  ;;  %v2324_v21 = vpop.f32.mrf.mxu1 }
 0x23d   :  { %v2334_v4 = vadd.f32 %v2324_v21, %v2268_v59  ;;  %v2269_v26 = vadd.f32 %v2261_v51, %v8649_v52  ;;  %v8827_v52 = vld [vmem:[#allocation2 + $0x16] sm:$0xff]  ;;  %v8863_v59 = vld [vmem:[#allocation2 + $0xd] sm:$0xff] }
 0x23e   :  { %v8883_v51 = vld [vmem:[%s10053_s29 + $0x96] sm:$0xff] }
 0x23f   :  { %v2400_v48 = vadd.f32 %v2390_v25, %v2334_v4  ;;  %6775 = vmatmul.msk.f32.gmra.mxu1 %vm1548_vm1, %v8792_v58  ;;  %6785 = vmatmul.msk.f32.vlgmr.msra.gmra.mxu0 %vm1548_vm1, %v3197_v35  ;;  %10061 = vst [vmem:[#allocation13_spill] sm:$0xff] %v8883_v51  ;;  %v8898_v35 = vld [vmem:[%s10053_s29 + $0x8a] sm:$0x3] }
 0x240   :  { %6794 = vmatmul.msk.f32.gmra.mxu2 %vm1548_vm1, %v8797_v61  ;;  %6797 = vmatmul.msk.f32.vlgmr.msra.gmra.mxu3 %vm1548_vm1, %v3335_v57 }
 0x241   :  { %v8808_v19 = vadd.f32 %v2456_v53, %v2400_v48  ;;  %6816 = vmatpush.msk.msra.mxu0 %vm3037_vm3, %v8854_v63  ;;  %6828 = vmatpush.msk.msra.mxu3 %vm3037_vm3, %v8859_v45  ;;  %v8878_v53 = vld [vmem:[%s10053_s29 + $0x78] sm:$0xff]  ;;  %v8986_v63 = vld [vmem:[%s10053_s29 + $0xa0] sm:$0xff] }
 0x242   :  { %10060 = vst [vmem:[#allocation12_spill] sm:$0xff] %v8878_v53 }
 0x243   :  { %v2459_v1 = vpop.f32.mrf.mxu3  ;;  %v8811_v3 = vpop.f32.mrf.mxu2  ;;  %3597 = vmatpush.msra.mxu0 %v8878_v53  ;;  %3735 = vmatpush.msra.mxu3 %v8883_v51  ;;  %v8971_v53 = vld [vmem:[#allocation2 + $0x18] sm:$0xff]  ;;  %10067 = vst [vmem:[#allocation19_spill] sm:$0xff] %v8986_v63 }
 0x244   :  { %v2327_v44 = vpop.f32.mrf.mxu1  ;;  %v8813_v18 = vpop.f32.mrf.mxu0 }
 0x245   :  { %v2335_v47 = vadd.f32 %v2327_v44, %v2269_v26  ;;  %v8915_v26 = vld [vmem:[%s10053_s29 + $0x82] sm:$0xff] }
 0x246   :  { %10062 = vst [vmem:[#allocation14_spill] sm:$0xff] %v8915_v26 }
 0x247   :  { %v2401_v46 = vadd.f32 %v2393_v50, %v2335_v47  ;;  %6786 = vmatmul.msk.f32.gmra.mxu0 %vm1548_vm1, %v8820_v27  ;;  %6789 = vmatmul.msk.f32.vlgmr.msrb.gmra.mxu1 %vm1548_vm1, %v3243_v28  ;;  %v8873_v50 = vld [vmem:[#allocation2 + $0x17] sm:$0xff] }
 0x248   :  { %6795 = vmatmul.msk.f32.gmra.mxu2 %vm1548_vm1, %v8827_v52  ;;  %6798 = vmatmul.msk.f32.gmra.mxu3 %vm1548_vm1, %v8829_v55  ;;  %v8933_v28 = vld [vmem:[%s10053_s29 + $0xbc] sm:$0x3] }
 0x249   :  { %v8841_v14 = vadd.f32 %v2459_v1, %v2401_v46  ;;  %6820 = vmatpush.msk.msrb.mxu1 %vm3037_vm3, %v8898_v35  ;;  %10063 = vst [vmem:[#allocation15_spill] sm:$0xff] %v8933_v28  ;;  %v8946_v46 = vld [vmem:[%s10053_s29 + $0xb4] sm:$0xff] }
 0x24a   :  { %10064 = vst [vmem:[#allocation16_spill] sm:$0xff] %v8946_v46 }
 0x24b   :  { %v8843_v25 = vpop.f32.mrf.mxu2  ;;  %v8845_v49 = vpop.f32.mrf.mxu3  ;;  %3643 = vmatpush.msrb.mxu1 %v8915_v26 }
 0x24c   :  { %v8847_v24 = vpop.f32.mrf.mxu0  ;;  %v8849_v39 = vpop.f32.mrf.mxu1 }
 0x24f   :  { %6787 = vmatmul.msk.f32.gmra.mxu0 %vm1548_vm1, %v8861_v41  ;;  %6790 = vmatmul.msk.f32.gmra.mxu1 %vm1548_vm1, %v8863_v59 }
 0x250   :  { %6799 = vmatmul.msk.f32.gmra.mxu3 %vm1548_vm1, %v8873_v50  ;;  %6809 = vmatmul.msk.f32.vlgmr.msrb.gmra.mxu2 %vm1548_vm1, %v8700_v31  ;;  %v8906_v31 = vld [vmem:[#allocation2 + $0x15] sm:$0xff] }
 0x251   :  { %6840 = vmatpush.msk.msrb.mxu2 %vm3037_vm3, %v8933_v28  ;;  %v8969_v28 = vld [vmem:[%s10053_s29 + $0xc6] sm:$0x3] }
 0x252   :  { %10066 = vst [vmem:[#allocation18_spill] sm:$0xff] %v8969_v28 }
 0x253   :  { %v8891_v21 = vpop.f32.mrf.mxu2  ;;  %v8893_v4 = vpop.f32.mrf.mxu3  ;;  %3873 = vmatpush.msrb.mxu2 %v8946_v46  ;;  %v8981_v46 = vld [vmem:[#allocation2 + $0x1b] sm:$0xff] }
 0x254   :  { %v8900_v48 = vpop.f32.mrf.mxu0  ;;  %v8902_v57 = vpop.f32.mrf.mxu1 }
 0x257   :  { %6791 = vmatmul.msk.f32.gmra.mxu1 %vm1548_vm1, %v8906_v31  ;;  %6801 = vmatmul.msk.f32.vlgmr.msrb.gmra.mxu0 %vm1548_vm1, %v8755_v54 }
 0x258   :  { %6810 = vmatmul.msk.f32.gmra.mxu2 %vm1548_vm1, %v8726_v42  ;;  %6813 = vmatmul.msk.f32.vlgmr.msrb.gmra.mxu3 %vm1548_vm1, %v8728_v0  ;;  %v8941_v0 = vld [vmem:[#allocation2 + $0x1a] sm:$0xff] }
 0x259   :  { %6832 = vmatpush.msk.msrb.mxu0 %vm3037_vm3, %v8964_v22  ;;  %6844 = vmatpush.msk.msrb.mxu3 %vm3037_vm3, %v8969_v28  ;;  %v8991_v22 = vld [vmem:[%s10053_s29 + $0xbe] sm:$0xff] }
 0x25a   :  { %10068 = vst [vmem:[#allocation20_spill] sm:$0xff] %v8991_v22 }
 0x25b   :  { %v8922_v1 = vpop.f32.mrf.mxu2  ;;  %v8924_v44 = vpop.f32.mrf.mxu3  ;;  %3781 = vmatpush.msrb.mxu0 %v8986_v63  ;;  %3919 = vmatpush.msrb.mxu3 %v8991_v22  ;;  %v9015_v63 = vld [vmem:[#allocation2 + $0x19] sm:$0xff] }
 0x25c   :  { %v8926_v47 = vpop.f32.mrf.mxu0  ;;  %v8928_v54 = vpop.f32.mrf.mxu1 }
 0x25f   :  { %6802 = vmatmul.msk.f32.gmra.mxu0 %vm1548_vm1, %v8792_v58  ;;  %6805 = vmatmul.msk.f32.vlgmr.msra.gmra.mxu1 %vm1548_vm1, %v8719_v37 }
 0x260   :  { %6811 = vmatmul.msk.f32.gmra.mxu2 %vm1548_vm1, %v8941_v0  ;;  %6814 = vmatmul.msk.f32.gmra.mxu3 %vm1548_vm1, %v8765_v23 }
 0x263   :  { %v8953_v51 = vpop.f32.mrf.mxu2  ;;  %v8955_v45 = vpop.f32.mrf.mxu3 }
 0x264   :  { %v8957_v37 = vpop.f32.mrf.mxu0  ;;  %v8959_v11 = vpop.f32.mrf.mxu1 }
 0x267   :  { %6803 = vmatmul.msk.f32.gmra.mxu0 %vm1548_vm1, %v8971_v53  ;;  %6806 = vmatmul.msk.f32.gmra.mxu1 %vm1548_vm1, %v8753_v10 }
 0x268   :  { %6815 = vmatmul.msk.f32.gmra.mxu3 %vm1548_vm1, %v8981_v46  ;;  %6825 = vmatmul.msk.f32.vlgmr.msra.gmra.mxu2 %vm1548_vm1, %v8797_v61  ;;  %v9013_v61 = vld [vmem:[%s10053_s29 + $0xb2] sm:$0x3] }
 0x269   :  { %6854 = vmatpush.msk.msra.mxu2 %vm3037_vm3, %v8549_v34  ;;  %10069 = vst [vmem:[#allocation21_spill] sm:$0xff] %v9013_v61  ;;  %6836 = vmatpush.msk.msra.mxu1 %vm3037_vm3, %v9013_v61  ;;  %v2528_v34 = vadd.f32 %v8813_v18, %v8685_v29 }
 0x26b   :  { %v9001_v28 = vpop.f32.mrf.mxu2  ;;  %v9003_v16 = vpop.f32.mrf.mxu3  ;;  %4034 = vmatpush.msra.mxu2 %v8606_v56  ;;  %v9028_v56 = vld [vmem:[%s10053_s29 + $0xaa] sm:$0xff]  ;;  %v2594_v22 = vadd.f32 %v8849_v39, %v2528_v34 }
 0x26c   :  { %v9005_v30 = vpop.f32.mrf.mxu0  ;;  %v9007_v26 = vpop.f32.mrf.mxu1  ;;  %3827 = vmatpush.msra.mxu1 %v9028_v56 }
 0x26f   :  { %6807 = vmatmul.msk.f32.gmra.mxu1 %vm1548_vm1, %v9015_v63  ;;  %6817 = vmatmul.msk.f32.vlgmr.msra.gmra.mxu0 %vm1548_vm1, %v8820_v27 }
 0x270   :  { %6826 = vmatmul.msk.f32.gmra.mxu2 %vm1548_vm1, %v8827_v52  ;;  %6829 = vmatmul.msk.f32.vlgmr.msra.gmra.mxu3 %vm1548_vm1, %v8829_v55  ;;  %v2660_v52 = vadd.f32 %v8811_v3, %v2594_v22  ;;  %v2529_v55 = vadd.f32 %v8847_v24, %v8711_v40 }
 0x271   :  { %6858 = vmatpush.msk.msra.mxu3 %vm3037_vm3, %v8525_v6  ;;  %v3659_v6 = vld [vmem:[#allocation2 + $0x1e] sm:$0xff] }
 0x272   :  { %v2726_v39 = vadd.f32 %v8845_v49, %v2660_v52  ;;  %v2530_v49 = vadd.f32 %v8900_v48, %v8740_v33 }
 0x273   :  { %v9038_v29 = vpop.f32.mrf.mxu3  ;;  %v2906_v18 = vpop.f32.mrf.mxu2  ;;  %4072 = vmatpush.msra.mxu3 %v8569_v15  ;;  %v2595_v15 = vadd.f32 %v8902_v57, %v2529_v55 }
 0x274   :  { %v9041_v27 = vpop.f32.mrf.mxu1  ;;  %v2774_v61 = vpop.f32.mrf.mxu0 }
 0x275   :  { %v2792_v40 = vadd.f32 %v2774_v61, %v2726_v39 }
 0x277   :  { %6818 = vmatmul.msk.f32.gmra.mxu0 %vm1548_vm1, %v8861_v41  ;;  %6821 = vmatmul.msk.f32.vlgmr.msrb.gmra.mxu1 %vm1548_vm1, %v8863_v59  ;;  %v2661_v59 = vadd.f32 %v8843_v25, %v2595_v15  ;;  %v2596_v25 = vadd.f32 %v8928_v54, %v2530_v49  ;;  %v3613_v54 = vld [vmem:[#allocation2 + $0x1d] sm:$0xff] }
 0x278   :  { %6827 = vmatmul.msk.f32.gmra.mxu2 %vm1548_vm1, %v3659_v6  ;;  %6830 = vmatmul.msk.f32.gmra.mxu3 %vm1548_vm1, %v8873_v50  ;;  %v3567_v6 = vld [vmem:[#allocation2 + $0x1c] sm:$0xff] }
 0x279   :  { %6850 = vmatpush.msk.msrb.mxu1 %vm3037_vm3, %v8533_v43  ;;  %v9062_v50 = vld [vmem:[%s10047_s5] ss:$0 sm:$0xff]  ;;  %v2727_v57 = vadd.f32 %v8893_v4, %v2661_v59  ;;  %v2662_v15 = vadd.f32 %v8891_v21, %v2596_v25  ;;  %v2531_v4 = vadd.f32 %v8926_v47, %v8782_v36  ;;  %s10087_s5 = sld [smem:[#allocation26_spill]] }
 0x27b   :  { %v2909_v22 = vpop.f32.mrf.mxu2  ;;  %v2972_v3 = vpop.f32.mrf.mxu3  ;;  %3999 = vmatpush.msrb.mxu1 %v8586_v38  ;;  %v3705_v38 = vld [vmem:[#allocation2 + $0x1f] sm:$0xff]  ;;  %v2728_v21 = vadd.f32 %v8924_v44, %v2662_v15 }
 0x27c   :  { %v2777_v24 = vpop.f32.mrf.mxu0  ;;  %v2840_v41 = vpop.f32.mrf.mxu1 }
 0x27d   :  { %v2858_v34 = vadd.f32 %v2840_v41, %v2792_v40  ;;  %v2793_v33 = vadd.f32 %v2777_v24, %v2727_v57 }
 0x27f   :  { %v2924_v43 = vadd.f32 %v2906_v18, %v2858_v34  ;;  %6819 = vmatmul.msk.f32.gmra.mxu0 %vm1548_vm1, %v3567_v6  ;;  %6822 = vmatmul.msk.f32.gmra.mxu1 %vm1548_vm1, %v8906_v31 }
 0x280   :  { %6831 = vmatmul.msk.f32.gmra.mxu3 %vm1548_vm1, %v3705_v38  ;;  %6841 = vmatmul.msk.f32.vlgmr.msrb.gmra.mxu2 %vm1548_vm1, %v8726_v42  ;;  %v3889_v38 = vld [vmem:[#allocation2 + $0x23] sm:$0xff] }
 0x281   :  { %v2990_v61 = vadd.f32 %v2972_v3, %v2924_v43  ;;  %6870 = vmatpush.msk.msrb.mxu2 %vm3037_vm3, %v8691_v8 }
 0x283   :  { %v3000_v48 = vadd.f32 %v9062_v50, %v2990_v61  ;;  %v2912_v18 = vpop.f32.mrf.mxu2  ;;  %v2975_v52 = vpop.f32.mrf.mxu3  ;;  %4195 = vmatpush.msrb.mxu2 %v8705_v13  ;;  %v2597_v13 = vadd.f32 %v8959_v11, %v2531_v4  ;;  %v2532_v11 = vadd.f32 %v8957_v37, %v8808_v19 }
 0x284   :  { %v2780_v31 = vpop.f32.mrf.mxu0  ;;  %v2843_v55 = vpop.f32.mrf.mxu1 }
 0x285   :  { %v3006_v42 = vmax.f32 %v3000_v48, 0.0  ;;  %v2859_v39 = vadd.f32 %v2843_v55, %v2793_v33  ;;  %v2794_v36 = vadd.f32 %v2780_v31, %v2728_v21  ;;  %v2663_v24 = vadd.f32 %v8922_v1, %v2597_v13 }
 0x287   :  { %3012 = vst.msk [vmem:[#allocation2 + $0x2b] sm:$0xff] %vm1548_vm1, %v3006_v42  ;;  %v2925_v8 = vadd.f32 %v2909_v22, %v2859_v39  ;;  %6823 = vmatmul.msk.f32.gmra.mxu1 %vm1548_vm1, %v3613_v54  ;;  %6833 = vmatmul.msk.f32.vlgmr.msrb.gmra.mxu0 %vm1548_vm1, %v8792_v58  ;;  %v2729_v1 = vadd.f32 %v8955_v45, %v2663_v24 }
 0x288   :  { %6842 = vmatmul.msk.f32.gmra.mxu2 %vm1548_vm1, %v8941_v0  ;;  %6845 = vmatmul.msk.f32.vlgmr.msrb.gmra.mxu3 %vm1548_vm1, %v8765_v23  ;;  %v2533_v45 = vadd.f32 %v9005_v30, %v8841_v14 }
 0x289   :  { %v2991_v40 = vadd.f32 %v2975_v52, %v2925_v8  ;;  %6874 = vmatpush.msk.msrb.mxu3 %vm3037_vm3, %v8628_v5  ;;  %v3843_v5 = vld [vmem:[#allocation2 + $0x22] sm:$0xff] }
 0x28b   :  { %v3001_v47 = vadd.f32 %v9062_v50, %v2991_v40  ;;  %v2915_v22 = vpop.f32.mrf.mxu2  ;;  %v2978_v3 = vpop.f32.mrf.mxu3  ;;  %4236 = vmatpush.msrb.mxu3 %v8641_v2  ;;  %v2598_v2 = vadd.f32 %v9007_v26, %v2532_v11  ;;  %v3751_v26 = vld [vmem:[#allocation2 + $0x20] sm:$0xff] }
 0x28c   :  { %v2783_v58 = vpop.f32.mrf.mxu0  ;;  %v2846_v0 = vpop.f32.mrf.mxu1 }
 0x28d   :  { %v3007_v23 = vmax.f32 %v3001_v47, 0.0  ;;  %v2860_v41 = vadd.f32 %v2846_v0, %v2794_v36  ;;  %v2795_v37 = vadd.f32 %v2783_v58, %v2729_v1  ;;  %v2664_v49 = vadd.f32 %v8953_v51, %v2598_v2  ;;  %v10070_v2 = vld [vmem:[#allocation14_spill] sm:$0xff] }
 0x28e   :  { %v2599_v51 = vadd.f32 %v9041_v27, %v2533_v45  ;;  %v3797_v27 = vld [vmem:[#allocation2 + $0x21] sm:$0xff] }
 0x28f   :  { %3013 = vst.msk [vmem:[#allocation2 + $0x33] sm:$0xff] %vm1548_vm1, %v3007_v23  ;;  %v2926_v44 = vadd.f32 %v2912_v18, %v2860_v41  ;;  %6834 = vmatmul.msk.f32.gmra.mxu0 %vm1548_vm1, %v8971_v53  ;;  %6837 = vmatmul.msk.f32.vlgmr.msra.gmra.mxu1 %vm1548_vm1, %v8753_v10  ;;  %v2730_v25 = vadd.f32 %v9003_v16, %v2664_v49 }
 0x290   :  { %6843 = vmatmul.msk.f32.gmra.mxu2 %vm1548_vm1, %v3843_v5  ;;  %6846 = vmatmul.msk.f32.gmra.mxu3 %vm1548_vm1, %v8981_v46  ;;  %v2665_v18 = vadd.f32 %v9001_v28, %v2599_v51 }
 0x291   :  { %v2992_v19 = vadd.f32 %v2978_v3, %v2926_v44  ;;  %6866 = vmatpush.msk.msra.mxu1 %vm3037_vm3, %v8661_v12 }
 0x293   :  { %v3002_v53 = vadd.f32 %v9062_v50, %v2992_v19  ;;  %v2918_v59 = vpop.f32.mrf.mxu2  ;;  %v2981_v34 = vpop.f32.mrf.mxu3  ;;  %4154 = vmatpush.msra.mxu1 %v8675_v7  ;;  %v3969_v7 = vld [vmem:[#allocation2 + $0x2b] sm:$0xff] }
 0x294   :  { %v2786_v10 = vpop.f32.mrf.mxu0  ;;  %v2849_v6 = vpop.f32.mrf.mxu1 }
 0x295   :  { %v3008_v46 = vmax.f32 %v3002_v53, 0.0  ;;  %v2861_v43 = vadd.f32 %v2849_v6, %v2795_v37  ;;  %v2796_v30 = vadd.f32 %v2786_v10, %v2730_v25  ;;  %v10071_v6 = vld [vmem:[#allocation6_spill] sm:$0xff] }
 0x296   :  { %v4045_v55 = vld [vmem:[#allocation2 + $0x2d] sm:$0xff] }
 0x297   :  { %3014 = vst.msk [vmem:[#allocation2 + $0x3b] sm:$0xff] %vm1548_vm1, %v3008_v46  ;;  %v2927_v12 = vadd.f32 %v2915_v22, %v2861_v43  ;;  %6835 = vmatmul.msk.f32.gmra.mxu0 %vm1548_vm1, %v3751_v26  ;;  %6838 = vmatmul.msk.f32.gmra.mxu1 %vm1548_vm1, %v9015_v63  ;;  %v3972_v40 = vld [vmem:[#allocation2 + $0x2c] sm:$0xff] }
 0x298   :  { %6847 = vmatmul.msk.f32.gmra.mxu3 %vm1548_vm1, %v3889_v38  ;;  %6855 = vmatmul.msk.f32.vlgmr.msra.gmra.mxu2 %vm1548_vm1, %v3969_v7  ;;  %v4168_v5 = vld [vmem:[#allocation2 + $0x30] sm:$0xff] }
 0x299   :  { %v2993_v57 = vadd.f32 %v2981_v34, %v2927_v12  ;;  %6886 = vmatpush.msk.msra.mxu2 %vm3037_vm3, %v8788_v62  ;;  %v9130_v62 = vld [vmem:[#allocation2 + $0x33] sm:$0xff]  ;;  %v10072_v43 = vld [vmem:[#allocation9_spill] sm:$0xff] }
 0x29a   :  { %v4209_v10 = vld [vmem:[#allocation2 + $0x31] sm:$0xff] }
 0x29b   :  { %v3003_v14 = vadd.f32 %v9062_v50, %v2993_v57  ;;  %v2921_v61 = vpop.f32.mrf.mxu2  ;;  %v2984_v33 = vpop.f32.mrf.mxu3  ;;  %4359 = vmatpush.msra.mxu2 %v8802_v9  ;;  %v2731_v9 = vadd.f32 %v9038_v29, %v2665_v18  ;;  %v4127_v38 = vld [vmem:[#allocation2 + $0x2f] sm:$0xff] }
 0x29c   :  { %v2789_v63 = vpop.f32.mrf.mxu0  ;;  %v2852_v48 = vpop.f32.mrf.mxu1 }
 0x29d   :  { %v3009_v52 = vmax.f32 %v3003_v14, 0.0  ;;  %v2862_v31 = vadd.f32 %v2852_v48, %v2796_v30  ;;  %v2797_v28 = vadd.f32 %v2789_v63, %v2731_v9  ;;  %v10073_v30 = vld [vmem:[#allocation10_spill] sm:$0xff]  ;;  %v10074_v63 = vld [vmem:[#allocation12_spill] sm:$0xff]  ;;  %v10075_v9 = vld [vmem:[#allocation21_spill] sm:$0xff] }
 0x29e   :  { %v9142_v29 = vld [vmem:[#allocation2 + $0x3b] sm:$0xff] }
 0x29f   :  { %3015 = vst.msk [vmem:[#allocation2 + $0x43] sm:$0xff] %vm1548_vm1, %v3009_v52  ;;  %v2928_v16 = vadd.f32 %v2918_v59, %v2862_v31  ;;  %6839 = vmatmul.msk.f32.gmra.mxu1 %vm1548_vm1, %v3797_v27  ;;  %v3973_v41 = vld [vmem:[#allocation2 + $0x34] sm:$0xff] }
 0x2a0   :  { %6856 = vmatmul.msk.f32.gmra.mxu2 %vm1548_vm1, %v9130_v62  ;;  %6859 = vmatmul.msk.f32.vlgmr.msra.gmra.mxu3 %vm1548_vm1, %v4045_v55  ;;  %v9168_v34 = vld [vmem:[#allocation2 + $0x38] sm:$0xff] }
 0x2a1   :  { %v2994_v15 = vadd.f32 %v2984_v33, %v2928_v16  ;;  %6890 = vmatpush.msk.msra.mxu3 %vm3037_vm3, %v8717_v60  ;;  %v9144_v60 = vld [vmem:[#allocation2 + $0x35] sm:$0xff] }
 0x2a2   :  { %v4210_v25 = vld [vmem:[#allocation2 + $0x39] sm:$0xff] }
 0x2a3   :  { %v3004_v42 = vadd.f32 %v9062_v50, %v2994_v15  ;;  %v2987_v39 = vpop.f32.mrf.mxu3  ;;  %v3139_v54 = vpop.f32.mrf.mxu2  ;;  %4400 = vmatpush.msra.mxu3 %v8733_v32  ;;  %v4128_v31 = vld [vmem:[#allocation2 + $0x37] sm:$0xff] }
 0x2a4   :  { %v2855_v4 = vpop.f32.mrf.mxu1  ;;  %v3058_v8 = vpop.f32.mrf.mxu0 }
 0x2a5   :  { %v3010_v13 = vmax.f32 %v3004_v42, 0.0  ;;  %v2863_v21 = vadd.f32 %v2855_v4, %v2797_v28  ;;  %v10076_v4 = vld [vmem:[#allocation15_spill] sm:$0xff] }
 0x2a6   :  { %v9156_v44 = vld [vmem:[#allocation2 + $0x3d] sm:$0xff] }
 0x2a7   :  { %3016 = vst.msk [vmem:[#allocation2 + $0x4b] sm:$0xff] %vm1548_vm1, %v3010_v13  ;;  %v2929_v36 = vadd.f32 %v2921_v61, %v2863_v21  ;;  %6851 = vmatmul.msk.f32.vlgmr.msrb.gmra.mxu1 %vm1548_vm1, %v3972_v40  ;;  %v9164_v53 = vld [vmem:[#allocation2 + $0x3c] sm:$0xff] }
 0x2a8   :  { %6857 = vmatmul.msk.f32.gmra.mxu2 %vm1548_vm1, %v9142_v29  ;;  %6860 = vmatmul.msk.f32.gmra.mxu3 %vm1548_vm1, %v9144_v60  ;;  %v4170_v51 = vld [vmem:[#allocation2 + $0x40] sm:$0xff] }
 0x2a9   :  { %v2995_v32 = vadd.f32 %v2987_v39, %v2929_v36  ;;  %6882 = vmatpush.msk.msrb.mxu1 %vm3037_vm3, %v8746_v20  ;;  %v4211_v16 = vld [vmem:[#allocation2 + $0x41] sm:$0xff] }
 0x2aa   :  { %v10077_v21 = vld [vmem:[#allocation16_spill] sm:$0xff] }
 0x2ab   :  { %v3005_v47 = vadd.f32 %v9062_v50, %v2995_v32  ;;  %v3142_v22 = vpop.f32.mrf.mxu2  ;;  %v3185_v3 = vpop.f32.mrf.mxu3  ;;  %4318 = vmatpush.msrb.mxu1 %v8770_v17 }
 0x2ac   :  { %v3061_v58 = vpop.f32.mrf.mxu0  ;;  %v3096_v0 = vpop.f32.mrf.mxu1 }
 0x2ad   :  { %v3011_v24 = vmax.f32 %v3005_v47, 0.0  ;;  %v3097_v23 = vadd.f32 %v3096_v0, %v3058_v8 }
 0x2ae   :  { %v4334_v36 = vld [vmem:[#allocation2 + $0x44] sm:$0xff] }
 0x2af   :  { %3017 = vst.msk [vmem:[#allocation2 + $0x53] sm:$0x7] %vm1554_vm2, %v3011_v24  ;;  %v3148_v11 = vadd.f32 %v3139_v54, %v3097_v23  ;;  %6852 = vmatmul.msk.f32.gmra.mxu1 %vm1548_vm1, %v3973_v41  ;;  %v4129_v54 = vld [vmem:[#allocation2 + $0x3f] sm:$0xff] }
 0x2b0   :  { %6861 = vmatmul.msk.f32.gmra.mxu3 %vm1548_vm1, %v9156_v44  ;;  %6871 = vmatmul.msk.f32.vlgmr.msrb.gmra.mxu2 %vm1548_vm1, %v4168_v5 }
 0x2b1   :  { %v3194_v20 = vadd.f32 %v3185_v3, %v3148_v11  ;;  %6902 = vmatpush.msk.msrb.mxu2 %vm3037_vm3, %v8898_v35  ;;  %v9221_v11 = vld [vmem:[#allocation2 + $0x43] sm:$0xff] }
 0x2b3   :  { %v3145_v17 = vpop.f32.mrf.mxu2  ;;  %v3188_v50 = vpop.f32.mrf.mxu3  ;;  %4523 = vmatpush.msrb.mxu2 %v10070_v2  ;;  %v4498_v2 = vld [vmem:[#allocation2 + $0x48] sm:$0xff] }
 0x2b4   :  { %v3064_v1 = vpop.f32.mrf.mxu0  ;;  %v3099_v19 = vpop.f32.mrf.mxu1 }
 0x2b5   :  { %v3100_v37 = vadd.f32 %v3099_v19, %v3061_v58 }
 0x2b7   :  { %v3149_v59 = vadd.f32 %v3142_v22, %v3100_v37  ;;  %6853 = vmatmul.msk.f32.gmra.mxu1 %vm1548_vm1, %v9164_v53  ;;  %v10079_v22 = vld [vmem:[#allocation19_spill] sm:$0xff] }
 0x2b8   :  { %6872 = vmatmul.msk.f32.gmra.mxu2 %vm1548_vm1, %v9168_v34  ;;  %6875 = vmatmul.msk.f32.vlgmr.msrb.gmra.mxu3 %vm1548_vm1, %v4209_v10 }
 0x2b9   :  { %v9173_v35 = vadd.f32 %v3188_v50, %v3149_v59  ;;  %6906 = vmatpush.msk.msrb.mxu3 %vm3037_vm3, %v10071_v6 }
 0x2bb   :  { %v3191_v49 = vpop.f32.mrf.mxu3  ;;  %v3323_v46 = vpop.f32.mrf.mxu2  ;;  %4564 = vmatpush.msrb.mxu3 %v10072_v43 }
 0x2bc   :  { %v3102_v26 = vpop.f32.mrf.mxu1  ;;  %v3231_v45 = vpop.f32.mrf.mxu0 }
 0x2bd   :  { %v3103_v12 = vadd.f32 %v3102_v26, %v3064_v1  ;;  %v3240_v14 = vadd.f32 %v3231_v45, %v3194_v20 }
 0x2bf   :  { %v3150_v7 = vadd.f32 %v3145_v17, %v3103_v12  ;;  %6867 = vmatmul.msk.f32.vlgmr.msra.gmra.mxu1 %vm1548_vm1, %v4127_v38 }
 0x2c0   :  { %6873 = vmatmul.msk.f32.gmra.mxu2 %vm1548_vm1, %v4170_v51  ;;  %6876 = vmatmul.msk.f32.gmra.mxu3 %vm1548_vm1, %v4210_v25 }
 0x2c1   :  { %v9181_v57 = vadd.f32 %v3191_v49, %v3150_v7  ;;  %6898 = vmatpush.msk.msra.mxu1 %vm3037_vm3, %v10073_v30  ;;  %v4539_v49 = vld [vmem:[#allocation2 + $0x49] sm:$0xff] }
 0x2c3   :  { %v9185_v61 = vpop.f32.mrf.mxu2  ;;  %v3369_v33 = vpop.f32.mrf.mxu3  ;;  %4482 = vmatpush.msra.mxu1 %v10074_v63 }
 0x2c4   :  { %v3234_v48 = vpop.f32.mrf.mxu0  ;;  %v3277_v18 = vpop.f32.mrf.mxu1 }
 0x2c5   :  { %v3286_v52 = vadd.f32 %v3277_v18, %v3240_v14  ;;  %v3241_v59 = vadd.f32 %v3234_v48, %v9173_v35  ;;  %v4457_v35 = vld [vmem:[#allocation2 + $0x47] sm:$0xff] }
 0x2c7   :  { %v3332_v27 = vadd.f32 %v3323_v46, %v3286_v52  ;;  %6868 = vmatmul.msk.f32.gmra.mxu1 %vm1548_vm1, %v4128_v31 }
 0x2c8   :  { %6877 = vmatmul.msk.f32.gmra.mxu3 %vm1548_vm1, %v4211_v16  ;;  %6887 = vmatmul.msk.f32.vlgmr.msra.gmra.mxu2 %vm1548_vm1, %v3973_v41 }
 0x2c9   :  { %v9191_v55 = vadd.f32 %v3369_v33, %v3332_v27  ;;  %6918 = vmatpush.msk.msra.mxu2 %vm3037_vm3, %v10075_v9 }
 0x2cb   :  { %v3329_v15 = vpop.f32.mrf.mxu2  ;;  %v3372_v28 = vpop.f32.mrf.mxu3  ;;  %4687 = vmatpush.msra.mxu2 %v9028_v56 }
 0x2cc   :  { %v3237_v42 = vpop.f32.mrf.mxu0  ;;  %v3280_v39 = vpop.f32.mrf.mxu1 }
 0x2cd   :  { %v3242_v10 = vadd.f32 %v3237_v42, %v9181_v57  ;;  %v3287_v6 = vadd.f32 %v3280_v39, %v3241_v59 }
 0x2cf   :  { %6869 = vmatmul.msk.f32.gmra.mxu1 %vm1548_vm1, %v4129_v54  ;;  %v3333_v43 = vadd.f32 %v9185_v61, %v3287_v6 }
 0x2d0   :  { %6888 = vmatmul.msk.f32.gmra.mxu2 %vm1548_vm1, %v9164_v53  ;;  %6891 = vmatmul.msk.f32.vlgmr.msra.gmra.mxu3 %vm1548_vm1, %v9144_v60  ;;  %v10078_v60 = vld [vmem:[#allocation17_spill] sm:$0xff] }
 0x2d1   :  { %6922 = vmatpush.msk.msra.mxu3 %vm3037_vm3, %v10076_v4  ;;  %v3379_v7 = vadd.f32 %v3372_v28, %v3333_v43  ;;  %v7044_v43 = vld [vmem:[%s10053_s29 + $0x1e] sm:$0xff] }
 0x2d3   :  { %v3375_v8 = vpop.f32.mrf.mxu3  ;;  %v9203_v13 = vpop.f32.mrf.mxu2  ;;  %4728 = vmatpush.msra.mxu3 %v10077_v21  ;;  %v4703_v21 = vld [vmem:[#allocation2 + $0x4d] sm:$0xff] }
 0x2d4   :  { %v3283_v56 = vpop.f32.mrf.mxu1  ;;  %v3415_v40 = vpop.f32.mrf.mxu0 }
 0x2d5   :  { %v3288_v46 = vadd.f32 %v3283_v56, %v3242_v10 }
 0x2d7   :  { %6883 = vmatmul.msk.f32.vlgmr.msrb.gmra.mxu1 %vm1548_vm1, %v9130_v62  ;;  %v4375_v62 = vld [vmem:[#allocation2 + $0x45] sm:$0xff]  ;;  %v3334_v38 = vadd.f32 %v3329_v15, %v3288_v46 }
 0x2d8   :  { %6889 = vmatmul.msk.f32.gmra.mxu2 %vm1548_vm1, %v4334_v36  ;;  %6892 = vmatmul.msk.f32.gmra.mxu3 %vm1548_vm1, %v9156_v44  ;;  %v7043_v46 = vld [vmem:[%s10053_s29 + $0x26] sm:$0x3] }
 0x2d9   :  { %6914 = vmatpush.msk.msrb.mxu1 %vm3037_vm3, %v10078_v60  ;;  %v3380_v57 = vadd.f32 %v3375_v8, %v3334_v38  ;;  %v4086_v38 = vld [vmem:[#allocation2 + $0x2e] sm:$0xff] }
 0x2db   :  { %v3510_v32 = vpop.f32.mrf.mxu2  ;;  %v9213_v47 = vpop.f32.mrf.mxu3  ;;  %4646 = vmatpush.msrb.mxu1 %v10079_v22 }
 0x2dc   :  { %v3418_v3 = vpop.f32.mrf.mxu0  ;;  %v3461_v58 = vpop.f32.mrf.mxu1 }
 0x2df   :  { %6884 = vmatmul.msk.f32.gmra.mxu1 %vm1548_vm1, %v9142_v29 }
 0x2e0   :  { %6893 = vmatmul.msk.f32.gmra.mxu3 %vm1548_vm1, %v4375_v62  ;;  %6903 = vmatmul.msk.f32.vlgmr.msrb.gmra.mxu2 %vm1548_vm1, %v9168_v34 }
 0x2e3   :  { %v3513_v0 = vpop.f32.mrf.mxu2  ;;  %v3556_v24 = vpop.f32.mrf.mxu3 }
 0x2e4   :  { %v3421_v23 = vpop.f32.mrf.mxu0  ;;  %v3464_v41 = vpop.f32.mrf.mxu1 }
 0x2e5   :  { %v3426_v30 = vadd.f32 %v3421_v23, %v3380_v57  ;;  %v4250_v57 = vld [vmem:[#allocation2 + $0x32] sm:$0xff] }
 0x2e7   :  { %6885 = vmatmul.msk.f32.gmra.mxu1 %vm1548_vm1, %v9221_v11 }
 0x2e8   :  { %6904 = vmatmul.msk.f32.gmra.mxu2 %vm1548_vm1, %v4170_v51  ;;  %6907 = vmatmul.msk.f32.vlgmr.msrb.gmra.mxu3 %vm1548_vm1, %v4210_v25  ;;  %v3425_v25 = vadd.f32 %v3418_v3, %v3379_v7  ;;  %v4621_v3 = vld [vmem:[#allocation2 + $0x4b] sm:$0xff]  ;;  %v10082_v7 = vld [vmem:[#allocation8_spill] sm:$0xff] }
 0x2ea   :  { %v3471_v14 = vadd.f32 %v3464_v41, %v3425_v25  ;;  %v4088_v25 = vld [vmem:[#allocation2 + $0x3e] sm:$0xff] }
 0x2eb   :  { %v3559_v5 = vpop.f32.mrf.mxu3  ;;  %v9227_v20 = vpop.f32.mrf.mxu2 }
 0x2ec   :  { %v3467_v17 = vpop.f32.mrf.mxu1  ;;  %v3599_v50 = vpop.f32.mrf.mxu0  ;;  %v3517_v52 = vadd.f32 %v3510_v32, %v3471_v14  ;;  %v4251_v14 = vld [vmem:[#allocation2 + $0x3a] sm:$0xff] }
 0x2ed   :  { %v3472_v18 = vadd.f32 %v3467_v17, %v3426_v30  ;;  %v10084_v30 = vld [vmem:[#allocation13_spill] sm:$0xff] }
 0x2ef   :  { %6899 = vmatmul.msk.f32.vlgmr.msra.gmra.mxu1 %vm1548_vm1, %v4128_v31  ;;  %v4662_v31 = vld [vmem:[#allocation2 + $0x4c] sm:$0xff]  ;;  %v3518_v27 = vadd.f32 %v3513_v0, %v3472_v18 }
 0x2f0   :  { %6905 = vmatmul.msk.f32.gmra.mxu2 %vm1548_vm1, %v4498_v2  ;;  %6908 = vmatmul.msk.f32.gmra.mxu3 %vm1548_vm1, %v4211_v16 }
 0x2f1   :  { %v3564_v39 = vadd.f32 %v3559_v5, %v3518_v27 }
 0x2f3   :  { %v9232_v1 = vpop.f32.mrf.mxu3  ;;  %v3694_v34 = vpop.f32.mrf.mxu2 }
 0x2f4   :  { %v3602_v19 = vpop.f32.mrf.mxu0  ;;  %v3645_v37 = vpop.f32.mrf.mxu1 }
 0x2f7   :  { %6900 = vmatmul.msk.f32.gmra.mxu1 %vm1548_vm1, %v4129_v54 }
 0x2f8   :  { %6909 = vmatmul.msk.f32.gmra.mxu3 %vm1548_vm1, %v4539_v49  ;;  %6919 = vmatmul.msk.f32.vlgmr.msra.gmra.mxu2 %vm1548_vm1, %v9164_v53  ;;  %v3424_v53 = vadd.f32 %v3415_v40, %v9191_v55  ;;  %v3563_v55 = vadd.f32 %v3556_v24, %v3517_v52  ;;  %v4580_v52 = vld [vmem:[#allocation2 + $0x4a] sm:$0xff] }
 0x2fa   :  { %v3470_v48 = vadd.f32 %v3461_v58, %v3424_v53  ;;  %v3609_v42 = vadd.f32 %v3602_v19, %v3563_v55  ;;  %v10083_v53 = vld [vmem:[#allocation11_spill] sm:$0xff] }
 0x2fb   :  { %v3740_v26 = vpop.f32.mrf.mxu3  ;;  %v3697_v51 = vpop.f32.mrf.mxu2 }
 0x2fc   :  { %v3605_v45 = vpop.f32.mrf.mxu0  ;;  %v3648_v12 = vpop.f32.mrf.mxu1 }
 0x2fd   :  { %v3610_v8 = vadd.f32 %v3605_v45, %v3564_v39  ;;  %v9279_v45 = vld [vmem:[%s10080_s10 + $0x8] sm:$0xf] }
 0x2ff   :  { %6901 = vmatmul.msk.f32.gmra.mxu1 %vm1548_vm1, %v4457_v35  ;;  %v10081_v35 = vld [vmem:[#allocation7_spill] sm:$0xff] }
 0x300   :  { %6920 = vmatmul.msk.f32.gmra.mxu2 %vm1548_vm1, %v4334_v36  ;;  %6923 = vmatmul.msk.f32.vlgmr.msra.gmra.mxu3 %vm1548_vm1, %v9156_v44  ;;  %v3516_v44 = vadd.f32 %v9203_v13, %v3470_v48  ;;  %v4416_v48 = vld [vmem:[#allocation2 + $0x46] sm:$0xff] }
 0x302   :  { %v3562_v28 = vadd.f32 %v9213_v47, %v3516_v44 }
 0x303   :  { %v3743_v61 = vpop.f32.mrf.mxu3  ;;  %v3875_v16 = vpop.f32.mrf.mxu2 }
 0x304   :  { %v3651_v33 = vpop.f32.mrf.mxu1  ;;  %v3783_v63 = vpop.f32.mrf.mxu0  ;;  %v3608_v4 = vadd.f32 %v3599_v50, %v3562_v28 }
 0x305   :  { %v3656_v56 = vadd.f32 %v3651_v33, %v3610_v8  ;;  %v10085_v33 = vld [vmem:[#allocation18_spill] sm:$0xff] }
 0x306   :  { %v3654_v13 = vadd.f32 %v3645_v37, %v3608_v4 }
 0x307   :  { %6915 = vmatmul.msk.f32.vlgmr.msrb.gmra.mxu1 %vm1548_vm1, %v9142_v29  ;;  %v3655_v29 = vadd.f32 %v3648_v12, %v3609_v42  ;;  %v3702_v47 = vadd.f32 %v3697_v51, %v3656_v56  ;;  %v7046_v12 = vld [vmem:[%s10053_s29 + $0x46] sm:$0xff]  ;;  %v4087_v51 = vld [vmem:[#allocation2 + $0x36] sm:$0xff]  ;;  %v4744_v42 = vld [vmem:[#allocation2 + $0x4e] sm:$0xff] }
 0x308   :  { %6921 = vmatmul.msk.f32.gmra.mxu2 %vm1548_vm1, %v4662_v31  ;;  %6924 = vmatmul.msk.f32.gmra.mxu3 %vm1548_vm1, %v4375_v62  ;;  %v3700_v32 = vadd.f32 %v9227_v20, %v3654_v13 }
 0x309   :  { %v3701_v40 = vadd.f32 %v3694_v34, %v3655_v29  ;;  %v3748_v23 = vadd.f32 %v3743_v61, %v3702_v47  ;;  %v4252_v61 = vld [vmem:[#allocation2 + $0x42] sm:$0xff] }
 0x30a   :  { %v3746_v0 = vadd.f32 %v9232_v1, %v3700_v32  ;;  %v9261_v1 = vld [vmem:[%s10080_s10] sm:$0xff] }
 0x30b   :  { %v3921_v9 = vpop.f32.mrf.mxu3  ;;  %v3878_v36 = vpop.f32.mrf.mxu2  ;;  %v3747_v58 = vadd.f32 %v3740_v26, %v3701_v40  ;;  %v7045_v26 = vld [vmem:[%s10053_s29 + $0x4e] sm:$0x3]  ;;  %s10091_s29 = sld [smem:[#allocation31_spill]] }
 0x30c   :  { %v3829_v15 = vpop.f32.mrf.mxu1  ;;  %v3786_v54 = vpop.f32.mrf.mxu0  ;;  %v3792_v41 = vadd.f32 %v3783_v63, %v3746_v0  ;;  %v10086_v63 = vld [vmem:[#allocation20_spill] sm:$0xff] }
 0x30d   :  { %v3793_v24 = vadd.f32 %v3786_v54, %v3747_v58 }
 0x30e   :  { %v3838_v50 = vadd.f32 %v3829_v15, %v3792_v41 }
 0x30f   :  { %6916 = vmatmul.msk.f32.gmra.mxu1 %vm1548_vm1, %v9221_v11 }
 0x310   :  { %6925 = vmatmul.msk.f32.gmra.mxu3 %vm1548_vm1, %v4703_v21  ;;  %v3884_v34 = vadd.f32 %v3875_v16, %v3838_v50 }
 0x312   :  { %v3930_v49 = vadd.f32 %v3921_v9, %v3884_v34 }
 0x313   :  { %v3924_v22 = vpop.f32.mrf.mxu3  ;;  %v3881_v19 = vpop.f32.mrf.mxu2 }
 0x314   :  { %v3832_v60 = vpop.f32.mrf.mxu1  ;;  %v3789_v62 = vpop.f32.mrf.mxu0 }
 0x315   :  { %v3794_v11 = vadd.f32 %v3789_v62, %v3748_v23  ;;  %v3839_v5 = vadd.f32 %v3832_v60, %v3793_v24 }
 0x317   :  { %6917 = vmatmul.msk.f32.gmra.mxu1 %vm1548_vm1, %v4621_v3  ;;  %v3885_v37 = vadd.f32 %v3878_v36, %v3839_v5 }
 0x319   :  { %v3931_v6 = vadd.f32 %v3924_v22, %v3885_v37 }
 0x31b   :  { %v3927_v59 = vpop.f32.mrf.mxu3  ;;  %v4036_v31 = vpop.f32.mrf.mxu2 }
 0x31c   :  { %v3835_v17 = vpop.f32.mrf.mxu1 }
 0x31d   :  { %v3840_v2 = vadd.f32 %v3835_v17, %v3794_v11 }
 0x31f   :  { %v3886_v20 = vadd.f32 %v3881_v19, %v3840_v2 }
 0x321   :  { %v3932_v10 = vadd.f32 %v3927_v59, %v3886_v20 }
 0x323   :  { %3959 = vmatpush.msra.mxu0 %v3932_v10  ;;  %v4074_v44 = vpop.f32.mrf.mxu3  ;;  %v4039_v16 = vpop.f32.mrf.mxu2 }
 0x324   :  { %v4001_v18 = vpop.f32.mrf.mxu1 }
 0x325   :  { %3960 = vmatpush.msra.mxu0 %v3931_v6  ;;  %v4037_v34 = vadd.f32 %v4036_v31, %v4001_v18 }
 0x327   :  { %3961 = vmatpush.msra.mxu0 %v3930_v49 }
 0x328   :  { %6848 = vmatmul.msk.f32.vlgmr.msra.gmra.mxu0 %vm3939_vm4, %v9261_v1 }
 0x329   :  { %6862 = vmatpush.msk.msrb.mxu0 %vm3037_vm3, %v7043_v46 }
 0x32b   :  { %4113 = vmatpush.msrb.mxu0 %v7044_v43  ;;  %v4077_v55 = vpop.f32.mrf.mxu3  ;;  %v4042_v28 = vpop.f32.mrf.mxu2 }
 0x32c   :  { %v4004_v27 = vpop.f32.mrf.mxu1 }
 0x32d   :  { %6878 = vmatpush.msk.msra.mxu0 %vm3037_vm3, %v7045_v26  ;;  %v4040_v59 = vadd.f32 %v4039_v16, %v4004_v27  ;;  %v4083_v26 = vadd.f32 %v4074_v44, %v4037_v34 }
 0x32f   :  { %4277 = vmatpush.msra.mxu0 %v7046_v12  ;;  %v4084_v46 = vadd.f32 %v4077_v55, %v4040_v59 }
 0x330   :  { %6849 = vmatmul.msk.f32.gmra.mxu0 %vm3939_vm4, %v9279_v45 }
 0x333   :  { %v4080_v39 = vpop.f32.mrf.mxu3  ;;  %v4197_v8 = vpop.f32.mrf.mxu2 }
 0x334   :  { %v4007_v9 = vpop.f32.mrf.mxu1 }
 0x335   :  { %v4043_v37 = vadd.f32 %v4042_v28, %v4007_v9 }
 0x337   :  { %v4085_v10 = vadd.f32 %v4080_v39, %v4043_v37 }
 0x338   :  { %6863 = vmatmul.msk.f32.vlgmr.msrb.gmra.mxu0 %vm1548_vm1, %v4086_v38 }
 0x339   :  { %6894 = vmatpush.msk.msrb.mxu0 %vm3037_vm3, %v10081_v35 }
 0x33b   :  { %4441 = vmatpush.msrb.mxu0 %v10082_v7  ;;  %v4238_v29 = vpop.f32.mrf.mxu3  ;;  %v4200_v56 = vpop.f32.mrf.mxu2 }
 0x33c   :  { %v4156_v54 = vpop.f32.mrf.mxu1 }
 0x340   :  { %6864 = vmatmul.msk.f32.gmra.mxu0 %vm1548_vm1, %v4087_v51 }
 0x343   :  { %v4241_v36 = vpop.f32.mrf.mxu3  ;;  %v4203_v32 = vpop.f32.mrf.mxu2 }
 0x344   :  { %v4159_v13 = vpop.f32.mrf.mxu1 }
 0x348   :  { %6865 = vmatmul.msk.f32.gmra.mxu0 %vm1548_vm1, %v4088_v25 }
 0x34b   :  { %v4244_v22 = vpop.f32.mrf.mxu3  ;;  %v4361_v62 = vpop.f32.mrf.mxu2 }
 0x34c   :  { %v4162_v60 = vpop.f32.mrf.mxu1 }
 0x350   :  { %6879 = vmatmul.msk.f32.vlgmr.msra.gmra.mxu0 %vm1548_vm1, %v4250_v57 }
 0x351   :  { %6910 = vmatpush.msk.msra.mxu0 %vm3037_vm3, %v10083_v53 }
 0x353   :  { %4605 = vmatpush.msra.mxu0 %v10084_v30  ;;  %v4402_v0 = vpop.f32.mrf.mxu3  ;;  %v4364_v41 = vpop.f32.mrf.mxu2 }
 0x354   :  { %v4320_v3 = vpop.f32.mrf.mxu1 }
 0x358   :  { %6880 = vmatmul.msk.f32.gmra.mxu0 %vm1548_vm1, %v4251_v14 }
 0x35b   :  { %v4405_v11 = vpop.f32.mrf.mxu3  ;;  %v4367_v50 = vpop.f32.mrf.mxu2 }
 0x35c   :  { %v4323_v24 = vpop.f32.mrf.mxu1 }
 0x360   :  { %6881 = vmatmul.msk.f32.gmra.mxu0 %vm1548_vm1, %v4252_v61 }
 0x363   :  { %v4408_v19 = vpop.f32.mrf.mxu3  ;;  %v4525_v6 = vpop.f32.mrf.mxu2 }
 0x364   :  { %v4326_v17 = vpop.f32.mrf.mxu1 }
 0x368   :  { %6895 = vmatmul.msk.f32.vlgmr.msrb.gmra.mxu0 %vm1548_vm1, %v4087_v51 }
 0x369   :  { %6926 = vmatpush.msk.msrb.mxu0 %vm3037_vm3, %v10085_v33 }
 0x36b   :  { %4769 = vmatpush.msrb.mxu0 %v10086_v63  ;;  %v4566_v38 = vpop.f32.mrf.mxu3 }
 0x36c   :  { %v4484_v20 = vpop.f32.mrf.mxu1 }
 0x370   :  { %6896 = vmatmul.msk.f32.gmra.mxu0 %vm1548_vm1, %v4088_v25 }
 0x374   :  { %v4487_v51 = vpop.f32.mrf.mxu1 }
 0x378   :  { %6897 = vmatmul.msk.f32.gmra.mxu0 %vm1548_vm1, %v4416_v48 }
 0x37c   :  { %v4490_v31 = vpop.f32.mrf.mxu1 }
 0x380   :  { %6911 = vmatmul.msk.f32.vlgmr.msra.gmra.mxu0 %vm1548_vm1, %v4251_v14  ;;  %v4528_v14 = vpop.f32.mrf.mxu2 }
 0x388   :  { %6912 = vmatmul.msk.f32.gmra.mxu0 %vm1548_vm1, %v4252_v61  ;;  %v4531_v28 = vpop.f32.mrf.mxu2 }
 0x390   :  { %6913 = vmatmul.msk.f32.gmra.mxu0 %vm1548_vm1, %v4580_v52 }
 0x398   :  { %6927 = vmatmul.msk.f32.vlgmr.msrb.gmra.mxu0 %vm1548_vm1, %v4088_v25 }
 0x3a0   :  { %6928 = vmatmul.msk.f32.gmra.mxu0 %vm1548_vm1, %v4416_v48  ;;  %v4569_v48 = vpop.f32.mrf.mxu3 }
 0x3a5   :  { %v9309_v15 = vpop.f32.mrf.mxu0 }
 0x3a8   :  { %6929 = vmatmul.msk.f32.gmra.mxu0 %vm1548_vm1, %v4744_v42 }
 0x3ad   :  { %v9312_v4 = vpop.f32.mrf.mxu0 }
 0x3b5   :  { %v4115_v21 = vpop.f32.mrf.mxu0 }
 0x3b6   :  { %v4124_v35 = vadd.f32 %v4115_v21, %v4083_v26 }
 0x3b8   :  { %v4165_v53 = vadd.f32 %v4156_v54, %v4124_v35 }
 0x3ba   :  { %v4206_v33 = vadd.f32 %v4197_v8, %v4165_v53 }
 0x3bc   :  { %v4247_v16 = vadd.f32 %v4238_v29, %v4206_v33 }
 0x3bd   :  { %v4118_v40 = vpop.f32.mrf.mxu0 }
 0x3be   :  { %v4125_v12 = vadd.f32 %v4118_v40, %v4084_v46 }
 0x3c0   :  { %v4166_v25 = vadd.f32 %v4159_v13, %v4125_v12  ;;  %v4572_v13 = vpop.f32.mrf.mxu3 }
 0x3c2   :  { %v4207_v61 = vadd.f32 %v4200_v56, %v4166_v25 }
 0x3c4   :  { %v4248_v18 = vadd.f32 %v4241_v36, %v4207_v61  ;;  %v4689_v36 = vpop.f32.mrf.mxu2 }
 0x3c5   :  { %v4121_v47 = vpop.f32.mrf.mxu0 }
 0x3c6   :  { %v4126_v43 = vadd.f32 %v4121_v47, %v4085_v10 }
 0x3c8   :  { %v4167_v7 = vadd.f32 %v4162_v60, %v4126_v43  ;;  %v4648_v60 = vpop.f32.mrf.mxu1 }
 0x3ca   :  { %v4208_v30 = vadd.f32 %v4203_v32, %v4167_v7 }
 0x3cc   :  { %v4249_v63 = vadd.f32 %v4244_v22, %v4208_v30  ;;  %v4692_v34 = vpop.f32.mrf.mxu2 }
 0x3cd   :  { %v4279_v58 = vpop.f32.mrf.mxu0 }
 0x3ce   :  { %v4288_v55 = vadd.f32 %v4279_v58, %v4247_v16  ;;  %v4730_v58 = vpop.f32.mrf.mxu3 }
 0x3d0   :  { %v4329_v39 = vadd.f32 %v4320_v3, %v4288_v55  ;;  %v4651_v59 = vpop.f32.mrf.mxu1 }
 0x3d2   :  { %v4370_v56 = vadd.f32 %v4361_v62, %v4329_v39 }
 0x3d4   :  { %v4411_v22 = vadd.f32 %v4402_v0, %v4370_v56  ;;  %v4695_v7 = vpop.f32.mrf.mxu2 }
 0x3d5   :  { %v4282_v23 = vpop.f32.mrf.mxu0 }
 0x3d6   :  { %v4289_v44 = vadd.f32 %v4282_v23, %v4248_v18 }
 0x3d8   :  { %v4330_v42 = vadd.f32 %v4323_v24, %v4289_v44  ;;  %v4654_v0 = vpop.f32.mrf.mxu1 }
 0x3da   :  { %v4371_v40 = vadd.f32 %v4364_v41, %v4330_v42 }
 0x3dc   :  { %v4412_v32 = vadd.f32 %v4405_v11, %v4371_v40  ;;  %v4733_v11 = vpop.f32.mrf.mxu3 }
 0x3dd   :  { %v4285_v5 = vpop.f32.mrf.mxu0 }
 0x3de   :  { %v4290_v52 = vadd.f32 %v4285_v5, %v4249_v63 }
 0x3e0   :  { %v4331_v9 = vadd.f32 %v4326_v17, %v4290_v52 }
 0x3e2   :  { %v4372_v21 = vadd.f32 %v4367_v50, %v4331_v9 }
 0x3e4   :  { %v4413_v8 = vadd.f32 %v4408_v19, %v4372_v21 }
 0x3e5   :  { %v4443_v2 = vpop.f32.mrf.mxu0 }
 0x3e6   :  { %v4452_v29 = vadd.f32 %v4443_v2, %v4411_v22 }
 0x3e8   :  { %v4493_v24 = vadd.f32 %v4484_v20, %v4452_v29 }
 0x3ea   :  { %v4534_v41 = vadd.f32 %v4525_v6, %v4493_v24 }
 0x3ec   :  { %v4575_v43 = vadd.f32 %v4566_v38, %v4534_v41 }
 0x3ed   :  { %v4446_v49 = vpop.f32.mrf.mxu0 }
 0x3ee   :  { %v4453_v5 = vadd.f32 %v4446_v49, %v4412_v32 }
 0x3f0   :  { %v4494_v17 = vadd.f32 %v4487_v51, %v4453_v5 }
 0x3f2   :  { %v4535_v50 = vadd.f32 %v4528_v14, %v4494_v17 }
 0x3f4   :  { %v4576_v62 = vadd.f32 %v4569_v48, %v4535_v50  ;;  %v7020_v48 = vld [vmem:[%s10087_s5] ss:$0 sm:$0xff] }
 0x3f5   :  { %v4449_v57 = vpop.f32.mrf.mxu0  ;;  %v9322_v18 = vadd.f32 %v7020_v48, %v9312_v4  ;;  %v9325_v52 = vadd.f32 %v7020_v48, %v9309_v15 }
 0x3f6   :  { %v4454_v47 = vadd.f32 %v4449_v57, %v4413_v8  ;;  %v4736_v57 = vpop.f32.mrf.mxu3 }
 0x3f8   :  { %v4495_v23 = vadd.f32 %v4490_v31, %v4454_v47  ;;  %v4808_v31 = vsel %vm4807_vm5, %v9322_v18, 0.0 }
 0x3fa   :  { %v4536_v3 = vadd.f32 %v4531_v28, %v4495_v23 }
 0x3fc   :  { %v4577_v46 = vadd.f32 %v4572_v13, %v4536_v3 }
 0x3fd   :  { %v4607_v27 = vpop.f32.mrf.mxu0 }
 0x3fe   :  { %v4616_v49 = vadd.f32 %v4607_v27, %v4575_v43 }
 0x400   :  { %v4657_v51 = vadd.f32 %v4648_v60, %v4616_v49 }
 0x402   :  { %v4698_v53 = vadd.f32 %v4689_v36, %v4657_v51 }
 0x404   :  { %v4739_v33 = vadd.f32 %v4730_v58, %v4698_v53 }
 0x405   :  { %v4610_v54 = vpop.f32.mrf.mxu0 }
 0x406   :  { %v4617_v26 = vadd.f32 %v4610_v54, %v4576_v62 }
 0x408   :  { %v4658_v35 = vadd.f32 %v4651_v59, %v4617_v26 }
 0x40a   :  { %v4699_v20 = vadd.f32 %v4692_v34, %v4658_v35 }
 0x40c   :  { %v4740_v6 = vadd.f32 %v4733_v11, %v4699_v20 }
 0x40d   :  { %v4613_v37 = vpop.f32.mrf.mxu0 }
 0x40e   :  { %v4618_v19 = vadd.f32 %v4613_v37, %v4577_v46 }
 0x410   :  { %v4659_v12 = vadd.f32 %v4654_v0, %v4618_v19 }
 0x412   :  { %v4700_v25 = vadd.f32 %v4695_v7, %v4659_v12 }
 0x414   :  { %v4741_v30 = vadd.f32 %v4736_v57, %v4700_v25 }
 0x415   :  { %v4771_v10 = vpop.f32.mrf.mxu0 }
 0x416   :  { %v4780_v38 = vadd.f32 %v4771_v10, %v4739_v33 }
 0x41d   :  { %v4774_v2 = vpop.f32.mrf.mxu0 }
 0x41e   :  { %v4781_v63 = vadd.f32 %v4774_v2, %v4740_v6 }
 0x425   :  { %v4777_v14 = vpop.f32.mrf.mxu0 }
 0x426   :  { %v4782_v61 = vadd.f32 %v4777_v14, %v4741_v30 }
 0x428   :  { %4796 = vmatpush.msra.mxu1 %v4782_v61 }
 0x42a   :  { %4797 = vmatpush.msra.mxu1 %v4781_v63  ;;  %v7048_v63 = vmov 0.0  }
 0x42b   :  { %4896 = vst.msk [vmem:[#allocation3] sm:$0xff] %vm1548_vm1, %v7048_v63 }
 0x42c   :  { %4798 = vmatpush.msra.mxu1 %v4780_v38  ;;  %4898 = vst.msk [vmem:[#allocation3 + $0x8] sm:$0x3f] %vm4897_vm7, %v7048_v63 }
 0x42d   :  { %6930 = vmatmul.msk.f32.vlgmr.msra.gmra.mxu1 %vm3939_vm4, %v9261_v1  ;;  %v4806_v1 = vsel %vm1548_vm1, %v9325_v52, 0.0  ;;  %5017 = vst.msk [vmem:[#allocation3 + $0xe] sm:$0xff] %vm1548_vm1, %v7048_v63 }
 0x42e   :  { %v4809_v27 = vadd.f32 %v4808_v31, %v4806_v1  ;;  %5018 = vst.msk [vmem:[#allocation3 + $0x16] sm:$0x3f] %vm4897_vm7, %v7048_v63  ;;  %v4904_v31 = vld [vmem:[%s10088_s6 + $0x8] sm:$0x3]  ;;  %v4976_v1 = vld [vmem:[%s10088_s6 + $0x1c] sm:$0x3] }
 0x42f   :  { %6935 = vmatpush.msk.msrb.mxu3 %vm3037_vm3, %v4904_v31  ;;  %6938 = vmatpush.msk.msra.mxu0 %vm3037_vm3, %v4976_v1 }
 0x430   :  { %v4810_v44 = vrot.slane %v4809_v27, 4 }
 0x432   :  { %v4811_v4 = vadd.f32 %v4810_v44, %v4809_v27  ;;  %v4907_v44 = vld [vmem:[%s10088_s6 + $0xa] sm:$0xff] }
 0x434   :  { %v4812_v13 = vrot.slane %v4811_v4, 2 }
 0x435   :  { %6931 = vmatmul.msk.f32.gmra.mxu1 %vm3939_vm4, %v9279_v45  ;;  %v7047_v45 = vmov 24.0  }
 0x436   :  { %7029 = vrcp.f32 %v7047_v45  ;;  %v4813_v56 = vadd.f32 %v4812_v13, %v4811_v4  ;;  %v4975_v4 = vld [vmem:[%s10088_s6 + $0x14] sm:$0xff] }
 0x437   :  { %5001 = vmatpush.msra.mxu0 %v4975_v4 }
 0x438   :  { %v4814_v36 = vrot.slane %v4813_v56, 1 }
 0x43a   :  { %v4815_v29 = vadd.f32 %v4814_v36, %v4813_v56 }
 0x43c   :  { %v7030_v55 = vpop.eup %7029 }
 0x43d   :  { %v4827_v15 = vmul.f32 24.0, %v7030_v55  ;;  %vm4831_vm6 = vweird.f32 %v7030_v55 }
 0x43f   :  { %v4828_v40 = vsub.f32 1.0, %v4827_v15 }
 0x441   :  { %v4829_v32 = vmul.f32 %v7030_v55, %v4828_v40  ;;  %v5096_v40 = vld [vmem:[%s10088_s6 + $0x1c] sm:$0x3] }
 0x443   :  { %v4830_v5 = vadd.f32 %v7030_v55, %v4829_v32 }
 0x445   :  { %v9339_v58 = vsel %vm4831_vm6, %v7030_v55, %v4830_v5  ;;  %v4903_v55 = vld [vmem:[%s10088_s6] sm:$0xff] }
 0x446   :  { %4965 = vmatpush.msrb.mxu3 %v4903_v55 }
 0x448   :  { %6947 = vmatpush.msk.msra.mxu3 %vm3037_vm3, %v5096_v40 }
 0x44a   :  { %5121 = vmatpush.msra.mxu3 %v4975_v4 }
 0x4aa   :  { %v4800_v16 = vpop.f32.mrf.mxu1 }
 0x4ab   :  { %v9331_v9 = vadd.f32 %v7020_v48, %v4800_v16  ;;  %v5028_v16 = vld [vmem:[%s10088_s6 + $0x12] sm:$0x3] }
 0x4ac   :  { %6941 = vmatpush.msk.msrb.mxu1 %vm3037_vm3, %v5028_v16 }
 0x4ad   :  { %v4816_v39 = vsel %vm1548_vm1, %v9331_v9, 0.0 }
 0x4ae   :  { %5053 = vmatpush.msrb.mxu1 %v4907_v44 }
 0x4b2   :  { %v4803_v28 = vpop.f32.mrf.mxu1 }
 0x4b3   :  { %v9333_v42 = vadd.f32 %v7020_v48, %v4803_v28  ;;  %v4908_v48 = vld [vmem:[%s10088_s6 + $0x12] sm:$0x3] }
 0x4b4   :  { %6932 = vmatpush.msk.msrb.mxu2 %vm3037_vm3, %v4908_v48 }
 0x4b5   :  { %v4817_v21 = vsel %vm4807_vm5, %v9333_v42, 0.0 }
 0x4b6   :  { %v4818_v54 = vadd.f32 %v4817_v21, %v4816_v39  ;;  %4933 = vmatpush.msrb.mxu2 %v4907_v44  ;;  %v4862_v21 = vld [vmem:[%s10089_s2] sm:$0x1]  ;;  %s10092_s2 = sld [smem:[#allocation32_spill]] }
 0x4b7   :  { %v7022_v44 = vld [vmem:[%s10091_s29] ss:$0 sm:$0xff] }
 0x4b8   :  { %v4819_v60 = vrot.slane %v4818_v54, 4 }
 0x4ba   :  { %v4820_v8 = vadd.f32 %v4819_v60, %v4818_v54  ;;  %v5024_v54 = vld [vmem:[%s10088_s6 + $0x8] sm:$0x3]  ;;  %s10094_s6 = sld [smem:[#allocation34_spill]] }
 0x4bb   :  { %6944 = vmatpush.msk.msra.mxu2 %vm3037_vm3, %v5024_v54 }
 0x4bc   :  { %v4821_v47 = vrot.slane %v4820_v8, 2 }
 0x4bd   :  { %5085 = vmatpush.msra.mxu2 %v4903_v55 }
 0x4be   :  { %v4822_v22 = vadd.f32 %v4821_v47, %v4820_v8  ;;  %v4875_v8 = vld [vmem:[%s10090_s8] sm:$0x1] }
 0x4c0   :  { %v4823_v37 = vrot.slane %v4822_v22, 1 }
 0x4c2   :  { %v4824_v23 = vadd.f32 %v4823_v37, %v4822_v22 }
 0x4c4   :  { %v4825_v17 = vadd.f32 %v4824_v23, %v4815_v29 }
 0x4c6   :  { %v9342_v59 = vmul.f32 %v9339_v58, %v4825_v17 }
 0x4c8   :  { %v4834_v24 = vsub.f32 %v9325_v52, %v9342_v59  ;;  %v4835_v3 = vsub.f32 %v9322_v18, %v9342_v59  ;;  %v4847_v50 = vsub.f32 %v9331_v9, %v9342_v59  ;;  %v4848_v34 = vsub.f32 %v9333_v42, %v9342_v59 }
 0x4ca   :  { %v4836_v10 = vmul.f32 %v4834_v24, %v4834_v24  ;;  %v4837_v41 = vmul.f32 %v4835_v3, %v4835_v3  ;;  %v4849_v46 = vmul.f32 %v4847_v50, %v4847_v50  ;;  %v4850_v62 = vmul.f32 %v4848_v34, %v4848_v34 }
 0x4cc   :  { %v4838_v19 = vsel %vm1548_vm1, %v4836_v10, 0.0  ;;  %v4839_v11 = vsel %vm4807_vm5, %v4837_v41, 0.0  ;;  %v4851_v43 = vsel %vm1548_vm1, %v4849_v46, 0.0  ;;  %v4852_v26 = vsel %vm4807_vm5, %v4850_v62, 0.0 }
 0x4cd   :  { %v4840_v0 = vadd.f32 %v4839_v11, %v4838_v19  ;;  %v4853_v49 = vadd.f32 %v4852_v26, %v4851_v43 }
 0x4cf   :  { %v4841_v12 = vrot.slane %v4840_v0, 4  ;;  %v4854_v2 = vrot.slane %v4853_v49, 4 }
 0x4d1   :  { %v4842_v35 = vadd.f32 %v4841_v12, %v4840_v0  ;;  %v4855_v7 = vadd.f32 %v4854_v2, %v4853_v49 }
 0x4d3   :  { %v4843_v51 = vrot.slane %v4842_v35, 2  ;;  %v4856_v25 = vrot.slane %v4855_v7, 2 }
 0x4d5   :  { %v4844_v20 = vadd.f32 %v4843_v51, %v4842_v35  ;;  %v4857_v57 = vadd.f32 %v4856_v25, %v4855_v7 }
 0x4d7   :  { %v4845_v53 = vrot.slane %v4844_v20, 1  ;;  %v4858_v30 = vrot.slane %v4857_v57, 1 }
 0x4d9   :  { %v4846_v14 = vadd.f32 %v4845_v53, %v4844_v20  ;;  %v4859_v6 = vadd.f32 %v4858_v30, %v4857_v57  ;;  %v7021_v30 = vld [vmem:[%s10091_s29] ss:$0 sm:$0xff] }
 0x4db   :  { %v4860_v61 = vadd.f32 %v4859_v6, %v4846_v14 }
 0x4dd   :  { %v4861_v33 = vmul.f32 %v4860_v61, %v9339_v58 }
 0x4df   :  { %v4863_v38 = vadd.f32 1e-05, %v4861_v33 }
 0x4e1   :  { %7031 = vrsqrt.f32 %v4863_v38  ;;  %vm4870_vm9 = vweird.f32 %v4863_v38 }
 0x4e7   :  { %v7032_v27 = vpop.eup %7031 }
 0x4e8   :  { %v4865_v45 = vmul.f32 %v7032_v27, %v4863_v38  ;;  %vm4871_vm8 = vweird.f32 %v7032_v27 }
 0x4e9   :  { %vm4872_vm10 = vmor %vm4870_vm9, %vm4871_vm8 }
 0x4ea   :  { %v4866_v28 = vmul.f32 %v7032_v27, %v4865_v45 }
 0x4ec   :  { %v4867_v15 = vmul.f32 0.5, %v4866_v28 }
 0x4ee   :  { %v4868_v39 = vsub.f32 1.5, %v4867_v15 }
 0x4f0   :  { %v4869_v13 = vmul.f32 %v7032_v27, %v4868_v39 }
 0x4f2   :  { %v4873_v60 = vsel %vm4872_vm10, %v7032_v27, %v4869_v13  ;;  %vm6309_vm10 = vcmask 588800  }
 0x4f3   :  { %v4874_v56 = vmul.f32 %v4873_v60, %v4862_v21 }
 0x4f5   :  { %v4876_v32 = vmul.f32 %v4874_v56, %v9342_v59  ;;  %v4879_v47 = vperm.slane %v4874_v56, 0 }
 0x4f7   :  { %v4877_v36 = vsub.f32 %v4875_v8, %v4876_v32  ;;  %v4881_v22 = vmul.f32 %v4879_v47, %v9325_v52  ;;  %v4882_v5 = vmul.f32 %v4879_v47, %v9322_v18  ;;  %v4890_v29 = vmul.f32 %v4879_v47, %v9331_v9 }
 0x4f8   :  { %v4891_v23 = vmul.f32 %v4879_v47, %v9333_v42 }
 0x4f9   :  { %v4884_v37 = vperm.slane %v4877_v36, 0 }
 0x4fb   :  { %v9409_v17 = vadd.f32 %v4884_v37, %v4881_v22  ;;  %v9411_v24 = vadd.f32 %v4884_v37, %v4882_v5  ;;  %v9413_v3 = vadd.f32 %v4890_v29, %v4884_v37  ;;  %v9415_v50 = vadd.f32 %v4891_v23, %v4884_v37 }
 0x4fd   :  { %v4888_v59 = vmax.f32 %v9409_v17, 0.0  ;;  %v4889_v34 = vmax.f32 %v9411_v24, 0.0  ;;  %v4894_v52 = vmax.f32 %v9413_v3, 0.0  ;;  %v4895_v18 = vmax.f32 %v9415_v50, 0.0 }
 0x4ff   :  { %4899 = vst.msk [vmem:[#allocation3 + $0x1] sm:$0xff] %vm1548_vm1, %v4888_v59 }
 0x500   :  { %4900 = vst.msk [vmem:[#allocation3 + $0x9] sm:$0xf] %vm4807_vm5, %v4889_v34 }
 0x501   :  { %5019 = vst.msk [vmem:[#allocation3 + $0xf] sm:$0xff] %vm1548_vm1, %v4894_v52 }
 0x502   :  { %5020 = vst.msk [vmem:[#allocation3 + $0x17] sm:$0xf] %vm4807_vm5, %v4895_v18 }
 0x506   :  { %v4905_v9 = vld [vmem:[#allocation3 + $0x1] sm:$0xff] }
 0x507   :  { %v4901_v42 = vld [vmem:[#allocation3] sm:$0xff]  ;;  %6933 = vmatmul.msk.f32.vlgmr.msrb.gmra.mxu2 %vm1548_vm1, %v4905_v9  ;;  %v4906_v41 = vld [vmem:[#allocation3 + $0x9] sm:$0xf] }
 0x508   :  { %v4973_v10 = vld [vmem:[#allocation3 + $0x2] sm:$0xff]  ;;  %6936 = vmatmul.msk.f32.vlgmr.msrb.gmra.mxu3 %vm1548_vm1, %v4901_v42  ;;  %v5025_v46 = vld [vmem:[#allocation3 + $0xf] sm:$0xff]  ;;  %v4974_v19 = vld [vmem:[#allocation3 + $0xa] sm:$0xf] }
 0x509   :  { %5219 = vst.msk [vmem:[#allocation3] sm:$0xff] %vm1548_vm1, %v7048_v63  ;;  %6939 = vmatmul.msk.f32.vlgmr.msra.gmra.mxu0 %vm1548_vm1, %v4973_v10  ;;  %v4902_v62 = vld [vmem:[#allocation3 + $0x8] sm:$0xf]  ;;  %v5093_v11 = vld [vmem:[#allocation3 + $0x10] sm:$0xff]  ;;  %6942 = vmatmul.msk.f32.vlgmr.msrb.gmra.mxu1 %vm1548_vm1, %v5025_v46  ;;  %v5094_v49 = vld [vmem:[#allocation3 + $0x18] sm:$0xf] }
 0x50a   :  { %5220 = vst.msk [vmem:[#allocation3 + $0x8] sm:$0x3f] %vm4897_vm7, %v7048_v63  ;;  %v5026_v43 = vld [vmem:[#allocation3 + $0x17] sm:$0xf]  ;;  %v5021_v26 = vld [vmem:[#allocation3 + $0xe] sm:$0xff] }
 0x50b   :  { %5339 = vst.msk [vmem:[#allocation3 + $0xe] sm:$0xff] %vm1548_vm1, %v7048_v63  ;;  %v5022_v0 = vld [vmem:[#allocation3 + $0x16] sm:$0xf] }
 0x50c   :  { %5340 = vst.msk [vmem:[#allocation3 + $0x16] sm:$0x3f] %vm4897_vm7, %v7048_v63 }
 0x50f   :  { %6934 = vmatmul.msk.f32.gmra.mxu2 %vm1548_vm1, %v4906_v41 }
 0x510   :  { %6937 = vmatmul.msk.f32.gmra.mxu3 %vm1548_vm1, %v4902_v62 }
 0x511   :  { %6940 = vmatmul.msk.f32.gmra.mxu0 %vm1548_vm1, %v4974_v19  ;;  %6943 = vmatmul.msk.f32.gmra.mxu1 %vm1548_vm1, %v5026_v43 }
 0x517   :  { %6945 = vmatmul.msk.f32.vlgmr.msra.gmra.mxu2 %vm1548_vm1, %v5021_v26 }
 0x518   :  { %6948 = vmatmul.msk.f32.vlgmr.msra.gmra.mxu3 %vm1548_vm1, %v5093_v11 }
 0x51f   :  { %6946 = vmatmul.msk.f32.gmra.mxu2 %vm1548_vm1, %v5022_v0 }
 0x520   :  { %6949 = vmatmul.msk.f32.gmra.mxu3 %vm1548_vm1, %v5094_v49 }
 0x586   :  { %v5003_v12 = vpop.f32.mrf.mxu0  ;;  %v5055_v61 = vpop.f32.mrf.mxu1 }
 0x58a   :  { %v4935_v2 = vpop.f32.mrf.mxu2 }
 0x58b   :  { %v4967_v35 = vpop.f32.mrf.mxu3 }
 0x58c   :  { %v4968_v7 = vadd.f32 %v4967_v35, %v4935_v2 }
 0x58e   :  { %v5006_v57 = vpop.f32.mrf.mxu0  ;;  %v5009_v53 = vadd.f32 %v5003_v12, %v4968_v7  ;;  %v5058_v55 = vpop.f32.mrf.mxu1 }
 0x590   :  { %v9458_v33 = vadd.f32 %v7021_v30, %v5009_v53 }
 0x592   :  { %v4938_v51 = vpop.f32.mrf.mxu2  ;;  %v5137_v1 = vsel %vm1548_vm1, %v9458_v33, 0.0 }
 0x593   :  { %v4970_v25 = vpop.f32.mrf.mxu3 }
 0x594   :  { %v4971_v20 = vadd.f32 %v4970_v25, %v4938_v51 }
 0x596   :  { %v5010_v14 = vadd.f32 %v5006_v57, %v4971_v20 }
 0x598   :  { %v9456_v6 = vadd.f32 %v7021_v30, %v5010_v14 }
 0x59a   :  { %v5087_v38 = vpop.f32.mrf.mxu2  ;;  %v5138_v31 = vsel %vm4807_vm5, %v9456_v6, 0.0 }
 0x59b   :  { %v5123_v48 = vpop.f32.mrf.mxu3  ;;  %v5088_v27 = vadd.f32 %v5087_v38, %v5055_v61  ;;  %v5139_v16 = vadd.f32 %v5138_v31, %v5137_v1 }
 0x59d   :  { %v5129_v45 = vadd.f32 %v5123_v48, %v5088_v27  ;;  %v5140_v4 = vrot.slane %v5139_v16, 4 }
 0x59f   :  { %v9467_v21 = vadd.f32 %v7022_v44, %v5129_v45  ;;  %v5141_v54 = vadd.f32 %v5140_v4, %v5139_v16  ;;  %v5230_v4 = vld [vmem:[%s10092_s2 + $0x12] sm:$0x3] }
 0x5a0   :  { %6950 = vmatpush.msk.msrb.mxu0 %vm3037_vm3, %v5230_v4  ;;  %v7023_v4 = vld [vmem:[%s9982_s13] ss:$0 sm:$0xff] }
 0x5a1   :  { %v5146_v60 = vsel %vm1548_vm1, %v9467_v21, 0.0  ;;  %v5142_v8 = vrot.slane %v5141_v54, 2 }
 0x5a2   :  { %v5090_v28 = vpop.f32.mrf.mxu2 }
 0x5a3   :  { %v5091_v15 = vadd.f32 %v5090_v28, %v5058_v55  ;;  %v5126_v39 = vpop.f32.mrf.mxu3  ;;  %v5143_v36 = vadd.f32 %v5142_v8, %v5141_v54  ;;  %v5226_v28 = vld [vmem:[%s10092_s2 + $0x8] sm:$0x3]  ;;  %v5225_v54 = vld [vmem:[%s10092_s2] sm:$0xff] }
 0x5a4   :  { %6953 = vmatpush.msk.msra.mxu1 %vm3037_vm3, %v5226_v28 }
 0x5a5   :  { %v5130_v13 = vadd.f32 %v5126_v39, %v5091_v15  ;;  %v5144_v37 = vrot.slane %v5143_v36, 1  ;;  %v5298_v15 = vld [vmem:[%s10092_s2 + $0x1c] sm:$0x3]  ;;  %v5350_v39 = vld [vmem:[%s10092_s2 + $0x12] sm:$0x3] }
 0x5a6   :  { %6956 = vmatpush.msk.msrb.mxu2 %vm3037_vm3, %v5298_v15  ;;  %6959 = vmatpush.msk.msrb.mxu3 %vm3037_vm3, %v5350_v39 }
 0x5a7   :  { %v9469_v40 = vadd.f32 %v7022_v44, %v5130_v13  ;;  %v5145_v9 = vadd.f32 %v5144_v37, %v5143_v36  ;;  %v5229_v13 = vld [vmem:[%s10092_s2 + $0xa] sm:$0xff]  ;;  %5287 = vmatpush.msra.mxu1 %v5225_v54 }
 0x5a8   :  { %5255 = vmatpush.msrb.mxu0 %v5229_v13  ;;  %5375 = vmatpush.msrb.mxu3 %v5229_v13 }
 0x5a9   :  { %v5147_v56 = vsel %vm4807_vm5, %v9469_v40, 0.0 }
 0x5aa   :  { %v5148_v32 = vadd.f32 %v5147_v56, %v5146_v60  ;;  %v5297_v60 = vld [vmem:[%s10092_s2 + $0x14] sm:$0xff] }
 0x5ab   :  { %5323 = vmatpush.msrb.mxu2 %v5297_v60 }
 0x5ac   :  { %v5149_v47 = vrot.slane %v5148_v32, 4 }
 0x5ae   :  { %v5150_v22 = vadd.f32 %v5149_v47, %v5148_v32 }
 0x5b0   :  { %v5151_v5 = vrot.slane %v5150_v22, 2 }
 0x5b2   :  { %v5152_v29 = vadd.f32 %v5151_v5, %v5150_v22  ;;  %v5185_v22 = vld [vmem:[%s10093_s11] sm:$0x1] }
 0x5b4   :  { %v5153_v23 = vrot.slane %v5152_v29, 1 }
 0x5b6   :  { %v5154_v42 = vadd.f32 %v5153_v23, %v5152_v29  ;;  %v5346_v29 = vld [vmem:[%s10092_s2 + $0x8] sm:$0x3]  ;;  %v5418_v23 = vld [vmem:[%s10092_s2 + $0x1c] sm:$0x3] }
 0x5b7   :  { %6962 = vmatpush.msk.msra.mxu0 %vm3037_vm3, %v5346_v29  ;;  %6965 = vmatpush.msk.msrb.mxu1 %vm3037_vm3, %v5418_v23 }
 0x5b8   :  { %v5155_v10 = vadd.f32 %v5154_v42, %v5145_v9  ;;  %v5198_v42 = vld [vmem:[%s10094_s6] sm:$0x1] }
 0x5b9   :  { %5407 = vmatpush.msra.mxu0 %v5225_v54  ;;  %5443 = vmatpush.msrb.mxu1 %v5297_v60 }
 0x5ba   :  { %v9476_v41 = vmul.f32 %v5155_v10, %v9339_v58 }
 0x5bc   :  { %v5157_v46 = vsub.f32 %v9458_v33, %v9476_v41  ;;  %v5158_v62 = vsub.f32 %v9456_v6, %v9476_v41  ;;  %v5170_v19 = vsub.f32 %v9467_v21, %v9476_v41  ;;  %v5171_v11 = vsub.f32 %v9469_v40, %v9476_v41 }
 0x5be   :  { %v5159_v43 = vmul.f32 %v5157_v46, %v5157_v46  ;;  %v5160_v26 = vmul.f32 %v5158_v62, %v5158_v62  ;;  %v5172_v0 = vmul.f32 %v5170_v19, %v5170_v19  ;;  %v5173_v49 = vmul.f32 %v5171_v11, %v5171_v11 }
 0x5c0   :  { %v5161_v12 = vsel %vm1548_vm1, %v5159_v43, 0.0  ;;  %v5162_v2 = vsel %vm4807_vm5, %v5160_v26, 0.0  ;;  %v5174_v35 = vsel %vm1548_vm1, %v5172_v0, 0.0  ;;  %v5175_v7 = vsel %vm4807_vm5, %v5173_v49, 0.0 }
 0x5c1   :  { %v5163_v51 = vadd.f32 %v5162_v2, %v5161_v12  ;;  %v5176_v25 = vadd.f32 %v5175_v7, %v5174_v35 }
 0x5c3   :  { %v5164_v20 = vrot.slane %v5163_v51, 4  ;;  %v5177_v57 = vrot.slane %v5176_v25, 4 }
 0x5c5   :  { %v5165_v53 = vadd.f32 %v5164_v20, %v5163_v51  ;;  %v5178_v30 = vadd.f32 %v5177_v57, %v5176_v25 }
 0x5c7   :  { %v5166_v14 = vrot.slane %v5165_v53, 2  ;;  %v5179_v61 = vrot.slane %v5178_v30, 2 }
 0x5c9   :  { %v5167_v38 = vadd.f32 %v5166_v14, %v5165_v53  ;;  %v5180_v48 = vadd.f32 %v5179_v61, %v5178_v30 }
 0x5cb   :  { %v5168_v31 = vrot.slane %v5167_v38, 1  ;;  %v5181_v1 = vrot.slane %v5180_v48, 1 }
 0x5cd   :  { %v5169_v27 = vadd.f32 %v5168_v31, %v5167_v38  ;;  %v5182_v16 = vadd.f32 %v5181_v1, %v5180_v48 }
 0x5cf   :  { %v5183_v45 = vadd.f32 %v5182_v16, %v5169_v27 }
 0x5d1   :  { %v5184_v44 = vmul.f32 %v5183_v45, %v9339_v58 }
 0x5d3   :  { %v5186_v55 = vadd.f32 1e-05, %v5184_v44 }
 0x5d5   :  { %7033 = vrsqrt.f32 %v5186_v55  ;;  %vm5193_vm12 = vweird.f32 %v5186_v55 }
 0x5db   :  { %v7034_v56 = vpop.eup %7033 }
 0x5dc   :  { %v5188_v8 = vmul.f32 %v7034_v56, %v5186_v55  ;;  %vm5194_vm11 = vweird.f32 %v7034_v56 }
 0x5dd   :  { %vm5195_vm13 = vmor %vm5193_vm12, %vm5194_vm11  ;;  %vm6352_vm11 = vcmask 0  }
 0x5de   :  { %v5189_v32 = vmul.f32 %v7034_v56, %v5188_v8 }
 0x5e0   :  { %v5190_v47 = vmul.f32 0.5, %v5189_v32 }
 0x5e2   :  { %v5191_v36 = vsub.f32 1.5, %v5190_v47 }
 0x5e4   :  { %v5192_v5 = vmul.f32 %v7034_v56, %v5191_v36 }
 0x5e6   :  { %v5196_v37 = vsel %vm5195_vm13, %v7034_v56, %v5192_v5 }
 0x5e7   :  { %v5197_v9 = vmul.f32 %v5196_v37, %v5185_v22  ;;  %v7024_v37 = vld [vmem:[%s9982_s13] ss:$0 sm:$0xff] }
 0x5e9   :  { %v5199_v10 = vmul.f32 %v5197_v9, %v9476_v41  ;;  %v5202_v46 = vperm.slane %v5197_v9, 0 }
 0x5eb   :  { %v5200_v62 = vsub.f32 %v5198_v42, %v5199_v10  ;;  %v5204_v19 = vmul.f32 %v5202_v46, %v9458_v33  ;;  %v5205_v11 = vmul.f32 %v5202_v46, %v9456_v6  ;;  %v5213_v26 = vmul.f32 %v5202_v46, %v9467_v21 }
 0x5ec   :  { %v5214_v0 = vmul.f32 %v5202_v46, %v9469_v40 }
 0x5ed   :  { %v5207_v43 = vperm.slane %v5200_v62, 0 }
 0x5ef   :  { %v5209_v49 = vadd.f32 %v5207_v43, %v5204_v19  ;;  %v5210_v12 = vadd.f32 %v5207_v43, %v5205_v11  ;;  %v5215_v2 = vadd.f32 %v5213_v26, %v5207_v43  ;;  %v5216_v35 = vadd.f32 %v5214_v0, %v5207_v43 }
 0x5f1   :  { %v5211_v7 = vmax.f32 %v5209_v49, 0.0  ;;  %v5212_v51 = vmax.f32 %v5210_v12, 0.0  ;;  %v5218_v41 = vmax.f32 %v5216_v35, 0.0  ;;  %v5217_v25 = vmax.f32 %v5215_v2, 0.0 }
 0x5f3   :  { %5222 = vst.msk [vmem:[#allocation3 + $0x9] sm:$0xf] %vm4807_vm5, %v5212_v51 }
 0x5f4   :  { %5342 = vst.msk [vmem:[#allocation3 + $0x17] sm:$0xf] %vm4807_vm5, %v5218_v41 }
 0x5f5   :  { %5221 = vst.msk [vmem:[#allocation3 + $0x1] sm:$0xff] %vm1548_vm1, %v5211_v7 }
 0x5f6   :  { %5341 = vst.msk [vmem:[#allocation3 + $0xf] sm:$0xff] %vm1548_vm1, %v5217_v25 }
 0x5fa   :  { %v5228_v6 = vld [vmem:[#allocation3 + $0x9] sm:$0xf] }
 0x5fb   :  { %v5296_v33 = vld [vmem:[#allocation3 + $0xa] sm:$0xf]  ;;  %v5348_v30 = vld [vmem:[#allocation3 + $0x17] sm:$0xf] }
 0x5fc   :  { %v5227_v21 = vld [vmem:[#allocation3 + $0x1] sm:$0xff]  ;;  %v5416_v14 = vld [vmem:[#allocation3 + $0x18] sm:$0xf] }
 0x5fd   :  { %v5223_v40 = vld [vmem:[#allocation3] sm:$0xff]  ;;  %6951 = vmatmul.msk.f32.vlgmr.msrb.gmra.mxu0 %vm1548_vm1, %v5227_v21  ;;  %v5347_v57 = vld [vmem:[#allocation3 + $0xf] sm:$0xff]  ;;  %v5224_v53 = vld [vmem:[#allocation3 + $0x8] sm:$0xf] }
 0x5fe   :  { %v5295_v20 = vld [vmem:[#allocation3 + $0x2] sm:$0xff]  ;;  %6954 = vmatmul.msk.f32.vlgmr.msra.gmra.mxu1 %vm1548_vm1, %v5223_v40  ;;  %6960 = vmatmul.msk.f32.vlgmr.msrb.gmra.mxu3 %vm1548_vm1, %v5347_v57  ;;  %v5343_v61 = vld [vmem:[#allocation3 + $0xe] sm:$0xff]  ;;  %v5344_v48 = vld [vmem:[#allocation3 + $0x16] sm:$0xf] }
 0x5ff   :  { %5545 = vst.msk [vmem:[#allocation3] sm:$0xff] %vm1548_vm1, %v7048_v63  ;;  %6957 = vmatmul.msk.f32.vlgmr.msrb.gmra.mxu2 %vm1548_vm1, %v5295_v20  ;;  %v5415_v38 = vld [vmem:[#allocation3 + $0x10] sm:$0xff] }
 0x600   :  { %5546 = vst.msk [vmem:[#allocation3 + $0x8] sm:$0x3f] %vm4897_vm7, %v7048_v63 }
 0x601   :  { %5665 = vst.msk [vmem:[#allocation3 + $0xe] sm:$0xff] %vm1548_vm1, %v7048_v63 }
 0x602   :  { %5666 = vst.msk [vmem:[#allocation3 + $0x16] sm:$0x3f] %vm4897_vm7, %v7048_v63 }
 0x605   :  { %6952 = vmatmul.msk.f32.gmra.mxu0 %vm1548_vm1, %v5228_v6 }
 0x606   :  { %6955 = vmatmul.msk.f32.gmra.mxu1 %vm1548_vm1, %v5224_v53  ;;  %6961 = vmatmul.msk.f32.gmra.mxu3 %vm1548_vm1, %v5348_v30 }
 0x607   :  { %6958 = vmatmul.msk.f32.gmra.mxu2 %vm1548_vm1, %v5296_v33 }
 0x60d   :  { %6963 = vmatmul.msk.f32.vlgmr.msra.gmra.mxu0 %vm1548_vm1, %v5343_v61 }
 0x60e   :  { %6966 = vmatmul.msk.f32.vlgmr.msrb.gmra.mxu1 %vm1548_vm1, %v5415_v38 }
 0x615   :  { %6964 = vmatmul.msk.f32.gmra.mxu0 %vm1548_vm1, %v5344_v48 }
 0x616   :  { %6967 = vmatmul.msk.f32.gmra.mxu1 %vm1548_vm1, %v5416_v14 }
 0x67a   :  { %v5257_v31 = vpop.f32.mrf.mxu0 }
 0x67b   :  { %v5289_v1 = vpop.f32.mrf.mxu1 }
 0x67c   :  { %v5290_v44 = vadd.f32 %v5289_v1, %v5257_v31 }
 0x681   :  { %v5377_v28 = vpop.f32.mrf.mxu3 }
 0x682   :  { %v5325_v27 = vpop.f32.mrf.mxu2  ;;  %v5260_v16 = vpop.f32.mrf.mxu0 }
 0x683   :  { %v5292_v45 = vpop.f32.mrf.mxu1  ;;  %v5331_v55 = vadd.f32 %v5325_v27, %v5290_v44 }
 0x684   :  { %v5293_v15 = vadd.f32 %v5292_v45, %v5260_v16 }
 0x685   :  { %v9562_v13 = vadd.f32 %v7023_v4, %v5331_v55 }
 0x687   :  { %v5459_v47 = vsel %vm1548_vm1, %v9562_v13, 0.0 }
 0x689   :  { %v5380_v23 = vpop.f32.mrf.mxu3 }
 0x68a   :  { %v5328_v39 = vpop.f32.mrf.mxu2  ;;  %v5409_v60 = vpop.f32.mrf.mxu0 }
 0x68b   :  { %v5332_v54 = vadd.f32 %v5328_v39, %v5293_v15  ;;  %v5445_v56 = vpop.f32.mrf.mxu1  ;;  %v5410_v32 = vadd.f32 %v5409_v60, %v5377_v28 }
 0x68d   :  { %v9564_v8 = vadd.f32 %v7023_v4, %v5332_v54  ;;  %v5451_v5 = vadd.f32 %v5445_v56, %v5410_v32 }
 0x68f   :  { %v5460_v36 = vsel %vm4807_vm5, %v9564_v8, 0.0  ;;  %v9573_v46 = vadd.f32 %v7024_v37, %v5451_v5 }
 0x690   :  { %v5461_v22 = vadd.f32 %v5460_v36, %v5459_v47 }
 0x691   :  { %v5468_v43 = vsel %vm1548_vm1, %v9573_v46, 0.0 }
 0x692   :  { %v5462_v29 = vrot.slane %v5461_v22, 4  ;;  %v5412_v9 = vpop.f32.mrf.mxu0 }
 0x693   :  { %v5413_v42 = vadd.f32 %v5412_v9, %v5380_v23  ;;  %v5448_v10 = vpop.f32.mrf.mxu1  ;;  %v5556_v23 = vld [vmem:[%s9983_s16 + $0x12] sm:$0x3]  ;;  %v5552_v9 = vld [vmem:[%s9983_s16 + $0x8] sm:$0x3] }
 0x694   :  { %v5463_v19 = vadd.f32 %v5462_v29, %v5461_v22  ;;  %6968 = vmatpush.msk.msra.mxu2 %vm3037_vm3, %v5556_v23  ;;  %6971 = vmatpush.msk.msra.mxu3 %vm3037_vm3, %v5552_v9 }
 0x695   :  { %v5452_v62 = vadd.f32 %v5448_v10, %v5413_v42  ;;  %v5624_v42 = vld [vmem:[%s9983_s16 + $0x1c] sm:$0x3]  ;;  %v5676_v10 = vld [vmem:[%s9983_s16 + $0x12] sm:$0x3] }
 0x696   :  { %v5464_v0 = vrot.slane %v5463_v19, 2  ;;  %6974 = vmatpush.msk.msrb.mxu0 %vm3037_vm3, %v5624_v42  ;;  %6977 = vmatpush.msk.msra.mxu1 %vm3037_vm3, %v5676_v10 }
 0x697   :  { %v9575_v11 = vadd.f32 %v7024_v37, %v5452_v62  ;;  %v5555_v62 = vld [vmem:[%s9983_s16 + $0xa] sm:$0xff] }
 0x698   :  { %v5465_v2 = vadd.f32 %v5464_v0, %v5463_v19  ;;  %v5551_v19 = vld [vmem:[%s9983_s16] sm:$0xff]  ;;  %5581 = vmatpush.msra.mxu2 %v5555_v62  ;;  %5701 = vmatpush.msra.mxu1 %v5555_v62 }
 0x699   :  { %v5469_v26 = vsel %vm4807_vm5, %v9575_v11, 0.0  ;;  %5613 = vmatpush.msra.mxu3 %v5551_v19 }
 0x69a   :  { %v5470_v49 = vadd.f32 %v5469_v26, %v5468_v43  ;;  %v5466_v51 = vrot.slane %v5465_v2, 1  ;;  %v5623_v43 = vld [vmem:[%s9983_s16 + $0x14] sm:$0xff] }
 0x69b   :  { %5649 = vmatpush.msrb.mxu0 %v5623_v43 }
 0x69c   :  { %v5471_v12 = vrot.slane %v5470_v49, 4  ;;  %v5467_v6 = vadd.f32 %v5466_v51, %v5465_v2 }
 0x69e   :  { %v5472_v35 = vadd.f32 %v5471_v12, %v5470_v49 }
 0x6a0   :  { %v5473_v7 = vrot.slane %v5472_v35, 2 }
 0x6a2   :  { %v5474_v41 = vadd.f32 %v5473_v7, %v5472_v35  ;;  %v5507_v35 = vld [vmem:[%s9984_s14] sm:$0x1] }
 0x6a4   :  { %v5475_v25 = vrot.slane %v5474_v41, 1 }
 0x6a6   :  { %v5476_v33 = vadd.f32 %v5475_v25, %v5474_v41  ;;  %v5672_v25 = vld [vmem:[%s9983_s16 + $0x8] sm:$0x3] }
 0x6a7   :  { %6980 = vmatpush.msk.msrb.mxu2 %vm3037_vm3, %v5672_v25 }
 0x6a8   :  { %v5477_v21 = vadd.f32 %v5476_v33, %v5467_v6  ;;  %v5744_v6 = vld [vmem:[%s9983_s16 + $0x1c] sm:$0x3]  ;;  %v5520_v33 = vld [vmem:[%s9985_s15] sm:$0x1] }
 0x6a9   :  { %6983 = vmatpush.msk.msrb.mxu3 %vm3037_vm3, %v5744_v6  ;;  %5733 = vmatpush.msrb.mxu2 %v5551_v19 }
 0x6aa   :  { %v9582_v40 = vmul.f32 %v5477_v21, %v9339_v58 }
 0x6ab   :  { %5769 = vmatpush.msrb.mxu3 %v5623_v43 }
 0x6ac   :  { %v5479_v20 = vsub.f32 %v9562_v13, %v9582_v40  ;;  %v5480_v57 = vsub.f32 %v9564_v8, %v9582_v40  ;;  %v5492_v53 = vsub.f32 %v9573_v46, %v9582_v40  ;;  %v5493_v30 = vsub.f32 %v9575_v11, %v9582_v40 }
 0x6ae   :  { %v5481_v14 = vmul.f32 %v5479_v20, %v5479_v20  ;;  %v5482_v61 = vmul.f32 %v5480_v57, %v5480_v57  ;;  %v5494_v38 = vmul.f32 %v5492_v53, %v5492_v53  ;;  %v5495_v48 = vmul.f32 %v5493_v30, %v5493_v30 }
 0x6b0   :  { %v5483_v31 = vsel %vm1548_vm1, %v5481_v14, 0.0  ;;  %v5484_v1 = vsel %vm4807_vm5, %v5482_v61, 0.0  ;;  %v5496_v27 = vsel %vm1548_vm1, %v5494_v38, 0.0  ;;  %v5497_v16 = vsel %vm4807_vm5, %v5495_v48, 0.0 }
 0x6b1   :  { %v5485_v45 = vadd.f32 %v5484_v1, %v5483_v31  ;;  %v5498_v44 = vadd.f32 %v5497_v16, %v5496_v27 }
 0x6b3   :  { %v5486_v55 = vrot.slane %v5485_v45, 4  ;;  %v5499_v4 = vrot.slane %v5498_v44, 4 }
 0x6b5   :  { %v5487_v28 = vadd.f32 %v5486_v55, %v5485_v45  ;;  %v5500_v15 = vadd.f32 %v5499_v4, %v5498_v44 }
 0x6b7   :  { %v5488_v39 = vrot.slane %v5487_v28, 2  ;;  %v5501_v54 = vrot.slane %v5500_v15, 2 }
 0x6b9   :  { %v5489_v60 = vadd.f32 %v5488_v39, %v5487_v28  ;;  %v5502_v56 = vadd.f32 %v5501_v54, %v5500_v15 }
 0x6bb   :  { %v5490_v32 = vrot.slane %v5489_v60, 1  ;;  %v5503_v47 = vrot.slane %v5502_v56, 1 }
 0x6bd   :  { %v5491_v36 = vadd.f32 %v5490_v32, %v5489_v60  ;;  %v5504_v22 = vadd.f32 %v5503_v47, %v5502_v56 }
 0x6bf   :  { %v5505_v5 = vadd.f32 %v5504_v22, %v5491_v36 }
 0x6c1   :  { %v5506_v37 = vmul.f32 %v5505_v5, %v9339_v58  ;;  %v7025_v5 = vld [vmem:[%s9986_s17] ss:$0 sm:$0xff] }
 0x6c3   :  { %v5508_v29 = vadd.f32 1e-05, %v5506_v37 }
 0x6c5   :  { %7035 = vrsqrt.f32 %v5508_v29  ;;  %vm5515_vm15 = vweird.f32 %v5508_v29 }
 0x6cb   :  { %v7036_v26 = vpop.eup %7035 }
 0x6cc   :  { %v5510_v0 = vmul.f32 %v7036_v26, %v5508_v29  ;;  %vm5516_vm14 = vweird.f32 %v7036_v26 }
 0x6cd   :  { %vm5517_vm0 = vmor %vm5515_vm15, %vm5516_vm14 }
 0x6ce   :  { %v5511_v49 = vmul.f32 %v7036_v26, %v5510_v0 }
 0x6d0   :  { %v5512_v12 = vmul.f32 0.5, %v5511_v49  ;;  %v7026_v49 = vld [vmem:[%s9986_s17] ss:$0 sm:$0xff] }
 0x6d2   :  { %v5513_v2 = vsub.f32 1.5, %v5512_v12 }
 0x6d4   :  { %v5514_v7 = vmul.f32 %v7036_v26, %v5513_v2 }
 0x6d6   :  { %v5518_v51 = vsel %vm5517_vm0, %v7036_v26, %v5514_v7 }
 0x6d7   :  { %v5519_v41 = vmul.f32 %v5518_v51, %v5507_v35 }
 0x6d9   :  { %v5521_v21 = vmul.f32 %v5519_v41, %v9582_v40  ;;  %v5524_v20 = vperm.slane %v5519_v41, 0 }
 0x6db   :  { %v5522_v57 = vsub.f32 %v5520_v33, %v5521_v21  ;;  %v5526_v53 = vmul.f32 %v5524_v20, %v9562_v13  ;;  %v5527_v30 = vmul.f32 %v5524_v20, %v9564_v8  ;;  %v5537_v61 = vmul.f32 %v5524_v20, %v9573_v46 }
 0x6dc   :  { %v5538_v38 = vmul.f32 %v5524_v20, %v9575_v11 }
 0x6dd   :  { %v5529_v14 = vperm.slane %v5522_v57, 0 }
 0x6df   :  { %v5531_v48 = vadd.f32 %v5529_v14, %v5526_v53  ;;  %v5532_v31 = vadd.f32 %v5529_v14, %v5527_v30  ;;  %v5539_v1 = vadd.f32 %v5537_v61, %v5529_v14  ;;  %v5540_v27 = vadd.f32 %v5538_v38, %v5529_v14 }
 0x6e1   :  { %v9643_v40 = vadd.f32 %v5531_v48, %v4888_v59  ;;  %v9647_v16 = vadd.f32 %v5532_v31, %v4889_v34  ;;  %v9651_v13 = vadd.f32 %v5539_v1, %v4894_v52  ;;  %v9655_v8 = vadd.f32 %v5540_v27, %v4895_v18 }
 0x6e3   :  { %v5535_v46 = vmax.f32 %v9643_v40, 0.0  ;;  %v5536_v11 = vmax.f32 %v9647_v16, 0.0  ;;  %v5543_v17 = vmax.f32 %v9651_v13, 0.0  ;;  %v5544_v59 = vmax.f32 %v9655_v8, 0.0  ;;  %v6294_v40 = vld [vmem:[%s9994_s26 + $0x78] sm:$0xff]  ;;  %v9872_v16 = vld [vmem:[%s9994_s26 + $0x70] sm:$0xff] }
 0x6e4   :  { %v6292_v13 = vld [vmem:[%s9994_s26 + $0x68] sm:$0xff]  ;;  %v6303_v8 = vld [vmem:[%s9994_s26 + $0xc0] sm:$0xff] }
 0x6e5   :  { %5547 = vst.msk [vmem:[#allocation3 + $0x1] sm:$0xff] %vm1548_vm1, %v5535_v46 }
 0x6e6   :  { %5548 = vst.msk [vmem:[#allocation3 + $0x9] sm:$0xf] %vm4807_vm5, %v5536_v11 }
 0x6e7   :  { %5667 = vst.msk [vmem:[#allocation3 + $0xf] sm:$0xff] %vm1548_vm1, %v5543_v17 }
 0x6e8   :  { %5668 = vst.msk [vmem:[#allocation3 + $0x17] sm:$0xf] %vm4807_vm5, %v5544_v59 }
 0x6ec   :  { %v5553_v24 = vld [vmem:[#allocation3 + $0x1] sm:$0xff] }
 0x6ed   :  { %v5549_v3 = vld [vmem:[#allocation3] sm:$0xff]  ;;  %6969 = vmatmul.msk.f32.vlgmr.msra.gmra.mxu2 %vm1548_vm1, %v5553_v24  ;;  %v5554_v34 = vld [vmem:[#allocation3 + $0x9] sm:$0xf] }
 0x6ee   :  { %6972 = vmatmul.msk.f32.vlgmr.msra.gmra.mxu3 %vm1548_vm1, %v5549_v3  ;;  %v5621_v50 = vld [vmem:[#allocation3 + $0x2] sm:$0xff]  ;;  %v5673_v52 = vld [vmem:[#allocation3 + $0xf] sm:$0xff]  ;;  %v5622_v45 = vld [vmem:[#allocation3 + $0xa] sm:$0xf] }
 0x6ef   :  { %6975 = vmatmul.msk.f32.vlgmr.msrb.gmra.mxu0 %vm1548_vm1, %v5621_v50  ;;  %5867 = vst.msk [vmem:[#allocation3] sm:$0xff] %vm1548_vm1, %v7048_v63  ;;  %v5550_v18 = vld [vmem:[#allocation3 + $0x8] sm:$0xf]  ;;  %6978 = vmatmul.msk.f32.vlgmr.msra.gmra.mxu1 %vm1548_vm1, %v5673_v52  ;;  %v5674_v44 = vld [vmem:[#allocation3 + $0x17] sm:$0xf]  ;;  %v5669_v55 = vld [vmem:[#allocation3 + $0xe] sm:$0xff] }
 0x6f0   :  { %5868 = vst.msk [vmem:[#allocation3 + $0x8] sm:$0x3f] %vm4897_vm7, %v7048_v63  ;;  %v5741_v4 = vld [vmem:[#allocation3 + $0x10] sm:$0xff]  ;;  %v5742_v15 = vld [vmem:[#allocation3 + $0x18] sm:$0xf] }
 0x6f1   :  { %5987 = vst.msk [vmem:[#allocation3 + $0xe] sm:$0xff] %vm1548_vm1, %v7048_v63  ;;  %v5670_v28 = vld [vmem:[#allocation3 + $0x16] sm:$0xf] }
 0x6f2   :  { %5988 = vst.msk [vmem:[#allocation3 + $0x16] sm:$0x3f] %vm4897_vm7, %v7048_v63 }
 0x6f5   :  { %6970 = vmatmul.msk.f32.gmra.mxu2 %vm1548_vm1, %v5554_v34 }
 0x6f6   :  { %6973 = vmatmul.msk.f32.gmra.mxu3 %vm1548_vm1, %v5550_v18 }
 0x6f7   :  { %6976 = vmatmul.msk.f32.gmra.mxu0 %vm1548_vm1, %v5622_v45  ;;  %6979 = vmatmul.msk.f32.gmra.mxu1 %vm1548_vm1, %v5674_v44 }
 0x6fd   :  { %6981 = vmatmul.msk.f32.vlgmr.msrb.gmra.mxu2 %vm1548_vm1, %v5669_v55 }
 0x6fe   :  { %6984 = vmatmul.msk.f32.vlgmr.msrb.gmra.mxu3 %vm1548_vm1, %v5741_v4 }
 0x705   :  { %6982 = vmatmul.msk.f32.gmra.mxu2 %vm1548_vm1, %v5670_v28 }
 0x706   :  { %6985 = vmatmul.msk.f32.gmra.mxu3 %vm1548_vm1, %v5742_v15 }
 0x76c   :  { %v5651_v39 = vpop.f32.mrf.mxu0  ;;  %v5703_v23 = vpop.f32.mrf.mxu1 }
 0x770   :  { %v5583_v54 = vpop.f32.mrf.mxu2 }
 0x771   :  { %v5615_v60 = vpop.f32.mrf.mxu3 }
 0x772   :  { %v5616_v63 = vadd.f32 %v5615_v60, %v5583_v54 }
 0x774   :  { %v5654_v36 = vpop.f32.mrf.mxu0  ;;  %v5657_v22 = vadd.f32 %v5651_v39, %v5616_v63  ;;  %v5706_v12 = vpop.f32.mrf.mxu1 }
 0x776   :  { %v9698_v9 = vadd.f32 %v7025_v5, %v5657_v22 }
 0x778   :  { %v5586_v56 = vpop.f32.mrf.mxu2  ;;  %v5785_v19 = vsel %vm1548_vm1, %v9698_v9, 0.0 }
 0x779   :  { %v5618_v32 = vpop.f32.mrf.mxu3 }
 0x77a   :  { %v5619_v47 = vadd.f32 %v5618_v32, %v5586_v56 }
 0x77c   :  { %v5658_v37 = vadd.f32 %v5654_v36, %v5619_v47 }
 0x77e   :  { %v9696_v29 = vadd.f32 %v7025_v5, %v5658_v37 }
 0x780   :  { %v5735_v42 = vpop.f32.mrf.mxu2  ;;  %v5786_v62 = vsel %vm4807_vm5, %v9696_v29, 0.0 }
 0x781   :  { %v5771_v10 = vpop.f32.mrf.mxu3  ;;  %v5736_v43 = vadd.f32 %v5735_v42, %v5703_v23  ;;  %v5787_v26 = vadd.f32 %v5786_v62, %v5785_v19 }
 0x783   :  { %v5777_v0 = vadd.f32 %v5771_v10, %v5736_v43  ;;  %v5788_v2 = vrot.slane %v5787_v26, 4 }
 0x785   :  { %v9707_v41 = vadd.f32 %v7026_v49, %v5777_v0  ;;  %v5789_v6 = vadd.f32 %v5788_v2, %v5787_v26  ;;  %v5874_v2 = vld [vmem:[%s9987_s20 + $0x8] sm:$0x3] }
 0x786   :  { %6989 = vmatpush.msk.msrb.mxu1 %vm3037_vm3, %v5874_v2 }
 0x787   :  { %v5794_v21 = vsel %vm1548_vm1, %v9707_v41, 0.0  ;;  %v5790_v57 = vrot.slane %v5789_v6, 2 }
 0x788   :  { %v5738_v35 = vpop.f32.mrf.mxu2 }
 0x789   :  { %v5739_v7 = vadd.f32 %v5738_v35, %v5706_v12  ;;  %v5774_v51 = vpop.f32.mrf.mxu3  ;;  %v5791_v14 = vadd.f32 %v5790_v57, %v5789_v6  ;;  %v5878_v12 = vld [vmem:[%s9987_s20 + $0x12] sm:$0x3]  ;;  %v5946_v35 = vld [vmem:[%s9987_s20 + $0x1c] sm:$0x3]  ;;  %v5945_v6 = vld [vmem:[%s9987_s20 + $0x14] sm:$0xff] }
 0x78a   :  { %6986 = vmatpush.msk.msra.mxu0 %vm3037_vm3, %v5878_v12  ;;  %6992 = vmatpush.msk.msra.mxu2 %vm3037_vm3, %v5946_v35 }
 0x78b   :  { %v5778_v25 = vadd.f32 %v5774_v51, %v5739_v7  ;;  %v5792_v48 = vrot.slane %v5791_v14, 1  ;;  %v5998_v7 = vld [vmem:[%s9987_s20 + $0x12] sm:$0x3]  ;;  %v5877_v51 = vld [vmem:[%s9987_s20 + $0xa] sm:$0xff] }
 0x78c   :  { %6995 = vmatpush.msk.msra.mxu3 %vm3037_vm3, %v5998_v7  ;;  %5903 = vmatpush.msra.mxu0 %v5877_v51 }
 0x78d   :  { %v9709_v33 = vadd.f32 %v7026_v49, %v5778_v25  ;;  %v5793_v27 = vadd.f32 %v5792_v48, %v5791_v14  ;;  %v5873_v25 = vld [vmem:[%s9987_s20] sm:$0xff]  ;;  %5971 = vmatpush.msra.mxu2 %v5945_v6  ;;  %v6066_v48 = vld [vmem:[%s9987_s20 + $0x1c] sm:$0x3] }
 0x78e   :  { %5935 = vmatpush.msrb.mxu1 %v5873_v25  ;;  %6023 = vmatpush.msra.mxu3 %v5877_v51  ;;  %v5833_v14 = vld [vmem:[%s9988_s18] sm:$0x1] }
 0x78f   :  { %v5795_v20 = vsel %vm4807_vm5, %v9709_v33, 0.0 }
 0x790   :  { %v5796_v53 = vadd.f32 %v5795_v20, %v5794_v21  ;;  %7001 = vmatpush.msk.msra.mxu1 %vm3037_vm3, %v6066_v48 }
 0x792   :  { %v5797_v30 = vrot.slane %v5796_v53, 4  ;;  %6091 = vmatpush.msra.mxu1 %v5945_v6 }
 0x794   :  { %v5798_v61 = vadd.f32 %v5797_v30, %v5796_v53 }
 0x796   :  { %v5799_v38 = vrot.slane %v5798_v61, 2 }
 0x798   :  { %v5800_v31 = vadd.f32 %v5799_v38, %v5798_v61  ;;  %v5994_v38 = vld [vmem:[%s9987_s20 + $0x8] sm:$0x3] }
 0x799   :  { %6998 = vmatpush.msk.msrb.mxu0 %vm3037_vm3, %v5994_v38 }
 0x79a   :  { %v5801_v1 = vrot.slane %v5800_v31, 1 }
 0x79b   :  { %6055 = vmatpush.msrb.mxu0 %v5873_v25 }
 0x79c   :  { %v5802_v24 = vadd.f32 %v5801_v1, %v5800_v31 }
 0x79e   :  { %v5803_v3 = vadd.f32 %v5802_v24, %v5793_v27  ;;  %v5846_v27 = vld [vmem:[%s9989_s19] sm:$0x1] }
 0x7a0   :  { %v9716_v50 = vmul.f32 %v5803_v3, %v9339_v58 }
 0x7a2   :  { %v5805_v34 = vsub.f32 %v9698_v9, %v9716_v50  ;;  %v5806_v52 = vsub.f32 %v9696_v29, %v9716_v50  ;;  %v5818_v18 = vsub.f32 %v9707_v41, %v9716_v50  ;;  %v5819_v45 = vsub.f32 %v9709_v33, %v9716_v50 }
 0x7a4   :  { %v5807_v44 = vmul.f32 %v5805_v34, %v5805_v34  ;;  %v5808_v55 = vmul.f32 %v5806_v52, %v5806_v52  ;;  %v5820_v4 = vmul.f32 %v5818_v18, %v5818_v18  ;;  %v5821_v28 = vmul.f32 %v5819_v45, %v5819_v45 }
 0x7a6   :  { %v5809_v15 = vsel %vm1548_vm1, %v5807_v44, 0.0  ;;  %v5810_v39 = vsel %vm4807_vm5, %v5808_v55, 0.0  ;;  %v5822_v54 = vsel %vm1548_vm1, %v5820_v4, 0.0  ;;  %v5823_v60 = vsel %vm4807_vm5, %v5821_v28, 0.0 }
 0x7a7   :  { %v5811_v63 = vadd.f32 %v5810_v39, %v5809_v15  ;;  %v5824_v56 = vadd.f32 %v5823_v60, %v5822_v54 }
 0x7a9   :  { %v5812_v32 = vrot.slane %v5811_v63, 4  ;;  %v5825_v47 = vrot.slane %v5824_v56, 4 }
 0x7ab   :  { %v5813_v36 = vadd.f32 %v5812_v32, %v5811_v63  ;;  %v5826_v22 = vadd.f32 %v5825_v47, %v5824_v56 }
 0x7ad   :  { %v5814_v5 = vrot.slane %v5813_v36, 2  ;;  %v5827_v37 = vrot.slane %v5826_v22, 2 }
 0x7af   :  { %v5815_v23 = vadd.f32 %v5814_v5, %v5813_v36  ;;  %v5828_v42 = vadd.f32 %v5827_v37, %v5826_v22 }
 0x7b1   :  { %v5816_v10 = vrot.slane %v5815_v23, 1  ;;  %v5829_v62 = vrot.slane %v5828_v42, 1 }
 0x7b3   :  { %v5817_v19 = vadd.f32 %v5816_v10, %v5815_v23  ;;  %v5830_v43 = vadd.f32 %v5829_v62, %v5828_v42 }
 0x7b5   :  { %v5831_v26 = vadd.f32 %v5830_v43, %v5817_v19 }
 0x7b7   :  { %v5832_v0 = vmul.f32 %v5831_v26, %v9339_v58 }
 0x7b9   :  { %v5834_v49 = vadd.f32 1e-05, %v5832_v0 }
 0x7bb   :  { %7037 = vrsqrt.f32 %v5834_v49  ;;  %vm5841_vm4 = vweird.f32 %v5834_v49 }
 0x7c1   :  { %v7038_v21 = vpop.eup %7037 }
 0x7c2   :  { %v5836_v20 = vmul.f32 %v7038_v21, %v5834_v49  ;;  %vm5842_vm2 = vweird.f32 %v7038_v21  ;;  %v7027_v49 = vld [vmem:[%s9990_s21] ss:$0 sm:$0xff] }
 0x7c3   :  { %vm5843_vm6 = vmor %vm5841_vm4, %vm5842_vm2 }
 0x7c4   :  { %v5837_v57 = vmul.f32 %v7038_v21, %v5836_v20 }
 0x7c6   :  { %v5838_v53 = vmul.f32 0.5, %v5837_v57 }
 0x7c8   :  { %v5839_v30 = vsub.f32 1.5, %v5838_v53 }
 0x7ca   :  { %v5840_v61 = vmul.f32 %v7038_v21, %v5839_v30 }
 0x7cc   :  { %v5844_v31 = vsel %vm5843_vm6, %v7038_v21, %v5840_v61  ;;  %v7028_v61 = vld [vmem:[%s9990_s21] ss:$0 sm:$0xff] }
 0x7cd   :  { %v5845_v1 = vmul.f32 %v5844_v31, %v5833_v14 }
 0x7cf   :  { %v5847_v24 = vmul.f32 %v5845_v1, %v9716_v50  ;;  %v5850_v3 = vperm.slane %v5845_v1, 0 }
 0x7d1   :  { %v5848_v34 = vsub.f32 %v5846_v27, %v5847_v24  ;;  %v5852_v52 = vmul.f32 %v5850_v3, %v9698_v9  ;;  %v5853_v18 = vmul.f32 %v5850_v3, %v9696_v29  ;;  %v5861_v44 = vmul.f32 %v5850_v3, %v9707_v41 }
 0x7d2   :  { %v5862_v55 = vmul.f32 %v5850_v3, %v9709_v33 }
 0x7d3   :  { %v5855_v45 = vperm.slane %v5848_v34, 0 }
 0x7d5   :  { %v5857_v4 = vadd.f32 %v5855_v45, %v5852_v52  ;;  %v5858_v28 = vadd.f32 %v5855_v45, %v5853_v18  ;;  %v5863_v15 = vadd.f32 %v5861_v44, %v5855_v45  ;;  %v5864_v39 = vadd.f32 %v5862_v55, %v5855_v45 }
 0x7d7   :  { %v5859_v54 = vmax.f32 %v5857_v4, 0.0  ;;  %v5860_v60 = vmax.f32 %v5858_v28, 0.0  ;;  %v5865_v63 = vmax.f32 %v5863_v15, 0.0  ;;  %v5866_v56 = vmax.f32 %v5864_v39, 0.0 }
 0x7d9   :  { %5869 = vst.msk [vmem:[#allocation3 + $0x1] sm:$0xff] %vm1548_vm1, %v5859_v54 }
 0x7da   :  { %5870 = vst.msk [vmem:[#allocation3 + $0x9] sm:$0xf] %vm4807_vm5, %v5860_v60 }
 0x7db   :  { %5989 = vst.msk [vmem:[#allocation3 + $0xf] sm:$0xff] %vm1548_vm1, %v5865_v63 }
 0x7dc   :  { %5990 = vst.msk [vmem:[#allocation3 + $0x17] sm:$0xf] %vm4807_vm5, %v5866_v56 }
 0x7e0   :  { %v5875_v29 = vld [vmem:[#allocation3 + $0x1] sm:$0xff] }
 0x7e1   :  { %v5871_v9 = vld [vmem:[#allocation3] sm:$0xff]  ;;  %6987 = vmatmul.msk.f32.vlgmr.msra.gmra.mxu0 %vm1548_vm1, %v5875_v29  ;;  %v5876_v50 = vld [vmem:[#allocation3 + $0x9] sm:$0xf] }
 0x7e2   :  { %6990 = vmatmul.msk.f32.vlgmr.msrb.gmra.mxu1 %vm1548_vm1, %v5871_v9  ;;  %v5943_v41 = vld [vmem:[#allocation3 + $0x2] sm:$0xff]  ;;  %v5995_v33 = vld [vmem:[#allocation3 + $0xf] sm:$0xff]  ;;  %v5944_v47 = vld [vmem:[#allocation3 + $0xa] sm:$0xf]  ;;  %6312 = vmatpush.msra.mxu0 %v6294_v40 }
 0x7e3   :  { %6993 = vmatmul.msk.f32.vlgmr.msra.gmra.mxu2 %vm1548_vm1, %v5943_v41  ;;  %6996 = vmatmul.msk.f32.vlgmr.msra.gmra.mxu3 %vm1548_vm1, %v5995_v33  ;;  %v5872_v32 = vld [vmem:[#allocation3 + $0x8] sm:$0xf]  ;;  %v5996_v36 = vld [vmem:[#allocation3 + $0x17] sm:$0xf]  ;;  %v5991_v22 = vld [vmem:[#allocation3 + $0xe] sm:$0xff] }
 0x7e4   :  { %v6063_v5 = vld [vmem:[#allocation3 + $0x10] sm:$0xff]  ;;  %v6064_v23 = vld [vmem:[#allocation3 + $0x18] sm:$0xf]  ;;  %6313 = vmatpush.msra.mxu0 %v9872_v16  ;;  %6339 = vmatpush.msrb.mxu1 %v6303_v8 }
 0x7e5   :  { %v5992_v37 = vld [vmem:[#allocation3 + $0x16] sm:$0xf] }
 0x7e6   :  { %6314 = vmatpush.msra.mxu0 %v6292_v13 }
 0x7e9   :  { %6988 = vmatmul.msk.f32.gmra.mxu0 %vm1548_vm1, %v5876_v50 }
 0x7ea   :  { %6991 = vmatmul.msk.f32.gmra.mxu1 %vm1548_vm1, %v5872_v32 }
 0x7eb   :  { %6994 = vmatmul.msk.f32.gmra.mxu2 %vm1548_vm1, %v5944_v47  ;;  %6997 = vmatmul.msk.f32.gmra.mxu3 %vm1548_vm1, %v5996_v36 }
 0x7f1   :  { %6999 = vmatmul.msk.f32.vlgmr.msrb.gmra.mxu0 %vm1548_vm1, %v5991_v22 }
 0x7f2   :  { %7002 = vmatmul.msk.f32.vlgmr.msra.gmra.mxu1 %vm1548_vm1, %v6063_v5 }
 0x7f9   :  { %7000 = vmatmul.msk.f32.gmra.mxu0 %vm1548_vm1, %v5992_v37 }
 0x7fa   :  { %7003 = vmatmul.msk.f32.gmra.mxu1 %vm1548_vm1, %v6064_v23 }
 0x85e   :  { %v5905_v42 = vpop.f32.mrf.mxu0 }
 0x85f   :  { %v5937_v10 = vpop.f32.mrf.mxu1 }
 0x860   :  { %v5938_v26 = vadd.f32 %v5937_v10, %v5905_v42 }
 0x866   :  { %v5973_v62 = vpop.f32.mrf.mxu2  ;;  %v5908_v19 = vpop.f32.mrf.mxu0 }
 0x867   :  { %v5940_v43 = vpop.f32.mrf.mxu1  ;;  %v5979_v0 = vadd.f32 %v5973_v62, %v5938_v26  ;;  %v6025_v12 = vpop.f32.mrf.mxu3 }
 0x868   :  { %v5941_v2 = vadd.f32 %v5940_v43, %v5908_v19 }
 0x869   :  { %v9794_v7 = vadd.f32 %v7027_v49, %v5979_v0 }
 0x86b   :  { %v6107_v57 = vsel %vm1548_vm1, %v9794_v7, 0.0 }
 0x86e   :  { %v5976_v35 = vpop.f32.mrf.mxu2  ;;  %v6057_v25 = vpop.f32.mrf.mxu0 }
 0x86f   :  { %v5980_v51 = vadd.f32 %v5976_v35, %v5941_v2  ;;  %v6093_v6 = vpop.f32.mrf.mxu1  ;;  %v6058_v20 = vadd.f32 %v6057_v25, %v6025_v12  ;;  %v6028_v48 = vpop.f32.mrf.mxu3 }
 0x871   :  { %v9796_v21 = vadd.f32 %v7027_v49, %v5980_v51  ;;  %v6099_v14 = vadd.f32 %v6093_v6, %v6058_v20 }
 0x873   :  { %v6108_v53 = vsel %vm4807_vm5, %v9796_v21, 0.0  ;;  %v9805_v24 = vadd.f32 %v7028_v61, %v6099_v14 }
 0x874   :  { %v6109_v30 = vadd.f32 %v6108_v53, %v6107_v57 }
 0x875   :  { %v6116_v18 = vsel %vm1548_vm1, %v9805_v24, 0.0 }
 0x876   :  { %v6110_v38 = vrot.slane %v6109_v30, 4  ;;  %v6060_v31 = vpop.f32.mrf.mxu0 }
 0x877   :  { %v6061_v1 = vadd.f32 %v6060_v31, %v6028_v48  ;;  %v6096_v27 = vpop.f32.mrf.mxu1  ;;  %v6221_v48 = vld [vmem:[%s9991_s24 + $0x18] sm:$0x3]  ;;  %v6218_v31 = vld [vmem:[%s9991_s24] sm:$0xff] }
 0x878   :  { %v6111_v34 = vadd.f32 %v6110_v38, %v6109_v30  ;;  %v6220_v38 = vld [vmem:[%s9991_s24 + $0x10] sm:$0x3]  ;;  %7006 = vmatpush.msk.msrb.mxu3 %vm3037_vm3, %v6221_v48  ;;  %v6287_v48 = vld [vmem:[%s9994_s26 + $0x40] sm:$0xff] }
 0x879   :  { %v6100_v3 = vadd.f32 %v6096_v27, %v6061_v1  ;;  %7004 = vmatpush.msk.msrb.mxu2 %vm3037_vm3, %v6220_v38 }
 0x87a   :  { %v6112_v44 = vrot.slane %v6111_v34, 2 }
 0x87b   :  { %v9807_v52 = vadd.f32 %v7028_v61, %v6100_v3  ;;  %6246 = vmatpush.msrb.mxu2 %v6218_v31 }
 0x87c   :  { %v6113_v28 = vadd.f32 %v6112_v44, %v6111_v34 }
 0x87d   :  { %v6117_v45 = vsel %vm4807_vm5, %v9807_v52, 0.0 }
 0x87e   :  { %v6118_v55 = vadd.f32 %v6117_v45, %v6116_v18  ;;  %v6114_v54 = vrot.slane %v6113_v28, 1  ;;  %v6155_v45 = vld [vmem:[%s9992_s22] sm:$0x1] }
 0x880   :  { %v6119_v4 = vrot.slane %v6118_v55, 4  ;;  %v6115_v56 = vadd.f32 %v6114_v54, %v6113_v28  ;;  %v6168_v28 = vld [vmem:[%s9993_s23] sm:$0x1] }
 0x882   :  { %v6120_v15 = vadd.f32 %v6119_v4, %v6118_v55 }
 0x884   :  { %v6121_v39 = vrot.slane %v6120_v15, 2 }
 0x886   :  { %v6122_v60 = vadd.f32 %v6121_v39, %v6120_v15 }
 0x888   :  { %v6123_v63 = vrot.slane %v6122_v60, 1 }
 0x88a   :  { %v6124_v29 = vadd.f32 %v6123_v63, %v6122_v60 }
 0x88c   :  { %v6125_v9 = vadd.f32 %v6124_v29, %v6115_v56 }
 0x88e   :  { %v6126_v41 = vmul.f32 %v6125_v9, %v9339_v58 }
 0x890   :  { %v6127_v33 = vsub.f32 %v9794_v7, %v6126_v41  ;;  %v6128_v50 = vsub.f32 %v9796_v21, %v6126_v41  ;;  %v6140_v32 = vsub.f32 %v9805_v24, %v6126_v41  ;;  %v6141_v47 = vsub.f32 %v9807_v52, %v6126_v41 }
 0x892   :  { %v6129_v36 = vmul.f32 %v6127_v33, %v6127_v33  ;;  %v6130_v22 = vmul.f32 %v6128_v50, %v6128_v50  ;;  %v6142_v5 = vmul.f32 %v6140_v32, %v6140_v32  ;;  %v6143_v37 = vmul.f32 %v6141_v47, %v6141_v47 }
 0x894   :  { %v6131_v23 = vsel %vm1548_vm1, %v6129_v36, 0.0  ;;  %v6132_v42 = vsel %vm4807_vm5, %v6130_v22, 0.0  ;;  %v6144_v10 = vsel %vm1548_vm1, %v6142_v5, 0.0  ;;  %v6145_v62 = vsel %vm4807_vm5, %v6143_v37, 0.0  ;;  %v6369_v36 = vld [vmem:[%s9991_s24 + $0x10] sm:$0x3] }
 0x895   :  { %v6133_v19 = vadd.f32 %v6132_v42, %v6131_v23  ;;  %v6146_v43 = vadd.f32 %v6145_v62, %v6144_v10  ;;  %7009 = vmatpush.msk.msra.mxu2 %vm3037_vm3, %v6369_v36  ;;  %v6279_v36 = vld [vmem:[%s9994_s26] sm:$0xff] }
 0x897   :  { %v6134_v26 = vrot.slane %v6133_v19, 4  ;;  %v6147_v0 = vrot.slane %v6146_v43, 4  ;;  %6395 = vmatpush.msra.mxu2 %v6218_v31 }
 0x899   :  { %v6135_v49 = vadd.f32 %v6134_v26, %v6133_v19  ;;  %v6148_v12 = vadd.f32 %v6147_v0, %v6146_v43  ;;  %v6290_v26 = vld [vmem:[%s9994_s26 + $0x58] sm:$0xff]  ;;  %v6300_v0 = vld [vmem:[%s9994_s26 + $0xa8] sm:$0xff] }
 0x89b   :  { %v6136_v2 = vrot.slane %v6135_v49, 2  ;;  %v6149_v35 = vrot.slane %v6148_v12, 2 }
 0x89d   :  { %v6137_v51 = vadd.f32 %v6136_v2, %v6135_v49  ;;  %v6150_v25 = vadd.f32 %v6149_v35, %v6148_v12 }
 0x89f   :  { %v6138_v6 = vrot.slane %v6137_v51, 1  ;;  %v6151_v20 = vrot.slane %v6150_v25, 1 }
 0x8a1   :  { %v6139_v57 = vadd.f32 %v6138_v6, %v6137_v51  ;;  %v6152_v53 = vadd.f32 %v6151_v20, %v6150_v25  ;;  %v6289_v6 = vld [vmem:[%s9994_s26 + $0x50] sm:$0xff] }
 0x8a3   :  { %v6153_v30 = vadd.f32 %v6152_v53, %v6139_v57 }
 0x8a5   :  { %v6154_v14 = vmul.f32 %v6153_v30, %v9339_v58  ;;  %v6219_v58 = vld [vmem:[%s9991_s24 + $0x8] sm:$0xff] }
 0x8a6   :  { %6266 = vmatpush.msrb.mxu3 %v6219_v58  ;;  %v6288_v30 = vld [vmem:[%s9994_s26 + $0x48] sm:$0xff] }
 0x8a7   :  { %v6156_v61 = vadd.f32 1e-05, %v6154_v14 }
 0x8a9   :  { %7039 = vrsqrt.f32 %v6156_v61  ;;  %vm6163_vm8 = vweird.f32 %v6156_v61 }
 0x8af   :  { %v7040_v1 = vpop.eup %7039 }
 0x8b0   :  { %v6158_v27 = vmul.f32 %v7040_v1, %v6156_v61  ;;  %vm6164_vm7 = vweird.f32 %v7040_v1 }
 0x8b1   :  { %vm6165_vm9 = vmor %vm6163_vm8, %vm6164_vm7 }
 0x8b2   :  { %v6159_v3 = vmul.f32 %v7040_v1, %v6158_v27 }
 0x8b4   :  { %v6160_v34 = vmul.f32 0.5, %v6159_v3 }
 0x8b6   :  { %v6161_v18 = vsub.f32 1.5, %v6160_v34 }
 0x8b8   :  { %v6162_v44 = vmul.f32 %v7040_v1, %v6161_v18  ;;  %v6285_v18 = vld [vmem:[%s9994_s26 + $0x30] sm:$0xff] }
 0x8ba   :  { %v6166_v55 = vsel %vm6165_vm9, %v7040_v1, %v6162_v44  ;;  %v6286_v1 = vld [vmem:[%s9994_s26 + $0x38] sm:$0xff] }
 0x8bb   :  { %v6167_v4 = vmul.f32 %v6166_v55, %v6155_v45  ;;  %v6284_v55 = vld [vmem:[%s9994_s26 + $0x28] sm:$0xff] }
 0x8bd   :  { %v6169_v15 = vmul.f32 %v6167_v4, %v6126_v41  ;;  %v6172_v39 = vperm.slane %v6167_v4, 0  ;;  %v6370_v41 = vld [vmem:[%s9991_s24 + $0x18] sm:$0x3] }
 0x8be   :  { %7011 = vmatpush.msk.msra.mxu3 %vm3037_vm3, %v6370_v41  ;;  %vm6201_vm3 = vcmask 74752   ;;  %v6295_v41 = vld [vmem:[%s9994_s26 + $0x80] sm:$0xff] }
 0x8bf   :  { %v6170_v54 = vsub.f32 %v6168_v28, %v6169_v15  ;;  %v6174_v60 = vmul.f32 %v6172_v39, %v9794_v7  ;;  %v6175_v63 = vmul.f32 %v6172_v39, %v9796_v21  ;;  %v6185_v29 = vmul.f32 %v6172_v39, %v9805_v24 }
 0x8c0   :  { %v6186_v9 = vmul.f32 %v6172_v39, %v9807_v52  ;;  %v7049_v7 = vmov 10.0   ;;  %6415 = vmatpush.msra.mxu3 %v6219_v58 }
 0x8c1   :  { %v6177_v56 = vperm.slane %v6170_v54, 0  ;;  %7041 = vrcp.f32 %v7049_v7  ;;  %v33_v7 = vstv %s9995_s27 }
 0x8c2   :  { %34 = vst [vmem:[#allocation5] sm:$0x1] %v33_v7 }
 0x8c3   :  { %v6179_v33 = vadd.f32 %v6177_v56, %v6174_v60  ;;  %v6180_v50 = vadd.f32 %v6177_v56, %v6175_v63  ;;  %v6187_v32 = vadd.f32 %v6185_v29, %v6177_v56  ;;  %v6188_v47 = vadd.f32 %v6186_v9, %v6177_v56  ;;  %v6283_v63 = vld [vmem:[%s9994_s26 + $0x20] sm:$0xff]  ;;  %v6282_v29 = vld [vmem:[%s9994_s26 + $0x18] sm:$0xff] }
 0x8c4   :  { %v6299_v56 = vld [vmem:[%s9994_s26 + $0xa0] sm:$0xff]  ;;  %v6298_v9 = vld [vmem:[%s9994_s26 + $0x98] sm:$0xff] }
 0x8c5   :  { %v6181_v21 = vadd.f32 %v6179_v33, %v5535_v46  ;;  %v6182_v24 = vadd.f32 %v6180_v50, %v5536_v11  ;;  %v6189_v52 = vadd.f32 %v6187_v32, %v5543_v17  ;;  %v6190_v22 = vadd.f32 %v6188_v47, %v5544_v59  ;;  %v6302_v11 = vld [vmem:[%s9994_s26 + $0xb8] sm:$0xff]  ;;  %v6291_v17 = vld [vmem:[%s9994_s26 + $0x60] sm:$0xff]  ;;  %v6301_v59 = vld [vmem:[%s9994_s26 + $0xb0] sm:$0xff] }
 0x8c6   :  { %6340 = vmatpush.msrb.mxu1 %v6302_v11  ;;  %6315 = vmatpush.msra.mxu0 %v6291_v17  ;;  %v6281_v33 = vld [vmem:[%s9994_s26 + $0x10] sm:$0xff]  ;;  %v6280_v32 = vld [vmem:[%s9994_s26 + $0x8] sm:$0xff] }
 0x8c7   :  { %v6183_v5 = vmax.f32 %v6181_v21, 0.0  ;;  %v6184_v37 = vmax.f32 %v6182_v24, 0.0  ;;  %v6191_v23 = vmax.f32 %v6189_v52, 0.0  ;;  %v6192_v42 = vmax.f32 %v6190_v22, 0.0  ;;  %v7042_v10 = vpop.eup %7041  ;;  %v6297_v50 = vld [vmem:[%s9994_s26 + $0x90] sm:$0xff]  ;;  %v6296_v47 = vld [vmem:[%s9994_s26 + $0x88] sm:$0xff] }
 0x8c8   :  { %v6211_v46 = vmul.f32 10.0, %v7042_v10  ;;  %6341 = vmatpush.msrb.mxu1 %v6301_v59  ;;  %6316 = vmatpush.msra.mxu0 %v6290_v26  ;;  %v6197_v52 = vld [vmem:[%s9996_s25] sm:$0x3] }
 0x8c9   :  { %6193 = vst.msk [vmem:[#allocation4] sm:$0xff] %vm1548_vm1, %v6183_v5 }
 0x8ca   :  { %6194 = vst.msk [vmem:[#allocation4 + $0x8] sm:$0xf] %vm4807_vm5, %v6184_v37  ;;  %v6212_v12 = vsub.f32 1.0, %v6211_v46  ;;  %6342 = vmatpush.msrb.mxu1 %v6300_v0  ;;  %6317 = vmatpush.msra.mxu0 %v6289_v6 }
 0x8cb   :  { %6195 = vst.msk [vmem:[#allocation4 + $0xc] sm:$0xff] %vm1548_vm1, %v6191_v23 }
 0x8cc   :  { %6196 = vst.msk [vmem:[#allocation4 + $0x14] sm:$0xf] %vm4807_vm5, %v6192_v42  ;;  %v6213_v14 = vmul.f32 %v7042_v10, %v6212_v12  ;;  %6318 = vmatpush.msra.mxu0 %v6288_v30  ;;  %vm6215_vm5 = vweird.f32 %v7042_v10  ;;  %6343 = vmatpush.msrb.mxu1 %v6299_v56  ;;  %v6452_v12 = vld [vmem:[#allocation5] sm:$0x1] }
 0x8ce   :  { %v6214_v27 = vadd.f32 %v7042_v10, %v6213_v14  ;;  %6319 = vmatpush.msra.mxu0 %v6287_v48  ;;  %6344 = vmatpush.msrb.mxu1 %v6298_v9 }
 0x8d0   :  { %v6198_v62 = vld [vmem:[#allocation4] sm:$0xff]  ;;  %6320 = vmatpush.msra.mxu0 %v6286_v1  ;;  %v6216_v4 = vsel %vm6215_vm5, %v7042_v10, %v6214_v27  ;;  %6345 = vmatpush.msrb.mxu1 %v6297_v50 }
 0x8d1   :  { %v6199_v19 = vld [vmem:[#allocation4 + $0x8] sm:$0x3]  ;;  %v6200_v43 = vsel %vm1548_vm1, %v6198_v62, 0.0 }
 0x8d2   :  { %v6202_v49 = vsel %vm6201_vm3, %v6199_v19, 0.0  ;;  %v6355_v2 = vld [vmem:[#allocation4 + $0xc] sm:$0xff]  ;;  %6321 = vmatpush.msra.mxu0 %v6285_v18  ;;  %6346 = vmatpush.msrb.mxu1 %v6296_v47  ;;  %v6304_v19 = vld [vmem:[#allocation5] sm:$0x1] }
 0x8d3   :  { %v6203_v35 = vadd.f32 %v6202_v49, %v6200_v43  ;;  %v6356_v51 = vld [vmem:[#allocation4 + $0x14] sm:$0x3]  ;;  %v6357_v25 = vsel %vm1548_vm1, %v6355_v2, 0.0 }
 0x8d4   :  { %v6358_v20 = vsel %vm6201_vm3, %v6356_v51, 0.0  ;;  %6322 = vmatpush.msra.mxu0 %v6284_v55  ;;  %6347 = vmatpush.msrb.mxu1 %v6295_v41 }
 0x8d5   :  { %v6204_v57 = vrot.slane %v6203_v35, 4  ;;  %v6359_v53 = vadd.f32 %v6358_v20, %v6357_v25 }
 0x8d6   :  { %6323 = vmatpush.msra.mxu0 %v6283_v63 }
 0x8d7   :  { %v6205_v61 = vadd.f32 %v6204_v57, %v6203_v35  ;;  %v6360_v38 = vrot.slane %v6359_v53, 4 }
 0x8d8   :  { %6324 = vmatpush.msra.mxu0 %v6282_v29 }
 0x8d9   :  { %v6206_v31 = vrot.slane %v6205_v61, 2  ;;  %v6361_v58 = vadd.f32 %v6360_v38, %v6359_v53 }
 0x8da   :  { %6325 = vmatpush.msra.mxu0 %v6281_v33 }
 0x8db   :  { %v6207_v3 = vadd.f32 %v6206_v31, %v6205_v61  ;;  %v6362_v34 = vrot.slane %v6361_v58, 2 }
 0x8dc   :  { %6326 = vmatpush.msra.mxu0 %v6280_v32 }
 0x8dd   :  { %v6208_v45 = vrot.slane %v6207_v3, 1  ;;  %v6363_v44 = vadd.f32 %v6362_v34, %v6361_v58 }
 0x8de   :  { %6327 = vmatpush.msra.mxu0 %v6279_v36 }
 0x8df   :  { %v6209_v28 = vadd.f32 %v6208_v45, %v6207_v3  ;;  %v6364_v39 = vrot.slane %v6363_v44, 1 }
 0x8e1   :  { %v6217_v15 = vmul.f32 %v6216_v4, %v6209_v28  ;;  %v6365_v54 = vadd.f32 %v6364_v39, %v6363_v44 }
 0x8e3   :  { %7005 = vmatmul.msk.f32.vlgmr.msrb.gmra.mxu2 %vm1548_vm1, %v6217_v15  ;;  %7007 = vmatmul.msk.f32.vlgmr.msrb.gmra.mxu3 %vm1548_vm1, %v6217_v15  ;;  %v6366_v60 = vmul.f32 %v6365_v54, %v6216_v4 }
 0x8e4   :  { %6459 = vmatpush.msrb.mxu2 %v6294_v40  ;;  %6486 = vmatpush.msrb.mxu3 %v6303_v8 }
 0x8e6   :  { %6460 = vmatpush.msrb.mxu2 %v9872_v16  ;;  %6487 = vmatpush.msrb.mxu3 %v6302_v11  ;;  %v6354_v16 = vld [vmem:[%s9996_s25] sm:$0x3] }
 0x8e8   :  { %6461 = vmatpush.msrb.mxu2 %v6292_v13  ;;  %6488 = vmatpush.msrb.mxu3 %v6301_v59 }
 0x8ea   :  { %6462 = vmatpush.msrb.mxu2 %v6291_v17  ;;  %6489 = vmatpush.msrb.mxu3 %v6300_v0 }
 0x8eb   :  { %7010 = vmatmul.msk.f32.vlgmr.msra.gmra.mxu2 %vm1548_vm1, %v6366_v60  ;;  %7012 = vmatmul.msk.f32.vlgmr.msra.gmra.mxu3 %vm1548_vm1, %v6366_v60  ;;  %vm6274_vm1 = vcmask 1040384  }
 0x8ec   :  { %6463 = vmatpush.msrb.mxu2 %v6290_v26  ;;  %6490 = vmatpush.msrb.mxu3 %v6299_v56 }
 0x8ee   :  { %6464 = vmatpush.msrb.mxu2 %v6289_v6  ;;  %6491 = vmatpush.msrb.mxu3 %v6298_v9 }
 0x8f0   :  { %6465 = vmatpush.msrb.mxu2 %v6288_v30  ;;  %6492 = vmatpush.msrb.mxu3 %v6297_v50 }
 0x8f2   :  { %6466 = vmatpush.msrb.mxu2 %v6287_v48  ;;  %6493 = vmatpush.msrb.mxu3 %v6296_v47 }
 0x8f4   :  { %6467 = vmatpush.msrb.mxu2 %v6286_v1  ;;  %6494 = vmatpush.msrb.mxu3 %v6295_v41 }
 0x8f6   :  { %6468 = vmatpush.msrb.mxu2 %v6285_v18 }
 0x8f8   :  { %6469 = vmatpush.msrb.mxu2 %v6284_v55 }
 0x8fa   :  { %6470 = vmatpush.msrb.mxu2 %v6283_v63 }
 0x8fc   :  { %6471 = vmatpush.msrb.mxu2 %v6282_v29 }
 0x8fe   :  { %6472 = vmatpush.msrb.mxu2 %v6281_v33 }
 0x900   :  { %6473 = vmatpush.msrb.mxu2 %v6280_v32 }
 0x902   :  { %6474 = vmatpush.msrb.mxu2 %v6279_v36 }
 0x966   :  { %v6248_v21 = vpop.f32.mrf.mxu2  ;;  %v6268_v24 = vpop.f32.mrf.mxu3 }
 0x967   :  { %v6273_v22 = vrot.slane %v6268_v24, 7 }
 0x969   :  { %v6275_v5 = vsel %vm6274_vm1, %v6248_v21, %v6273_v22 }
 0x96a   :  { %v6277_v37 = vadd.f32 %v6275_v5, %v6197_v52 }
 0x96c   :  { %v6278_v23 = vmax.f32 %v6277_v37, 0.0 }
 0x96e   :  { %v6306_v42 = vperm.slane %v6278_v23, 0  ;;  %v6307_v10 = vperm.slane %v6278_v23, 1  ;;  %v6417_v40 = vpop.f32.mrf.mxu3  ;;  %v6397_v8 = vpop.f32.mrf.mxu2 }
 0x96f   :  { %v6422_v13 = vrot.slane %v6417_v40, 7 }
 0x970   :  { %6328 = vmatmul.f32.vlgmr.msra.gmra.mxu0 %v6306_v42  ;;  %7008 = vmatmul.msk.f32.vlgmr.msrb.gmra.mxu1 %vm6309_vm10, %v6307_v10 }
 0x971   :  { %v6423_v46 = vsel %vm6274_vm1, %v6397_v8, %v6422_v13 }
 0x972   :  { %v6425_v11 = vadd.f32 %v6423_v46, %v6354_v16 }
 0x974   :  { %v6426_v17 = vmax.f32 %v6425_v11, 0.0 }
 0x976   :  { %v6454_v59 = vperm.slane %v6426_v17, 0  ;;  %v6455_v62 = vperm.slane %v6426_v17, 1 }
 0x978   :  { %6475 = vmatmul.f32.vlgmr.msrb.gmra.mxu2 %v6454_v59  ;;  %7013 = vmatmul.msk.f32.vlgmr.msrb.gmra.mxu3 %vm6309_vm10, %v6455_v62 }
 0x9ed   :  { %v6329_v43 = vpop.f32.mrf.mxu0  ;;  %v6349_v0 = vpop.f32.mrf.mxu1 }
 0x9ee   :  { %v6330_v26 = vadd.f32 %v6329_v43, %v6304_v19 }
 0x9f0   :  { %v6350_v49 = vadd.f32 %v6349_v0, %v6330_v26 }
 0x9f2   :  { %6353 = vst.msk [vmem:[%s9997_s28] sm:$0x1] %vm6352_vm11, %v6350_v49 }
 0x9fb   :  { %v6476_v2 = vpop.f32.mrf.mxu2  ;;  %v6496_v51 = vpop.f32.mrf.mxu3 }
 0x9fc   :  { %v6477_v35 = vadd.f32 %v6476_v2, %v6452_v12 }
 0x9fe   :  { %v6497_v25 = vadd.f32 %v6496_v51, %v6477_v35 }
 0xa00   :  { %6499 = vst.msk [vmem:[%s9997_s28 + $0x1] sm:$0x1] %vm6352_vm11, %v6497_v25 }

</bundles_post_ra>
